<compile_context>
chip_gen: v7x
topology: tpu7x:2x2x1
jax: 0.10.0
libtpu: 0.0.40
codegen_flags: <defaults>
</compile_context>

<pallas_src>
import functools
import math

import jax
import jax.numpy as jnp
from jax import lax
from jax.experimental import pallas as pl
from jax.experimental.pallas import tpu as pltpu

CP = 128        # lane-padded channel width
W_PAD = 8       # W padded to one sublane tile -> metadata-only 2-D <-> 4-D reshapes
_BF16 = jnp.bfloat16


def _mxu_dot(a, b):
    # bf16 MXU inputs with f32 accumulation.
    return jnp.dot(a.astype(_BF16), b.astype(_BF16), preferred_element_type=jnp.float32)


# --------------------------- Pallas kernels (one image per grid step) --------

def _stem_kernel(p_ref, w_ref, o_ref, *, Hc, Wc_pad, pool_k, pool_s, Ho, Wo):
    # conv1 (3x3, stride 2, pad 1) as ONE matmul over im2col patches, then
    # max_pool2d(3, stride 2) via slices + maxes on the (1, Hc, Wc_pad, CP) view.
    conv = _mxu_dot(p_ref[...], w_ref[...])                    # (Hc*Wc_pad, CP)
    x4 = conv.reshape(1, Hc, Wc_pad, CP)
    cols = [jnp.max(x4[:, :, pool_s * wo:pool_s * wo + pool_k, :], axis=2, keepdims=True)
            for wo in range(Wo)]
    if Wo < W_PAD:
        cols.append(jnp.zeros((1, Hc, W_PAD - Wo, CP), jnp.float32))
    xw = jnp.concatenate(cols, axis=2)                         # (1, Hc, W_PAD, CP)
    rows = [jnp.max(xw[:, pool_s * ho:pool_s * ho + pool_k, :, :], axis=1, keepdims=True)
            for ho in range(Ho)]
    out4 = jnp.concatenate(rows, axis=1)                       # (1, Ho, W_PAD, CP)
    o_ref[...] = out4.reshape(Ho * W_PAD, CP)


def _dense_block_kernel(feat_ref, s1_ref, b1_ref, w1_ref, s2_ref, b2_ref, w2_ref,
                        o_ref, *, n_layers, H, Wv):
    # Whole DenseBlock fused: for each bottleneck layer
    #   BN1+ReLU -> 1x1 conv -> BN2+ReLU -> 3x3 conv(pad 1) -> add new-channel stripe.
    # The feature buffer stays resident (value) across layers; the 3x3 conv output
    # stripe is embedded in the (padded) weight columns so "concat" is feat + acc.
    feat = feat_ref[...]                                        # (H*W_PAD, CP) one image
    M = feat.shape[0]
    wvalid = (lax.broadcasted_iota(jnp.int32, (W_PAD, CP), 0) < Wv)
    wvalid = wvalid.astype(jnp.float32).reshape(1, 1, W_PAD, CP)
    zrow = jnp.zeros((1, 1, W_PAD, CP), jnp.float32)
    zcol = jnp.zeros((1, H, 1, CP), jnp.float32)
    for l in range(n_layers):
        h = jnp.maximum(feat * s1_ref[l] + b1_ref[l], 0.0)      # BN1 + ReLU (f32)
        inter = _mxu_dot(h, w1_ref[l])                          # 1x1 conv
        inter = jnp.maximum(inter * s2_ref[l] + b2_ref[l], 0.0)  # BN2 + ReLU
        # zero padded W columns so shifted taps see true conv zero-padding
        inter4 = inter.reshape(1, H, W_PAD, CP) * wvalid
        hext = jnp.concatenate([zrow, inter4, zrow], axis=1)    # (1, H+2, W_PAD, CP)
        acc = jnp.zeros((M, CP), jnp.float32)
        for di in range(3):
            hsl = hext[:, di:di + H, :, :]                      # H shift: outer-dim slice
            for dj in range(3):
                if dj == 0:                                     # W shift: sublane concat
                    tap = jnp.concatenate([zcol, hsl[:, :, :W_PAD - 1, :]], axis=2)
                elif dj == 2:
                    tap = jnp.concatenate([hsl[:, :, 1:, :], zcol], axis=2)
                else:
                    tap = hsl
                acc = acc + _mxu_dot(tap.reshape(M, CP), w2_ref[l * 9 + di * 3 + dj])
        feat = feat + acc                                       # concat == stripe add
    o_ref[...] = feat


def _transition_kernel(x_ref, s_ref, b_ref, w_ref, o_ref, *, H, Ho, Wo):
    # BN+ReLU -> 1x1 conv -> 2x2 avg pool (stride 2) via slices + VPU adds.
    h = jnp.maximum(x_ref[...] * s_ref[...] + b_ref[...], 0.0)
    c = _mxu_dot(h, w_ref[...])                                 # (H*W_PAD, CP)
    c4 = c.reshape(1, H, W_PAD, CP)
    cols = [jnp.sum(c4[:, :, 2 * wo:2 * wo + 2, :], axis=2, keepdims=True)
            for wo in range(Wo)]
    if Wo < W_PAD:
        cols.append(jnp.zeros((1, H, W_PAD - Wo, CP), jnp.float32))
    cw = jnp.concatenate(cols, axis=2)                          # (1, H, W_PAD, CP)
    rows = [jnp.sum(cw[:, 2 * ho:2 * ho + 2, :, :], axis=1, keepdims=True)
            for ho in range(Ho)]
    o_ref[...] = (jnp.concatenate(rows, axis=1) * 0.25).reshape(Ho * W_PAD, CP)


def _head_kernel(x_ref, s_ref, b_ref, *rest, n_fc, H, k):
    # Final BN (no ReLU) -> avg pool (k x k -> 1x1) -> hidden FCs (+ReLU) -> classifier.
    o_ref = rest[-1]
    wb = rest[:-1]
    y = x_ref[...] * s_ref[...] + b_ref[...]
    y4 = y.reshape(1, H, W_PAD, CP)
    cw = jnp.sum(y4[:, :, 0:k, :], axis=2, keepdims=True)       # (1, H, 1, CP)
    cw = jnp.concatenate([cw, jnp.zeros((1, H, W_PAD - 1, CP), jnp.float32)], axis=2)
    ch = jnp.sum(cw[:, 0:k, :, :], axis=1, keepdims=True)       # (1, 1, W_PAD, CP)
    h = (ch * (1.0 / (k * k))).reshape(W_PAD, CP)               # row 0 = pooled features
    for i in range(n_fc):
        h = jnp.maximum(_mxu_dot(h, wb[2 * i][...]) + wb[2 * i + 1][...], 0.0)
    o_ref[...] = _mxu_dot(h, wb[2 * n_fc][...]) + wb[2 * n_fc + 1][...]


# --------------------------- pallas_call wrappers -----------------------------

def _compiler_params():
    # batch grid axis is independent across images -> parallel (2 TCs on v7x,
    # pipelining on v5e/v6e).
    return pltpu.CompilerParams(dimension_semantics=("parallel",))


def _img_spec(rows, cols):
    return pl.BlockSpec((rows, cols), lambda n: (n, 0))


def _full_spec(shape):
    nd = len(shape)
    return pl.BlockSpec(tuple(shape), lambda n, _nd=nd: (0,) * _nd)


def _stem_call(patches, w9, N, Hc, Wc_pad, Ho, Wo):
    rows_in, rows_out = Hc * Wc_pad, Ho * W_PAD
    kern = functools.partial(_stem_kernel, Hc=Hc, Wc_pad=Wc_pad,
                             pool_k=3, pool_s=2, Ho=Ho, Wo=Wo)
    return pl.pallas_call(
        kern,
        out_shape=jax.ShapeDtypeStruct((N * rows_out, CP), jnp.float32),
        grid=(N,),
        in_specs=[_img_spec(rows_in, patches.shape[1]), _full_spec(w9.shape)],
        out_specs=_img_spec(rows_out, CP),
        compiler_params=_compiler_params(),
    )(patches, w9)


def _dense_block_call(feat, prep, N, H, Wv):
    rows = H * W_PAD
    kern = functools.partial(_dense_block_kernel, n_layers=prep["L"], H=H, Wv=Wv)
    return pl.pallas_call(
        kern,
        out_shape=jax.ShapeDtypeStruct((N * rows, CP), jnp.float32),
        grid=(N,),
        in_specs=[_img_spec(rows, CP),
                  _full_spec(prep["s1"].shape), _full_spec(prep["b1"].shape),
                  _full_spec(prep["w1"].shape),
                  _full_spec(prep["s2"].shape), _full_spec(prep["b2"].shape),
                  _full_spec(prep["w2"].shape)],
        out_specs=_img_spec(rows, CP),
        compiler_params=_compiler_params(),
    )(feat, prep["s1"], prep["b1"], prep["w1"], prep["s2"], prep["b2"], prep["w2"])


def _transition_call(feat, prep, N, H, Wv):
    Ho, Wo = H // 2, Wv // 2
    rows_in, rows_out = H * W_PAD, Ho * W_PAD
    kern = functools.partial(_transition_kernel, H=H, Ho=Ho, Wo=Wo)
    return pl.pallas_call(
        kern,
        out_shape=jax.ShapeDtypeStruct((N * rows_out, CP), jnp.float32),
        grid=(N,),
        in_specs=[_img_spec(rows_in, CP), _full_spec((1, CP)), _full_spec((1, CP)),
                  _full_spec((CP, CP))],
        out_specs=_img_spec(rows_out, CP),
        compiler_params=_compiler_params(),
    )(feat, prep["s"], prep["b"], prep["w"])


def _head_call(feat, s, b, wb, N, H, k, n_fc):
    rows_in = H * W_PAD
    kern = functools.partial(_head_kernel, n_fc=n_fc, H=H, k=k)
    in_specs = [_img_spec(rows_in, CP), _full_spec((1, CP)), _full_spec((1, CP))]
    in_specs += [_full_spec(a.shape) for a in wb]
    return pl.pallas_call(
        kern,
        out_shape=jax.ShapeDtypeStruct((N * W_PAD, CP), jnp.float32),
        grid=(N,),
        in_specs=in_specs,
        out_specs=_img_spec(W_PAD, CP),
        compiler_params=_compiler_params(),
    )(feat, s, b, *wb)


# ------------------------------ parameter prep -------------------------------

def _bn_scale_bias(bn, eps=1e-5):
    gamma, beta, mean, var = bn
    scale = gamma / jnp.sqrt(var + eps)
    bias = beta - mean * scale
    return scale, bias


def _pad_row(v):
    c = v.shape[-1]
    return jnp.pad(v.reshape(1, c), ((0, 0), (0, CP - c)))


def _pad_mat(w, col_off=0):
    out = jnp.zeros((CP, CP), jnp.float32)
    return out.at[:w.shape[0], col_off:col_off + w.shape[1]].set(w)


def _prep_stem(conv1_w, k_pad):
    c0, cin = conv1_w.shape[0], conv1_w.shape[1]
    w = jnp.transpose(conv1_w, (2, 3, 1, 0)).reshape(9 * cin, c0)
    out = jnp.zeros((k_pad, CP), jnp.float32)
    return out.at[:9 * cin, :c0].set(w)


def _prep_dense_block(blk):
    s1l, b1l, w1l, s2l, b2l, w2l = [], [], [], [], [], []
    for p in blk["layers"]:
        g, c4 = p["conv2_w"].shape[0], p["conv2_w"].shape[1]
        c = p["conv1_w"].shape[1]                               # layer input channels
        assert c + g <= CP, "channel count exceeds lane padding"
        s1, b1 = _bn_scale_bias(p["bn1"])
        s1l.append(_pad_row(s1)); b1l.append(_pad_row(b1))
        w1l.append(_pad_mat(p["conv1_w"][:, :, 0, 0].T))        # (c, 4g) -> (CP, CP)
        s2, b2 = _bn_scale_bias(p["bn2"])
        s2l.append(_pad_row(s2)); b2l.append(_pad_row(b2))
        w2 = jnp.transpose(p["conv2_w"], (2, 3, 1, 0)).reshape(9, c4, g)
        # embed this layer's new-channel stripe into columns [c, c+g)
        w2l.append(jnp.stack([_pad_mat(w2[t], col_off=c) for t in range(9)], axis=0))
    return {"L": len(blk["layers"]),
            "s1": jnp.stack(s1l), "b1": jnp.stack(b1l), "w1": jnp.stack(w1l),
            "s2": jnp.stack(s2l), "b2": jnp.stack(b2l),
            "w2": jnp.concatenate(w2l, axis=0)}                 # (L*9, CP, CP)


def _prep_transition(blk):
    s, b = _bn_scale_bias(blk["bn"])
    return {"s": _pad_row(s), "b": _pad_row(b),
            "w": _pad_mat(blk["conv_w"][:, :, 0, 0].T)}


def _prep_head(params):
    s, b = _bn_scale_bias(params["bn"])
    wb = []
    for (w, bb) in params["fc_part"]:
        wb += [_pad_mat(w), jnp.pad(bb, ((0, 0), (0, CP - bb.shape[1])))]
    wclf, bclf = params["clf"]
    wb += [_pad_mat(wclf), jnp.pad(bclf, ((0, 0), (0, CP - bclf.shape[1])))]
    return _pad_row(s), _pad_row(b), wb


def _stem_patches(x_nhwc):
    # single stride-2 im2col of the tiny Cin-channel input (only XLA-side gather).
    N, Hin, Win, Cin = x_nhwc.shape
    xp = jnp.pad(x_nhwc, ((0, 0), (1, 1), (1, 1), (0, 0)))
    Hc = (Hin + 2 - 3) // 2 + 1
    Wc = (Win + 2 - 3) // 2 + 1
    cols = []
    for di in range(3):
        for dj in range(3):
            cols.append(xp[:, di:di + 2 * (Hc - 1) + 1:2, dj:dj + 2 * (Wc - 1) + 1:2, :])
    p = jnp.concatenate(cols, axis=-1)                          # (N, Hc, Wc, 9*Cin)
    K = 9 * Cin
    Kp = max(8, ((K + 7) // 8) * 8)
    Wc_pad = ((Wc + 7) // 8) * 8
    p = jnp.pad(p, ((0, 0), (0, 0), (0, Wc_pad - Wc), (0, Kp - K)))
    return p.reshape(N * Hc * Wc_pad, Kp), Hc, Wc, Wc_pad, Kp


# ------------------------------ forward ---------------------------------------

def densenet_forward(params, x_nchw, *, avg_pool_size):
    x = jnp.transpose(x_nchw, (0, 2, 3, 1)).astype(jnp.float32)   # NCHW -> NHWC
    N = x.shape[0]

    # stem: conv1 (3x3, s2, p1) + max_pool2d(3, s2), one fused kernel
    patches, Hc, Wc, Wc_pad, Kp = _stem_patches(x)
    H = (Hc - 3) // 2 + 1
    Wv = (Wc - 3) // 2 + 1
    assert Wv <= W_PAD, "this toy layout keeps W <= 8"
    feat = _stem_call(patches, _prep_stem(params["conv1_w"], Kp), N, Hc, Wc_pad, H, Wv)

    # dense blocks (one fused kernel per block) and transitions
    for blk in params["main_blocks"]:
        if "layers" in blk:
            feat = _dense_block_call(feat, _prep_dense_block(blk), N, H, Wv)
        else:
            feat = _transition_call(feat, _prep_transition(blk), N, H, Wv)
            H, Wv = H // 2, Wv // 2

    # head: final BN + avg pool + FC stack + classifier
    k = avg_pool_size
    Ho, Wo = (H - k) // k + 1, (Wv - k) // k + 1
    assert Ho == 1 and Wo == 1, "fused head assumes 1x1 pooled output"
    # TODO(synk): general Ho*Wo > 1 (channel-major flatten) head path not fused.
    s, b, wb = _prep_head(params)
    out = _head_call(feat, s, b, wb, N, H, k, len(params["fc_part"]))   # (N*8, CP)
    n_classes = params["clf"][0].shape[1]
    return out.reshape(N, W_PAD, CP)[:, 0, :n_classes]


# --------------------------- deterministic init ------------------------------

def init_params(key, growth_rate, n_layers, n_fc, reduction=0.5, n_classes=2,
                inp_channels=1):
    keys = iter(jax.random.split(key, 512))

    def conv(cout, cin, k):
        return 0.1 * jax.random.normal(next(keys), (cout, cin, k, k), jnp.float32)

    def bn(c):
        gamma = 1.0 + 0.1 * jax.random.normal(next(keys), (c,), jnp.float32)
        beta = 0.1 * jax.random.normal(next(keys), (c,), jnp.float32)
        mean = 0.1 * jax.random.normal(next(keys), (c,), jnp.float32)
        var = 1.0 + 0.1 * jax.random.uniform(next(keys), (c,), jnp.float32)
        return (gamma, beta, mean, var)

    def linear(cin, cout):
        w = 0.1 * jax.random.normal(next(keys), (cin, cout), jnp.float32)
        b = 0.1 * jax.random.normal(next(keys), (cout,), jnp.float32)
        return (w, b.reshape(1, cout))

    params = {}
    n_channels = 2 * growth_rate
    params["conv1_w"] = conv(n_channels, inp_channels, 3)

    main = []
    for i, depth in enumerate(n_layers):
        layers = []
        c = n_channels
        for _ in range(int(depth)):
            inter = 4 * growth_rate
            layers.append({"bn1": bn(c), "conv1_w": conv(inter, c, 1),
                           "bn2": bn(inter), "conv2_w": conv(growth_rate, inter, 3)})
            c += growth_rate
        main.append({"layers": layers})
        n_channels = c
        if i != len(n_layers) - 1:
            n_out = int(math.floor(n_channels * reduction))
            main.append({"bn": bn(n_channels), "conv_w": conv(n_out, n_channels, 1)})
            n_channels = n_out
    params["main_blocks"] = main
    params["bn"] = bn(n_channels)

    fc = []
    for i in range(len(n_fc) - 1):
        fc.append(linear(n_fc[i], n_fc[i + 1]))
    params["fc_part"] = fc
    params["clf"] = linear(n_fc[-1], n_classes)
    return params


# ------------------------------------ main ------------------------------------

if __name__ == "__main__":
    # Config: growthRate=4, nLayers=[2,2], nFc=[16,8], nClasses=2, inp_channels=1,
    # reduction=0.5, bottleneck=True, avg_pool_size=3.
    # Input 32x32 -> conv1/s2 -> 16 -> maxpool3/s2 -> 7 -> transition avgpool2 -> 3
    # -> final avgpool3 -> 1x1 spatial, 16 channels -> flatten 16 == nFc[0].
    # TODO(synk): BatchNorm uses running-stats (eval) semantics; dropout disabled.
    x = jax.random.normal(jax.random.PRNGKey(0), (2, 1, 32, 32), jnp.float32)

    params = init_params(jax.random.PRNGKey(42),
                         growth_rate=4, n_layers=[2, 2], n_fc=[16, 8],
                         reduction=0.5, n_classes=2, inp_channels=1)

    fwd = jax.jit(functools.partial(densenet_forward, avg_pool_size=3))
    logits = jax.block_until_ready(fwd(params, x))
    assert logits.shape == (2, 2) and logits.dtype == jnp.float32
    print("KERNEL_OK")
</pallas_src>

<mosaic_0001>
module attributes {stable_mosaic.version = 11 : i64} {
  func.func @_stem_kernel(%arg0: i32, %arg1: memref<256x16xf32, #tpu.memory_space<vmem>>, %arg2: memref<16x128xf32, #tpu.memory_space<vmem>>, %arg3: memref<56x128xf32, #tpu.memory_space<vmem>>) attributes {dimension_semantics = [#tpu.dimension_semantics<parallel>], iteration_bounds = array<i64: 2>, scalar_prefetch = 0 : i64, scratch_operands = 0 : i64, tpu.core_type = #tpu.core_type<tc>, window_params = [{transform_indices = @transform_0, window_bounds = array<i64: 256, 16>}, {pipeline_mode = #tpu.pipeline_mode<synchronous>, transform_indices = @transform_1, window_bounds = array<i64: 16, 128>}, {transform_indices = @transform_2, window_bounds = array<i64: 56, 128>}]} {
    %c0 = arith.constant 0 : index
    %c0_0 = arith.constant 0 : index
    %0 = vector.load %arg1[%c0, %c0_0] : memref<256x16xf32, #tpu.memory_space<vmem>>, vector<256x16xf32>
    %c0_1 = arith.constant 0 : index
    %c0_2 = arith.constant 0 : index
    %1 = vector.load %arg2[%c0_1, %c0_2] : memref<16x128xf32, #tpu.memory_space<vmem>>, vector<16x128xf32>
    %2 = arith.truncf %0 : vector<256x16xf32> to vector<256x16xbf16>
    %3 = arith.truncf %1 : vector<16x128xf32> to vector<16x128xbf16>
    %cst = arith.constant dense<0.000000e+00> : vector<256x128xf32>
    %4 = tpu.matmul %2, %3, %cst {dimension_numbers = #tpu.dot_dimension_numbers<[1], [0], [0], [1], [0, 0, 1, 1], [], []>} : vector<256x16xbf16>, vector<16x128xbf16>, vector<256x128xf32> -> vector<256x128xf32>
    %5 = vector.shape_cast %4 : vector<256x128xf32> to vector<1x16x16x128xf32>
    %6 = vector.extract_strided_slice %5 {offsets = [0, 0, 0, 0], sizes = [1, 16, 3, 128], strides = [1, 1, 1, 1]} : vector<1x16x16x128xf32> to vector<1x16x3x128xf32>
    %cst_3 = arith.constant dense<0xFF800000> : vector<1x16x128xf32>
    %7 = vector.multi_reduction <maximumf>, %6, %cst_3 [2] : vector<1x16x3x128xf32> to vector<1x16x128xf32>
    %8 = vector.shape_cast %7 : vector<1x16x128xf32> to vector<1x16x1x128xf32>
    %9 = vector.extract_strided_slice %5 {offsets = [0, 0, 2, 0], sizes = [1, 16, 3, 128], strides = [1, 1, 1, 1]} : vector<1x16x16x128xf32> to vector<1x16x3x128xf32>
    %cst_4 = arith.constant dense<0xFF800000> : vector<1x16x128xf32>
    %10 = vector.multi_reduction <maximumf>, %9, %cst_4 [2] : vector<1x16x3x128xf32> to vector<1x16x128xf32>
    %11 = vector.shape_cast %10 : vector<1x16x128xf32> to vector<1x16x1x128xf32>
    %12 = vector.extract_strided_slice %5 {offsets = [0, 0, 4, 0], sizes = [1, 16, 3, 128], strides = [1, 1, 1, 1]} : vector<1x16x16x128xf32> to vector<1x16x3x128xf32>
    %cst_5 = arith.constant dense<0xFF800000> : vector<1x16x128xf32>
    %13 = vector.multi_reduction <maximumf>, %12, %cst_5 [2] : vector<1x16x3x128xf32> to vector<1x16x128xf32>
    %14 = vector.shape_cast %13 : vector<1x16x128xf32> to vector<1x16x1x128xf32>
    %15 = vector.extract_strided_slice %5 {offsets = [0, 0, 6, 0], sizes = [1, 16, 3, 128], strides = [1, 1, 1, 1]} : vector<1x16x16x128xf32> to vector<1x16x3x128xf32>
    %cst_6 = arith.constant dense<0xFF800000> : vector<1x16x128xf32>
    %16 = vector.multi_reduction <maximumf>, %15, %cst_6 [2] : vector<1x16x3x128xf32> to vector<1x16x128xf32>
    %17 = vector.shape_cast %16 : vector<1x16x128xf32> to vector<1x16x1x128xf32>
    %18 = vector.extract_strided_slice %5 {offsets = [0, 0, 8, 0], sizes = [1, 16, 3, 128], strides = [1, 1, 1, 1]} : vector<1x16x16x128xf32> to vector<1x16x3x128xf32>
    %cst_7 = arith.constant dense<0xFF800000> : vector<1x16x128xf32>
    %19 = vector.multi_reduction <maximumf>, %18, %cst_7 [2] : vector<1x16x3x128xf32> to vector<1x16x128xf32>
    %20 = vector.shape_cast %19 : vector<1x16x128xf32> to vector<1x16x1x128xf32>
    %21 = vector.extract_strided_slice %5 {offsets = [0, 0, 10, 0], sizes = [1, 16, 3, 128], strides = [1, 1, 1, 1]} : vector<1x16x16x128xf32> to vector<1x16x3x128xf32>
    %cst_8 = arith.constant dense<0xFF800000> : vector<1x16x128xf32>
    %22 = vector.multi_reduction <maximumf>, %21, %cst_8 [2] : vector<1x16x3x128xf32> to vector<1x16x128xf32>
    %23 = vector.shape_cast %22 : vector<1x16x128xf32> to vector<1x16x1x128xf32>
    %24 = vector.extract_strided_slice %5 {offsets = [0, 0, 12, 0], sizes = [1, 16, 3, 128], strides = [1, 1, 1, 1]} : vector<1x16x16x128xf32> to vector<1x16x3x128xf32>
    %cst_9 = arith.constant dense<0xFF800000> : vector<1x16x128xf32>
    %25 = vector.multi_reduction <maximumf>, %24, %cst_9 [2] : vector<1x16x3x128xf32> to vector<1x16x128xf32>
    %26 = vector.shape_cast %25 : vector<1x16x128xf32> to vector<1x16x1x128xf32>
    %cst_10 = arith.constant 0.000000e+00 : f32
    %27 = vector.broadcast %cst_10 : f32 to vector<1x16x1x128xf32>
    %28 = tpu.concatenate %8, %11, %14, %17, %20, %23, %26, %27 in 2 : vector<1x16x1x128xf32>, vector<1x16x1x128xf32>, vector<1x16x1x128xf32>, vector<1x16x1x128xf32>, vector<1x16x1x128xf32>, vector<1x16x1x128xf32>, vector<1x16x1x128xf32>, vector<1x16x1x128xf32> -> vector<1x16x8x128xf32>
    %29 = vector.extract_strided_slice %28 {offsets = [0, 0, 0, 0], sizes = [1, 3, 8, 128], strides = [1, 1, 1, 1]} : vector<1x16x8x128xf32> to vector<1x3x8x128xf32>
    %cst_11 = arith.constant dense<0xFF800000> : vector<1x8x128xf32>
    %30 = vector.multi_reduction <maximumf>, %29, %cst_11 [1] : vector<1x3x8x128xf32> to vector<1x8x128xf32>
    %31 = vector.shape_cast %30 : vector<1x8x128xf32> to vector<1x1x8x128xf32>
    %32 = vector.extract_strided_slice %28 {offsets = [0, 2, 0, 0], sizes = [1, 3, 8, 128], strides = [1, 1, 1, 1]} : vector<1x16x8x128xf32> to vector<1x3x8x128xf32>
    %cst_12 = arith.constant dense<0xFF800000> : vector<1x8x128xf32>
    %33 = vector.multi_reduction <maximumf>, %32, %cst_12 [1] : vector<1x3x8x128xf32> to vector<1x8x128xf32>
    %34 = vector.shape_cast %33 : vector<1x8x128xf32> to vector<1x1x8x128xf32>
    %35 = vector.extract_strided_slice %28 {offsets = [0, 4, 0, 0], sizes = [1, 3, 8, 128], strides = [1, 1, 1, 1]} : vector<1x16x8x128xf32> to vector<1x3x8x128xf32>
    %cst_13 = arith.constant dense<0xFF800000> : vector<1x8x128xf32>
    %36 = vector.multi_reduction <maximumf>, %35, %cst_13 [1] : vector<1x3x8x128xf32> to vector<1x8x128xf32>
    %37 = vector.shape_cast %36 : vector<1x8x128xf32> to vector<1x1x8x128xf32>
    %38 = vector.extract_strided_slice %28 {offsets = [0, 6, 0, 0], sizes = [1, 3, 8, 128], strides = [1, 1, 1, 1]} : vector<1x16x8x128xf32> to vector<1x3x8x128xf32>
    %cst_14 = arith.constant dense<0xFF800000> : vector<1x8x128xf32>
    %39 = vector.multi_reduction <maximumf>, %38, %cst_14 [1] : vector<1x3x8x128xf32> to vector<1x8x128xf32>
    %40 = vector.shape_cast %39 : vector<1x8x128xf32> to vector<1x1x8x128xf32>
    %41 = vector.extract_strided_slice %28 {offsets = [0, 8, 0, 0], sizes = [1, 3, 8, 128], strides = [1, 1, 1, 1]} : vector<1x16x8x128xf32> to vector<1x3x8x128xf32>
    %cst_15 = arith.constant dense<0xFF800000> : vector<1x8x128xf32>
    %42 = vector.multi_reduction <maximumf>, %41, %cst_15 [1] : vector<1x3x8x128xf32> to vector<1x8x128xf32>
    %43 = vector.shape_cast %42 : vector<1x8x128xf32> to vector<1x1x8x128xf32>
    %44 = vector.extract_strided_slice %28 {offsets = [0, 10, 0, 0], sizes = [1, 3, 8, 128], strides = [1, 1, 1, 1]} : vector<1x16x8x128xf32> to vector<1x3x8x128xf32>
    %cst_16 = arith.constant dense<0xFF800000> : vector<1x8x128xf32>
    %45 = vector.multi_reduction <maximumf>, %44, %cst_16 [1] : vector<1x3x8x128xf32> to vector<1x8x128xf32>
    %46 = vector.shape_cast %45 : vector<1x8x128xf32> to vector<1x1x8x128xf32>
    %47 = vector.extract_strided_slice %28 {offsets = [0, 12, 0, 0], sizes = [1, 3, 8, 128], strides = [1, 1, 1, 1]} : vector<1x16x8x128xf32> to vector<1x3x8x128xf32>
    %cst_17 = arith.constant dense<0xFF800000> : vector<1x8x128xf32>
    %48 = vector.multi_reduction <maximumf>, %47, %cst_17 [1] : vector<1x3x8x128xf32> to vector<1x8x128xf32>
    %49 = vector.shape_cast %48 : vector<1x8x128xf32> to vector<1x1x8x128xf32>
    %50 = tpu.concatenate %31, %34, %37, %40, %43, %46, %49 in 1 : vector<1x1x8x128xf32>, vector<1x1x8x128xf32>, vector<1x1x8x128xf32>, vector<1x1x8x128xf32>, vector<1x1x8x128xf32>, vector<1x1x8x128xf32>, vector<1x1x8x128xf32> -> vector<1x7x8x128xf32>
    %51 = vector.shape_cast %50 : vector<1x7x8x128xf32> to vector<56x128xf32>
    %c0_18 = arith.constant 0 : index
    %c0_19 = arith.constant 0 : index
    %52 = vector.load %arg3[%c0_18, %c0_19] : memref<56x128xf32, #tpu.memory_space<vmem>>, vector<56x128xf32>
    tpu.vector_store %arg3[%c0_18, %c0_19], %51 {strides = array<i32>} : memref<56x128xf32, #tpu.memory_space<vmem>>, vector<56x128xf32>,
    return
  }
  func.func @transform_0(%arg0: i32) -> (i32, i32) {
    %c0_i32 = arith.constant 0 : i32
    %c0_i32_0 = arith.constant 0 : i32
    return %arg0, %c0_i32 : i32, i32
  }
  func.func @transform_1(%arg0: i32) -> (i32, i32) {
    %c0_i32 = arith.constant 0 : i32
    %c0_i32_0 = arith.constant 0 : i32
    %c0_i32_1 = arith.constant 0 : i32
    return %c0_i32, %c0_i32_0 : i32, i32
  }
  func.func @transform_2(%arg0: i32) -> (i32, i32) {
    %c0_i32 = arith.constant 0 : i32
    %c0_i32_0 = arith.constant 0 : i32
    return %arg0, %c0_i32 : i32, i32
  }
}

module attributes {stable_mosaic.version = 11 : i64} {
  func.func @_transition_kernel(%arg0: i32, %arg1: memref<56x128xf32, #tpu.memory_space<vmem>>, %arg2: memref<1x128xf32, #tpu.memory_space<vmem>>, %arg3: memref<1x128xf32, #tpu.memory_space<vmem>>, %arg4: memref<128x128xf32, #tpu.memory_space<vmem>>, %arg5: memref<24x128xf32, #tpu.memory_space<vmem>>) attributes {dimension_semantics = [#tpu.dimension_semantics<parallel>], iteration_bounds = array<i64: 2>, scalar_prefetch = 0 : i64, scratch_operands = 0 : i64, tpu.core_type = #tpu.core_type<tc>, window_params = [{transform_indices = @transform_0, window_bounds = array<i64: 56, 128>}, {pipeline_mode = #tpu.pipeline_mode<synchronous>, transform_indices = @transform_1, window_bounds = array<i64: 1, 128>}, {pipeline_mode = #tpu.pipeline_mode<synchronous>, transform_indices = @transform_2, window_bounds = array<i64: 1, 128>}, {pipeline_mode = #tpu.pipeline_mode<synchronous>, transform_indices = @transform_3, window_bounds = array<i64: 128, 128>}, {transform_indices = @transform_4, window_bounds = array<i64: 24, 128>}]} {
    %c0 = arith.constant 0 : index
    %c0_0 = arith.constant 0 : index
    %0 = vector.load %arg1[%c0, %c0_0] : memref<56x128xf32, #tpu.memory_space<vmem>>, vector<56x128xf32>
    %c0_1 = arith.constant 0 : index
    %c0_2 = arith.constant 0 : index
    %1 = vector.load %arg2[%c0_1, %c0_2] : memref<1x128xf32, #tpu.memory_space<vmem>>, vector<1x128xf32>
    %2 = vector.broadcast %1 : vector<1x128xf32> to vector<56x128xf32>
    %3 = arith.mulf %0, %2 : vector<56x128xf32>
    %c0_3 = arith.constant 0 : index
    %c0_4 = arith.constant 0 : index
    %4 = vector.load %arg3[%c0_3, %c0_4] : memref<1x128xf32, #tpu.memory_space<vmem>>, vector<1x128xf32>
    %5 = vector.broadcast %4 : vector<1x128xf32> to vector<56x128xf32>
    %6 = arith.addf %3, %5 : vector<56x128xf32>
    %cst = arith.constant 0.000000e+00 : f32
    %7 = vector.broadcast %cst : f32 to vector<56x128xf32>
    %8 = arith.maximumf %6, %7 : vector<56x128xf32>
    %c0_5 = arith.constant 0 : index
    %c0_6 = arith.constant 0 : index
    %9 = vector.load %arg4[%c0_5, %c0_6] : memref<128x128xf32, #tpu.memory_space<vmem>>, vector<128x128xf32>
    %10 = arith.truncf %8 : vector<56x128xf32> to vector<56x128xbf16>
    %11 = arith.truncf %9 : vector<128x128xf32> to vector<128x128xbf16>
    %cst_7 = arith.constant dense<0.000000e+00> : vector<56x128xf32>
    %12 = tpu.matmul %10, %11, %cst_7 {dimension_numbers = #tpu.dot_dimension_numbers<[1], [0], [0], [1], [0, 0, 1, 1], [], []>} : vector<56x128xbf16>, vector<128x128xbf16>, vector<56x128xf32> -> vector<56x128xf32>
    %13 = vector.shape_cast %12 : vector<56x128xf32> to vector<1x7x8x128xf32>
    %14 = vector.extract_strided_slice %13 {offsets = [0, 0, 0, 0], sizes = [1, 7, 2, 128], strides = [1, 1, 1, 1]} : vector<1x7x8x128xf32> to vector<1x7x2x128xf32>
    %cst_8 = arith.constant dense<0.000000e+00> : vector<1x7x128xf32>
    %15 = vector.multi_reduction <add>, %14, %cst_8 [2] : vector<1x7x2x128xf32> to vector<1x7x128xf32>
    %16 = vector.shape_cast %15 : vector<1x7x128xf32> to vector<1x7x1x128xf32>
    %17 = vector.extract_strided_slice %13 {offsets = [0, 0, 2, 0], sizes = [1, 7, 2, 128], strides = [1, 1, 1, 1]} : vector<1x7x8x128xf32> to vector<1x7x2x128xf32>
    %cst_9 = arith.constant dense<0.000000e+00> : vector<1x7x128xf32>
    %18 = vector.multi_reduction <add>, %17, %cst_9 [2] : vector<1x7x2x128xf32> to vector<1x7x128xf32>
    %19 = vector.shape_cast %18 : vector<1x7x128xf32> to vector<1x7x1x128xf32>
    %20 = vector.extract_strided_slice %13 {offsets = [0, 0, 4, 0], sizes = [1, 7, 2, 128], strides = [1, 1, 1, 1]} : vector<1x7x8x128xf32> to vector<1x7x2x128xf32>
    %cst_10 = arith.constant dense<0.000000e+00> : vector<1x7x128xf32>
    %21 = vector.multi_reduction <add>, %20, %cst_10 [2] : vector<1x7x2x128xf32> to vector<1x7x128xf32>
    %22 = vector.shape_cast %21 : vector<1x7x128xf32> to vector<1x7x1x128xf32>
    %cst_11 = arith.constant 0.000000e+00 : f32
    %23 = vector.broadcast %cst_11 : f32 to vector<1x7x5x128xf32>
    %24 = tpu.concatenate %16, %19, %22, %23 in 2 : vector<1x7x1x128xf32>, vector<1x7x1x128xf32>, vector<1x7x1x128xf32>, vector<1x7x5x128xf32> -> vector<1x7x8x128xf32>
    %25 = vector.extract_strided_slice %24 {offsets = [0, 0, 0, 0], sizes = [1, 2, 8, 128], strides = [1, 1, 1, 1]} : vector<1x7x8x128xf32> to vector<1x2x8x128xf32>
    %cst_12 = arith.constant dense<0.000000e+00> : vector<1x8x128xf32>
    %26 = vector.multi_reduction <add>, %25, %cst_12 [1] : vector<1x2x8x128xf32> to vector<1x8x128xf32>
    %27 = vector.shape_cast %26 : vector<1x8x128xf32> to vector<1x1x8x128xf32>
    %28 = vector.extract_strided_slice %24 {offsets = [0, 2, 0, 0], sizes = [1, 2, 8, 128], strides = [1, 1, 1, 1]} : vector<1x7x8x128xf32> to vector<1x2x8x128xf32>
    %cst_13 = arith.constant dense<0.000000e+00> : vector<1x8x128xf32>
    %29 = vector.multi_reduction <add>, %28, %cst_13 [1] : vector<1x2x8x128xf32> to vector<1x8x128xf32>
    %30 = vector.shape_cast %29 : vector<1x8x128xf32> to vector<1x1x8x128xf32>
    %31 = vector.extract_strided_slice %24 {offsets = [0, 4, 0, 0], sizes = [1, 2, 8, 128], strides = [1, 1, 1, 1]} : vector<1x7x8x128xf32> to vector<1x2x8x128xf32>
    %cst_14 = arith.constant dense<0.000000e+00> : vector<1x8x128xf32>
    %32 = vector.multi_reduction <add>, %31, %cst_14 [1] : vector<1x2x8x128xf32> to vector<1x8x128xf32>
    %33 = vector.shape_cast %32 : vector<1x8x128xf32> to vector<1x1x8x128xf32>
    %34 = tpu.concatenate %27, %30, %33 in 1 : vector<1x1x8x128xf32>, vector<1x1x8x128xf32>, vector<1x1x8x128xf32> -> vector<1x3x8x128xf32>
    %cst_15 = arith.constant 2.500000e-01 : f32
    %35 = vector.broadcast %cst_15 : f32 to vector<1x3x8x128xf32>
    %36 = arith.mulf %34, %35 : vector<1x3x8x128xf32>
    %37 = vector.shape_cast %36 : vector<1x3x8x128xf32> to vector<24x128xf32>
    %c0_16 = arith.constant 0 : index
    %c0_17 = arith.constant 0 : index
    %38 = vector.load %arg5[%c0_16, %c0_17] : memref<24x128xf32, #tpu.memory_space<vmem>>, vector<24x128xf32>
    tpu.vector_store %arg5[%c0_16, %c0_17], %37 {strides = array<i32>} : memref<24x128xf32, #tpu.memory_space<vmem>>, vector<24x128xf32>,
    return
  }
  func.func @transform_0(%arg0: i32) -> (i32, i32) {
    %c0_i32 = arith.constant 0 : i32
    %c0_i32_0 = arith.constant 0 : i32
    return %arg0, %c0_i32 : i32, i32
  }
  func.func @transform_1(%arg0: i32) -> (i32, i32) {
    %c0_i32 = arith.constant 0 : i32
    %c0_i32_0 = arith.constant 0 : i32
    %c0_i32_1 = arith.constant 0 : i32
    return %c0_i32, %c0_i32_0 : i32, i32
  }
  func.func @transform_2(%arg0: i32) -> (i32, i32) {
    %c0_i32 = arith.constant 0 : i32
    %c0_i32_0 = arith.constant 0 : i32
    %c0_i32_1 = arith.constant 0 : i32
    return %c0_i32, %c0_i32_0 : i32, i32
  }
  func.func @transform_3(%arg0: i32) -> (i32, i32) {
    %c0_i32 = arith.constant 0 : i32
    %c0_i32_0 = arith.constant 0 : i32
    %c0_i32_1 = arith.constant 0 : i32
    return %c0_i32, %c0_i32_0 : i32, i32
  }
  func.func @transform_4(%arg0: i32) -> (i32, i32) {
    %c0_i32 = arith.constant 0 : i32
    %c0_i32_0 = arith.constant 0 : i32
    return %arg0, %c0_i32 : i32, i32
  }
}

module attributes {stable_mosaic.version = 11 : i64} {
  func.func @_dense_block_kernel(%arg0: i32, %arg1: memref<56x128xf32, #tpu.memory_space<vmem>>, %arg2: memref<2x1x128xf32, #tpu.memory_space<vmem>>, %arg3: memref<2x1x128xf32, #tpu.memory_space<vmem>>, %arg4: memref<2x128x128xf32, #tpu.memory_space<vmem>>, %arg5: memref<2x1x128xf32, #tpu.memory_space<vmem>>, %arg6: memref<2x1x128xf32, #tpu.memory_space<vmem>>, %arg7: memref<18x128x128xf32, #tpu.memory_space<vmem>>, %arg8: memref<56x128xf32, #tpu.memory_space<vmem>>) attributes {dimension_semantics = [#tpu.dimension_semantics<parallel>], iteration_bounds = array<i64: 2>, scalar_prefetch = 0 : i64, scratch_operands = 0 : i64, tpu.core_type = #tpu.core_type<tc>, window_params = [{transform_indices = @transform_0, window_bounds = array<i64: 56, 128>}, {pipeline_mode = #tpu.pipeline_mode<synchronous>, transform_indices = @transform_1, window_bounds = array<i64: 2, 1, 128>}, {pipeline_mode = #tpu.pipeline_mode<synchronous>, transform_indices = @transform_2, window_bounds = array<i64: 2, 1, 128>}, {pipeline_mode = #tpu.pipeline_mode<synchronous>, transform_indices = @transform_3, window_bounds = array<i64: 2, 128, 128>}, {pipeline_mode = #tpu.pipeline_mode<synchronous>, transform_indices = @transform_4, window_bounds = array<i64: 2, 1, 128>}, {pipeline_mode = #tpu.pipeline_mode<synchronous>, transform_indices = @transform_5, window_bounds = array<i64: 2, 1, 128>}, {pipeline_mode = #tpu.pipeline_mode<synchronous>, transform_indices = @transform_6, window_bounds = array<i64: 18, 128, 128>}, {transform_indices = @transform_7, window_bounds = array<i64: 56, 128>}]} {
    %c0 = arith.constant 0 : index
    %c0_0 = arith.constant 0 : index
    %0 = vector.load %arg1[%c0, %c0_0] : memref<56x128xf32, #tpu.memory_space<vmem>>, vector<56x128xf32>
    %1 = tpu.iota {dimensions = array<i32: 0>} : vector<8x128xi32>
    %c7_i32 = arith.constant 7 : i32
    %2 = vector.broadcast %c7_i32 : i32 to vector<8x128xi32>
    %3 = arith.cmpi slt, %1, %2 : vector<8x128xi32>
    %4 = arith.extui %3 : vector<8x128xi1> to vector<8x128xi32>
    %5 = arith.sitofp %4 : vector<8x128xi32> to vector<8x128xf32>
    %6 = vector.shape_cast %5 : vector<8x128xf32> to vector<1x1x8x128xf32>
    %cst = arith.constant 0.000000e+00 : f32
    %7 = vector.broadcast %cst : f32 to vector<1x1x8x128xf32>
    %cst_1 = arith.constant 0.000000e+00 : f32
    %8 = vector.broadcast %cst_1 : f32 to vector<1x7x1x128xf32>
    %c0_2 = arith.constant 0 : index
    %c0_3 = arith.constant 0 : index
    %c0_4 = arith.constant 0 : index
    %9 = vector.load %arg2[%c0_2, %c0_3, %c0_4] : memref<2x1x128xf32, #tpu.memory_space<vmem>>, vector<1x1x128xf32>
    %10 = vector.shape_cast %9 : vector<1x1x128xf32> to vector<1x128xf32>
    %11 = vector.broadcast %10 : vector<1x128xf32> to vector<56x128xf32>
    %12 = arith.mulf %0, %11 : vector<56x128xf32>
    %c0_5 = arith.constant 0 : index
    %c0_6 = arith.constant 0 : index
    %c0_7 = arith.constant 0 : index
    %13 = vector.load %arg3[%c0_5, %c0_6, %c0_7] : memref<2x1x128xf32, #tpu.memory_space<vmem>>, vector<1x1x128xf32>
    %14 = vector.shape_cast %13 : vector<1x1x128xf32> to vector<1x128xf32>
    %15 = vector.broadcast %14 : vector<1x128xf32> to vector<56x128xf32>
    %16 = arith.addf %12, %15 : vector<56x128xf32>
    %cst_8 = arith.constant 0.000000e+00 : f32
    %17 = vector.broadcast %cst_8 : f32 to vector<56x128xf32>
    %18 = arith.maximumf %16, %17 : vector<56x128xf32>
    %c0_9 = arith.constant 0 : index
    %c0_10 = arith.constant 0 : index
    %c0_11 = arith.constant 0 : index
    %19 = vector.load %arg4[%c0_9, %c0_10, %c0_11] : memref<2x128x128xf32, #tpu.memory_space<vmem>>, vector<1x128x128xf32>
    %20 = vector.shape_cast %19 : vector<1x128x128xf32> to vector<128x128xf32>
    %21 = arith.truncf %18 : vector<56x128xf32> to vector<56x128xbf16>
    %22 = arith.truncf %20 : vector<128x128xf32> to vector<128x128xbf16>
    %cst_12 = arith.constant dense<0.000000e+00> : vector<56x128xf32>
    %23 = tpu.matmul %21, %22, %cst_12 {dimension_numbers = #tpu.dot_dimension_numbers<[1], [0], [0], [1], [0, 0, 1, 1], [], []>} : vector<56x128xbf16>, vector<128x128xbf16>, vector<56x128xf32> -> vector<56x128xf32>
    %c0_13 = arith.constant 0 : index
    %c0_14 = arith.constant 0 : index
    %c0_15 = arith.constant 0 : index
    %24 = vector.load %arg5[%c0_13, %c0_14, %c0_15] : memref<2x1x128xf32, #tpu.memory_space<vmem>>, vector<1x1x128xf32>
    %25 = vector.shape_cast %24 : vector<1x1x128xf32> to vector<1x128xf32>
    %26 = vector.broadcast %25 : vector<1x128xf32> to vector<56x128xf32>
    %27 = arith.mulf %23, %26 : vector<56x128xf32>
    %c0_16 = arith.constant 0 : index
    %c0_17 = arith.constant 0 : index
    %c0_18 = arith.constant 0 : index
    %28 = vector.load %arg6[%c0_16, %c0_17, %c0_18] : memref<2x1x128xf32, #tpu.memory_space<vmem>>, vector<1x1x128xf32>
    %29 = vector.shape_cast %28 : vector<1x1x128xf32> to vector<1x128xf32>
    %30 = vector.broadcast %29 : vector<1x128xf32> to vector<56x128xf32>
    %31 = arith.addf %27, %30 : vector<56x128xf32>
    %cst_19 = arith.constant 0.000000e+00 : f32
    %32 = vector.broadcast %cst_19 : f32 to vector<56x128xf32>
    %33 = arith.maximumf %31, %32 : vector<56x128xf32>
    %34 = vector.shape_cast %33 : vector<56x128xf32> to vector<1x7x8x128xf32>
    %35 = vector.broadcast %6 : vector<1x1x8x128xf32> to vector<1x7x8x128xf32>
    %36 = arith.mulf %34, %35 : vector<1x7x8x128xf32>
    %37 = tpu.concatenate %7, %36, %7 in 1 : vector<1x1x8x128xf32>, vector<1x7x8x128xf32>, vector<1x1x8x128xf32> -> vector<1x9x8x128xf32>
    %cst_20 = arith.constant 0.000000e+00 : f32
    %38 = vector.broadcast %cst_20 : f32 to vector<56x128xf32>
    %39 = vector.extract_strided_slice %37 {offsets = [0, 0, 0, 0], sizes = [1, 7, 8, 128], strides = [1, 1, 1, 1]} : vector<1x9x8x128xf32> to vector<1x7x8x128xf32>
    %40 = vector.extract_strided_slice %39 {offsets = [0, 0, 0, 0], sizes = [1, 7, 7, 128], strides = [1, 1, 1, 1]} : vector<1x7x8x128xf32> to vector<1x7x7x128xf32>
    %41 = tpu.concatenate %8, %40 in 2 : vector<1x7x1x128xf32>, vector<1x7x7x128xf32> -> vector<1x7x8x128xf32>
    %42 = vector.shape_cast %41 : vector<1x7x8x128xf32> to vector<56x128xf32>
    %c0_21 = arith.constant 0 : index
    %c0_22 = arith.constant 0 : index
    %c0_23 = arith.constant 0 : index
    %43 = vector.load %arg7[%c0_21, %c0_22, %c0_23] : memref<18x128x128xf32, #tpu.memory_space<vmem>>, vector<1x128x128xf32>
    %44 = vector.shape_cast %43 : vector<1x128x128xf32> to vector<128x128xf32>
    %45 = arith.truncf %42 : vector<56x128xf32> to vector<56x128xbf16>
    %46 = arith.truncf %44 : vector<128x128xf32> to vector<128x128xbf16>
    %cst_24 = arith.constant dense<0.000000e+00> : vector<56x128xf32>
    %47 = tpu.matmul %45, %46, %cst_24 {dimension_numbers = #tpu.dot_dimension_numbers<[1], [0], [0], [1], [0, 0, 1, 1], [], []>} : vector<56x128xbf16>, vector<128x128xbf16>, vector<56x128xf32> -> vector<56x128xf32>
    %48 = arith.addf %38, %47 : vector<56x128xf32>
    %49 = vector.shape_cast %39 : vector<1x7x8x128xf32> to vector<56x128xf32>
    %c1 = arith.constant 1 : index
    %c0_25 = arith.constant 0 : index
    %c0_26 = arith.constant 0 : index
    %50 = vector.load %arg7[%c1, %c0_25, %c0_26] : memref<18x128x128xf32, #tpu.memory_space<vmem>>, vector<1x128x128xf32>
    %51 = vector.shape_cast %50 : vector<1x128x128xf32> to vector<128x128xf32>
    %52 = arith.truncf %49 : vector<56x128xf32> to vector<56x128xbf16>
    %53 = arith.truncf %51 : vector<128x128xf32> to vector<128x128xbf16>
    %cst_27 = arith.constant dense<0.000000e+00> : vector<56x128xf32>
    %54 = tpu.matmul %52, %53, %cst_27 {dimension_numbers = #tpu.dot_dimension_numbers<[1], [0], [0], [1], [0, 0, 1, 1], [], []>} : vector<56x128xbf16>, vector<128x128xbf16>, vector<56x128xf32> -> vector<56x128xf32>
    %55 = arith.addf %48, %54 : vector<56x128xf32>
    %56 = vector.extract_strided_slice %39 {offsets = [0, 0, 1, 0], sizes = [1, 7, 7, 128], strides = [1, 1, 1, 1]} : vector<1x7x8x128xf32> to vector<1x7x7x128xf32>
    %57 = tpu.concatenate %56, %8 in 2 : vector<1x7x7x128xf32>, vector<1x7x1x128xf32> -> vector<1x7x8x128xf32>
    %58 = vector.shape_cast %57 : vector<1x7x8x128xf32> to vector<56x128xf32>
    %c2 = arith.constant 2 : index
    %c0_28 = arith.constant 0 : index
    %c0_29 = arith.constant 0 : index
    %59 = vector.load %arg7[%c2, %c0_28, %c0_29] : memref<18x128x128xf32, #tpu.memory_space<vmem>>, vector<1x128x128xf32>
    %60 = vector.shape_cast %59 : vector<1x128x128xf32> to vector<128x128xf32>
    %61 = arith.truncf %58 : vector<56x128xf32> to vector<56x128xbf16>
    %62 = arith.truncf %60 : vector<128x128xf32> to vector<128x128xbf16>
    %cst_30 = arith.constant dense<0.000000e+00> : vector<56x128xf32>
    %63 = tpu.matmul %61, %62, %cst_30 {dimension_numbers = #tpu.dot_dimension_numbers<[1], [0], [0], [1], [0, 0, 1, 1], [], []>} : vector<56x128xbf16>, vector<128x128xbf16>, vector<56x128xf32> -> vector<56x128xf32>
    %64 = arith.addf %55, %63 : vector<56x128xf32>
    %65 = vector.extract_strided_slice %37 {offsets = [0, 1, 0, 0], sizes = [1, 7, 8, 128], strides = [1, 1, 1, 1]} : vector<1x9x8x128xf32> to vector<1x7x8x128xf32>
    %66 = vector.extract_strided_slice %65 {offsets = [0, 0, 0, 0], sizes = [1, 7, 7, 128], strides = [1, 1, 1, 1]} : vector<1x7x8x128xf32> to vector<1x7x7x128xf32>
    %67 = tpu.concatenate %8, %66 in 2 : vector<1x7x1x128xf32>, vector<1x7x7x128xf32> -> vector<1x7x8x128xf32>
    %68 = vector.shape_cast %67 : vector<1x7x8x128xf32> to vector<56x128xf32>
    %c3 = arith.constant 3 : index
    %c0_31 = arith.constant 0 : index
    %c0_32 = arith.constant 0 : index
    %69 = vector.load %arg7[%c3, %c0_31, %c0_32] : memref<18x128x128xf32, #tpu.memory_space<vmem>>, vector<1x128x128xf32>
    %70 = vector.shape_cast %69 : vector<1x128x128xf32> to vector<128x128xf32>
    %71 = arith.truncf %68 : vector<56x128xf32> to vector<56x128xbf16>
    %72 = arith.truncf %70 : vector<128x128xf32> to vector<128x128xbf16>
    %cst_33 = arith.constant dense<0.000000e+00> : vector<56x128xf32>
    %73 = tpu.matmul %71, %72, %cst_33 {dimension_numbers = #tpu.dot_dimension_numbers<[1], [0], [0], [1], [0, 0, 1, 1], [], []>} : vector<56x128xbf16>, vector<128x128xbf16>, vector<56x128xf32> -> vector<56x128xf32>
    %74 = arith.addf %64, %73 : vector<56x128xf32>
    %75 = vector.shape_cast %65 : vector<1x7x8x128xf32> to vector<56x128xf32>
    %c4 = arith.constant 4 : index
    %c0_34 = arith.constant 0 : index
    %c0_35 = arith.constant 0 : index
    %76 = vector.load %arg7[%c4, %c0_34, %c0_35] : memref<18x128x128xf32, #tpu.memory_space<vmem>>, vector<1x128x128xf32>
    %77 = vector.shape_cast %76 : vector<1x128x128xf32> to vector<128x128xf32>
    %78 = arith.truncf %75 : vector<56x128xf32> to vector<56x128xbf16>
    %79 = arith.truncf %77 : vector<128x128xf32> to vector<128x128xbf16>
    %cst_36 = arith.constant dense<0.000000e+00> : vector<56x128xf32>
    %80 = tpu.matmul %78, %79, %cst_36 {dimension_numbers = #tpu.dot_dimension_numbers<[1], [0], [0], [1], [0, 0, 1, 1], [], []>} : vector<56x128xbf16>, vector<128x128xbf16>, vector<56x128xf32> -> vector<56x128xf32>
    %81 = arith.addf %74, %80 : vector<56x128xf32>
    %82 = vector.extract_strided_slice %65 {offsets = [0, 0, 1, 0], sizes = [1, 7, 7, 128], strides = [1, 1, 1, 1]} : vector<1x7x8x128xf32> to vector<1x7x7x128xf32>
    %83 = tpu.concatenate %82, %8 in 2 : vector<1x7x7x128xf32>, vector<1x7x1x128xf32> -> vector<1x7x8x128xf32>
    %84 = vector.shape_cast %83 : vector<1x7x8x128xf32> to vector<56x128xf32>
    %c5 = arith.constant 5 : index
    %c0_37 = arith.constant 0 : index
    %c0_38 = arith.constant 0 : index
    %85 = vector.load %arg7[%c5, %c0_37, %c0_38] : memref<18x128x128xf32, #tpu.memory_space<vmem>>, vector<1x128x128xf32>
    %86 = vector.shape_cast %85 : vector<1x128x128xf32> to vector<128x128xf32>
    %87 = arith.truncf %84 : vector<56x128xf32> to vector<56x128xbf16>
    %88 = arith.truncf %86 : vector<128x128xf32> to vector<128x128xbf16>
    %cst_39 = arith.constant dense<0.000000e+00> : vector<56x128xf32>
    %89 = tpu.matmul %87, %88, %cst_39 {dimension_numbers = #tpu.dot_dimension_numbers<[1], [0], [0], [1], [0, 0, 1, 1], [], []>} : vector<56x128xbf16>, vector<128x128xbf16>, vector<56x128xf32> -> vector<56x128xf32>
    %90 = arith.addf %81, %89 : vector<56x128xf32>
    %91 = vector.extract_strided_slice %37 {offsets = [0, 2, 0, 0], sizes = [1, 7, 8, 128], strides = [1, 1, 1, 1]} : vector<1x9x8x128xf32> to vector<1x7x8x128xf32>
    %92 = vector.extract_strided_slice %91 {offsets = [0, 0, 0, 0], sizes = [1, 7, 7, 128], strides = [1, 1, 1, 1]} : vector<1x7x8x128xf32> to vector<1x7x7x128xf32>
    %93 = tpu.concatenate %8, %92 in 2 : vector<1x7x1x128xf32>, vector<1x7x7x128xf32> -> vector<1x7x8x128xf32>
    %94 = vector.shape_cast %93 : vector<1x7x8x128xf32> to vector<56x128xf32>
    %c6 = arith.constant 6 : index
    %c0_40 = arith.constant 0 : index
    %c0_41 = arith.constant 0 : index
    %95 = vector.load %arg7[%c6, %c0_40, %c0_41] : memref<18x128x128xf32, #tpu.memory_space<vmem>>, vector<1x128x128xf32>
    %96 = vector.shape_cast %95 : vector<1x128x128xf32> to vector<128x128xf32>
    %97 = arith.truncf %94 : vector<56x128xf32> to vector<56x128xbf16>
    %98 = arith.truncf %96 : vector<128x128xf32> to vector<128x128xbf16>
    %cst_42 = arith.constant dense<0.000000e+00> : vector<56x128xf32>
    %99 = tpu.matmul %97, %98, %cst_42 {dimension_numbers = #tpu.dot_dimension_numbers<[1], [0], [0], [1], [0, 0, 1, 1], [], []>} : vector<56x128xbf16>, vector<128x128xbf16>, vector<56x128xf32> -> vector<56x128xf32>
    %100 = arith.addf %90, %99 : vector<56x128xf32>
    %101 = vector.shape_cast %91 : vector<1x7x8x128xf32> to vector<56x128xf32>
    %c7 = arith.constant 7 : index
    %c0_43 = arith.constant 0 : index
    %c0_44 = arith.constant 0 : index
    %102 = vector.load %arg7[%c7, %c0_43, %c0_44] : memref<18x128x128xf32, #tpu.memory_space<vmem>>, vector<1x128x128xf32>
    %103 = vector.shape_cast %102 : vector<1x128x128xf32> to vector<128x128xf32>
    %104 = arith.truncf %101 : vector<56x128xf32> to vector<56x128xbf16>
    %105 = arith.truncf %103 : vector<128x128xf32> to vector<128x128xbf16>
    %cst_45 = arith.constant dense<0.000000e+00> : vector<56x128xf32>
    %106 = tpu.matmul %104, %105, %cst_45 {dimension_numbers = #tpu.dot_dimension_numbers<[1], [0], [0], [1], [0, 0, 1, 1], [], []>} : vector<56x128xbf16>, vector<128x128xbf16>, vector<56x128xf32> -> vector<56x128xf32>
    %107 = arith.addf %100, %106 : vector<56x128xf32>
    %108 = vector.extract_strided_slice %91 {offsets = [0, 0, 1, 0], sizes = [1, 7, 7, 128], strides = [1, 1, 1, 1]} : vector<1x7x8x128xf32> to vector<1x7x7x128xf32>
    %109 = tpu.concatenate %108, %8 in 2 : vector<1x7x7x128xf32>, vector<1x7x1x128xf32> -> vector<1x7x8x128xf32>
    %110 = vector.shape_cast %109 : vector<1x7x8x128xf32> to vector<56x128xf32>
    %c8 = arith.constant 8 : index
    %c0_46 = arith.constant 0 : index
    %c0_47 = arith.constant 0 : index
    %111 = vector.load %arg7[%c8, %c0_46, %c0_47] : memref<18x128x128xf32, #tpu.memory_space<vmem>>, vector<1x128x128xf32>
    %112 = vector.shape_cast %111 : vector<1x128x128xf32> to vector<128x128xf32>
    %113 = arith.truncf %110 : vector<56x128xf32> to vector<56x128xbf16>
    %114 = arith.truncf %112 : vector<128x128xf32> to vector<128x128xbf16>
    %cst_48 = arith.constant dense<0.000000e+00> : vector<56x128xf32>
    %115 = tpu.matmul %113, %114, %cst_48 {dimension_numbers = #tpu.dot_dimension_numbers<[1], [0], [0], [1], [0, 0, 1, 1], [], []>} : vector<56x128xbf16>, vector<128x128xbf16>, vector<56x128xf32> -> vector<56x128xf32>
    %116 = arith.addf %107, %115 : vector<56x128xf32>
    %117 = arith.addf %0, %116 : vector<56x128xf32>
    %c1_49 = arith.constant 1 : index
    %c0_50 = arith.constant 0 : index
    %c0_51 = arith.constant 0 : index
    %118 = vector.load %arg2[%c1_49, %c0_50, %c0_51] : memref<2x1x128xf32, #tpu.memory_space<vmem>>, vector<1x1x128xf32>
    %119 = vector.shape_cast %118 : vector<1x1x128xf32> to vector<1x128xf32>
    %120 = vector.broadcast %119 : vector<1x128xf32> to vector<56x128xf32>
    %121 = arith.mulf %117, %120 : vector<56x128xf32>
    %c1_52 = arith.constant 1 : index
    %c0_53 = arith.constant 0 : index
    %c0_54 = arith.constant 0 : index
    %122 = vector.load %arg3[%c1_52, %c0_53, %c0_54] : memref<2x1x128xf32, #tpu.memory_space<vmem>>, vector<1x1x128xf32>
    %123 = vector.shape_cast %122 : vector<1x1x128xf32> to vector<1x128xf32>
    %124 = vector.broadcast %123 : vector<1x128xf32> to vector<56x128xf32>
    %125 = arith.addf %121, %124 : vector<56x128xf32>
    %cst_55 = arith.constant 0.000000e+00 : f32
    %126 = vector.broadcast %cst_55 : f32 to vector<56x128xf32>
    %127 = arith.maximumf %125, %126 : vector<56x128xf32>
    %c1_56 = arith.constant 1 : index
    %c0_57 = arith.constant 0 : index
    %c0_58 = arith.constant 0 : index
    %128 = vector.load %arg4[%c1_56, %c0_57, %c0_58] : memref<2x128x128xf32, #tpu.memory_space<vmem>>, vector<1x128x128xf32>
    %129 = vector.shape_cast %128 : vector<1x128x128xf32> to vector<128x128xf32>
    %130 = arith.truncf %127 : vector<56x128xf32> to vector<56x128xbf16>
    %131 = arith.truncf %129 : vector<128x128xf32> to vector<128x128xbf16>
    %cst_59 = arith.constant dense<0.000000e+00> : vector<56x128xf32>
    %132 = tpu.matmul %130, %131, %cst_59 {dimension_numbers = #tpu.dot_dimension_numbers<[1], [0], [0], [1], [0, 0, 1, 1], [], []>} : vector<56x128xbf16>, vector<128x128xbf16>, vector<56x128xf32> -> vector<56x128xf32>
    %c1_60 = arith.constant 1 : index
    %c0_61 = arith.constant 0 : index
    %c0_62 = arith.constant 0 : index
    %133 = vector.load %arg5[%c1_60, %c0_61, %c0_62] : memref<2x1x128xf32, #tpu.memory_space<vmem>>, vector<1x1x128xf32>
    %134 = vector.shape_cast %133 : vector<1x1x128xf32> to vector<1x128xf32>
    %135 = vector.broadcast %134 : vector<1x128xf32> to vector<56x128xf32>
    %136 = arith.mulf %132, %135 : vector<56x128xf32>
    %c1_63 = arith.constant 1 : index
    %c0_64 = arith.constant 0 : index
    %c0_65 = arith.constant 0 : index
    %137 = vector.load %arg6[%c1_63, %c0_64, %c0_65] : memref<2x1x128xf32, #tpu.memory_space<vmem>>, vector<1x1x128xf32>
    %138 = vector.shape_cast %137 : vector<1x1x128xf32> to vector<1x128xf32>
    %139 = vector.broadcast %138 : vector<1x128xf32> to vector<56x128xf32>
    %140 = arith.addf %136, %139 : vector<56x128xf32>
    %cst_66 = arith.constant 0.000000e+00 : f32
    %141 = vector.broadcast %cst_66 : f32 to vector<56x128xf32>
    %142 = arith.maximumf %140, %141 : vector<56x128xf32>
    %143 = vector.shape_cast %142 : vector<56x128xf32> to vector<1x7x8x128xf32>
    %144 = vector.broadcast %6 : vector<1x1x8x128xf32> to vector<1x7x8x128xf32>
    %145 = arith.mulf %143, %144 : vector<1x7x8x128xf32>
    %146 = tpu.concatenate %7, %145, %7 in 1 : vector<1x1x8x128xf32>, vector<1x7x8x128xf32>, vector<1x1x8x128xf32> -> vector<1x9x8x128xf32>
    %cst_67 = arith.constant 0.000000e+00 : f32
    %147 = vector.broadcast %cst_67 : f32 to vector<56x128xf32>
    %148 = vector.extract_strided_slice %146 {offsets = [0, 0, 0, 0], sizes = [1, 7, 8, 128], strides = [1, 1, 1, 1]} : vector<1x9x8x128xf32> to vector<1x7x8x128xf32>
    %149 = vector.extract_strided_slice %148 {offsets = [0, 0, 0, 0], sizes = [1, 7, 7, 128], strides = [1, 1, 1, 1]} : vector<1x7x8x128xf32> to vector<1x7x7x128xf32>
    %150 = tpu.concatenate %8, %149 in 2 : vector<1x7x1x128xf32>, vector<1x7x7x128xf32> -> vector<1x7x8x128xf32>
    %151 = vector.shape_cast %150 : vector<1x7x8x128xf32> to vector<56x128xf32>
    %c9 = arith.constant 9 : index
    %c0_68 = arith.constant 0 : index
    %c0_69 = arith.constant 0 : index
    %152 = vector.load %arg7[%c9, %c0_68, %c0_69] : memref<18x128x128xf32, #tpu.memory_space<vmem>>, vector<1x128x128xf32>
    %153 = vector.shape_cast %152 : vector<1x128x128xf32> to vector<128x128xf32>
    %154 = arith.truncf %151 : vector<56x128xf32> to vector<56x128xbf16>
    %155 = arith.truncf %153 : vector<128x128xf32> to vector<128x128xbf16>
    %cst_70 = arith.constant dense<0.000000e+00> : vector<56x128xf32>
    %156 = tpu.matmul %154, %155, %cst_70 {dimension_numbers = #tpu.dot_dimension_numbers<[1], [0], [0], [1], [0, 0, 1, 1], [], []>} : vector<56x128xbf16>, vector<128x128xbf16>, vector<56x128xf32> -> vector<56x128xf32>
    %157 = arith.addf %147, %156 : vector<56x128xf32>
    %158 = vector.shape_cast %148 : vector<1x7x8x128xf32> to vector<56x128xf32>
    %c10 = arith.constant 10 : index
    %c0_71 = arith.constant 0 : index
    %c0_72 = arith.constant 0 : index
    %159 = vector.load %arg7[%c10, %c0_71, %c0_72] : memref<18x128x128xf32, #tpu.memory_space<vmem>>, vector<1x128x128xf32>
    %160 = vector.shape_cast %159 : vector<1x128x128xf32> to vector<128x128xf32>
    %161 = arith.truncf %158 : vector<56x128xf32> to vector<56x128xbf16>
    %162 = arith.truncf %160 : vector<128x128xf32> to vector<128x128xbf16>
    %cst_73 = arith.constant dense<0.000000e+00> : vector<56x128xf32>
    %163 = tpu.matmul %161, %162, %cst_73 {dimension_numbers = #tpu.dot_dimension_numbers<[1], [0], [0], [1], [0, 0, 1, 1], [], []>} : vector<56x128xbf16>, vector<128x128xbf16>, vector<56x128xf32> -> vector<56x128xf32>
    %164 = arith.addf %157, %163 : vector<56x128xf32>
    %165 = vector.extract_strided_slice %148 {offsets = [0, 0, 1, 0], sizes = [1, 7, 7, 128], strides = [1, 1, 1, 1]} : vector<1x7x8x128xf32> to vector<1x7x7x128xf32>
    %166 = tpu.concatenate %165, %8 in 2 : vector<1x7x7x128xf32>, vector<1x7x1x128xf32> -> vector<1x7x8x128xf32>
    %167 = vector.shape_cast %166 : vector<1x7x8x128xf32> to vector<56x128xf32>
    %c11 = arith.constant 11 : index
    %c0_74 = arith.constant 0 : index
    %c0_75 = arith.constant 0 : index
    %168 = vector.load %arg7[%c11, %c0_74, %c0_75] : memref<18x128x128xf32, #tpu.memory_space<vmem>>, vector<1x128x128xf32>
    %169 = vector.shape_cast %168 : vector<1x128x128xf32> to vector<128x128xf32>
    %170 = arith.truncf %167 : vector<56x128xf32> to vector<56x128xbf16>
    %171 = arith.truncf %169 : vector<128x128xf32> to vector<128x128xbf16>
    %cst_76 = arith.constant dense<0.000000e+00> : vector<56x128xf32>
    %172 = tpu.matmul %170, %171, %cst_76 {dimension_numbers = #tpu.dot_dimension_numbers<[1], [0], [0], [1], [0, 0, 1, 1], [], []>} : vector<56x128xbf16>, vector<128x128xbf16>, vector<56x128xf32> -> vector<56x128xf32>
    %173 = arith.addf %164, %172 : vector<56x128xf32>
    %174 = vector.extract_strided_slice %146 {offsets = [0, 1, 0, 0], sizes = [1, 7, 8, 128], strides = [1, 1, 1, 1]} : vector<1x9x8x128xf32> to vector<1x7x8x128xf32>
    %175 = vector.extract_strided_slice %174 {offsets = [0, 0, 0, 0], sizes = [1, 7, 7, 128], strides = [1, 1, 1, 1]} : vector<1x7x8x128xf32> to vector<1x7x7x128xf32>
    %176 = tpu.concatenate %8, %175 in 2 : vector<1x7x1x128xf32>, vector<1x7x7x128xf32> -> vector<1x7x8x128xf32>
    %177 = vector.shape_cast %176 : vector<1x7x8x128xf32> to vector<56x128xf32>
    %c12 = arith.constant 12 : index
    %c0_77 = arith.constant 0 : index
    %c0_78 = arith.constant 0 : index
    %178 = vector.load %arg7[%c12, %c0_77, %c0_78] : memref<18x128x128xf32, #tpu.memory_space<vmem>>, vector<1x128x128xf32>
    %179 = vector.shape_cast %178 : vector<1x128x128xf32> to vector<128x128xf32>
    %180 = arith.truncf %177 : vector<56x128xf32> to vector<56x128xbf16>
    %181 = arith.truncf %179 : vector<128x128xf32> to vector<128x128xbf16>
    %cst_79 = arith.constant dense<0.000000e+00> : vector<56x128xf32>
    %182 = tpu.matmul %180, %181, %cst_79 {dimension_numbers = #tpu.dot_dimension_numbers<[1], [0], [0], [1], [0, 0, 1, 1], [], []>} : vector<56x128xbf16>, vector<128x128xbf16>, vector<56x128xf32> -> vector<56x128xf32>
    %183 = arith.addf %173, %182 : vector<56x128xf32>
    %184 = vector.shape_cast %174 : vector<1x7x8x128xf32> to vector<56x128xf32>
    %c13 = arith.constant 13 : index
    %c0_80 = arith.constant 0 : index
    %c0_81 = arith.constant 0 : index
    %185 = vector.load %arg7[%c13, %c0_80, %c0_81] : memref<18x128x128xf32, #tpu.memory_space<vmem>>, vector<1x128x128xf32>
    %186 = vector.shape_cast %185 : vector<1x128x128xf32> to vector<128x128xf32>
    %187 = arith.truncf %184 : vector<56x128xf32> to vector<56x128xbf16>
    %188 = arith.truncf %186 : vector<128x128xf32> to vector<128x128xbf16>
    %cst_82 = arith.constant dense<0.000000e+00> : vector<56x128xf32>
    %189 = tpu.matmul %187, %188, %cst_82 {dimension_numbers = #tpu.dot_dimension_numbers<[1], [0], [0], [1], [0, 0, 1, 1], [], []>} : vector<56x128xbf16>, vector<128x128xbf16>, vector<56x128xf32> -> vector<56x128xf32>
    %190 = arith.addf %183, %189 : vector<56x128xf32>
    %191 = vector.extract_strided_slice %174 {offsets = [0, 0, 1, 0], sizes = [1, 7, 7, 128], strides = [1, 1, 1, 1]} : vector<1x7x8x128xf32> to vector<1x7x7x128xf32>
    %192 = tpu.concatenate %191, %8 in 2 : vector<1x7x7x128xf32>, vector<1x7x1x128xf32> -> vector<1x7x8x128xf32>
    %193 = vector.shape_cast %192 : vector<1x7x8x128xf32> to vector<56x128xf32>
    %c14 = arith.constant 14 : index
    %c0_83 = arith.constant 0 : index
    %c0_84 = arith.constant 0 : index
    %194 = vector.load %arg7[%c14, %c0_83, %c0_84] : memref<18x128x128xf32, #tpu.memory_space<vmem>>, vector<1x128x128xf32>
    %195 = vector.shape_cast %194 : vector<1x128x128xf32> to vector<128x128xf32>
    %196 = arith.truncf %193 : vector<56x128xf32> to vector<56x128xbf16>
    %197 = arith.truncf %195 : vector<128x128xf32> to vector<128x128xbf16>
    %cst_85 = arith.constant dense<0.000000e+00> : vector<56x128xf32>
    %198 = tpu.matmul %196, %197, %cst_85 {dimension_numbers = #tpu.dot_dimension_numbers<[1], [0], [0], [1], [0, 0, 1, 1], [], []>} : vector<56x128xbf16>, vector<128x128xbf16>, vector<56x128xf32> -> vector<56x128xf32>
    %199 = arith.addf %190, %198 : vector<56x128xf32>
    %200 = vector.extract_strided_slice %146 {offsets = [0, 2, 0, 0], sizes = [1, 7, 8, 128], strides = [1, 1, 1, 1]} : vector<1x9x8x128xf32> to vector<1x7x8x128xf32>
    %201 = vector.extract_strided_slice %200 {offsets = [0, 0, 0, 0], sizes = [1, 7, 7, 128], strides = [1, 1, 1, 1]} : vector<1x7x8x128xf32> to vector<1x7x7x128xf32>
    %202 = tpu.concatenate %8, %201 in 2 : vector<1x7x1x128xf32>, vector<1x7x7x128xf32> -> vector<1x7x8x128xf32>
    %203 = vector.shape_cast %202 : vector<1x7x8x128xf32> to vector<56x128xf32>
    %c15 = arith.constant 15 : index
    %c0_86 = arith.constant 0 : index
    %c0_87 = arith.constant 0 : index
    %204 = vector.load %arg7[%c15, %c0_86, %c0_87] : memref<18x128x128xf32, #tpu.memory_space<vmem>>, vector<1x128x128xf32>
    %205 = vector.shape_cast %204 : vector<1x128x128xf32> to vector<128x128xf32>
    %206 = arith.truncf %203 : vector<56x128xf32> to vector<56x128xbf16>
    %207 = arith.truncf %205 : vector<128x128xf32> to vector<128x128xbf16>
    %cst_88 = arith.constant dense<0.000000e+00> : vector<56x128xf32>
    %208 = tpu.matmul %206, %207, %cst_88 {dimension_numbers = #tpu.dot_dimension_numbers<[1], [0], [0], [1], [0, 0, 1, 1], [], []>} : vector<56x128xbf16>, vector<128x128xbf16>, vector<56x128xf32> -> vector<56x128xf32>
    %209 = arith.addf %199, %208 : vector<56x128xf32>
    %210 = vector.shape_cast %200 : vector<1x7x8x128xf32> to vector<56x128xf32>
    %c16 = arith.constant 16 : index
    %c0_89 = arith.constant 0 : index
    %c0_90 = arith.constant 0 : index
    %211 = vector.load %arg7[%c16, %c0_89, %c0_90] : memref<18x128x128xf32, #tpu.memory_space<vmem>>, vector<1x128x128xf32>
    %212 = vector.shape_cast %211 : vector<1x128x128xf32> to vector<128x128xf32>
    %213 = arith.truncf %210 : vector<56x128xf32> to vector<56x128xbf16>
    %214 = arith.truncf %212 : vector<128x128xf32> to vector<128x128xbf16>
    %cst_91 = arith.constant dense<0.000000e+00> : vector<56x128xf32>
    %215 = tpu.matmul %213, %214, %cst_91 {dimension_numbers = #tpu.dot_dimension_numbers<[1], [0], [0], [1], [0, 0, 1, 1], [], []>} : vector<56x128xbf16>, vector<128x128xbf16>, vector<56x128xf32> -> vector<56x128xf32>
    %216 = arith.addf %209, %215 : vector<56x128xf32>
    %217 = vector.extract_strided_slice %200 {offsets = [0, 0, 1, 0], sizes = [1, 7, 7, 128], strides = [1, 1, 1, 1]} : vector<1x7x8x128xf32> to vector<1x7x7x128xf32>
    %218 = tpu.concatenate %217, %8 in 2 : vector<1x7x7x128xf32>, vector<1x7x1x128xf32> -> vector<1x7x8x128xf32>
    %219 = vector.shape_cast %218 : vector<1x7x8x128xf32> to vector<56x128xf32>
    %c17 = arith.constant 17 : index
    %c0_92 = arith.constant 0 : index
    %c0_93 = arith.constant 0 : index
    %220 = vector.load %arg7[%c17, %c0_92, %c0_93] : memref<18x128x128xf32, #tpu.memory_space<vmem>>, vector<1x128x128xf32>
    %221 = vector.shape_cast %220 : vector<1x128x128xf32> to vector<128x128xf32>
    %222 = arith.truncf %219 : vector<56x128xf32> to vector<56x128xbf16>
    %223 = arith.truncf %221 : vector<128x128xf32> to vector<128x128xbf16>
    %cst_94 = arith.constant dense<0.000000e+00> : vector<56x128xf32>
    %224 = tpu.matmul %222, %223, %cst_94 {dimension_numbers = #tpu.dot_dimension_numbers<[1], [0], [0], [1], [0, 0, 1, 1], [], []>} : vector<56x128xbf16>, vector<128x128xbf16>, vector<56x128xf32> -> vector<56x128xf32>
    %225 = arith.addf %216, %224 : vector<56x128xf32>
    %226 = arith.addf %117, %225 : vector<56x128xf32>
    %c0_95 = arith.constant 0 : index
    %c0_96 = arith.constant 0 : index
    %227 = vector.load %arg8[%c0_95, %c0_96] : memref<56x128xf32, #tpu.memory_space<vmem>>, vector<56x128xf32>
    tpu.vector_store %arg8[%c0_95, %c0_96], %226 {strides = array<i32>} : memref<56x128xf32, #tpu.memory_space<vmem>>, vector<56x128xf32>,
    return
  }
  func.func @transform_0(%arg0: i32) -> (i32, i32) {
    %c0_i32 = arith.constant 0 : i32
    %c0_i32_0 = arith.constant 0 : i32
    return %arg0, %c0_i32 : i32, i32
  }
  func.func @transform_1(%arg0: i32) -> (i32, i32, i32) {
    %c0_i32 = arith.constant 0 : i32
    %c0_i32_0 = arith.constant 0 : i32
    %c0_i32_1 = arith.constant 0 : i32
    %c0_i32_2 = arith.constant 0 : i32
    return %c0_i32, %c0_i32_0, %c0_i32_1 : i32, i32, i32
  }
  func.func @transform_2(%arg0: i32) -> (i32, i32, i32) {
    %c0_i32 = arith.constant 0 : i32
    %c0_i32_0 = arith.constant 0 : i32
    %c0_i32_1 = arith.constant 0 : i32
    %c0_i32_2 = arith.constant 0 : i32
    return %c0_i32, %c0_i32_0, %c0_i32_1 : i32, i32, i32
  }
  func.func @transform_3(%arg0: i32) -> (i32, i32, i32) {
    %c0_i32 = arith.constant 0 : i32
    %c0_i32_0 = arith.constant 0 : i32
    %c0_i32_1 = arith.constant 0 : i32
    %c0_i32_2 = arith.constant 0 : i32
    return %c0_i32, %c0_i32_0, %c0_i32_1 : i32, i32, i32
  }
  func.func @transform_4(%arg0: i32) -> (i32, i32, i32) {
    %c0_i32 = arith.constant 0 : i32
    %c0_i32_0 = arith.constant 0 : i32
    %c0_i32_1 = arith.constant 0 : i32
    %c0_i32_2 = arith.constant 0 : i32
    return %c0_i32, %c0_i32_0, %c0_i32_1 : i32, i32, i32
  }
  func.func @transform_5(%arg0: i32) -> (i32, i32, i32) {
    %c0_i32 = arith.constant 0 : i32
    %c0_i32_0 = arith.constant 0 : i32
    %c0_i32_1 = arith.constant 0 : i32
    %c0_i32_2 = arith.constant 0 : i32
    return %c0_i32, %c0_i32_0, %c0_i32_1 : i32, i32, i32
  }
  func.func @transform_6(%arg0: i32) -> (i32, i32, i32) {
    %c0_i32 = arith.constant 0 : i32
    %c0_i32_0 = arith.constant 0 : i32
    %c0_i32_1 = arith.constant 0 : i32
    %c0_i32_2 = arith.constant 0 : i32
    return %c0_i32, %c0_i32_0, %c0_i32_1 : i32, i32, i32
  }
  func.func @transform_7(%arg0: i32) -> (i32, i32) {
    %c0_i32 = arith.constant 0 : i32
    %c0_i32_0 = arith.constant 0 : i32
    return %arg0, %c0_i32 : i32, i32
  }
}

module attributes {stable_mosaic.version = 11 : i64} {
  func.func @_dense_block_kernel(%arg0: i32, %arg1: memref<24x128xf32, #tpu.memory_space<vmem>>, %arg2: memref<2x1x128xf32, #tpu.memory_space<vmem>>, %arg3: memref<2x1x128xf32, #tpu.memory_space<vmem>>, %arg4: memref<2x128x128xf32, #tpu.memory_space<vmem>>, %arg5: memref<2x1x128xf32, #tpu.memory_space<vmem>>, %arg6: memref<2x1x128xf32, #tpu.memory_space<vmem>>, %arg7: memref<18x128x128xf32, #tpu.memory_space<vmem>>, %arg8: memref<24x128xf32, #tpu.memory_space<vmem>>) attributes {dimension_semantics = [#tpu.dimension_semantics<parallel>], iteration_bounds = array<i64: 2>, scalar_prefetch = 0 : i64, scratch_operands = 0 : i64, tpu.core_type = #tpu.core_type<tc>, window_params = [{transform_indices = @transform_0, window_bounds = array<i64: 24, 128>}, {pipeline_mode = #tpu.pipeline_mode<synchronous>, transform_indices = @transform_1, window_bounds = array<i64: 2, 1, 128>}, {pipeline_mode = #tpu.pipeline_mode<synchronous>, transform_indices = @transform_2, window_bounds = array<i64: 2, 1, 128>}, {pipeline_mode = #tpu.pipeline_mode<synchronous>, transform_indices = @transform_3, window_bounds = array<i64: 2, 128, 128>}, {pipeline_mode = #tpu.pipeline_mode<synchronous>, transform_indices = @transform_4, window_bounds = array<i64: 2, 1, 128>}, {pipeline_mode = #tpu.pipeline_mode<synchronous>, transform_indices = @transform_5, window_bounds = array<i64: 2, 1, 128>}, {pipeline_mode = #tpu.pipeline_mode<synchronous>, transform_indices = @transform_6, window_bounds = array<i64: 18, 128, 128>}, {transform_indices = @transform_7, window_bounds = array<i64: 24, 128>}]} {
    %c0 = arith.constant 0 : index
    %c0_0 = arith.constant 0 : index
    %0 = vector.load %arg1[%c0, %c0_0] : memref<24x128xf32, #tpu.memory_space<vmem>>, vector<24x128xf32>
    %1 = tpu.iota {dimensions = array<i32: 0>} : vector<8x128xi32>
    %c3_i32 = arith.constant 3 : i32
    %2 = vector.broadcast %c3_i32 : i32 to vector<8x128xi32>
    %3 = arith.cmpi slt, %1, %2 : vector<8x128xi32>
    %4 = arith.extui %3 : vector<8x128xi1> to vector<8x128xi32>
    %5 = arith.sitofp %4 : vector<8x128xi32> to vector<8x128xf32>
    %6 = vector.shape_cast %5 : vector<8x128xf32> to vector<1x1x8x128xf32>
    %cst = arith.constant 0.000000e+00 : f32
    %7 = vector.broadcast %cst : f32 to vector<1x1x8x128xf32>
    %cst_1 = arith.constant 0.000000e+00 : f32
    %8 = vector.broadcast %cst_1 : f32 to vector<1x3x1x128xf32>
    %c0_2 = arith.constant 0 : index
    %c0_3 = arith.constant 0 : index
    %c0_4 = arith.constant 0 : index
    %9 = vector.load %arg2[%c0_2, %c0_3, %c0_4] : memref<2x1x128xf32, #tpu.memory_space<vmem>>, vector<1x1x128xf32>
    %10 = vector.shape_cast %9 : vector<1x1x128xf32> to vector<1x128xf32>
    %11 = vector.broadcast %10 : vector<1x128xf32> to vector<24x128xf32>
    %12 = arith.mulf %0, %11 : vector<24x128xf32>
    %c0_5 = arith.constant 0 : index
    %c0_6 = arith.constant 0 : index
    %c0_7 = arith.constant 0 : index
    %13 = vector.load %arg3[%c0_5, %c0_6, %c0_7] : memref<2x1x128xf32, #tpu.memory_space<vmem>>, vector<1x1x128xf32>
    %14 = vector.shape_cast %13 : vector<1x1x128xf32> to vector<1x128xf32>
    %15 = vector.broadcast %14 : vector<1x128xf32> to vector<24x128xf32>
    %16 = arith.addf %12, %15 : vector<24x128xf32>
    %cst_8 = arith.constant 0.000000e+00 : f32
    %17 = vector.broadcast %cst_8 : f32 to vector<24x128xf32>
    %18 = arith.maximumf %16, %17 : vector<24x128xf32>
    %c0_9 = arith.constant 0 : index
    %c0_10 = arith.constant 0 : index
    %c0_11 = arith.constant 0 : index
    %19 = vector.load %arg4[%c0_9, %c0_10, %c0_11] : memref<2x128x128xf32, #tpu.memory_space<vmem>>, vector<1x128x128xf32>
    %20 = vector.shape_cast %19 : vector<1x128x128xf32> to vector<128x128xf32>
    %21 = arith.truncf %18 : vector<24x128xf32> to vector<24x128xbf16>
    %22 = arith.truncf %20 : vector<128x128xf32> to vector<128x128xbf16>
    %cst_12 = arith.constant dense<0.000000e+00> : vector<24x128xf32>
    %23 = tpu.matmul %21, %22, %cst_12 {dimension_numbers = #tpu.dot_dimension_numbers<[1], [0], [0], [1], [0, 0, 1, 1], [], []>} : vector<24x128xbf16>, vector<128x128xbf16>, vector<24x128xf32> -> vector<24x128xf32>
    %c0_13 = arith.constant 0 : index
    %c0_14 = arith.constant 0 : index
    %c0_15 = arith.constant 0 : index
    %24 = vector.load %arg5[%c0_13, %c0_14, %c0_15] : memref<2x1x128xf32, #tpu.memory_space<vmem>>, vector<1x1x128xf32>
    %25 = vector.shape_cast %24 : vector<1x1x128xf32> to vector<1x128xf32>
    %26 = vector.broadcast %25 : vector<1x128xf32> to vector<24x128xf32>
    %27 = arith.mulf %23, %26 : vector<24x128xf32>
    %c0_16 = arith.constant 0 : index
    %c0_17 = arith.constant 0 : index
    %c0_18 = arith.constant 0 : index
    %28 = vector.load %arg6[%c0_16, %c0_17, %c0_18] : memref<2x1x128xf32, #tpu.memory_space<vmem>>, vector<1x1x128xf32>
    %29 = vector.shape_cast %28 : vector<1x1x128xf32> to vector<1x128xf32>
    %30 = vector.broadcast %29 : vector<1x128xf32> to vector<24x128xf32>
    %31 = arith.addf %27, %30 : vector<24x128xf32>
    %cst_19 = arith.constant 0.000000e+00 : f32
    %32 = vector.broadcast %cst_19 : f32 to vector<24x128xf32>
    %33 = arith.maximumf %31, %32 : vector<24x128xf32>
    %34 = vector.shape_cast %33 : vector<24x128xf32> to vector<1x3x8x128xf32>
    %35 = vector.broadcast %6 : vector<1x1x8x128xf32> to vector<1x3x8x128xf32>
    %36 = arith.mulf %34, %35 : vector<1x3x8x128xf32>
    %37 = tpu.concatenate %7, %36, %7 in 1 : vector<1x1x8x128xf32>, vector<1x3x8x128xf32>, vector<1x1x8x128xf32> -> vector<1x5x8x128xf32>
    %cst_20 = arith.constant 0.000000e+00 : f32
    %38 = vector.broadcast %cst_20 : f32 to vector<24x128xf32>
    %39 = vector.extract_strided_slice %37 {offsets = [0, 0, 0, 0], sizes = [1, 3, 8, 128], strides = [1, 1, 1, 1]} : vector<1x5x8x128xf32> to vector<1x3x8x128xf32>
    %40 = vector.extract_strided_slice %39 {offsets = [0, 0, 0, 0], sizes = [1, 3, 7, 128], strides = [1, 1, 1, 1]} : vector<1x3x8x128xf32> to vector<1x3x7x128xf32>
    %41 = tpu.concatenate %8, %40 in 2 : vector<1x3x1x128xf32>, vector<1x3x7x128xf32> -> vector<1x3x8x128xf32>
    %42 = vector.shape_cast %41 : vector<1x3x8x128xf32> to vector<24x128xf32>
    %c0_21 = arith.constant 0 : index
    %c0_22 = arith.constant 0 : index
    %c0_23 = arith.constant 0 : index
    %43 = vector.load %arg7[%c0_21, %c0_22, %c0_23] : memref<18x128x128xf32, #tpu.memory_space<vmem>>, vector<1x128x128xf32>
    %44 = vector.shape_cast %43 : vector<1x128x128xf32> to vector<128x128xf32>
    %45 = arith.truncf %42 : vector<24x128xf32> to vector<24x128xbf16>
    %46 = arith.truncf %44 : vector<128x128xf32> to vector<128x128xbf16>
    %cst_24 = arith.constant dense<0.000000e+00> : vector<24x128xf32>
    %47 = tpu.matmul %45, %46, %cst_24 {dimension_numbers = #tpu.dot_dimension_numbers<[1], [0], [0], [1], [0, 0, 1, 1], [], []>} : vector<24x128xbf16>, vector<128x128xbf16>, vector<24x128xf32> -> vector<24x128xf32>
    %48 = arith.addf %38, %47 : vector<24x128xf32>
    %49 = vector.shape_cast %39 : vector<1x3x8x128xf32> to vector<24x128xf32>
    %c1 = arith.constant 1 : index
    %c0_25 = arith.constant 0 : index
    %c0_26 = arith.constant 0 : index
    %50 = vector.load %arg7[%c1, %c0_25, %c0_26] : memref<18x128x128xf32, #tpu.memory_space<vmem>>, vector<1x128x128xf32>
    %51 = vector.shape_cast %50 : vector<1x128x128xf32> to vector<128x128xf32>
    %52 = arith.truncf %49 : vector<24x128xf32> to vector<24x128xbf16>
    %53 = arith.truncf %51 : vector<128x128xf32> to vector<128x128xbf16>
    %cst_27 = arith.constant dense<0.000000e+00> : vector<24x128xf32>
    %54 = tpu.matmul %52, %53, %cst_27 {dimension_numbers = #tpu.dot_dimension_numbers<[1], [0], [0], [1], [0, 0, 1, 1], [], []>} : vector<24x128xbf16>, vector<128x128xbf16>, vector<24x128xf32> -> vector<24x128xf32>
    %55 = arith.addf %48, %54 : vector<24x128xf32>
    %56 = vector.extract_strided_slice %39 {offsets = [0, 0, 1, 0], sizes = [1, 3, 7, 128], strides = [1, 1, 1, 1]} : vector<1x3x8x128xf32> to vector<1x3x7x128xf32>
    %57 = tpu.concatenate %56, %8 in 2 : vector<1x3x7x128xf32>, vector<1x3x1x128xf32> -> vector<1x3x8x128xf32>
    %58 = vector.shape_cast %57 : vector<1x3x8x128xf32> to vector<24x128xf32>
    %c2 = arith.constant 2 : index
    %c0_28 = arith.constant 0 : index
    %c0_29 = arith.constant 0 : index
    %59 = vector.load %arg7[%c2, %c0_28, %c0_29] : memref<18x128x128xf32, #tpu.memory_space<vmem>>, vector<1x128x128xf32>
    %60 = vector.shape_cast %59 : vector<1x128x128xf32> to vector<128x128xf32>
    %61 = arith.truncf %58 : vector<24x128xf32> to vector<24x128xbf16>
    %62 = arith.truncf %60 : vector<128x128xf32> to vector<128x128xbf16>
    %cst_30 = arith.constant dense<0.000000e+00> : vector<24x128xf32>
    %63 = tpu.matmul %61, %62, %cst_30 {dimension_numbers = #tpu.dot_dimension_numbers<[1], [0], [0], [1], [0, 0, 1, 1], [], []>} : vector<24x128xbf16>, vector<128x128xbf16>, vector<24x128xf32> -> vector<24x128xf32>
    %64 = arith.addf %55, %63 : vector<24x128xf32>
    %65 = vector.extract_strided_slice %37 {offsets = [0, 1, 0, 0], sizes = [1, 3, 8, 128], strides = [1, 1, 1, 1]} : vector<1x5x8x128xf32> to vector<1x3x8x128xf32>
    %66 = vector.extract_strided_slice %65 {offsets = [0, 0, 0, 0], sizes = [1, 3, 7, 128], strides = [1, 1, 1, 1]} : vector<1x3x8x128xf32> to vector<1x3x7x128xf32>
    %67 = tpu.concatenate %8, %66 in 2 : vector<1x3x1x128xf32>, vector<1x3x7x128xf32> -> vector<1x3x8x128xf32>
    %68 = vector.shape_cast %67 : vector<1x3x8x128xf32> to vector<24x128xf32>
    %c3 = arith.constant 3 : index
    %c0_31 = arith.constant 0 : index
    %c0_32 = arith.constant 0 : index
    %69 = vector.load %arg7[%c3, %c0_31, %c0_32] : memref<18x128x128xf32, #tpu.memory_space<vmem>>, vector<1x128x128xf32>
    %70 = vector.shape_cast %69 : vector<1x128x128xf32> to vector<128x128xf32>
    %71 = arith.truncf %68 : vector<24x128xf32> to vector<24x128xbf16>
    %72 = arith.truncf %70 : vector<128x128xf32> to vector<128x128xbf16>
    %cst_33 = arith.constant dense<0.000000e+00> : vector<24x128xf32>
    %73 = tpu.matmul %71, %72, %cst_33 {dimension_numbers = #tpu.dot_dimension_numbers<[1], [0], [0], [1], [0, 0, 1, 1], [], []>} : vector<24x128xbf16>, vector<128x128xbf16>, vector<24x128xf32> -> vector<24x128xf32>
    %74 = arith.addf %64, %73 : vector<24x128xf32>
    %75 = vector.shape_cast %65 : vector<1x3x8x128xf32> to vector<24x128xf32>
    %c4 = arith.constant 4 : index
    %c0_34 = arith.constant 0 : index
    %c0_35 = arith.constant 0 : index
    %76 = vector.load %arg7[%c4, %c0_34, %c0_35] : memref<18x128x128xf32, #tpu.memory_space<vmem>>, vector<1x128x128xf32>
    %77 = vector.shape_cast %76 : vector<1x128x128xf32> to vector<128x128xf32>
    %78 = arith.truncf %75 : vector<24x128xf32> to vector<24x128xbf16>
    %79 = arith.truncf %77 : vector<128x128xf32> to vector<128x128xbf16>
    %cst_36 = arith.constant dense<0.000000e+00> : vector<24x128xf32>
    %80 = tpu.matmul %78, %79, %cst_36 {dimension_numbers = #tpu.dot_dimension_numbers<[1], [0], [0], [1], [0, 0, 1, 1], [], []>} : vector<24x128xbf16>, vector<128x128xbf16>, vector<24x128xf32> -> vector<24x128xf32>
    %81 = arith.addf %74, %80 : vector<24x128xf32>
    %82 = vector.extract_strided_slice %65 {offsets = [0, 0, 1, 0], sizes = [1, 3, 7, 128], strides = [1, 1, 1, 1]} : vector<1x3x8x128xf32> to vector<1x3x7x128xf32>
    %83 = tpu.concatenate %82, %8 in 2 : vector<1x3x7x128xf32>, vector<1x3x1x128xf32> -> vector<1x3x8x128xf32>
    %84 = vector.shape_cast %83 : vector<1x3x8x128xf32> to vector<24x128xf32>
    %c5 = arith.constant 5 : index
    %c0_37 = arith.constant 0 : index
    %c0_38 = arith.constant 0 : index
    %85 = vector.load %arg7[%c5, %c0_37, %c0_38] : memref<18x128x128xf32, #tpu.memory_space<vmem>>, vector<1x128x128xf32>
    %86 = vector.shape_cast %85 : vector<1x128x128xf32> to vector<128x128xf32>
    %87 = arith.truncf %84 : vector<24x128xf32> to vector<24x128xbf16>
    %88 = arith.truncf %86 : vector<128x128xf32> to vector<128x128xbf16>
    %cst_39 = arith.constant dense<0.000000e+00> : vector<24x128xf32>
    %89 = tpu.matmul %87, %88, %cst_39 {dimension_numbers = #tpu.dot_dimension_numbers<[1], [0], [0], [1], [0, 0, 1, 1], [], []>} : vector<24x128xbf16>, vector<128x128xbf16>, vector<24x128xf32> -> vector<24x128xf32>
    %90 = arith.addf %81, %89 : vector<24x128xf32>
    %91 = vector.extract_strided_slice %37 {offsets = [0, 2, 0, 0], sizes = [1, 3, 8, 128], strides = [1, 1, 1, 1]} : vector<1x5x8x128xf32> to vector<1x3x8x128xf32>
    %92 = vector.extract_strided_slice %91 {offsets = [0, 0, 0, 0], sizes = [1, 3, 7, 128], strides = [1, 1, 1, 1]} : vector<1x3x8x128xf32> to vector<1x3x7x128xf32>
    %93 = tpu.concatenate %8, %92 in 2 : vector<1x3x1x128xf32>, vector<1x3x7x128xf32> -> vector<1x3x8x128xf32>
    %94 = vector.shape_cast %93 : vector<1x3x8x128xf32> to vector<24x128xf32>
    %c6 = arith.constant 6 : index
    %c0_40 = arith.constant 0 : index
    %c0_41 = arith.constant 0 : index
    %95 = vector.load %arg7[%c6, %c0_40, %c0_41] : memref<18x128x128xf32, #tpu.memory_space<vmem>>, vector<1x128x128xf32>
    %96 = vector.shape_cast %95 : vector<1x128x128xf32> to vector<128x128xf32>
    %97 = arith.truncf %94 : vector<24x128xf32> to vector<24x128xbf16>
    %98 = arith.truncf %96 : vector<128x128xf32> to vector<128x128xbf16>
    %cst_42 = arith.constant dense<0.000000e+00> : vector<24x128xf32>
    %99 = tpu.matmul %97, %98, %cst_42 {dimension_numbers = #tpu.dot_dimension_numbers<[1], [0], [0], [1], [0, 0, 1, 1], [], []>} : vector<24x128xbf16>, vector<128x128xbf16>, vector<24x128xf32> -> vector<24x128xf32>
    %100 = arith.addf %90, %99 : vector<24x128xf32>
    %101 = vector.shape_cast %91 : vector<1x3x8x128xf32> to vector<24x128xf32>
    %c7 = arith.constant 7 : index
    %c0_43 = arith.constant 0 : index
    %c0_44 = arith.constant 0 : index
    %102 = vector.load %arg7[%c7, %c0_43, %c0_44] : memref<18x128x128xf32, #tpu.memory_space<vmem>>, vector<1x128x128xf32>
    %103 = vector.shape_cast %102 : vector<1x128x128xf32> to vector<128x128xf32>
    %104 = arith.truncf %101 : vector<24x128xf32> to vector<24x128xbf16>
    %105 = arith.truncf %103 : vector<128x128xf32> to vector<128x128xbf16>
    %cst_45 = arith.constant dense<0.000000e+00> : vector<24x128xf32>
    %106 = tpu.matmul %104, %105, %cst_45 {dimension_numbers = #tpu.dot_dimension_numbers<[1], [0], [0], [1], [0, 0, 1, 1], [], []>} : vector<24x128xbf16>, vector<128x128xbf16>, vector<24x128xf32> -> vector<24x128xf32>
    %107 = arith.addf %100, %106 : vector<24x128xf32>
    %108 = vector.extract_strided_slice %91 {offsets = [0, 0, 1, 0], sizes = [1, 3, 7, 128], strides = [1, 1, 1, 1]} : vector<1x3x8x128xf32> to vector<1x3x7x128xf32>
    %109 = tpu.concatenate %108, %8 in 2 : vector<1x3x7x128xf32>, vector<1x3x1x128xf32> -> vector<1x3x8x128xf32>
    %110 = vector.shape_cast %109 : vector<1x3x8x128xf32> to vector<24x128xf32>
    %c8 = arith.constant 8 : index
    %c0_46 = arith.constant 0 : index
    %c0_47 = arith.constant 0 : index
    %111 = vector.load %arg7[%c8, %c0_46, %c0_47] : memref<18x128x128xf32, #tpu.memory_space<vmem>>, vector<1x128x128xf32>
    %112 = vector.shape_cast %111 : vector<1x128x128xf32> to vector<128x128xf32>
    %113 = arith.truncf %110 : vector<24x128xf32> to vector<24x128xbf16>
    %114 = arith.truncf %112 : vector<128x128xf32> to vector<128x128xbf16>
    %cst_48 = arith.constant dense<0.000000e+00> : vector<24x128xf32>
    %115 = tpu.matmul %113, %114, %cst_48 {dimension_numbers = #tpu.dot_dimension_numbers<[1], [0], [0], [1], [0, 0, 1, 1], [], []>} : vector<24x128xbf16>, vector<128x128xbf16>, vector<24x128xf32> -> vector<24x128xf32>
    %116 = arith.addf %107, %115 : vector<24x128xf32>
    %117 = arith.addf %0, %116 : vector<24x128xf32>
    %c1_49 = arith.constant 1 : index
    %c0_50 = arith.constant 0 : index
    %c0_51 = arith.constant 0 : index
    %118 = vector.load %arg2[%c1_49, %c0_50, %c0_51] : memref<2x1x128xf32, #tpu.memory_space<vmem>>, vector<1x1x128xf32>
    %119 = vector.shape_cast %118 : vector<1x1x128xf32> to vector<1x128xf32>
    %120 = vector.broadcast %119 : vector<1x128xf32> to vector<24x128xf32>
    %121 = arith.mulf %117, %120 : vector<24x128xf32>
    %c1_52 = arith.constant 1 : index
    %c0_53 = arith.constant 0 : index
    %c0_54 = arith.constant 0 : index
    %122 = vector.load %arg3[%c1_52, %c0_53, %c0_54] : memref<2x1x128xf32, #tpu.memory_space<vmem>>, vector<1x1x128xf32>
    %123 = vector.shape_cast %122 : vector<1x1x128xf32> to vector<1x128xf32>
    %124 = vector.broadcast %123 : vector<1x128xf32> to vector<24x128xf32>
    %125 = arith.addf %121, %124 : vector<24x128xf32>
    %cst_55 = arith.constant 0.000000e+00 : f32
    %126 = vector.broadcast %cst_55 : f32 to vector<24x128xf32>
    %127 = arith.maximumf %125, %126 : vector<24x128xf32>
    %c1_56 = arith.constant 1 : index
    %c0_57 = arith.constant 0 : index
    %c0_58 = arith.constant 0 : index
    %128 = vector.load %arg4[%c1_56, %c0_57, %c0_58] : memref<2x128x128xf32, #tpu.memory_space<vmem>>, vector<1x128x128xf32>
    %129 = vector.shape_cast %128 : vector<1x128x128xf32> to vector<128x128xf32>
    %130 = arith.truncf %127 : vector<24x128xf32> to vector<24x128xbf16>
    %131 = arith.truncf %129 : vector<128x128xf32> to vector<128x128xbf16>
    %cst_59 = arith.constant dense<0.000000e+00> : vector<24x128xf32>
    %132 = tpu.matmul %130, %131, %cst_59 {dimension_numbers = #tpu.dot_dimension_numbers<[1], [0], [0], [1], [0, 0, 1, 1], [], []>} : vector<24x128xbf16>, vector<128x128xbf16>, vector<24x128xf32> -> vector<24x128xf32>
    %c1_60 = arith.constant 1 : index
    %c0_61 = arith.constant 0 : index
    %c0_62 = arith.constant 0 : index
    %133 = vector.load %arg5[%c1_60, %c0_61, %c0_62] : memref<2x1x128xf32, #tpu.memory_space<vmem>>, vector<1x1x128xf32>
    %134 = vector.shape_cast %133 : vector<1x1x128xf32> to vector<1x128xf32>
    %135 = vector.broadcast %134 : vector<1x128xf32> to vector<24x128xf32>
    %136 = arith.mulf %132, %135 : vector<24x128xf32>
    %c1_63 = arith.constant 1 : index
    %c0_64 = arith.constant 0 : index
    %c0_65 = arith.constant 0 : index
    %137 = vector.load %arg6[%c1_63, %c0_64, %c0_65] : memref<2x1x128xf32, #tpu.memory_space<vmem>>, vector<1x1x128xf32>
    %138 = vector.shape_cast %137 : vector<1x1x128xf32> to vector<1x128xf32>
    %139 = vector.broadcast %138 : vector<1x128xf32> to vector<24x128xf32>
    %140 = arith.addf %136, %139 : vector<24x128xf32>
    %cst_66 = arith.constant 0.000000e+00 : f32
    %141 = vector.broadcast %cst_66 : f32 to vector<24x128xf32>
    %142 = arith.maximumf %140, %141 : vector<24x128xf32>
    %143 = vector.shape_cast %142 : vector<24x128xf32> to vector<1x3x8x128xf32>
    %144 = vector.broadcast %6 : vector<1x1x8x128xf32> to vector<1x3x8x128xf32>
    %145 = arith.mulf %143, %144 : vector<1x3x8x128xf32>
    %146 = tpu.concatenate %7, %145, %7 in 1 : vector<1x1x8x128xf32>, vector<1x3x8x128xf32>, vector<1x1x8x128xf32> -> vector<1x5x8x128xf32>
    %cst_67 = arith.constant 0.000000e+00 : f32
    %147 = vector.broadcast %cst_67 : f32 to vector<24x128xf32>
    %148 = vector.extract_strided_slice %146 {offsets = [0, 0, 0, 0], sizes = [1, 3, 8, 128], strides = [1, 1, 1, 1]} : vector<1x5x8x128xf32> to vector<1x3x8x128xf32>
    %149 = vector.extract_strided_slice %148 {offsets = [0, 0, 0, 0], sizes = [1, 3, 7, 128], strides = [1, 1, 1, 1]} : vector<1x3x8x128xf32> to vector<1x3x7x128xf32>
    %150 = tpu.concatenate %8, %149 in 2 : vector<1x3x1x128xf32>, vector<1x3x7x128xf32> -> vector<1x3x8x128xf32>
    %151 = vector.shape_cast %150 : vector<1x3x8x128xf32> to vector<24x128xf32>
    %c9 = arith.constant 9 : index
    %c0_68 = arith.constant 0 : index
    %c0_69 = arith.constant 0 : index
    %152 = vector.load %arg7[%c9, %c0_68, %c0_69] : memref<18x128x128xf32, #tpu.memory_space<vmem>>, vector<1x128x128xf32>
    %153 = vector.shape_cast %152 : vector<1x128x128xf32> to vector<128x128xf32>
    %154 = arith.truncf %151 : vector<24x128xf32> to vector<24x128xbf16>
    %155 = arith.truncf %153 : vector<128x128xf32> to vector<128x128xbf16>
    %cst_70 = arith.constant dense<0.000000e+00> : vector<24x128xf32>
    %156 = tpu.matmul %154, %155, %cst_70 {dimension_numbers = #tpu.dot_dimension_numbers<[1], [0], [0], [1], [0, 0, 1, 1], [], []>} : vector<24x128xbf16>, vector<128x128xbf16>, vector<24x128xf32> -> vector<24x128xf32>
    %157 = arith.addf %147, %156 : vector<24x128xf32>
    %158 = vector.shape_cast %148 : vector<1x3x8x128xf32> to vector<24x128xf32>
    %c10 = arith.constant 10 : index
    %c0_71 = arith.constant 0 : index
    %c0_72 = arith.constant 0 : index
    %159 = vector.load %arg7[%c10, %c0_71, %c0_72] : memref<18x128x128xf32, #tpu.memory_space<vmem>>, vector<1x128x128xf32>
    %160 = vector.shape_cast %159 : vector<1x128x128xf32> to vector<128x128xf32>
    %161 = arith.truncf %158 : vector<24x128xf32> to vector<24x128xbf16>
    %162 = arith.truncf %160 : vector<128x128xf32> to vector<128x128xbf16>
    %cst_73 = arith.constant dense<0.000000e+00> : vector<24x128xf32>
    %163 = tpu.matmul %161, %162, %cst_73 {dimension_numbers = #tpu.dot_dimension_numbers<[1], [0], [0], [1], [0, 0, 1, 1], [], []>} : vector<24x128xbf16>, vector<128x128xbf16>, vector<24x128xf32> -> vector<24x128xf32>
    %164 = arith.addf %157, %163 : vector<24x128xf32>
    %165 = vector.extract_strided_slice %148 {offsets = [0, 0, 1, 0], sizes = [1, 3, 7, 128], strides = [1, 1, 1, 1]} : vector<1x3x8x128xf32> to vector<1x3x7x128xf32>
    %166 = tpu.concatenate %165, %8 in 2 : vector<1x3x7x128xf32>, vector<1x3x1x128xf32> -> vector<1x3x8x128xf32>
    %167 = vector.shape_cast %166 : vector<1x3x8x128xf32> to vector<24x128xf32>
    %c11 = arith.constant 11 : index
    %c0_74 = arith.constant 0 : index
    %c0_75 = arith.constant 0 : index
    %168 = vector.load %arg7[%c11, %c0_74, %c0_75] : memref<18x128x128xf32, #tpu.memory_space<vmem>>, vector<1x128x128xf32>
    %169 = vector.shape_cast %168 : vector<1x128x128xf32> to vector<128x128xf32>
    %170 = arith.truncf %167 : vector<24x128xf32> to vector<24x128xbf16>
    %171 = arith.truncf %169 : vector<128x128xf32> to vector<128x128xbf16>
    %cst_76 = arith.constant dense<0.000000e+00> : vector<24x128xf32>
    %172 = tpu.matmul %170, %171, %cst_76 {dimension_numbers = #tpu.dot_dimension_numbers<[1], [0], [0], [1], [0, 0, 1, 1], [], []>} : vector<24x128xbf16>, vector<128x128xbf16>, vector<24x128xf32> -> vector<24x128xf32>
    %173 = arith.addf %164, %172 : vector<24x128xf32>
    %174 = vector.extract_strided_slice %146 {offsets = [0, 1, 0, 0], sizes = [1, 3, 8, 128], strides = [1, 1, 1, 1]} : vector<1x5x8x128xf32> to vector<1x3x8x128xf32>
    %175 = vector.extract_strided_slice %174 {offsets = [0, 0, 0, 0], sizes = [1, 3, 7, 128], strides = [1, 1, 1, 1]} : vector<1x3x8x128xf32> to vector<1x3x7x128xf32>
    %176 = tpu.concatenate %8, %175 in 2 : vector<1x3x1x128xf32>, vector<1x3x7x128xf32> -> vector<1x3x8x128xf32>
    %177 = vector.shape_cast %176 : vector<1x3x8x128xf32> to vector<24x128xf32>
    %c12 = arith.constant 12 : index
    %c0_77 = arith.constant 0 : index
    %c0_78 = arith.constant 0 : index
    %178 = vector.load %arg7[%c12, %c0_77, %c0_78] : memref<18x128x128xf32, #tpu.memory_space<vmem>>, vector<1x128x128xf32>
    %179 = vector.shape_cast %178 : vector<1x128x128xf32> to vector<128x128xf32>
    %180 = arith.truncf %177 : vector<24x128xf32> to vector<24x128xbf16>
    %181 = arith.truncf %179 : vector<128x128xf32> to vector<128x128xbf16>
    %cst_79 = arith.constant dense<0.000000e+00> : vector<24x128xf32>
    %182 = tpu.matmul %180, %181, %cst_79 {dimension_numbers = #tpu.dot_dimension_numbers<[1], [0], [0], [1], [0, 0, 1, 1], [], []>} : vector<24x128xbf16>, vector<128x128xbf16>, vector<24x128xf32> -> vector<24x128xf32>
    %183 = arith.addf %173, %182 : vector<24x128xf32>
    %184 = vector.shape_cast %174 : vector<1x3x8x128xf32> to vector<24x128xf32>
    %c13 = arith.constant 13 : index
    %c0_80 = arith.constant 0 : index
    %c0_81 = arith.constant 0 : index
    %185 = vector.load %arg7[%c13, %c0_80, %c0_81] : memref<18x128x128xf32, #tpu.memory_space<vmem>>, vector<1x128x128xf32>
    %186 = vector.shape_cast %185 : vector<1x128x128xf32> to vector<128x128xf32>
    %187 = arith.truncf %184 : vector<24x128xf32> to vector<24x128xbf16>
    %188 = arith.truncf %186 : vector<128x128xf32> to vector<128x128xbf16>
    %cst_82 = arith.constant dense<0.000000e+00> : vector<24x128xf32>
    %189 = tpu.matmul %187, %188, %cst_82 {dimension_numbers = #tpu.dot_dimension_numbers<[1], [0], [0], [1], [0, 0, 1, 1], [], []>} : vector<24x128xbf16>, vector<128x128xbf16>, vector<24x128xf32> -> vector<24x128xf32>
    %190 = arith.addf %183, %189 : vector<24x128xf32>
    %191 = vector.extract_strided_slice %174 {offsets = [0, 0, 1, 0], sizes = [1, 3, 7, 128], strides = [1, 1, 1, 1]} : vector<1x3x8x128xf32> to vector<1x3x7x128xf32>
    %192 = tpu.concatenate %191, %8 in 2 : vector<1x3x7x128xf32>, vector<1x3x1x128xf32> -> vector<1x3x8x128xf32>
    %193 = vector.shape_cast %192 : vector<1x3x8x128xf32> to vector<24x128xf32>
    %c14 = arith.constant 14 : index
    %c0_83 = arith.constant 0 : index
    %c0_84 = arith.constant 0 : index
    %194 = vector.load %arg7[%c14, %c0_83, %c0_84] : memref<18x128x128xf32, #tpu.memory_space<vmem>>, vector<1x128x128xf32>
    %195 = vector.shape_cast %194 : vector<1x128x128xf32> to vector<128x128xf32>
    %196 = arith.truncf %193 : vector<24x128xf32> to vector<24x128xbf16>
    %197 = arith.truncf %195 : vector<128x128xf32> to vector<128x128xbf16>
    %cst_85 = arith.constant dense<0.000000e+00> : vector<24x128xf32>
    %198 = tpu.matmul %196, %197, %cst_85 {dimension_numbers = #tpu.dot_dimension_numbers<[1], [0], [0], [1], [0, 0, 1, 1], [], []>} : vector<24x128xbf16>, vector<128x128xbf16>, vector<24x128xf32> -> vector<24x128xf32>
    %199 = arith.addf %190, %198 : vector<24x128xf32>
    %200 = vector.extract_strided_slice %146 {offsets = [0, 2, 0, 0], sizes = [1, 3, 8, 128], strides = [1, 1, 1, 1]} : vector<1x5x8x128xf32> to vector<1x3x8x128xf32>
    %201 = vector.extract_strided_slice %200 {offsets = [0, 0, 0, 0], sizes = [1, 3, 7, 128], strides = [1, 1, 1, 1]} : vector<1x3x8x128xf32> to vector<1x3x7x128xf32>
    %202 = tpu.concatenate %8, %201 in 2 : vector<1x3x1x128xf32>, vector<1x3x7x128xf32> -> vector<1x3x8x128xf32>
    %203 = vector.shape_cast %202 : vector<1x3x8x128xf32> to vector<24x128xf32>
    %c15 = arith.constant 15 : index
    %c0_86 = arith.constant 0 : index
    %c0_87 = arith.constant 0 : index
    %204 = vector.load %arg7[%c15, %c0_86, %c0_87] : memref<18x128x128xf32, #tpu.memory_space<vmem>>, vector<1x128x128xf32>
    %205 = vector.shape_cast %204 : vector<1x128x128xf32> to vector<128x128xf32>
    %206 = arith.truncf %203 : vector<24x128xf32> to vector<24x128xbf16>
    %207 = arith.truncf %205 : vector<128x128xf32> to vector<128x128xbf16>
    %cst_88 = arith.constant dense<0.000000e+00> : vector<24x128xf32>
    %208 = tpu.matmul %206, %207, %cst_88 {dimension_numbers = #tpu.dot_dimension_numbers<[1], [0], [0], [1], [0, 0, 1, 1], [], []>} : vector<24x128xbf16>, vector<128x128xbf16>, vector<24x128xf32> -> vector<24x128xf32>
    %209 = arith.addf %199, %208 : vector<24x128xf32>
    %210 = vector.shape_cast %200 : vector<1x3x8x128xf32> to vector<24x128xf32>
    %c16 = arith.constant 16 : index
    %c0_89 = arith.constant 0 : index
    %c0_90 = arith.constant 0 : index
    %211 = vector.load %arg7[%c16, %c0_89, %c0_90] : memref<18x128x128xf32, #tpu.memory_space<vmem>>, vector<1x128x128xf32>
    %212 = vector.shape_cast %211 : vector<1x128x128xf32> to vector<128x128xf32>
    %213 = arith.truncf %210 : vector<24x128xf32> to vector<24x128xbf16>
    %214 = arith.truncf %212 : vector<128x128xf32> to vector<128x128xbf16>
    %cst_91 = arith.constant dense<0.000000e+00> : vector<24x128xf32>
    %215 = tpu.matmul %213, %214, %cst_91 {dimension_numbers = #tpu.dot_dimension_numbers<[1], [0], [0], [1], [0, 0, 1, 1], [], []>} : vector<24x128xbf16>, vector<128x128xbf16>, vector<24x128xf32> -> vector<24x128xf32>
    %216 = arith.addf %209, %215 : vector<24x128xf32>
    %217 = vector.extract_strided_slice %200 {offsets = [0, 0, 1, 0], sizes = [1, 3, 7, 128], strides = [1, 1, 1, 1]} : vector<1x3x8x128xf32> to vector<1x3x7x128xf32>
    %218 = tpu.concatenate %217, %8 in 2 : vector<1x3x7x128xf32>, vector<1x3x1x128xf32> -> vector<1x3x8x128xf32>
    %219 = vector.shape_cast %218 : vector<1x3x8x128xf32> to vector<24x128xf32>
    %c17 = arith.constant 17 : index
    %c0_92 = arith.constant 0 : index
    %c0_93 = arith.constant 0 : index
    %220 = vector.load %arg7[%c17, %c0_92, %c0_93] : memref<18x128x128xf32, #tpu.memory_space<vmem>>, vector<1x128x128xf32>
    %221 = vector.shape_cast %220 : vector<1x128x128xf32> to vector<128x128xf32>
    %222 = arith.truncf %219 : vector<24x128xf32> to vector<24x128xbf16>
    %223 = arith.truncf %221 : vector<128x128xf32> to vector<128x128xbf16>
    %cst_94 = arith.constant dense<0.000000e+00> : vector<24x128xf32>
    %224 = tpu.matmul %222, %223, %cst_94 {dimension_numbers = #tpu.dot_dimension_numbers<[1], [0], [0], [1], [0, 0, 1, 1], [], []>} : vector<24x128xbf16>, vector<128x128xbf16>, vector<24x128xf32> -> vector<24x128xf32>
    %225 = arith.addf %216, %224 : vector<24x128xf32>
    %226 = arith.addf %117, %225 : vector<24x128xf32>
    %c0_95 = arith.constant 0 : index
    %c0_96 = arith.constant 0 : index
    %227 = vector.load %arg8[%c0_95, %c0_96] : memref<24x128xf32, #tpu.memory_space<vmem>>, vector<24x128xf32>
    tpu.vector_store %arg8[%c0_95, %c0_96], %226 {strides = array<i32>} : memref<24x128xf32, #tpu.memory_space<vmem>>, vector<24x128xf32>,
    return
  }
  func.func @transform_0(%arg0: i32) -> (i32, i32) {
    %c0_i32 = arith.constant 0 : i32
    %c0_i32_0 = arith.constant 0 : i32
    return %arg0, %c0_i32 : i32, i32
  }
  func.func @transform_1(%arg0: i32) -> (i32, i32, i32) {
    %c0_i32 = arith.constant 0 : i32
    %c0_i32_0 = arith.constant 0 : i32
    %c0_i32_1 = arith.constant 0 : i32
    %c0_i32_2 = arith.constant 0 : i32
    return %c0_i32, %c0_i32_0, %c0_i32_1 : i32, i32, i32
  }
  func.func @transform_2(%arg0: i32) -> (i32, i32, i32) {
    %c0_i32 = arith.constant 0 : i32
    %c0_i32_0 = arith.constant 0 : i32
    %c0_i32_1 = arith.constant 0 : i32
    %c0_i32_2 = arith.constant 0 : i32
    return %c0_i32, %c0_i32_0, %c0_i32_1 : i32, i32, i32
  }
  func.func @transform_3(%arg0: i32) -> (i32, i32, i32) {
    %c0_i32 = arith.constant 0 : i32
    %c0_i32_0 = arith.constant 0 : i32
    %c0_i32_1 = arith.constant 0 : i32
    %c0_i32_2 = arith.constant 0 : i32
    return %c0_i32, %c0_i32_0, %c0_i32_1 : i32, i32, i32
  }
  func.func @transform_4(%arg0: i32) -> (i32, i32, i32) {
    %c0_i32 = arith.constant 0 : i32
    %c0_i32_0 = arith.constant 0 : i32
    %c0_i32_1 = arith.constant 0 : i32
    %c0_i32_2 = arith.constant 0 : i32
    return %c0_i32, %c0_i32_0, %c0_i32_1 : i32, i32, i32
  }
  func.func @transform_5(%arg0: i32) -> (i32, i32, i32) {
    %c0_i32 = arith.constant 0 : i32
    %c0_i32_0 = arith.constant 0 : i32
    %c0_i32_1 = arith.constant 0 : i32
    %c0_i32_2 = arith.constant 0 : i32
    return %c0_i32, %c0_i32_0, %c0_i32_1 : i32, i32, i32
  }
  func.func @transform_6(%arg0: i32) -> (i32, i32, i32) {
    %c0_i32 = arith.constant 0 : i32
    %c0_i32_0 = arith.constant 0 : i32
    %c0_i32_1 = arith.constant 0 : i32
    %c0_i32_2 = arith.constant 0 : i32
    return %c0_i32, %c0_i32_0, %c0_i32_1 : i32, i32, i32
  }
  func.func @transform_7(%arg0: i32) -> (i32, i32) {
    %c0_i32 = arith.constant 0 : i32
    %c0_i32_0 = arith.constant 0 : i32
    return %arg0, %c0_i32 : i32, i32
  }
}

module attributes {stable_mosaic.version = 11 : i64} {
  func.func @_head_kernel(%arg0: i32, %arg1: memref<24x128xf32, #tpu.memory_space<vmem>>, %arg2: memref<1x128xf32, #tpu.memory_space<vmem>>, %arg3: memref<1x128xf32, #tpu.memory_space<vmem>>, %arg4: memref<128x128xf32, #tpu.memory_space<vmem>>, %arg5: memref<1x128xf32, #tpu.memory_space<vmem>>, %arg6: memref<128x128xf32, #tpu.memory_space<vmem>>, %arg7: memref<1x128xf32, #tpu.memory_space<vmem>>, %arg8: memref<8x128xf32, #tpu.memory_space<vmem>>) attributes {dimension_semantics = [#tpu.dimension_semantics<parallel>], iteration_bounds = array<i64: 2>, scalar_prefetch = 0 : i64, scratch_operands = 0 : i64, tpu.core_type = #tpu.core_type<tc>, window_params = [{transform_indices = @transform_0, window_bounds = array<i64: 24, 128>}, {pipeline_mode = #tpu.pipeline_mode<synchronous>, transform_indices = @transform_1, window_bounds = array<i64: 1, 128>}, {pipeline_mode = #tpu.pipeline_mode<synchronous>, transform_indices = @transform_2, window_bounds = array<i64: 1, 128>}, {pipeline_mode = #tpu.pipeline_mode<synchronous>, transform_indices = @transform_3, window_bounds = array<i64: 128, 128>}, {pipeline_mode = #tpu.pipeline_mode<synchronous>, transform_indices = @transform_4, window_bounds = array<i64: 1, 128>}, {pipeline_mode = #tpu.pipeline_mode<synchronous>, transform_indices = @transform_5, window_bounds = array<i64: 128, 128>}, {pipeline_mode = #tpu.pipeline_mode<synchronous>, transform_indices = @transform_6, window_bounds = array<i64: 1, 128>}, {transform_indices = @transform_7, window_bounds = array<i64: 8, 128>}]} {
    %c0 = arith.constant 0 : index
    %c0_0 = arith.constant 0 : index
    %0 = vector.load %arg1[%c0, %c0_0] : memref<24x128xf32, #tpu.memory_space<vmem>>, vector<24x128xf32>
    %c0_1 = arith.constant 0 : index
    %c0_2 = arith.constant 0 : index
    %1 = vector.load %arg2[%c0_1, %c0_2] : memref<1x128xf32, #tpu.memory_space<vmem>>, vector<1x128xf32>
    %2 = vector.broadcast %1 : vector<1x128xf32> to vector<24x128xf32>
    %3 = arith.mulf %0, %2 : vector<24x128xf32>
    %c0_3 = arith.constant 0 : index
    %c0_4 = arith.constant 0 : index
    %4 = vector.load %arg3[%c0_3, %c0_4] : memref<1x128xf32, #tpu.memory_space<vmem>>, vector<1x128xf32>
    %5 = vector.broadcast %4 : vector<1x128xf32> to vector<24x128xf32>
    %6 = arith.addf %3, %5 : vector<24x128xf32>
    %7 = vector.shape_cast %6 : vector<24x128xf32> to vector<1x3x8x128xf32>
    %8 = vector.extract_strided_slice %7 {offsets = [0, 0, 0, 0], sizes = [1, 3, 3, 128], strides = [1, 1, 1, 1]} : vector<1x3x8x128xf32> to vector<1x3x3x128xf32>
    %cst = arith.constant dense<0.000000e+00> : vector<1x3x128xf32>
    %9 = vector.multi_reduction <add>, %8, %cst [2] : vector<1x3x3x128xf32> to vector<1x3x128xf32>
    %10 = vector.shape_cast %9 : vector<1x3x128xf32> to vector<1x3x1x128xf32>
    %cst_5 = arith.constant 0.000000e+00 : f32
    %11 = vector.broadcast %cst_5 : f32 to vector<1x3x7x128xf32>
    %12 = tpu.concatenate %10, %11 in 2 : vector<1x3x1x128xf32>, vector<1x3x7x128xf32> -> vector<1x3x8x128xf32>
    %cst_6 = arith.constant dense<0.000000e+00> : vector<1x8x128xf32>
    %13 = vector.multi_reduction <add>, %12, %cst_6 [1] : vector<1x3x8x128xf32> to vector<1x8x128xf32>
    %14 = vector.shape_cast %13 : vector<1x8x128xf32> to vector<1x1x8x128xf32>
    %cst_7 = arith.constant 0.111111112 : f32
    %15 = vector.broadcast %cst_7 : f32 to vector<1x1x8x128xf32>
    %16 = arith.mulf %14, %15 : vector<1x1x8x128xf32>
    %17 = vector.shape_cast %16 : vector<1x1x8x128xf32> to vector<8x128xf32>
    %c0_8 = arith.constant 0 : index
    %c0_9 = arith.constant 0 : index
    %18 = vector.load %arg4[%c0_8, %c0_9] : memref<128x128xf32, #tpu.memory_space<vmem>>, vector<128x128xf32>
    %19 = arith.truncf %17 : vector<8x128xf32> to vector<8x128xbf16>
    %20 = arith.truncf %18 : vector<128x128xf32> to vector<128x128xbf16>
    %cst_10 = arith.constant dense<0.000000e+00> : vector<8x128xf32>
    %21 = tpu.matmul %19, %20, %cst_10 {dimension_numbers = #tpu.dot_dimension_numbers<[1], [0], [0], [1], [0, 0, 1, 1], [], []>} : vector<8x128xbf16>, vector<128x128xbf16>, vector<8x128xf32> -> vector<8x128xf32>
    %c0_11 = arith.constant 0 : index
    %c0_12 = arith.constant 0 : index
    %22 = vector.load %arg5[%c0_11, %c0_12] : memref<1x128xf32, #tpu.memory_space<vmem>>, vector<1x128xf32>
    %23 = vector.broadcast %22 : vector<1x128xf32> to vector<8x128xf32>
    %24 = arith.addf %21, %23 : vector<8x128xf32>
    %cst_13 = arith.constant 0.000000e+00 : f32
    %25 = vector.broadcast %cst_13 : f32 to vector<8x128xf32>
    %26 = arith.maximumf %24, %25 : vector<8x128xf32>
    %c0_14 = arith.constant 0 : index
    %c0_15 = arith.constant 0 : index
    %27 = vector.load %arg6[%c0_14, %c0_15] : memref<128x128xf32, #tpu.memory_space<vmem>>, vector<128x128xf32>
    %28 = arith.truncf %26 : vector<8x128xf32> to vector<8x128xbf16>
    %29 = arith.truncf %27 : vector<128x128xf32> to vector<128x128xbf16>
    %cst_16 = arith.constant dense<0.000000e+00> : vector<8x128xf32>
    %30 = tpu.matmul %28, %29, %cst_16 {dimension_numbers = #tpu.dot_dimension_numbers<[1], [0], [0], [1], [0, 0, 1, 1], [], []>} : vector<8x128xbf16>, vector<128x128xbf16>, vector<8x128xf32> -> vector<8x128xf32>
    %c0_17 = arith.constant 0 : index
    %c0_18 = arith.constant 0 : index
    %31 = vector.load %arg7[%c0_17, %c0_18] : memref<1x128xf32, #tpu.memory_space<vmem>>, vector<1x128xf32>
    %32 = vector.broadcast %31 : vector<1x128xf32> to vector<8x128xf32>
    %33 = arith.addf %30, %32 : vector<8x128xf32>
    %c0_19 = arith.constant 0 : index
    %c0_20 = arith.constant 0 : index
    %34 = vector.load %arg8[%c0_19, %c0_20] : memref<8x128xf32, #tpu.memory_space<vmem>>, vector<8x128xf32>
    tpu.vector_store %arg8[%c0_19, %c0_20], %33 {strides = array<i32>} : memref<8x128xf32, #tpu.memory_space<vmem>>, vector<8x128xf32>,
    return
  }
  func.func @transform_0(%arg0: i32) -> (i32, i32) {
    %c0_i32 = arith.constant 0 : i32
    %c0_i32_0 = arith.constant 0 : i32
    return %arg0, %c0_i32 : i32, i32
  }
  func.func @transform_1(%arg0: i32) -> (i32, i32) {
    %c0_i32 = arith.constant 0 : i32
    %c0_i32_0 = arith.constant 0 : i32
    %c0_i32_1 = arith.constant 0 : i32
    return %c0_i32, %c0_i32_0 : i32, i32
  }
  func.func @transform_2(%arg0: i32) -> (i32, i32) {
    %c0_i32 = arith.constant 0 : i32
    %c0_i32_0 = arith.constant 0 : i32
    %c0_i32_1 = arith.constant 0 : i32
    return %c0_i32, %c0_i32_0 : i32, i32
  }
  func.func @transform_3(%arg0: i32) -> (i32, i32) {
    %c0_i32 = arith.constant 0 : i32
    %c0_i32_0 = arith.constant 0 : i32
    %c0_i32_1 = arith.constant 0 : i32
    return %c0_i32, %c0_i32_0 : i32, i32
  }
  func.func @transform_4(%arg0: i32) -> (i32, i32) {
    %c0_i32 = arith.constant 0 : i32
    %c0_i32_0 = arith.constant 0 : i32
    %c0_i32_1 = arith.constant 0 : i32
    return %c0_i32, %c0_i32_0 : i32, i32
  }
  func.func @transform_5(%arg0: i32) -> (i32, i32) {
    %c0_i32 = arith.constant 0 : i32
    %c0_i32_0 = arith.constant 0 : i32
    %c0_i32_1 = arith.constant 0 : i32
    return %c0_i32, %c0_i32_0 : i32, i32
  }
  func.func @transform_6(%arg0: i32) -> (i32, i32) {
    %c0_i32 = arith.constant 0 : i32
    %c0_i32_0 = arith.constant 0 : i32
    %c0_i32_1 = arith.constant 0 : i32
    return %c0_i32, %c0_i32_0 : i32, i32
  }
  func.func @transform_7(%arg0: i32) -> (i32, i32) {
    %c0_i32 = arith.constant 0 : i32
    %c0_i32_0 = arith.constant 0 : i32
    return %arg0, %c0_i32 : i32, i32
  }
}

</mosaic_0001>

<bundles_post_ra>
// kernel: densenet_forward.5
= control target key start
LH: loop header
LB: loop body
LE: loop exit
PB: predicated region body
PF: predicated region fallthrough
CT: control target
= control target key end

     0   :  { %s1474_s9 = smov 0   ;;  %s2112_s0 = inlined_call_operand.vmem [shape: f32[512,16], index: 0, kind: input, shape index: {}]   ;;  %s2113_s1 = inlined_call_operand.vmem [shape: f32[16,128], index: 1, kind: input, shape index: {}]   ;;  %s2114_s2 = inlined_call_operand.vmem [shape: f32[112,128], index: 2, kind: output, shape index: {}]  }
   0x1 LB: > { %s1364_s10 = sadd.s32 4294967295, %s1457_s9   ;;  %p1368_p0 = scmp.ge.s32.totalorder %s1457_s9, 1  ;;  %s1457_s9 = sphi %s1474_s9, %s12_s9  }
   0x2   : > { %p113_p1 = scmp.lt.s32.totalorder %s1457_s9, 3 }
   0x4   : > { %p114_p2 = pnand %p1368_p0, %p113_p1 }
   0x5   : > { %v180_v0 = vld [vmem:[%s2113_s1] sm:$0xff] (!%p114_p2)  ;;  %v181_v1 = vld [vmem:[%s2113_s1 + $0x8] sm:$0xff] (!%p114_p2)  ;;  %s1369_s15 = sshll.u32 (!%p114_p2), %s1364_s10, 5  ;;  %vm199_vm0 = vcmask (!%p114_p2), 130048   ;;  %vm407_vm1 = vcmask (!%p114_p2), 1042432   ;;  %vm513_vm2 = vcmask (!%p114_p2), 1044482  }
   0x6   : > { %117 = sbr.rel (%p114_p2) target bundleno = 460 (0x1cc), region = 28  ;;  %v198_v2 = vpack.c.bf16 (!%p114_p2), %v181_v1, %v180_v0  ;;  %p136_p3 = scmp.lt.s32.totalorder (!%p114_p2), %s1369_s15, 63  ;;  %vm619_vm3 = vcmask (!%p114_p2), 1046532   ;;  %vm725_vm4 = vcmask (!%p114_p2), 1047558   ;;  %vm727_vm5 = vcmask (!%p114_p2), 1040384  }
   0x7   : > { %vm1192_vm6 = vcmask (!%p114_p2), 1041408   ;;  %vm1223_vm7 = vcmask (!%p114_p2), 1043456   ;;  %vm1239_vm8 = vcmask (!%p114_p2), 1044480   ;;  %vm1255_vm9 = vcmask (!%p114_p2), 1045504   ;;  %s1812_s20 = smul.u32 (!%p114_p2), 7, %s1364_s10 }
   0x8   : > { %1407 = vmatprep.subr.bf16.mxu0 (!%p114_p2), %v198_v2  ;;  %1441 = vmatprep.subr.bf16.mxu1 (!%p114_p2), %v198_v2  ;;  %vm1271_vm10 = vcmask (!%p114_p2), 1046528  }
   0x9   : > { %1408 = vmatpush3.bf16.msra.mxu0 (!%p114_p2), %v198_v2  ;;  %1442 = vmatpush3.bf16.msra.mxu1 (!%p114_p2), %v198_v2  ;;  %p142_p4 = scmp.lt.s32.totalorder (!%p114_p2), %s1812_s20, 13 }
   0xd   : > { %s2116_s15 = smov (!%p136_p3, %s1369_s15), 63  ;;  %s2118_s20 = smov (!%p142_p4, %s1812_s20), 13 }
   0xe   : > { %s1370_s16 = sshll.u32 %s2116_s15, 3  ;;  %s1371_s21 = sshll.u32 %s2118_s20, 3 }
   0xf   : > { %s1493_s19 = scalar_lea.vmem %s2112_s0, %s1370_s16  ;;  %s1854_s24 = scalar_lea.vmem %s2114_s2, %s1371_s21 }
  0x10   : > { %v148_v3 = vld [vmem:[%s1493_s19] sm:$0xff]  ;;  %v149_v4 = vld [vmem:[%s1493_s19 + $0x8] sm:$0xff]  ;;  %v150_v8 = vld [vmem:[%s1493_s19 + $0x10] sm:$0xff] }
  0x11   : > { %v164_v5 = vld [vmem:[%s1493_s19 + $0x80] sm:$0xff]  ;;  %v182_v6 = vpack.c.bf16 %v149_v4, %v148_v3  ;;  %v165_v7 = vld [vmem:[%s1493_s19 + $0x88] sm:$0xff]  ;;  %v151_v9 = vld [vmem:[%s1493_s19 + $0x18] sm:$0xff] }
  0x12   : > { %v190_v10 = vpack.c.bf16 %v165_v7, %v164_v5  ;;  %v183_v11 = vpack.c.bf16 %v151_v9, %v150_v8  ;;  %v166_v12 = vld [vmem:[%s1493_s19 + $0x90] sm:$0xff]  ;;  %v167_v13 = vld [vmem:[%s1493_s19 + $0x98] sm:$0xff]  ;;  %v152_v14 = vld [vmem:[%s1493_s19 + $0x20] sm:$0xff] }
  0x13   : > { %1409 = vmatprep.mubr.msk.bf16.mxu0 %vm199_vm0, %v182_v6  ;;  %v191_v15 = vpack.c.bf16 %v167_v13, %v166_v12  ;;  %v153_v16 = vld [vmem:[%s1493_s19 + $0x28] sm:$0xff]  ;;  %v168_v17 = vld [vmem:[%s1493_s19 + $0xa0] sm:$0xff]  ;;  %v154_v21 = vld [vmem:[%s1493_s19 + $0x30] sm:$0xff] }
  0x14   : > { %v169_v18 = vld [vmem:[%s1493_s19 + $0xa8] sm:$0xff]  ;;  %1425 = vmatprep.mubr.msk.bf16.mxu1 %vm199_vm0, %v190_v10  ;;  %1410 = vmatmul.mubr.msk.bf16.vlgmr.msra.gmra.mrb[0].mxu0 %vm199_vm0, %v183_v11  ;;  %v184_v19 = vpack.c.bf16 %v153_v16, %v152_v14  ;;  %v155_v22 = vld [vmem:[%s1493_s19 + $0x38] sm:$0xff]  ;;  %v170_v23 = vld [vmem:[%s1493_s19 + $0xb0] sm:$0xff] }
  0x15   : > { %v192_v20 = vpack.c.bf16 %v169_v18, %v168_v17  ;;  %1426 = vmatmul.mubr.msk.bf16.vlgmr.msra.gmra.mrb[0].mxu1 %vm199_vm0, %v191_v15  ;;  %v171_v24 = vld [vmem:[%s1493_s19 + $0xb8] sm:$0xff]  ;;  %v156_v25 = vld [vmem:[%s1493_s19 + $0x40] sm:$0xff]  ;;  %v157_v26 = vld [vmem:[%s1493_s19 + $0x48] sm:$0xff]  ;;  %v185_v29 = vpack.c.bf16 %v155_v22, %v154_v21 }
  0x16   : > { %1413 = vmatprep.mubr.msk.bf16.mxu0 %vm199_vm0, %v184_v19  ;;  %v172_v27 = vld [vmem:[%s1493_s19 + $0xc0] sm:$0xff]  ;;  %v173_v28 = vld [vmem:[%s1493_s19 + $0xc8] sm:$0xff]  ;;  %v193_v30 = vpack.c.bf16 %v171_v24, %v170_v23  ;;  %v186_v31 = vpack.c.bf16 %v157_v26, %v156_v25  ;;  %v158_v33 = vld [vmem:[%s1493_s19 + $0x50] sm:$0xff] }
  0x17   : > { %1429 = vmatprep.mubr.msk.bf16.mxu1 %vm199_vm0, %v192_v20  ;;  %v194_v32 = vpack.c.bf16 %v173_v28, %v172_v27  ;;  %v159_v34 = vld [vmem:[%s1493_s19 + $0x58] sm:$0xff]  ;;  %v174_v35 = vld [vmem:[%s1493_s19 + $0xd0] sm:$0xff]  ;;  %v160_v37 = vld [vmem:[%s1493_s19 + $0x60] sm:$0xff] }
  0x18   : > { %v175_v36 = vld [vmem:[%s1493_s19 + $0xd8] sm:$0xff]  ;;  %v161_v38 = vld [vmem:[%s1493_s19 + $0x68] sm:$0xff]  ;;  %v176_v39 = vld [vmem:[%s1493_s19 + $0xe0] sm:$0xff]  ;;  %v187_v41 = vpack.c.bf16 %v159_v34, %v158_v33 }
  0x19   : > { %v177_v40 = vld [vmem:[%s1493_s19 + $0xe8] sm:$0xff]  ;;  %v195_v42 = vpack.c.bf16 %v175_v36, %v174_v35  ;;  %v188_v43 = vpack.c.bf16 %v161_v38, %v160_v37  ;;  %v162_v45 = vld [vmem:[%s1493_s19 + $0x70] sm:$0xff]  ;;  %v163_v46 = vld [vmem:[%s1493_s19 + $0x78] sm:$0xff] }
  0x1a   : > { %v196_v44 = vpack.c.bf16 %v177_v40, %v176_v39  ;;  %v178_v47 = vld [vmem:[%s1493_s19 + $0xf0] sm:$0xff]  ;;  %v179_v48 = vld [vmem:[%s1493_s19 + $0xf8] sm:$0xff]  ;;  %v189_v49 = vpack.c.bf16 %v163_v46, %v162_v45 }
  0x1b   : > { %v197_v50 = vpack.c.bf16 %v179_v48, %v178_v47 }
  0x1c   : > { %1414 = vmatmul.mubr.msk.bf16.gmra.mrb[4].mxu0 %vm199_vm0, %v185_v29 }
  0x1d   : > { %1430 = vmatmul.mubr.msk.bf16.gmra.mrb[4].mxu1 %vm199_vm0, %v193_v30  ;;  %1417 = vmatprep.mubr.msk.bf16.mxu0 %vm199_vm0, %v186_v31 }
  0x1e   : > { %1433 = vmatprep.mubr.msk.bf16.mxu1 %vm199_vm0, %v194_v32 }
  0x24   : > { %1418 = vmatmul.mubr.msk.bf16.gmra.mrb[8].mxu0 %vm199_vm0, %v187_v41 }
  0x25   : > { %1434 = vmatmul.mubr.msk.bf16.gmra.mrb[8].mxu1 %vm199_vm0, %v195_v42  ;;  %1421 = vmatprep.mubr.msk.bf16.mxu0 %vm199_vm0, %v188_v43 }
  0x26   : > { %1437 = vmatprep.mubr.msk.bf16.mxu1 %vm199_vm0, %v196_v44 }
  0x2c   : > { %1422 = vmatmul.mubr.msk.bf16.gmra.mrb[12].mxu0 %vm199_vm0, %v189_v49 }
  0x2d   : > { %1438 = vmatmul.mubr.msk.bf16.gmra.mrb[12].mxu1 %vm199_vm0, %v197_v50 }
  0xe7   : > { %v1411_v51 = vpop.f32.mrb[0].mxu0 }
  0xe8   : > { %v415_v52 = vsel %vm407_vm1, %v1411_v51, -inf  ;;  %v521_v53 = vsel %vm513_vm2, %v1411_v51, -inf  ;;  %v627_v54 = vsel %vm619_vm3, %v1411_v51, -inf  ;;  %v1546_v55 = vpop.f32.mrb[0].mxu1  ;;  %v1548_v56 = vpop.f32.mrb[1].mxu0  ;;  %v1557_v63 = vsel %vm725_vm4, %v1411_v51, -inf }
  0xe9   : > { %v416_v57 = vrot.slane %v415_v52, 4  ;;  %v522_v58 = vrot.slane %v521_v53, 4  ;;  %v628_v59 = vrot.slane %v627_v54, 4  ;;  %v471_v60 = vsel %vm407_vm1, %v1546_v55, -inf  ;;  %v1552_v61 = vpop.f32.mrb[1].mxu1  ;;  %v1554_v62 = vpop.f32.mrb[2].mxu0 }
  0xea   : > { %v472_v0 = vrot.slane %v471_v60, 4  ;;  %v577_v1 = vsel %vm513_vm2, %v1546_v55, -inf  ;;  %v683_v2 = vsel %vm619_vm3, %v1546_v55, -inf  ;;  %v1563_v3 = vpop.f32.mrb[2].mxu1  ;;  %v1565_v4 = vpop.f32.mrb[3].mxu0  ;;  %v408_v12 = vsel %vm407_vm1, %v1548_v56, -inf }
  0xeb   : > { %v417_v5 = vmax.f32 %v415_v52, %v416_v57  ;;  %v523_v6 = vmax.f32 %v521_v53, %v522_v58  ;;  %v629_v7 = vmax.f32 %v627_v54, %v628_v59  ;;  %v578_v8 = vrot.slane %v577_v1, 4  ;;  %v1567_v9 = vpop.f32.mrb[3].mxu1 }
  0xec   : > { %v473_v10 = vmax.f32 %v471_v60, %v472_v0  ;;  %v684_v11 = vrot.slane %v683_v2, 4  ;;  %v514_v13 = vsel %vm513_vm2, %v1548_v56, -inf  ;;  %v409_v20 = vrot.slane %v408_v12, 4 }
  0xed   : > { %v418_v14 = vrot.slane %v417_v5, 2  ;;  %v524_v15 = vrot.slane %v523_v6, 2  ;;  %v630_v16 = vrot.slane %v629_v7, 2  ;;  %v579_v17 = vmax.f32 %v577_v1, %v578_v8 }
  0xee   : > { %v474_v18 = vrot.slane %v473_v10, 2  ;;  %v685_v19 = vmax.f32 %v683_v2, %v684_v11  ;;  %v515_v21 = vrot.slane %v514_v13, 4  ;;  %v410_v29 = vmax.f32 %v408_v12, %v409_v20 }
  0xef   : > { %v419_v22 = vmax.f32 %v417_v5, %v418_v14  ;;  %v525_v23 = vmax.f32 %v523_v6, %v524_v15  ;;  %v631_v24 = vmax.f32 %v629_v7, %v630_v16  ;;  %v580_v25 = vrot.slane %v579_v17, 2  ;;  %v1573_v26 = vpop.f32.mrb[4].mxu0 }
  0xf0   : > { %v475_v27 = vmax.f32 %v473_v10, %v474_v18  ;;  %v686_v28 = vrot.slane %v685_v19, 2  ;;  %v516_v30 = vmax.f32 %v514_v13, %v515_v21  ;;  %v1575_v31 = vpop.f32.mrb[4].mxu1  ;;  %v1577_v32 = vpop.f32.mrb[5].mxu0  ;;  %v411_v41 = vrot.slane %v410_v29, 2 }
  0xf1   : > { %v420_v33 = vrot.slane %v419_v22, 1  ;;  %v526_v34 = vrot.slane %v525_v23, 1  ;;  %v632_v35 = vrot.slane %v631_v24, 1  ;;  %v581_v36 = vmax.f32 %v579_v17, %v580_v25  ;;  %v1579_v37 = vpop.f32.mrb[5].mxu1  ;;  %v1581_v38 = vpop.f32.mrb[6].mxu0 }
  0xf2   : > { %v476_v39 = vrot.slane %v475_v27, 1  ;;  %v687_v40 = vmax.f32 %v685_v19, %v686_v28  ;;  %v517_v42 = vrot.slane %v516_v30, 2  ;;  %v1583_v43 = vpop.f32.mrb[6].mxu1  ;;  %v1585_v44 = vpop.f32.mrb[7].mxu0  ;;  %v412_v52 = vmax.f32 %v410_v29, %v411_v41 }
  0xf3   : > { %v421_v45 = vmax.f32 %v419_v22, %v420_v33  ;;  %v527_v46 = vmax.f32 %v525_v23, %v526_v34  ;;  %v633_v47 = vmax.f32 %v631_v24, %v632_v35  ;;  %v582_v48 = vrot.slane %v581_v36, 1  ;;  %v1587_v49 = vpop.f32.mrb[7].mxu1 }
  0xf4   : > { %v477_v50 = vmax.f32 %v475_v27, %v476_v39  ;;  %v688_v51 = vrot.slane %v687_v40, 1  ;;  %v518_v53 = vmax.f32 %v516_v30, %v517_v42  ;;  %v1592_v58 = vsel %vm725_vm4, %v1546_v55, -inf }
  0xf5   : > { %v1178_v54 = vsel %vm727_vm5, %v421_v45, %v527_v46  ;;  %v583_v57 = vmax.f32 %v581_v36, %v582_v48  ;;  %v620_v59 = vsel %vm619_vm3, %v1548_v56, -inf  ;;  %v413_v0 = vrot.slane %v412_v52, 1 }
  0xf6   : > { %v689_v60 = vmax.f32 %v687_v40, %v688_v51  ;;  %v519_v1 = vrot.slane %v518_v53, 1  ;;  %v1598_v2 = vsel %vm725_vm4, %v1548_v56, -inf  ;;  %v621_v6 = vrot.slane %v620_v59, 4 }
  0xf7   : > { %v1186_v5 = vsel %vm727_vm5, %v477_v50, %v583_v57  ;;  %v464_v7 = vsel %vm407_vm1, %v1552_v61, -inf  ;;  %v570_v55 = vsel %vm513_vm2, %v1552_v61, -inf  ;;  %v1605_v8 = vpop.f32.mrb[8].mxu0  ;;  %v1608_v10 = vsel %vm1192_vm6, %v1178_v54, %v633_v47 }
  0xf8   : > { %v414_v11 = vmax.f32 %v412_v52, %v413_v0  ;;  %v520_v12 = vmax.f32 %v518_v53, %v519_v1  ;;  %v465_v13 = vrot.slane %v464_v7, 4  ;;  %v1610_v14 = vpop.f32.mrb[8].mxu1  ;;  %v1612_v56 = vpop.f32.mrb[9].mxu0  ;;  %v1615_v15 = vsel %vm1192_vm6, %v1186_v5, %v689_v60 }
  0xf9   : > { %v622_v16 = vmax.f32 %v620_v59, %v621_v6  ;;  %v571_v17 = vrot.slane %v570_v55, 4  ;;  %v676_v18 = vsel %vm619_vm3, %v1552_v61, -inf  ;;  %v1619_v19 = vpop.f32.mrb[9].mxu1  ;;  %v1621_v20 = vpop.f32.mrb[10].mxu0  ;;  %v737_v24 = vsel %vm727_vm5, %v1554_v62, -inf }
  0xfa   : > { %v1177_v21 = vsel %vm727_vm5, %v414_v11, %v520_v12  ;;  %v466_v22 = vmax.f32 %v464_v7, %v465_v13  ;;  %v677_v23 = vrot.slane %v676_v18, 4  ;;  %v1626_v25 = vpop.f32.mrb[10].mxu1  ;;  %v738_v29 = vmax.f32 %v1557_v63, %v737_v24  ;;  %v1635_v63 = vpop.f32.mrb[11].mxu0 }
  0xfb   : > { %v623_v27 = vrot.slane %v622_v16, 2  ;;  %v572_v28 = vmax.f32 %v570_v55, %v571_v17  ;;  %v869_v30 = vsel %vm407_vm1, %v1554_v62, -inf  ;;  %v974_v36 = vsel %vm513_vm2, %v1554_v62, -inf }
  0xfc   : > { %v467_v33 = vrot.slane %v466_v22, 2  ;;  %v678_v34 = vmax.f32 %v676_v18, %v677_v23  ;;  %v870_v35 = vrot.slane %v869_v30, 4  ;;  %v739_v41 = vrot.slane %v738_v29, 4 }
  0xfd   : > { %v624_v39 = vmax.f32 %v622_v16, %v623_v27  ;;  %v573_v40 = vrot.slane %v572_v28, 2  ;;  %v975_v42 = vrot.slane %v974_v36, 4  ;;  %v1079_v48 = vsel %vm619_vm3, %v1554_v62, -inf }
  0xfe   : > { %v468_v45 = vmax.f32 %v466_v22, %v467_v33  ;;  %v679_v46 = vrot.slane %v678_v34, 2  ;;  %v871_v47 = vmax.f32 %v869_v30, %v870_v35  ;;  %v740_v52 = vmax.f32 %v738_v29, %v739_v41 }
  0xff   : > { %v625_v50 = vrot.slane %v624_v39, 1  ;;  %v574_v51 = vmax.f32 %v572_v28, %v573_v40  ;;  %v976_v53 = vmax.f32 %v974_v36, %v975_v42  ;;  %v1080_v60 = vrot.slane %v1079_v48, 4  ;;  %v1650_v36 = vpop.f32.mrb[11].mxu1 }
 0x100   : > { %v469_v54 = vrot.slane %v468_v45, 1  ;;  %v680_v57 = vmax.f32 %v678_v34, %v679_v46  ;;  %v872_v59 = vrot.slane %v871_v47, 2  ;;  %v741_v5 = vrot.slane %v740_v52, 2  ;;  %v1439_v42 = vpop.f32.mrb[12].mxu1 }
 0x101   : > { %v626_v0 = vmax.f32 %v624_v39, %v625_v50  ;;  %v575_v1 = vrot.slane %v574_v51, 1  ;;  %v977_v6 = vrot.slane %v976_v53, 2  ;;  %v1081_v11 = vmax.f32 %v1079_v48, %v1080_v60 }
 0x102   : > { %v470_v7 = vmax.f32 %v468_v45, %v469_v54  ;;  %v681_v55 = vrot.slane %v680_v57, 1  ;;  %v873_v62 = vmax.f32 %v871_v47, %v872_v59  ;;  %v1639_v13 = vsel %vm725_vm4, %v1552_v61, -inf }
 0x103   : > { %v576_v12 = vmax.f32 %v574_v51, %v575_v1  ;;  %v742_v16 = vmax.f32 %v740_v52, %v741_v5  ;;  %v978_v17 = vmax.f32 %v976_v53, %v977_v6  ;;  %v1642_v18 = vsel %vm1192_vm6, %v1177_v21, %v626_v0 }
 0x104   : > { %v874_v22 = vrot.slane %v873_v62, 1  ;;  %v1082_v23 = vrot.slane %v1081_v11, 2  ;;  %v809_v24 = vsel %vm727_vm5, %v1563_v3, -inf  ;;  %v682_v27 = vmax.f32 %v680_v57, %v681_v55 }
 0x105   : > { %v743_v28 = vrot.slane %v742_v16, 1  ;;  %v979_v29 = vrot.slane %v978_v17, 1  ;;  %v810_v30 = vmax.f32 %v1592_v58, %v809_v24  ;;  %v1185_v33 = vsel %vm727_vm5, %v470_v7, %v576_v12 }
 0x106   : > { %v875_v34 = vmax.f32 %v873_v62, %v874_v22  ;;  %v1083_v61 = vmax.f32 %v1081_v11, %v1082_v23  ;;  %v925_v35 = vsel %vm407_vm1, %v1563_v3, -inf  ;;  %v1030_v46 = vsel %vm513_vm2, %v1563_v3, -inf }
 0x107   : > { %v744_v21 = vmax.f32 %v742_v16, %v743_v28  ;;  %v980_v39 = vmax.f32 %v978_v17, %v979_v29  ;;  %v811_v40 = vrot.slane %v810_v30, 4  ;;  %v926_v41 = vrot.slane %v925_v35, 4 }
 0x108   : > { %v1084_v45 = vrot.slane %v1083_v61, 1  ;;  %v1135_v58 = vsel %vm619_vm3, %v1563_v3, -inf  ;;  %v728_v47 = vsel %vm727_vm5, %v1565_v4, -inf  ;;  %v1031_v52 = vrot.slane %v1030_v46, 4 }
 0x109   : > { %v1209_v48 = vsel %vm407_vm1, %v1608_v10, %v744_v21  ;;  %v812_v50 = vmax.f32 %v810_v30, %v811_v40  ;;  %v927_v51 = vmax.f32 %v925_v35, %v926_v41  ;;  %v1136_v57 = vrot.slane %v1135_v58, 4 }
 0x10a   : > { %v1085_v53 = vmax.f32 %v1083_v61, %v1084_v45  ;;  %v1225_v54 = vsel %vm1223_vm7, %v1209_v48, %v875_v34  ;;  %v729_v59 = vmax.f32 %v1598_v2, %v728_v47  ;;  %v1032_v3 = vmax.f32 %v1030_v46, %v1031_v52 }
 0x10b   : > { %v1241_v60 = vsel %vm1239_vm8, %v1225_v54, %v980_v39  ;;  %v813_v0 = vrot.slane %v812_v50, 2  ;;  %v928_v1 = vrot.slane %v927_v51, 2  ;;  %v1137_v6 = vmax.f32 %v1135_v58, %v1136_v57 }
 0x10c   : > { %v1257_v5 = vsel %vm1255_vm9, %v1241_v60, %v1085_v53  ;;  %v730_v7 = vrot.slane %v729_v59, 4  ;;  %v862_v10 = vsel %vm407_vm1, %v1565_v4, -inf  ;;  %v1667_v55 = vsel %vm1192_vm6, %v1185_v33, %v682_v27  ;;  %v1678_v53 = vpop.f32.mrb[12].mxu0 }
 0x10d   : > { %v814_v62 = vmax.f32 %v812_v50, %v813_v0  ;;  %v929_v11 = vmax.f32 %v927_v51, %v928_v1  ;;  %v1033_v12 = vrot.slane %v1032_v3, 2  ;;  %v1138_v2 = vrot.slane %v1137_v6, 2 }
 0x10e   : > { %v731_v16 = vmax.f32 %v729_v59, %v730_v7  ;;  %v863_v17 = vrot.slane %v862_v10, 4  ;;  %v967_v22 = vsel %vm513_vm2, %v1565_v4, -inf  ;;  %v1072_v27 = vsel %vm619_vm3, %v1565_v4, -inf }
 0x10f   : > { %v815_v23 = vrot.slane %v814_v62, 1  ;;  %v930_v24 = vrot.slane %v929_v11, 1  ;;  %v1034_v28 = vmax.f32 %v1032_v3, %v1033_v12  ;;  %v968_v29 = vrot.slane %v967_v22, 4 }
 0x110   : > { %v1139_v30 = vmax.f32 %v1137_v6, %v1138_v2  ;;  %v732_v34 = vrot.slane %v731_v16, 2  ;;  %v864_v61 = vmax.f32 %v862_v10, %v863_v17  ;;  %v1073_v45 = vrot.slane %v1072_v27, 4 }
 0x111   : > { %v816_v33 = vmax.f32 %v814_v62, %v815_v23  ;;  %v931_v35 = vmax.f32 %v929_v11, %v930_v24  ;;  %v1035_v21 = vrot.slane %v1034_v28, 1  ;;  %v969_v39 = vmax.f32 %v967_v22, %v968_v29  ;;  %v1690_v11 = vpop.f32.mrb[13].mxu0 }
 0x112   : > { %v1140_v40 = vrot.slane %v1139_v30, 1  ;;  %v733_v41 = vmax.f32 %v731_v16, %v732_v34  ;;  %v865_v42 = vrot.slane %v864_v61, 2  ;;  %v800_v48 = vsel %vm727_vm5, %v1567_v9, -inf }
 0x113   : > { %v1036_v46 = vmax.f32 %v1034_v28, %v1035_v21  ;;  %v1217_v58 = vsel %vm407_vm1, %v1615_v15, %v816_v33  ;;  %v970_v47 = vrot.slane %v969_v39, 2  ;;  %v1074_v59 = vmax.f32 %v1072_v27, %v1073_v45  ;;  %v1702_v33 = vpop.f32.mrb[13].mxu1 }
 0x114   : > { %v1141_v50 = vmax.f32 %v1139_v30, %v1140_v40  ;;  %v1233_v51 = vsel %vm1223_vm7, %v1217_v58, %v931_v35  ;;  %v734_v4 = vrot.slane %v733_v41, 1  ;;  %v866_v52 = vmax.f32 %v864_v61, %v865_v42 }
 0x115   : > { %v1249_v54 = vsel %vm1239_vm8, %v1233_v51, %v1036_v46  ;;  %v971_v57 = vmax.f32 %v969_v39, %v970_v47  ;;  %v801_v60 = vmax.f32 %v1639_v13, %v800_v48  ;;  %v918_v3 = vsel %vm407_vm1, %v1567_v9, -inf }
 0x116   : > { %v1683_v0 = vsel %vm1255_vm9, %v1249_v54, %v1141_v50  ;;  %v735_v15 = vmax.f32 %v733_v41, %v734_v4  ;;  %v867_v1 = vrot.slane %v866_v52, 1  ;;  %v1688_v6 = vsel %vm1271_vm10, %v1257_v5, 0.0  ;;  %v1440_v41 = vpop.f32.mrb[14].mxu1 }
 0x117   : > { %v972_v7 = vrot.slane %v971_v57, 1  ;;  %v1075_v10 = vrot.slane %v1074_v59, 2  ;;  %v802_v62 = vrot.slane %v801_v60, 4  ;;  %v919_v2 = vrot.slane %v918_v3, 4 }
 0x118   : > { %v868_v12 = vmax.f32 %v866_v52, %v867_v1  ;;  %v1208_v13 = vsel %vm407_vm1, %v1642_v18, %v735_v15  ;;  %v1023_v16 = vsel %vm513_vm2, %v1567_v9, -inf  ;;  %v1128_v29 = vsel %vm619_vm3, %v1567_v9, -inf }
 0x119   : > { %v973_v17 = vmax.f32 %v971_v57, %v972_v7  ;;  %v1076_v22 = vmax.f32 %v1074_v59, %v1075_v10  ;;  %v803_v23 = vmax.f32 %v801_v60, %v802_v62  ;;  %v1024_v24 = vrot.slane %v1023_v16, 4 }
 0x11a   : > { %v1224_v5 = vsel %vm1223_vm7, %v1208_v13, %v868_v12  ;;  %v920_v28 = vmax.f32 %v918_v3, %v919_v2  ;;  %v429_v30 = vsel %vm407_vm1, %v1573_v26, -inf  ;;  %v1129_v21 = vrot.slane %v1128_v29, 4 }
 0x11b   : > { %v1077_v34 = vrot.slane %v1076_v22, 1  ;;  %v1240_v18 = vsel %vm1239_vm8, %v1224_v5, %v973_v17  ;;  %v804_v61 = vrot.slane %v803_v23, 2  ;;  %v1025_v27 = vmax.f32 %v1023_v16, %v1024_v24 }
 0x11c   : > { %v921_v35 = vrot.slane %v920_v28, 2  ;;  %v430_v39 = vrot.slane %v429_v30, 4  ;;  %v535_v40 = vsel %vm513_vm2, %v1573_v26, -inf  ;;  %v1130_v47 = vmax.f32 %v1128_v29, %v1129_v21 }
 0x11d   : > { %v1078_v42 = vmax.f32 %v1076_v22, %v1077_v34  ;;  %v805_v45 = vmax.f32 %v803_v23, %v804_v61  ;;  %v1026_v9 = vrot.slane %v1025_v27, 2  ;;  %v536_v46 = vrot.slane %v535_v40, 4  ;;  %v1716_v23 = vpop.f32.mrb[14].mxu0 }
 0x11e   : > { %v922_v58 = vmax.f32 %v920_v28, %v921_v35  ;;  %v431_v48 = vmax.f32 %v429_v30, %v430_v39  ;;  %v641_v50 = vsel %vm619_vm3, %v1573_v26, -inf  ;;  %v1131_v60 = vrot.slane %v1130_v47, 2 }
 0x11f   : > { %v1256_v51 = vsel %vm1255_vm9, %v1240_v18, %v1078_v42  ;;  %v806_v4 = vrot.slane %v805_v45, 1  ;;  %v1027_v52 = vmax.f32 %v1025_v27, %v1026_v9  ;;  %v537_v54 = vmax.f32 %v535_v40, %v536_v46 }
 0x120   : > { %v1710_v57 = vsel %vm1271_vm10, %v1256_v51, 0.0  ;;  %v923_v59 = vrot.slane %v922_v58, 1  ;;  %v432_v15 = vrot.slane %v431_v48, 2  ;;  %v1132_v12 = vmax.f32 %v1130_v47, %v1131_v60 }
 0x121   : > { %v1287_v1 = vmax.f32 %v1710_v57, %v1688_v6  ;;  %v807_v3 = vmax.f32 %v805_v45, %v806_v4  ;;  %v1028_v7 = vrot.slane %v1027_v52, 1  ;;  %v538_v10 = vrot.slane %v537_v54, 2 }
 0x122   : > { %v924_v62 = vmax.f32 %v922_v58, %v923_v59  ;;  %v433_v13 = vmax.f32 %v431_v48, %v432_v15  ;;  %v642_v2 = vrot.slane %v641_v50, 4  ;;  %v1133_v24 = vrot.slane %v1132_v12, 1  ;;  %v1741_v59 = vpop.f32.mrb[15].mxu0 }
 0x123   : > { %v1029_v16 = vmax.f32 %v1027_v52, %v1028_v7  ;;  %v1216_v17 = vsel %vm407_vm1, %v1667_v55, %v807_v3  ;;  %v539_v22 = vmax.f32 %v537_v54, %v538_v10  ;;  %v485_v18 = vsel %vm407_vm1, %v1575_v31, -inf }
 0x124   : > { %v1232_v5 = vsel %vm1223_vm7, %v1216_v17, %v924_v62  ;;  %v434_v28 = vrot.slane %v433_v13, 1  ;;  %v643_v29 = vmax.f32 %v641_v50, %v642_v2  ;;  %v591_v61 = vsel %vm513_vm2, %v1575_v31, -inf }
 0x125   : > { %v1248_v30 = vsel %vm1239_vm8, %v1232_v5, %v1029_v16  ;;  %v540_v34 = vrot.slane %v539_v22, 1  ;;  %v1134_v27 = vmax.f32 %v1132_v12, %v1133_v24  ;;  %v486_v55 = vrot.slane %v485_v18, 4 }
 0x126   : > { %v644_v35 = vrot.slane %v643_v29, 2  ;;  %v435_v21 = vmax.f32 %v433_v13, %v434_v28  ;;  %v592_v40 = vrot.slane %v591_v61, 4  ;;  %v697_v41 = vsel %vm619_vm3, %v1575_v31, -inf }
 0x127   : > { %v541_v39 = vmax.f32 %v539_v22, %v540_v34  ;;  %v1727_v42 = vsel %vm1255_vm9, %v1248_v30, %v1134_v27  ;;  %v487_v9 = vmax.f32 %v485_v18, %v486_v55  ;;  %v698_v46 = vrot.slane %v697_v41, 4 }
 0x128   : > { %v645_v45 = vmax.f32 %v643_v29, %v644_v35  ;;  %v1731_v58 = vsel %vm1271_vm10, %v1683_v0, 0.0  ;;  %v754_v47 = vsel %vm725_vm4, %v1573_v26, -inf  ;;  %v593_v48 = vmax.f32 %v591_v61, %v592_v40 }
 0x129   : > { %v422_v50 = vsel %vm407_vm1, %v1577_v32, -inf  ;;  %v488_v4 = vrot.slane %v487_v9, 2  ;;  %v699_v52 = vmax.f32 %v697_v41, %v698_v46  ;;  %v1739_v54 = vsel %vm725_vm4, %v1575_v31, -inf }
 0x12a   : > { %v646_v51 = vrot.slane %v645_v45, 1  ;;  %v594_v60 = vrot.slane %v593_v48, 2  ;;  %v423_v15 = vrot.slane %v422_v50, 4  ;;  %v528_v0 = vsel %vm513_vm2, %v1577_v32, -inf }
 0x12b   : > { %v634_v26 = vsel %vm619_vm3, %v1577_v32, -inf  ;;  %v1180_v3 = vsel %vm727_vm5, %v435_v21, %v541_v39  ;;  %v489_v7 = vmax.f32 %v487_v9, %v488_v4  ;;  %v700_v10 = vrot.slane %v699_v52, 2  ;;  %v1756_v9 = vpop.f32.mrb[15].mxu1 }
 0x12c   : > { %v529_v62 = vrot.slane %v528_v0, 4  ;;  %v647_v12 = vmax.f32 %v645_v45, %v646_v51  ;;  %v595_v13 = vmax.f32 %v593_v48, %v594_v60  ;;  %v424_v2 = vmax.f32 %v422_v50, %v423_v15 }
 0x12d   : > { %v635_v31 = vrot.slane %v634_v26, 4  ;;  %v490_v16 = vrot.slane %v489_v7, 1  ;;  %v701_v17 = vmax.f32 %v699_v52, %v700_v10  ;;  %v1750_v24 = vsel %vm725_vm4, %v1577_v32, -inf }
 0x12e   : > { %v530_v22 = vmax.f32 %v528_v0, %v529_v62  ;;  %v596_v5 = vrot.slane %v595_v13, 1  ;;  %v425_v28 = vrot.slane %v424_v2, 2  ;;  %v478_v30 = vsel %vm407_vm1, %v1579_v37, -inf }
 0x12f   : > { %v636_v29 = vmax.f32 %v634_v26, %v635_v31  ;;  %v491_v34 = vmax.f32 %v489_v7, %v490_v16  ;;  %v702_v18 = vrot.slane %v701_v17, 1  ;;  %v479_v27 = vrot.slane %v478_v30, 4 }
 0x130   : > { %v531_v61 = vrot.slane %v530_v22, 2  ;;  %v597_v35 = vmax.f32 %v595_v13, %v596_v5  ;;  %v426_v55 = vmax.f32 %v424_v2, %v425_v28  ;;  %v584_v39 = vsel %vm513_vm2, %v1579_v37, -inf }
 0x131   : > { %v637_v21 = vrot.slane %v636_v29, 2  ;;  %v703_v40 = vmax.f32 %v701_v17, %v702_v18  ;;  %v480_v32 = vmax.f32 %v478_v30, %v479_v27  ;;  %v585_v45 = vrot.slane %v584_v39, 4 }
 0x132   : > { %v532_v41 = vmax.f32 %v530_v22, %v531_v61  ;;  %v1188_v46 = vsel %vm727_vm5, %v491_v34, %v597_v35  ;;  %v427_v48 = vrot.slane %v426_v55, 1  ;;  %v690_v51 = vsel %vm619_vm3, %v1579_v37, -inf }
 0x133   : > { %v638_v50 = vmax.f32 %v636_v29, %v637_v21  ;;  %v1762_v4 = vsel %vm1192_vm6, %v1180_v3, %v647_v12  ;;  %v481_v60 = vrot.slane %v480_v32, 2  ;;  %v586_v15 = vmax.f32 %v584_v39, %v585_v45 }
 0x134   : > { %v533_v52 = vrot.slane %v532_v41, 1  ;;  %v1765_v0 = vsel %vm1192_vm6, %v1188_v46, %v703_v40  ;;  %v428_v26 = vmax.f32 %v426_v55, %v427_v48  ;;  %v691_v10 = vrot.slane %v690_v51, 4 }
 0x135   : > { %v639_v7 = vrot.slane %v638_v50, 1  ;;  %v482_v13 = vmax.f32 %v480_v32, %v481_v60  ;;  %v587_v2 = vrot.slane %v586_v15, 2  ;;  %v755_v31 = vsel %vm727_vm5, %v1581_v38, -inf }
 0x136   : > { %v534_v62 = vmax.f32 %v532_v41, %v533_v52  ;;  %v692_v16 = vmax.f32 %v690_v51, %v691_v10  ;;  %v1771_v3 = vsel %vm725_vm4, %v1579_v37, -inf  ;;  %v756_v12 = vmax.f32 %v754_v47, %v755_v31 }
 0x137   : > { %v883_v17 = vsel %vm407_vm1, %v1581_v38, -inf  ;;  %v640_v22 = vmax.f32 %v638_v50, %v639_v7  ;;  %v483_v5 = vrot.slane %v482_v13, 1  ;;  %v588_v28 = vmax.f32 %v586_v15, %v587_v2 }
 0x138   : > { %v884_v29 = vrot.slane %v883_v17, 4  ;;  %v1179_v30 = vsel %vm727_vm5, %v428_v26, %v534_v62  ;;  %v693_v34 = vrot.slane %v692_v16, 2  ;;  %v757_v18 = vrot.slane %v756_v12, 4 }
 0x139   : > { %v988_v61 = vsel %vm513_vm2, %v1581_v38, -inf  ;;  %v484_v27 = vmax.f32 %v482_v13, %v483_v5  ;;  %v589_v35 = vrot.slane %v588_v28, 1  ;;  %v1093_v39 = vsel %vm619_vm3, %v1581_v38, -inf }
 0x13a   : > { %v885_v55 = vmax.f32 %v883_v17, %v884_v29  ;;  %v989_v37 = vrot.slane %v988_v61, 4  ;;  %v694_v21 = vmax.f32 %v692_v16, %v693_v34  ;;  %v758_v47 = vmax.f32 %v756_v12, %v757_v18 }
 0x13b   : > { %v827_v40 = vsel %vm727_vm5, %v1583_v43, -inf  ;;  %v590_v41 = vmax.f32 %v588_v28, %v589_v35  ;;  %v1094_v46 = vrot.slane %v1093_v39, 4  ;;  %v939_v52 = vsel %vm407_vm1, %v1583_v43, -inf }
 0x13c   : > { %v886_v32 = vrot.slane %v885_v55, 2  ;;  %v990_v45 = vmax.f32 %v988_v61, %v989_v37  ;;  %v695_v48 = vrot.slane %v694_v21, 1  ;;  %v759_v50 = vrot.slane %v758_v47, 2 }
 0x13d   : > { %v828_v51 = vmax.f32 %v1739_v54, %v827_v40  ;;  %v1786_v60 = vsel %vm1192_vm6, %v1179_v30, %v640_v22  ;;  %v1095_v38 = vmax.f32 %v1093_v39, %v1094_v46  ;;  %v1187_v7 = vsel %vm727_vm5, %v484_v27, %v590_v41 }
 0x13e   : > { %v887_v15 = vmax.f32 %v885_v55, %v886_v32  ;;  %v991_v26 = vrot.slane %v990_v45, 2  ;;  %v760_v10 = vmax.f32 %v758_v47, %v759_v50  ;;  %v940_v13 = vrot.slane %v939_v52, 4 }
 0x13f   : > { %v829_v62 = vrot.slane %v828_v51, 4  ;;  %v1096_v16 = vrot.slane %v1095_v38, 2  ;;  %v1044_v54 = vsel %vm513_vm2, %v1583_v43, -inf  ;;  %v696_v12 = vmax.f32 %v694_v21, %v695_v48 }
 0x140   : > { %v888_v2 = vrot.slane %v887_v15, 1  ;;  %v992_v31 = vmax.f32 %v990_v45, %v991_v26  ;;  %v761_v17 = vrot.slane %v760_v10, 1  ;;  %v941_v28 = vmax.f32 %v939_v52, %v940_v13 }
 0x141   : > { %v830_v5 = vmax.f32 %v828_v51, %v829_v62  ;;  %v1097_v30 = vmax.f32 %v1095_v38, %v1096_v16  ;;  %v1045_v34 = vrot.slane %v1044_v54, 4  ;;  %v1149_v35 = vsel %vm619_vm3, %v1583_v43, -inf }
 0x142   : > { %v889_v22 = vmax.f32 %v887_v15, %v888_v2  ;;  %v993_v29 = vrot.slane %v992_v31, 1  ;;  %v762_v18 = vmax.f32 %v760_v10, %v761_v17  ;;  %v942_v27 = vrot.slane %v941_v28, 2 }
 0x143   : > { %v831_v61 = vrot.slane %v830_v5, 2  ;;  %v1098_v37 = vrot.slane %v1097_v30, 1  ;;  %v1046_v47 = vmax.f32 %v1044_v54, %v1045_v34  ;;  %v1150_v39 = vrot.slane %v1149_v35, 4 }
 0x144   : > { %v994_v55 = vmax.f32 %v992_v31, %v993_v29  ;;  %v1211_v21 = vsel %vm407_vm1, %v1762_v4, %v762_v18  ;;  %v943_v41 = vmax.f32 %v941_v28, %v942_v27  ;;  %v746_v32 = vsel %vm727_vm5, %v1585_v44, -inf }
 0x145   : > { %v832_v40 = vmax.f32 %v830_v5, %v831_v61  ;;  %v1099_v45 = vmax.f32 %v1097_v30, %v1098_v37  ;;  %v1227_v46 = vsel %vm1223_vm7, %v1211_v21, %v889_v22  ;;  %v1047_v48 = vrot.slane %v1046_v47, 2 }
 0x146   : > { %v1151_v50 = vmax.f32 %v1149_v35, %v1150_v39  ;;  %v1243_v51 = vsel %vm1239_vm8, %v1227_v46, %v994_v55  ;;  %v944_v52 = vrot.slane %v943_v41, 1  ;;  %v747_v15 = vmax.f32 %v1750_v24, %v746_v32 }
 0x147   : > { %v833_v43 = vrot.slane %v832_v40, 1  ;;  %v1259_v26 = vsel %vm1255_vm9, %v1243_v51, %v1099_v45  ;;  %v1048_v4 = vmax.f32 %v1046_v47, %v1047_v48  ;;  %v876_v10 = vsel %vm407_vm1, %v1585_v44, -inf }
 0x148   : > { %v1152_v38 = vrot.slane %v1151_v50, 2  ;;  %v1804_v62 = vsel %vm1192_vm6, %v1187_v7, %v696_v12  ;;  %v945_v2 = vmax.f32 %v943_v41, %v944_v52  ;;  %v748_v31 = vrot.slane %v747_v15, 4 }
 0x149   : > { %v834_v13 = vmax.f32 %v832_v40, %v833_v43  ;;  %v1049_v16 = vrot.slane %v1048_v4, 1  ;;  %v877_v17 = vrot.slane %v876_v10, 4  ;;  %v981_v5 = vsel %vm513_vm2, %v1585_v44, -inf }
 0x14a   : > { %v1153_v54 = vmax.f32 %v1151_v50, %v1152_v38  ;;  %v749_v28 = vmax.f32 %v747_v15, %v748_v31  ;;  %v982_v22 = vrot.slane %v981_v5, 4  ;;  %v1086_v7 = vsel %vm619_vm3, %v1585_v44, -inf }
 0x14b   : > { %v1219_v24 = vsel %vm407_vm1, %v1765_v0, %v834_v13  ;;  %v1050_v12 = vmax.f32 %v1048_v4, %v1049_v16  ;;  %v878_v34 = vmax.f32 %v876_v10, %v877_v17  ;;  %v1087_v27 = vrot.slane %v1086_v7, 4 }
 0x14c   : > { %v1154_v29 = vrot.slane %v1153_v54, 1  ;;  %v1235_v30 = vsel %vm1223_vm7, %v1219_v24, %v945_v2  ;;  %v750_v18 = vrot.slane %v749_v28, 2  ;;  %v983_v61 = vmax.f32 %v981_v5, %v982_v22 }
 0x14d   : > { %v818_v0 = vsel %vm727_vm5, %v1587_v49, -inf  ;;  %v1251_v55 = vsel %vm1239_vm8, %v1235_v30, %v1050_v12  ;;  %v879_v37 = vrot.slane %v878_v34, 2  ;;  %v1088_v21 = vmax.f32 %v1086_v7, %v1087_v27 }
 0x14e   : > { %v1155_v35 = vmax.f32 %v1153_v54, %v1154_v29  ;;  %v819_v47 = vmax.f32 %v1771_v3, %v818_v0  ;;  %v751_v39 = vmax.f32 %v749_v28, %v750_v18  ;;  %v984_v44 = vrot.slane %v983_v61, 2 }
 0x14f   : > { %v932_v40 = vsel %vm407_vm1, %v1587_v49, -inf  ;;  %v880_v32 = vmax.f32 %v878_v34, %v879_v37  ;;  %v1828_v48 = vsel %vm1271_vm10, %v1259_v26, 0.0  ;;  %v1089_v51 = vrot.slane %v1088_v21, 2 }
 0x150   : > { %v1825_v41 = vsel %vm1255_vm9, %v1251_v55, %v1155_v35  ;;  %v820_v45 = vrot.slane %v819_v47, 4  ;;  %v933_v46 = vrot.slane %v932_v40, 4  ;;  %v752_v50 = vrot.slane %v751_v39, 1 }
 0x151   : > { %v985_v3 = vmax.f32 %v983_v61, %v984_v44  ;;  %v881_v43 = vrot.slane %v880_v32, 1  ;;  %v1037_v4 = vsel %vm513_vm2, %v1587_v49, -inf  ;;  %v1090_v13 = vmax.f32 %v1088_v21, %v1089_v51 }
 0x152   : > { %v821_v52 = vmax.f32 %v819_v47, %v820_v45  ;;  %v934_v15 = vmax.f32 %v932_v40, %v933_v46  ;;  %v753_v38 = vmax.f32 %v751_v39, %v752_v50  ;;  %v1038_v2 = vrot.slane %v1037_v4, 4 }
 0x153   : > { %v986_v10 = vrot.slane %v985_v3, 1  ;;  %v882_v31 = vmax.f32 %v880_v32, %v881_v43  ;;  %v1142_v54 = vsel %vm619_vm3, %v1587_v49, -inf  ;;  %v1091_v5 = vrot.slane %v1090_v13, 1 }
 0x154   : > { %v822_v26 = vrot.slane %v821_v52, 2  ;;  %v935_v16 = vrot.slane %v934_v15, 2  ;;  %v1210_v24 = vsel %vm407_vm1, %v1786_v60, %v753_v38  ;;  %v1039_v28 = vmax.f32 %v1037_v4, %v1038_v2 }
 0x155   : > { %v987_v17 = vmax.f32 %v985_v3, %v986_v10  ;;  %v1226_v22 = vsel %vm1223_vm7, %v1210_v24, %v882_v31  ;;  %v1143_v29 = vrot.slane %v1142_v54, 4  ;;  %v1092_v30 = vmax.f32 %v1090_v13, %v1091_v5 }
 0x156   : > { %v823_v7 = vmax.f32 %v821_v52, %v822_v26  ;;  %v936_v12 = vmax.f32 %v934_v15, %v935_v16  ;;  %v1040_v18 = vrot.slane %v1039_v28, 2  ;;  %v443_v61 = vsel %vm407_vm1, %v1605_v8, -inf }
 0x157   : > { %v1242_v34 = vsel %vm1239_vm8, %v1226_v22, %v987_v17  ;;  %v1144_v0 = vmax.f32 %v1142_v54, %v1143_v29  ;;  %v444_v35 = vrot.slane %v443_v61, 4  ;;  %v549_v37 = vsel %vm513_vm2, %v1605_v8, -inf }
 0x158   : > { %v824_v49 = vrot.slane %v823_v7, 1  ;;  %v937_v27 = vrot.slane %v936_v12, 1  ;;  %v1258_v60 = vsel %vm1255_vm9, %v1242_v34, %v1092_v30  ;;  %v1041_v55 = vmax.f32 %v1039_v28, %v1040_v18 }
 0x159   : > { %v655_v47 = vsel %vm619_vm3, %v1605_v8, -inf  ;;  %v1857_v39 = vsel %vm1271_vm10, %v1258_v60, 0.0  ;;  %v1145_v40 = vrot.slane %v1144_v0, 2  ;;  %v445_v50 = vmax.f32 %v443_v61, %v444_v35 }
 0x15a   : > { %v825_v44 = vmax.f32 %v823_v7, %v824_v49  ;;  %v938_v21 = vmax.f32 %v936_v12, %v937_v27  ;;  %v1288_v32 = vmax.f32 %v1287_v1, %v1857_v39  ;;  %v1289_v45 = vmax.f32 %v1857_v39, %v1828_v48 }
 0x15b   : > { %v1042_v46 = vrot.slane %v1041_v55, 1  ;;  %v1146_v3 = vmax.f32 %v1144_v0, %v1145_v40  ;;  %v550_v43 = vrot.slane %v549_v37, 4  ;;  %v656_v52 = vrot.slane %v655_v47, 4 }
 0x15c   : > { %v1218_v51 = vsel %vm407_vm1, %v1804_v62, %v825_v44  ;;  %v1869_v15 = vsel %vm1271_vm10, %v1727_v42, 0.0  ;;  %1301 = vst [vmem:[%s1854_s24] sm:$0xff] %v1288_v32  ;;  %v446_v57 = vrot.slane %v445_v50, 2  ;;  %v499_v13 = vsel %vm407_vm1, %v1610_v14, -inf }
 0x15d   : > { %v1043_v4 = vmax.f32 %v1041_v55, %v1042_v46  ;;  %v1234_v6 = vsel %vm1223_vm7, %v1218_v51, %v938_v21  ;;  %v1147_v1 = vrot.slane %v1146_v3, 1  ;;  %v551_v38 = vmax.f32 %v549_v37, %v550_v43 }
 0x15e   : > { %v657_v10 = vmax.f32 %v655_v47, %v656_v52  ;;  %v447_v62 = vmax.f32 %v445_v50, %v446_v57  ;;  %v500_v31 = vrot.slane %v499_v13, 4  ;;  %v605_v26 = vsel %vm513_vm2, %v1610_v14, -inf }
 0x15f   : > { %v1250_v2 = vsel %vm1239_vm8, %v1234_v6, %v1043_v4  ;;  %v1148_v42 = vmax.f32 %v1146_v3, %v1147_v1  ;;  %v552_v16 = vrot.slane %v551_v38, 2  ;;  %v606_v17 = vrot.slane %v605_v26, 4 }
 0x160   : > { %v658_v54 = vrot.slane %v657_v10, 2  ;;  %v1295_v5 = vmax.f32 %v1869_v15, %v1731_v58  ;;  %v1882_v24 = vsel %vm1271_vm10, %v1825_v41, 0.0  ;;  %v501_v28 = vmax.f32 %v499_v13, %v500_v31 }
 0x161   : > { %v711_v22 = vsel %vm619_vm3, %v1610_v14, -inf  ;;  %v1266_v7 = vsel %vm1255_vm9, %v1250_v2, %v1148_v42  ;;  %v553_v12 = vmax.f32 %v551_v38, %v552_v16  ;;  %v607_v30 = vmax.f32 %v605_v26, %v606_v17 }
 0x162   : > { %v659_v29 = vmax.f32 %v657_v10, %v658_v54  ;;  %v1888_v34 = vsel %vm1271_vm10, %v1266_v7, 0.0  ;;  %v448_v18 = vrot.slane %v447_v62, 1  ;;  %v502_v61 = vrot.slane %v501_v28, 2 }
 0x163   : > { %v712_v58 = vrot.slane %v711_v22, 4  ;;  %v1296_v49 = vmax.f32 %v1295_v5, %v1888_v34  ;;  %v1297_v41 = vmax.f32 %v1888_v34, %v1882_v24  ;;  %v554_v27 = vrot.slane %v553_v12, 1 }
 0x164   : > { %v660_v0 = vrot.slane %v659_v29, 1  ;;  %v503_v35 = vmax.f32 %v501_v28, %v502_v61  ;;  %v608_v60 = vrot.slane %v607_v30, 2  ;;  %v436_v37 = vsel %vm407_vm1, %v1612_v56, -inf }
 0x165   : > { %v713_v55 = vmax.f32 %v711_v22, %v712_v58  ;;  %1305 = vst [vmem:[%s1854_s24 + $0x20] sm:$0xff] %v1296_v49  ;;  %v772_v47 = vsel %vm725_vm4, %v1605_v8, -inf  ;;  %v1900_v44 = vsel %vm725_vm4, %v1610_v14, -inf  ;;  %v437_v21 = vrot.slane %v436_v37, 4 }
 0x166   : > { %v542_v40 = vsel %vm513_vm2, %v1612_v56, -inf  ;;  %v504_v32 = vrot.slane %v503_v35, 1  ;;  %v609_v46 = vmax.f32 %v607_v30, %v608_v60  ;;  %v449_v51 = vmax.f32 %v447_v62, %v448_v18 }
 0x167   : > { %v714_v50 = vrot.slane %v713_v55, 2  ;;  %v543_v3 = vrot.slane %v542_v40, 4  ;;  %v555_v43 = vmax.f32 %v553_v12, %v554_v27  ;;  %v438_v52 = vmax.f32 %v436_v37, %v437_v21 }
 0x168   : > { %v648_v4 = vsel %vm619_vm3, %v1612_v56, -inf  ;;  %v661_v6 = vmax.f32 %v659_v29, %v660_v0  ;;  %v505_v8 = vmax.f32 %v503_v35, %v504_v32  ;;  %v610_v57 = vrot.slane %v609_v46, 1 }
 0x169   : > { %v715_v1 = vmax.f32 %v713_v55, %v714_v50  ;;  %v439_v14 = vrot.slane %v438_v52, 2  ;;  %v544_v38 = vmax.f32 %v542_v40, %v543_v3  ;;  %v649_v10 = vrot.slane %v648_v4, 4 }
 0x16a   : > { %v492_v13 = vsel %vm407_vm1, %v1619_v19, -inf  ;;  %v611_v2 = vmax.f32 %v609_v46, %v610_v57  ;;  %v598_v62 = vsel %vm513_vm2, %v1619_v19, -inf  ;;  %v1182_v5 = vsel %vm727_vm5, %v449_v51, %v555_v43 }
 0x16b   : > { %v716_v31 = vrot.slane %v715_v1, 1  ;;  %v493_v26 = vrot.slane %v492_v13, 4  ;;  %v440_v42 = vmax.f32 %v438_v52, %v439_v14  ;;  %v545_v16 = vrot.slane %v544_v38, 2 }
 0x16c   : > { %v650_v54 = vmax.f32 %v648_v4, %v649_v10  ;;  %v599_v17 = vrot.slane %v598_v62, 4  ;;  %v1913_v28 = vsel %vm725_vm4, %v1612_v56, -inf  ;;  %v704_v7 = vsel %vm619_vm3, %v1619_v19, -inf }
 0x16d   : > { %v494_v22 = vmax.f32 %v492_v13, %v493_v26  ;;  %v441_v12 = vrot.slane %v440_v42, 1  ;;  %v546_v29 = vmax.f32 %v544_v38, %v545_v16  ;;  %v717_v61 = vmax.f32 %v715_v1, %v716_v31 }
 0x16e   : > { %v651_v30 = vrot.slane %v650_v54, 2  ;;  %v600_v18 = vmax.f32 %v598_v62, %v599_v17  ;;  %v1190_v58 = vsel %vm727_vm5, %v505_v8, %v611_v2  ;;  %v705_v27 = vrot.slane %v704_v7, 4 }
 0x16f   : > { %v495_v49 = vrot.slane %v494_v22, 2  ;;  %v442_v0 = vmax.f32 %v440_v42, %v441_v12  ;;  %v547_v35 = vrot.slane %v546_v29, 1  ;;  %v773_v21 = vsel %vm727_vm5, %v1621_v20, -inf }
 0x170   : > { %v652_v60 = vmax.f32 %v650_v54, %v651_v30  ;;  %v601_v55 = vrot.slane %v600_v18, 2  ;;  %v706_v56 = vmax.f32 %v704_v7, %v705_v27  ;;  %v897_v40 = vsel %vm407_vm1, %v1621_v20, -inf }
 0x171   : > { %v496_v37 = vmax.f32 %v494_v22, %v495_v49  ;;  %v548_v32 = vmax.f32 %v546_v29, %v547_v35  ;;  %v774_v3 = vmax.f32 %v772_v47, %v773_v21  ;;  %v898_v52 = vrot.slane %v897_v40, 4 }
 0x172   : > { %v653_v46 = vrot.slane %v652_v60, 1  ;;  %v602_v50 = vmax.f32 %v600_v18, %v601_v55  ;;  %v707_v43 = vrot.slane %v706_v56, 2  ;;  %v1002_v4 = vsel %vm513_vm2, %v1621_v20, -inf }
 0x173   : > { %v497_v51 = vrot.slane %v496_v37, 1  ;;  %v1198_v8 = vsel %vm1192_vm6, %v1182_v5, %v661_v6  ;;  %v1926_v57 = vsel %vm1192_vm6, %v1190_v58, %v717_v61  ;;  %v775_v14 = vrot.slane %v774_v3, 4 }
 0x174   : > { %v654_v1 = vmax.f32 %v652_v60, %v653_v46  ;;  %v1181_v38 = vsel %vm727_vm5, %v442_v0, %v548_v32  ;;  %v603_v10 = vrot.slane %v602_v50, 1  ;;  %v899_v13 = vmax.f32 %v897_v40, %v898_v52 }
 0x175   : > { %v1003_v2 = vrot.slane %v1002_v4, 4  ;;  %v498_v31 = vmax.f32 %v496_v37, %v497_v51  ;;  %v1931_v47 = vsel %vm725_vm4, %v1619_v19, -inf  ;;  %v776_v26 = vmax.f32 %v774_v3, %v775_v14 }
 0x176   : > { %v1107_v62 = vsel %vm619_vm3, %v1621_v20, -inf  ;;  %v1935_v6 = vmax.f32 %v706_v56, %v707_v43  ;;  %v900_v42 = vrot.slane %v899_v13, 2  ;;  %v1938_v17 = vsel %vm1192_vm6, %v1181_v38, %v654_v1 }
 0x177   : > { %v1004_v16 = vmax.f32 %v1002_v4, %v1003_v2  ;;  %v1108_v54 = vrot.slane %v1107_v62, 4  ;;  %v777_v5 = vrot.slane %v776_v26, 2  ;;  %v845_v22 = vsel %vm727_vm5, %v1626_v25, -inf }
 0x178   : > { %v953_v19 = vsel %vm407_vm1, %v1626_v25, -inf  ;;  %v604_v7 = vmax.f32 %v602_v50, %v603_v10  ;;  %v901_v12 = vmax.f32 %v899_v13, %v900_v42  ;;  %v846_v18 = vmax.f32 %v1900_v44, %v845_v22 }
 0x179   : > { %v1005_v29 = vrot.slane %v1004_v16, 2  ;;  %v1109_v30 = vmax.f32 %v1107_v62, %v1108_v54  ;;  %v778_v20 = vmax.f32 %v776_v26, %v777_v5  ;;  %v954_v61 = vrot.slane %v953_v19, 4 }
 0x17a   : > { %v1058_v58 = vsel %vm513_vm2, %v1626_v25, -inf  ;;  %v709_v49 = vrot.slane %v1935_v6, 1  ;;  %v902_v27 = vrot.slane %v901_v12, 1  ;;  %v847_v55 = vrot.slane %v846_v18, 4 }
 0x17b   : > { %v1006_v0 = vmax.f32 %v1004_v16, %v1005_v29  ;;  %v1110_v35 = vrot.slane %v1109_v30, 2  ;;  %v779_v60 = vrot.slane %v778_v20, 1  ;;  %v955_v37 = vmax.f32 %v953_v19, %v954_v61 }
 0x17c   : > { %v1059_v56 = vrot.slane %v1058_v58, 4  ;;  %v903_v21 = vmax.f32 %v901_v12, %v902_v27  ;;  %v1163_v46 = vsel %vm619_vm3, %v1626_v25, -inf  ;;  %v848_v50 = vmax.f32 %v846_v18, %v847_v55 }
 0x17d   : > { %v1007_v40 = vrot.slane %v1006_v0, 1  ;;  %v1111_v32 = vmax.f32 %v1109_v30, %v1110_v35  ;;  %v780_v44 = vmax.f32 %v778_v20, %v779_v60  ;;  %v956_v3 = vrot.slane %v955_v37, 2 }
 0x17e   : > { %v1060_v51 = vmax.f32 %v1058_v58, %v1059_v56  ;;  %v1164_v4 = vrot.slane %v1163_v46, 4  ;;  %v764_v1 = vsel %vm727_vm5, %v1635_v63, -inf  ;;  %v849_v38 = vrot.slane %v848_v50, 2 }
 0x17f   : > { %v1008_v43 = vmax.f32 %v1006_v0, %v1007_v40  ;;  %v1112_v52 = vrot.slane %v1111_v32, 1  ;;  %v1213_v14 = vsel %vm407_vm1, %v1198_v8, %v780_v44  ;;  %v957_v10 = vmax.f32 %v955_v37, %v956_v3 }
 0x180   : > { %v1061_v13 = vrot.slane %v1060_v51, 2  ;;  %v1229_v26 = vsel %vm1223_vm7, %v1213_v14, %v903_v21  ;;  %v1165_v62 = vmax.f32 %v1163_v46, %v1164_v4  ;;  %v765_v25 = vmax.f32 %v1913_v28, %v764_v1 }
 0x181   : > { %v1113_v2 = vmax.f32 %v1111_v32, %v1112_v52  ;;  %v1245_v42 = vsel %vm1239_vm8, %v1229_v26, %v1008_v43  ;;  %v850_v16 = vmax.f32 %v848_v50, %v849_v38  ;;  %v958_v54 = vrot.slane %v957_v10, 1 }
 0x182   : > { %v1062_v5 = vmax.f32 %v1060_v51, %v1061_v13  ;;  %v1166_v19 = vrot.slane %v1165_v62, 2  ;;  %v766_v12 = vrot.slane %v765_v25, 4  ;;  %v890_v8 = vsel %vm407_vm1, %v1635_v63, -inf }
 0x183   : > { %v1957_v22 = vsel %vm1255_vm9, %v1245_v42, %v1113_v2  ;;  %v1962_v29 = vsel %vm727_vm5, %v498_v31, %v604_v7  ;;  %v851_v30 = vrot.slane %v850_v16, 1  ;;  %v959_v20 = vmax.f32 %v957_v10, %v958_v54 }
 0x184   : > { %v1063_v18 = vrot.slane %v1062_v5, 1  ;;  %v1167_v28 = vmax.f32 %v1165_v62, %v1166_v19  ;;  %v767_v61 = vmax.f32 %v765_v25, %v766_v12  ;;  %v891_v58 = vrot.slane %v890_v8, 4 }
 0x185   : > { %v995_v27 = vsel %vm513_vm2, %v1635_v63, -inf  ;;  %v852_v0 = vmax.f32 %v850_v16, %v851_v30  ;;  %v1100_v55 = vsel %vm619_vm3, %v1635_v63, -inf  ;;  %v836_v32 = vsel %vm727_vm5, %v1650_v36, -inf }
 0x186   : > { %v1064_v35 = vmax.f32 %v1062_v5, %v1063_v18  ;;  %v996_v60 = vrot.slane %v995_v27, 4  ;;  %v1168_v37 = vrot.slane %v1167_v28, 1  ;;  %v768_v56 = vrot.slane %v767_v61, 2 }
 0x187   : > { %v892_v21 = vmax.f32 %v890_v8, %v891_v58  ;;  %v1101_v31 = vrot.slane %v1100_v55, 4  ;;  %v1221_v7 = vsel %vm407_vm1, %v1926_v57, %v852_v0  ;;  %v946_v46 = vsel %vm407_vm1, %v1650_v36, -inf }
 0x188   : > { %v997_v40 = vmax.f32 %v995_v27, %v996_v60  ;;  %v1169_v44 = vmax.f32 %v1167_v28, %v1168_v37  ;;  %v1237_v50 = vsel %vm1223_vm7, %v1221_v7, %v959_v20  ;;  %v769_v3 = vmax.f32 %v767_v61, %v768_v56 }
 0x189   : > { %v893_v51 = vrot.slane %v892_v21, 2  ;;  %v1253_v63 = vsel %vm1239_vm8, %v1237_v50, %v1064_v35  ;;  %v1102_v52 = vmax.f32 %v1100_v55, %v1101_v31  ;;  %v837_v4 = vmax.f32 %v1931_v47, %v836_v32 }
 0x18a   : > { %v998_v43 = vrot.slane %v997_v40, 2  ;;  %v1978_v57 = vsel %vm1255_vm9, %v1253_v63, %v1169_v44  ;;  %v770_v1 = vrot.slane %v769_v3, 1  ;;  %v947_v38 = vrot.slane %v946_v46, 4 }
 0x18b   : > { %v894_v14 = vmax.f32 %v892_v21, %v893_v51  ;;  %v710_v10 = vmax.f32 %v1935_v6, %v709_v49  ;;  %v1103_v2 = vrot.slane %v1102_v52, 2  ;;  %v838_v26 = vrot.slane %v837_v4, 4 }
 0x18c   : > { %v999_v13 = vmax.f32 %v997_v40, %v998_v43  ;;  %v771_v62 = vmax.f32 %v769_v3, %v770_v1  ;;  %v948_v42 = vmax.f32 %v946_v46, %v947_v38  ;;  %v1051_v16 = vsel %vm513_vm2, %v1650_v36, -inf }
 0x18d   : > { %v895_v25 = vrot.slane %v894_v14, 1  ;;  %v1104_v54 = vmax.f32 %v1102_v52, %v1103_v2  ;;  %v839_v5 = vmax.f32 %v837_v4, %v838_v26  ;;  %v1052_v19 = vrot.slane %v1051_v16, 4 }
 0x18e   : > { %v1000_v47 = vrot.slane %v999_v13, 1  ;;  %v1212_v8 = vsel %vm407_vm1, %v1938_v17, %v771_v62  ;;  %v949_v30 = vrot.slane %v948_v42, 2  ;;  %v1156_v6 = vsel %vm619_vm3, %v1650_v36, -inf }
 0x18f   : > { %v896_v12 = vmax.f32 %v894_v14, %v895_v25  ;;  %v1105_v20 = vrot.slane %v1104_v54, 1  ;;  %v840_v18 = vrot.slane %v839_v5, 2  ;;  %v1053_v28 = vmax.f32 %v1051_v16, %v1052_v19 }
 0x190   : > { %v1001_v49 = vmax.f32 %v999_v13, %v1000_v47  ;;  %v950_v58 = vmax.f32 %v948_v42, %v949_v30  ;;  %v1157_v27 = vrot.slane %v1156_v6, 4  ;;  %v457_v0 = vsel %vm407_vm1, %v1678_v53, -inf }
 0x191   : > { %v1228_v61 = vsel %vm1223_vm7, %v1212_v8, %v896_v12  ;;  %v1106_v35 = vmax.f32 %v1104_v54, %v1105_v20  ;;  %v841_v55 = vmax.f32 %v839_v5, %v840_v18  ;;  %v1054_v17 = vrot.slane %v1053_v28, 2 }
 0x192   : > { %v1244_v60 = vsel %vm1239_vm8, %v1228_v61, %v1001_v49  ;;  %v951_v37 = vrot.slane %v950_v58, 1  ;;  %v1158_v56 = vmax.f32 %v1156_v6, %v1157_v27  ;;  %v458_v21 = vrot.slane %v457_v0, 4 }
 0x193   : > { %v563_v36 = vsel %vm513_vm2, %v1678_v53, -inf  ;;  %v1260_v31 = vsel %vm1255_vm9, %v1244_v60, %v1106_v35  ;;  %v842_v7 = vrot.slane %v841_v55, 1  ;;  %v1055_v40 = vmax.f32 %v1053_v28, %v1054_v17 }
 0x194   : > { %v564_v32 = vrot.slane %v563_v36, 4  ;;  %v1205_v46 = vsel %vm1192_vm6, %v1962_v29, %v710_v10  ;;  %v1999_v44 = vsel %vm1271_vm10, %v1260_v31, 0.0  ;;  %v1159_v50 = vrot.slane %v1158_v56, 2 }
 0x195   : > { %v459_v3 = vmax.f32 %v457_v0, %v458_v21  ;;  %v1290_v51 = vmax.f32 %v1289_v45, %v1999_v44  ;;  %v843_v63 = vmax.f32 %v841_v55, %v842_v7  ;;  %v1056_v43 = vrot.slane %v1055_v40, 1 }
 0x196   : > { %v565_v52 = vmax.f32 %v563_v36, %v564_v32  ;;  %v952_v4 = vmax.f32 %v950_v58, %v951_v37  ;;  %v1160_v1 = vmax.f32 %v1158_v56, %v1159_v50  ;;  %v669_v38 = vsel %vm619_vm3, %v1678_v53, -inf }
 0x197   : > { %v460_v14 = vrot.slane %v459_v3, 2  ;;  %1302 = vst [vmem:[%s1854_s24 + $0x8] sm:$0xff] %v1290_v51  ;;  %v1057_v29 = vmax.f32 %v1055_v40, %v1056_v43  ;;  %v1220_v10 = vsel %vm407_vm1, %v1205_v46, %v843_v63  ;;  %v670_v2 = vrot.slane %v669_v38, 4 }
 0x198   : > { %v566_v13 = vrot.slane %v565_v52, 2  ;;  %v1161_v26 = vrot.slane %v1160_v1, 1  ;;  %v1236_v62 = vsel %vm1223_vm7, %v1220_v10, %v952_v4  ;;  %v450_v39 = vsel %vm407_vm1, %v1690_v11, -inf }
 0x199   : > { %v461_v48 = vmax.f32 %v459_v3, %v460_v14  ;;  %v1252_v45 = vsel %vm1239_vm8, %v1236_v62, %v1057_v29  ;;  %v671_v42 = vmax.f32 %v669_v38, %v670_v2  ;;  %v451_v16 = vrot.slane %v450_v39, 4 }
 0x19a   : > { %v567_v25 = vmax.f32 %v565_v52, %v566_v13  ;;  %v1162_v47 = vmax.f32 %v1160_v1, %v1161_v26  ;;  %v556_v5 = vsel %vm513_vm2, %v1690_v11, -inf  ;;  %v662_v19 = vsel %vm619_vm3, %v1690_v11, -inf }
 0x19b   : > { %v462_v54 = vrot.slane %v461_v48, 1  ;;  %v672_v8 = vrot.slane %v671_v42, 2  ;;  %v452_v30 = vmax.f32 %v450_v39, %v451_v16  ;;  %v557_v6 = vrot.slane %v556_v5, 4 }
 0x19c   : > { %v568_v12 = vrot.slane %v567_v25, 1  ;;  %v1268_v49 = vsel %vm1255_vm9, %v1252_v45, %v1162_v47  ;;  %v663_v18 = vrot.slane %v662_v19, 4  ;;  %v506_v28 = vsel %vm407_vm1, %v1702_v33, -inf }
 0x19d   : > { %v463_v20 = vmax.f32 %v461_v48, %v462_v54  ;;  %v2021_v61 = vsel %vm1271_vm10, %v1268_v49, 0.0  ;;  %v673_v27 = vmax.f32 %v671_v42, %v672_v8  ;;  %v453_v0 = vrot.slane %v452_v30, 2 }
 0x19e   : > { %v569_v58 = vmax.f32 %v567_v25, %v568_v12  ;;  %v1298_v35 = vmax.f32 %v1297_v41, %v2021_v61  ;;  %v558_v60 = vmax.f32 %v556_v5, %v557_v6  ;;  %v664_v55 = vmax.f32 %v662_v19, %v663_v18 }
 0x19f   : > { %v507_v17 = vrot.slane %v506_v28, 4  ;;  %v674_v37 = vrot.slane %v673_v27, 1  ;;  %v790_v56 = vsel %vm725_vm4, %v1678_v53, -inf  ;;  %v454_v21 = vmax.f32 %v452_v30, %v453_v0 }
 0x1a0   : > { %v612_v36 = vsel %vm513_vm2, %v1702_v33, -inf  ;;  %1306 = vst [vmem:[%s1854_s24 + $0x28] sm:$0xff] %v1298_v35  ;;  %v559_v31 = vrot.slane %v558_v60, 2  ;;  %v665_v7 = vrot.slane %v664_v55, 2  ;;  %v1184_v46 = vsel %vm727_vm5, %v463_v20, %v569_v58 }
 0x1a1   : > { %v508_v40 = vmax.f32 %v506_v28, %v507_v17  ;;  %v613_v32 = vrot.slane %v612_v36, 4  ;;  %v455_v24 = vrot.slane %v454_v21, 1  ;;  %v718_v34 = vsel %vm619_vm3, %v1702_v33, -inf }
 0x1a2   : > { %v791_v41 = vsel %vm727_vm5, %v1716_v23, -inf  ;;  %v560_v50 = vmax.f32 %v558_v60, %v559_v31  ;;  %v666_v53 = vmax.f32 %v664_v55, %v665_v7  ;;  %v675_v63 = vmax.f32 %v673_v27, %v674_v37 }
 0x1a3   : > { %v509_v3 = vrot.slane %v508_v40, 2  ;;  %v614_v51 = vmax.f32 %v612_v36, %v613_v32  ;;  %v456_v43 = vmax.f32 %v454_v21, %v455_v24  ;;  %v719_v52 = vrot.slane %v718_v34, 4 }
 0x1a4   : > { %v792_v4 = vmax.f32 %v790_v56, %v791_v41  ;;  %v561_v1 = vrot.slane %v560_v50, 1  ;;  %v667_v14 = vrot.slane %v666_v53, 1  ;;  %v911_v2 = vsel %vm407_vm1, %v1716_v23, -inf }
 0x1a5   : > { %v510_v38 = vmax.f32 %v508_v40, %v509_v3  ;;  %v615_v29 = vrot.slane %v614_v51, 2  ;;  %v720_v10 = vmax.f32 %v718_v34, %v719_v52  ;;  %v1016_v26 = vsel %vm513_vm2, %v1716_v23, -inf }
 0x1a6   : > { %v793_v13 = vrot.slane %v792_v4, 4  ;;  %v562_v62 = vmax.f32 %v560_v50, %v561_v1  ;;  %v2043_v45 = vsel %vm1271_vm10, %v1957_v22, 0.0  ;;  %v912_v42 = vrot.slane %v911_v2, 4 }
 0x1a7   : > { %v511_v48 = vrot.slane %v510_v38, 1  ;;  %v616_v39 = vmax.f32 %v614_v51, %v615_v29  ;;  %v1017_v16 = vrot.slane %v1016_v26, 4  ;;  %v2047_v47 = vsel %vm1271_vm10, %v1978_v57, 0.0 }
 0x1a8   : > { %v794_v25 = vmax.f32 %v792_v4, %v793_v13  ;;  %v1200_v54 = vsel %vm1192_vm6, %v1184_v46, %v675_v63  ;;  %v668_v5 = vmax.f32 %v666_v53, %v667_v14  ;;  %v1121_v19 = vsel %vm619_vm3, %v1716_v23, -inf }
 0x1a9   : > { %v1183_v12 = vsel %vm727_vm5, %v456_v43, %v562_v62  ;;  %v721_v8 = vrot.slane %v720_v10, 2  ;;  %v913_v6 = vmax.f32 %v911_v2, %v912_v42  ;;  %v2053_v22 = vmax.f32 %v510_v38, %v511_v48 }
 0x1aa   : > { %v795_v30 = vrot.slane %v794_v25, 2  ;;  %v617_v49 = vrot.slane %v616_v39, 1  ;;  %v1018_v20 = vmax.f32 %v1016_v26, %v1017_v16  ;;  %v1122_v18 = vrot.slane %v1121_v19, 4 }
 0x1ab   : > { %v914_v58 = vrot.slane %v913_v6, 2  ;;  %v781_v57 = vsel %vm725_vm4, %v1690_v11, -inf  ;;  %v782_v27 = vsel %vm727_vm5, %v1741_v59, -inf  ;;  %v1199_v23 = vsel %vm1192_vm6, %v1183_v12, %v668_v5 }
 0x1ac   : > { %v796_v28 = vmax.f32 %v794_v25, %v795_v30  ;;  %v1019_v0 = vrot.slane %v1018_v20, 2  ;;  %v1123_v35 = vmax.f32 %v1121_v19, %v1122_v18  ;;  %v783_v60 = vmax.f32 %v781_v57, %v782_v27 }
 0x1ad   : > { %v2060_v55 = vmax.f32 %v720_v10, %v721_v8  ;;  %v915_v37 = vmax.f32 %v913_v6, %v914_v58  ;;  %v904_v56 = vsel %vm407_vm1, %v1741_v59, -inf  ;;  %v2064_v11 = vmax.f32 %v616_v39, %v617_v49 }
 0x1ae   : > { %v797_v17 = vrot.slane %v796_v28, 1  ;;  %v1020_v21 = vmax.f32 %v1018_v20, %v1019_v0  ;;  %v1124_v36 = vrot.slane %v1123_v35, 2  ;;  %v784_v31 = vrot.slane %v783_v60, 4 }
 0x1af   : > { %v905_v7 = vrot.slane %v904_v56, 4  ;;  %v916_v32 = vrot.slane %v915_v37, 1  ;;  %v1009_v46 = vsel %vm513_vm2, %v1741_v59, -inf  ;;  %v1114_v63 = vsel %vm619_vm3, %v1741_v59, -inf }
 0x1b0   : > { %v798_v40 = vmax.f32 %v796_v28, %v797_v17  ;;  %v1021_v24 = vrot.slane %v1020_v21, 1  ;;  %v1125_v34 = vmax.f32 %v1123_v35, %v1124_v36  ;;  %v785_v41 = vmax.f32 %v783_v60, %v784_v31 }
 0x1b1   : > { %v906_v50 = vmax.f32 %v904_v56, %v905_v7  ;;  %v917_v53 = vmax.f32 %v915_v37, %v916_v32  ;;  %v1010_v51 = vrot.slane %v1009_v46, 4  ;;  %v1115_v29 = vrot.slane %v1114_v63, 4 }
 0x1b2   : > { %v1215_v3 = vsel %vm407_vm1, %v1200_v54, %v798_v40  ;;  %v1022_v43 = vmax.f32 %v1020_v21, %v1021_v24  ;;  %v1126_v52 = vrot.slane %v1125_v34, 1  ;;  %v786_v4 = vrot.slane %v785_v41, 2 }
 0x1b3   : > { %v907_v1 = vrot.slane %v906_v50, 2  ;;  %v1231_v14 = vsel %vm1223_vm7, %v1215_v3, %v917_v53  ;;  %v1011_v38 = vmax.f32 %v1009_v46, %v1010_v51  ;;  %v1291_v10 = vmax.f32 %v1999_v44, %v2043_v45 }
 0x1b4   : > { %v1127_v13 = vmax.f32 %v1125_v34, %v1126_v52  ;;  %v1247_v2 = vsel %vm1239_vm8, %v1231_v14, %v1022_v43  ;;  %v787_v26 = vmax.f32 %v785_v41, %v786_v4  ;;  %v1116_v39 = vmax.f32 %v1114_v63, %v1115_v29 }
 0x1b5   : > { %v908_v62 = vmax.f32 %v906_v50, %v907_v1  ;;  %v1012_v48 = vrot.slane %v1011_v38, 2  ;;  %v853_v59 = vsel %vm725_vm4, %v1702_v33, -inf  ;;  %v854_v25 = vsel %vm727_vm5, %v1756_v9, -inf }
 0x1b6   : > { %v1263_v42 = vsel %vm1255_vm9, %v1247_v2, %v1127_v13  ;;  %v788_v16 = vrot.slane %v787_v26, 1  ;;  %v855_v5 = vmax.f32 %v853_v59, %v854_v25  ;;  %v723_v44 = vrot.slane %v2060_v55, 1 }
 0x1b7   : > { %v909_v54 = vrot.slane %v908_v62, 1  ;;  %v1013_v45 = vmax.f32 %v1011_v38, %v1012_v48  ;;  %v1117_v19 = vrot.slane %v1116_v39, 2  ;;  %v960_v12 = vsel %vm407_vm1, %v1756_v9, -inf }
 0x1b8   : > { %v789_v8 = vmax.f32 %v787_v26, %v788_v16  ;;  %v856_v6 = vrot.slane %v855_v5, 4  ;;  %v961_v49 = vrot.slane %v960_v12, 4  ;;  %v1065_v18 = vsel %vm513_vm2, %v1756_v9, -inf }
 0x1b9   : > { %v910_v30 = vmax.f32 %v908_v62, %v909_v54  ;;  %v1014_v33 = vrot.slane %v1013_v45, 1  ;;  %v1118_v20 = vmax.f32 %v1116_v39, %v1117_v19  ;;  %v1170_v28 = vsel %vm619_vm3, %v1756_v9, -inf }
 0x1ba   : > { %v1214_v58 = vsel %vm407_vm1, %v1199_v23, %v789_v8  ;;  %v857_v57 = vmax.f32 %v855_v5, %v856_v6  ;;  %v962_v27 = vmax.f32 %v960_v12, %v961_v49  ;;  %v1066_v0 = vrot.slane %v1065_v18, 4 }
 0x1bb   : > { %v1015_v35 = vmax.f32 %v1013_v45, %v1014_v33  ;;  %v1119_v60 = vrot.slane %v1118_v20, 1  ;;  %v1230_v17 = vsel %vm1223_vm7, %v1214_v58, %v910_v30  ;;  %v1171_v37 = vrot.slane %v1170_v28, 4 }
 0x1bc   : > { %v858_v56 = vrot.slane %v857_v57, 2  ;;  %v963_v21 = vrot.slane %v962_v27, 2  ;;  %v1067_v36 = vmax.f32 %v1065_v18, %v1066_v0  ;;  %v1299_v31 = vmax.f32 %v2021_v61, %v2047_v47 }
 0x1bd   : > { %v1120_v7 = vmax.f32 %v1118_v20, %v1119_v60  ;;  %v1246_v40 = vsel %vm1239_vm8, %v1230_v17, %v1015_v35  ;;  %v1172_v9 = vmax.f32 %v1170_v28, %v1171_v37  ;;  %v1279_v23 = vsel %vm1271_vm10, %v1263_v42, 0.0 }
 0x1be   : > { %v859_v32 = vmax.f32 %v857_v57, %v858_v56  ;;  %v964_v46 = vmax.f32 %v962_v27, %v963_v21  ;;  %v1068_v24 = vrot.slane %v1067_v36, 2  ;;  %v724_v34 = vmax.f32 %v2060_v55, %v723_v44 }
 0x1bf   : > { %v1191_v41 = vsel %vm727_vm5, %v2053_v22, %v2064_v11  ;;  %v1262_v50 = vsel %vm1255_vm9, %v1246_v40, %v1120_v7  ;;  %v1173_v53 = vrot.slane %v1172_v9, 2 }
 0x1c0   : > { %v1278_v61 = vsel %vm1271_vm10, %v1262_v50, 0.0  ;;  %v860_v47 = vrot.slane %v859_v32, 1  ;;  %v965_v3 = vrot.slane %v964_v46, 1  ;;  %v1069_v51 = vmax.f32 %v1067_v36, %v1068_v24 }
 0x1c1   : > { %v1292_v63 = vmax.f32 %v1291_v10, %v1278_v61  ;;  %v1293_v43 = vmax.f32 %v1278_v61, %v1279_v23  ;;  %v1174_v52 = vmax.f32 %v1172_v9, %v1173_v53  ;;  %v1207_v55 = vsel %vm1192_vm6, %v1191_v41, %v724_v34 }
 0x1c2   : > { %v861_v4 = vmax.f32 %v859_v32, %v860_v47  ;;  %v1070_v1 = vrot.slane %v1069_v51, 1  ;;  %v966_v22 = vmax.f32 %v964_v46, %v965_v3 }
 0x1c3   : > { %v1294_v14 = vmax.f32 %v1293_v43, %v1869_v15  ;;  %1303 = vst [vmem:[%s1854_s24 + $0x10] sm:$0xff] %v1292_v63  ;;  %v1175_v11 = vrot.slane %v1174_v52, 1 }
 0x1c4   : > { %v1071_v38 = vmax.f32 %v1069_v51, %v1070_v1  ;;  %v1222_v29 = vsel %vm407_vm1, %v1207_v55, %v861_v4 }
 0x1c5   : > { %1304 = vst [vmem:[%s1854_s24 + $0x18] sm:$0xff] %v1294_v14  ;;  %v1176_v13 = vmax.f32 %v1174_v52, %v1175_v11  ;;  %v1238_v2 = vsel %vm1223_vm7, %v1222_v29, %v966_v22 }
 0x1c6   : > { %v1254_v10 = vsel %vm1239_vm8, %v1238_v2, %v1071_v38 }
 0x1c7   : > { %v1270_v26 = vsel %vm1255_vm9, %v1254_v10, %v1176_v13 }
 0x1c8   : > { %v1286_v62 = vsel %vm1271_vm10, %v1270_v26, 0.0 }
 0x1c9   : > { %v1300_v48 = vmax.f32 %v1299_v31, %v1286_v62 }
 0x1cb   : > { %1307 = vst [vmem:[%s1854_s24 + $0x30] sm:$0xff] %v1300_v48 }
 0x1cc PF: > { %s12_s9 = sadd.s32 1, %s1457_s9  }
 0x1cd   : > { %p9_p5 = scmp.ge.s32.totalorder %s12_s9, 4  }
 0x1cf   :  { %11 = sbr.rel (!%p9_p5) target bundleno = 1 (0x1), region = 58 }

// kernel: densenet_forward.7
= control target key start
LH: loop header
LB: loop body
LE: loop exit
PB: predicated region body
PF: predicated region fallthrough
CT: control target
= control target key end

     0   :  { %s681_s15 = smov 0   ;;  %s841_s0 = inlined_call_operand.vmem [shape: f32[112,128], index: 0, kind: input, shape index: {}]   ;;  %s842_s1 = inlined_call_operand.vmem [shape: f32[1,128], index: 1, kind: input, shape index: {}]   ;;  %s843_s2 = inlined_call_operand.vmem [shape: f32[1,128], index: 2, kind: input, shape index: {}]   ;;  %s844_s3 = inlined_call_operand.vmem [shape: f32[128,128], index: 3, kind: input, shape index: {}]   ;;  %s845_s4 = inlined_call_operand.vmem [shape: f32[48,128], index: 4, kind: output, shape index: {}]  }
   0x1 LB: > { %s577_s16 = sadd.s32 4294967295, %s654_s15   ;;  %p581_p0 = scmp.ge.s32.totalorder %s654_s15, 1  ;;  %s654_s15 = sphi %s681_s15, %s14_s15  }
   0x2   : > { %p163_p1 = scmp.lt.s32.totalorder %s654_s15, 3 }
   0x4   : > { %p164_p2 = pnand %p581_p0, %p163_p1 }
   0x5   : > { %v244_v0 = vld [vmem:[%s844_s3] sm:$0xff] (!%p164_p2)  ;;  %v245_v1 = vld [vmem:[%s844_s3 + $0x8] sm:$0xff] (!%p164_p2)  ;;  %v246_v2 = vld [vmem:[%s844_s3 + $0x10] sm:$0xff] (!%p164_p2)  ;;  %s189_s23 = smul.u32 (!%p164_p2), 7, %s577_s16  ;;  %vm335_vm0 = vcmask (!%p164_p2), 1041408   ;;  %vm492_vm1 = vcmask (!%p164_p2), 1040384  }
   0x6   : > { %167 = sbr.rel (%p164_p2) target bundleno = 303 (0x12f), region = 36  ;;  %v264_v3 = vpack.c.bf16 (!%p164_p2), %v245_v1, %v244_v0  ;;  %v247_v4 = vld [vmem:[%s844_s3 + $0x18] sm:$0xff] (!%p164_p2)  ;;  %v248_v6 = vld [vmem:[%s844_s3 + $0x20] sm:$0xff] (!%p164_p2)  ;;  %v249_v7 = vld [vmem:[%s844_s3 + $0x28] sm:$0xff] (!%p164_p2)  ;;  %vm505_vm2 = vcmask (!%p164_p2), 1042432  }
   0x7   : > { %v265_v5 = vpack.c.bf16 (!%p164_p2), %v247_v4, %v246_v2  ;;  %p190_p3 = scmp.lt.s32.totalorder (!%p164_p2), %s189_s23, 13  ;;  %v266_v8 = vpack.c.bf16 (!%p164_p2), %v249_v7, %v248_v6  ;;  %v250_v9 = vld [vmem:[%s844_s3 + $0x30] sm:$0xff] (!%p164_p2)  ;;  %v251_v10 = vld [vmem:[%s844_s3 + $0x38] sm:$0xff] (!%p164_p2)  ;;  %v584_v11 = vld [vmem:[%s842_s1] ss:$0 sm:$0xff] (!%p164_p2) }
   0x8   : > { %600 = vmatprep.subr.bf16.mxu0 (!%p164_p2), %v264_v3  ;;  %624 = vmatprep.subr.bf16.mxu1 (!%p164_p2), %v264_v3  ;;  %v585_v12 = vld [vmem:[%s843_s2] ss:$0 sm:$0xff] (!%p164_p2)  ;;  %v267_v13 = vpack.c.bf16 (!%p164_p2), %v251_v10, %v250_v9  ;;  %v253_v22 = vld [vmem:[%s844_s3 + $0x48] sm:$0xff] (!%p164_p2)  ;;  %v254_v32 = vld [vmem:[%s844_s3 + $0x50] sm:$0xff] (!%p164_p2) }
   0x9   : > { %601 = vmatpush3.bf16.msra.mxu0 (!%p164_p2), %v264_v3  ;;  %632 = vmatpush3.bf16.msra.mxu1 (!%p164_p2), %v264_v3  ;;  %v252_v21 = vld [vmem:[%s844_s3 + $0x40] sm:$0xff] (!%p164_p2)  ;;  %v255_v33 = vld [vmem:[%s844_s3 + $0x58] sm:$0xff] (!%p164_p2)  ;;  %v257_v42 = vld [vmem:[%s844_s3 + $0x68] sm:$0xff] (!%p164_p2) }
   0xa   : > { %602 = vmatprep.subr.bf16.mxu0 (!%p164_p2), %v265_v5  ;;  %625 = vmatprep.subr.bf16.mxu1 (!%p164_p2), %v265_v5  ;;  %v268_v28 = vpack.c.bf16 (!%p164_p2), %v253_v22, %v252_v21  ;;  %v269_v40 = vpack.c.bf16 (!%p164_p2), %v255_v33, %v254_v32  ;;  %v256_v41 = vld [vmem:[%s844_s3 + $0x60] sm:$0xff] (!%p164_p2)  ;;  %v258_v47 = vld [vmem:[%s844_s3 + $0x70] sm:$0xff] (!%p164_p2)  ;;  %v259_v48 = vld [vmem:[%s844_s3 + $0x78] sm:$0xff] (!%p164_p2) }
   0xb   : > { %v270_v46 = vpack.c.bf16 (!%p164_p2), %v257_v42, %v256_v41  ;;  %v271_v52 = vpack.c.bf16 (!%p164_p2), %v259_v48, %v258_v47 }
   0xd   : > { %s847_s23 = smov (!%p190_p3, %s189_s23), 13  ;;  %603 = vmatpush3.bf16.msra.mxu0 %v265_v5  ;;  %633 = vmatpush3.bf16.msra.mxu1 %v265_v5 }
   0xe   : > { %s582_s8 = sshll.u32 %s847_s23, 3  ;;  %604 = vmatprep.subr.bf16.mxu0 %v266_v8  ;;  %626 = vmatprep.subr.bf16.mxu1 %v266_v8 }
   0xf   : > { %s721_s13 = scalar_lea.vmem %s841_s0, %s582_s8  ;;  %s788_s8 = smul.u32 3, %s577_s16 }
  0x10   : > { %v202_v14 = vld [vmem:[%s721_s13] sm:$0xff]  ;;  %v203_v15 = vld [vmem:[%s721_s13 + $0x8] sm:$0xff]  ;;  %v204_v37 = vld [vmem:[%s721_s13 + $0x10] sm:$0xff] }
  0x11   : > { %v206_v16 = vld [vmem:[%s721_s13 + $0x20] sm:$0xff]  ;;  %v216_v17 = vmul.f32 %v584_v11, %v202_v14  ;;  %v217_v18 = vmul.f32 %v584_v11, %v203_v15  ;;  %v207_v19 = vld [vmem:[%s721_s13 + $0x28] sm:$0xff]  ;;  %605 = vmatpush3.bf16.msra.mxu0 %v266_v8  ;;  %634 = vmatpush3.bf16.msra.mxu1 %v266_v8  ;;  %v205_v38 = vld [vmem:[%s721_s13 + $0x18] sm:$0xff]  ;;  %v218_v43 = vmul.f32 %v584_v11, %v204_v37  ;;  %p196_p4 = scmp.lt.s32.totalorder %s788_s8, 5 }
  0x12   : > { %v220_v20 = vmul.f32 %v584_v11, %v206_v16  ;;  %v221_v23 = vmul.f32 %v584_v11, %v207_v19  ;;  %606 = vmatprep.subr.bf16.mxu0 %v267_v13  ;;  %627 = vmatprep.subr.bf16.mxu1 %v267_v13  ;;  %v208_v39 = vld [vmem:[%s721_s13 + $0x30] sm:$0xff]  ;;  %v219_v44 = vmul.f32 %v584_v11, %v205_v38 }
  0x13   : > { %v230_v24 = vadd.f32 %v585_v12, %v216_v17  ;;  %v231_v25 = vadd.f32 %v585_v12, %v217_v18  ;;  %v222_v45 = vmul.f32 %v584_v11, %v208_v39  ;;  %v232_v49 = vadd.f32 %v585_v12, %v218_v43  ;;  %s849_s8 = smov (!%p196_p4, %s788_s8), 5 }
  0x14   : > { %v234_v26 = vadd.f32 %v585_v12, %v220_v20  ;;  %v235_v27 = vadd.f32 %v585_v12, %v221_v23  ;;  %v233_v50 = vadd.f32 %v585_v12, %v219_v44  ;;  %s583_s16 = sshll.u32 %s849_s8, 3 }
  0x15   : > { %v237_v29 = vmax.f32 %v230_v24, 0.0  ;;  %v238_v30 = vmax.f32 %v231_v25, 0.0  ;;  %607 = vmatpush3.bf16.msra.mxu0 %v267_v13  ;;  %635 = vmatpush3.bf16.msra.mxu1 %v267_v13  ;;  %v236_v51 = vadd.f32 %v585_v12, %v222_v45  ;;  %v239_v53 = vmax.f32 %v232_v49, 0.0  ;;  %s822_s11 = scalar_lea.vmem %s845_s4, %s583_s16 }
  0x16   : > { %v241_v31 = vmax.f32 %v234_v26, 0.0  ;;  %v242_v34 = vmax.f32 %v235_v27, 0.0  ;;  %608 = vmatprep.subr.bf16.mxu0 %v268_v28  ;;  %628 = vmatprep.subr.bf16.mxu1 %v268_v28  ;;  %v240_v54 = vmax.f32 %v233_v50, 0.0 }
  0x17   : > { %v260_v35 = vpack.c.bf16 %v238_v30, %v237_v29  ;;  %v243_v55 = vmax.f32 %v236_v51, 0.0 }
  0x18   : > { %v262_v36 = vpack.c.bf16 %v242_v34, %v241_v31  ;;  %v261_v56 = vpack.c.bf16 %v240_v54, %v239_v53 }
  0x19   : > { %616 = vmatprep.mubr.bf16.mxu0 %v260_v35  ;;  %609 = vmatpush3.bf16.msra.mxu0 %v268_v28  ;;  %v263_v57 = vpack.c.bf16 %v243_v55, %v243_v55 }
  0x1a   : > { %620 = vmatprep.mubr.bf16.mxu1 %v262_v36  ;;  %636 = vmatpush3.bf16.msra.mxu1 %v268_v28 }
  0x1b   : > { %610 = vmatprep.subr.bf16.mxu0 %v269_v40  ;;  %629 = vmatprep.subr.bf16.mxu1 %v269_v40 }
  0x1d   : > { %611 = vmatpush3.bf16.msra.mxu0 %v269_v40 }
  0x1e   : > { %637 = vmatpush3.bf16.msra.mxu1 %v269_v40  ;;  %612 = vmatprep.subr.bf16.mxu0 %v270_v46 }
  0x1f   : > { %630 = vmatprep.subr.bf16.mxu1 %v270_v46 }
  0x21   : > { %613 = vmatpush3.bf16.msra.mxu0 %v270_v46 }
  0x22   : > { %638 = vmatpush3.bf16.msra.mxu1 %v270_v46  ;;  %614 = vmatprep.subr.bf16.mxu0 %v271_v52 }
  0x23   : > { %631 = vmatprep.subr.bf16.mxu1 %v271_v52 }
  0x25   : > { %615 = vmatpush3.bf16.msra.mxu0 %v271_v52 }
  0x26   : > { %639 = vmatpush3.bf16.msra.mxu1 %v271_v52 }
  0x28   : > { %617 = vmatmul.mubr.bf16.vlgmr.msra.gmra.mrb[0].mxu0 %v261_v56 }
  0x29   : > { %621 = vmatmul.mubr.bf16.vlgmr.msra.gmra.mrb[0].mxu1 %v263_v57 }
  0xfb   : > { %v618_v58 = vpop.f32.mrb[0].mxu0 }
  0xfc   : > { %v622_v59 = vpop.f32.mrb[0].mxu1  ;;  %v350_v60 = vsel %vm335_vm0, %v618_v58, 0.0  ;;  %v386_v61 = vrot.slane %v618_v58, 2  ;;  %v440_v62 = vrot.slane %v618_v58, 4  ;;  %v306_v63 = vpop.f32.mrb[1].mxu0 }
  0xfd   : > { %v322_v0 = vpop.f32.mrb[1].mxu1  ;;  %v351_v1 = vrot.slane %v350_v60, 4  ;;  %v336_v2 = vsel %vm335_vm0, %v306_v63, 0.0  ;;  %v384_v3 = vrot.slane %v306_v63, 2  ;;  %v438_v4 = vrot.slane %v306_v63, 4  ;;  %v759_v5 = vpop.f32.mrb[2].mxu0 }
  0xfe   : > { %v623_v6 = vpop.f32.mrb[2].mxu1  ;;  %v410_v7 = vsel %vm335_vm0, %v386_v61, 0.0  ;;  %v464_v8 = vsel %vm335_vm0, %v440_v62, 0.0  ;;  %v337_v9 = vrot.slane %v336_v2, 4  ;;  %v364_v10 = vsel %vm335_vm0, %v322_v0, 0.0  ;;  %v764_v11 = vpop.f32.mrb[3].mxu0 }
  0xff   : > { %v766_v12 = vpop.f32.mrb[3].mxu1  ;;  %v352_v13 = vadd.f32 %v351_v1, %v350_v60  ;;  %v411_v14 = vrot.slane %v410_v7, 4  ;;  %v465_v15 = vrot.slane %v464_v8, 4  ;;  %v396_v16 = vsel %vm335_vm0, %v384_v3, 0.0 }
 0x100   : > { %v338_v17 = vadd.f32 %v337_v9, %v336_v2  ;;  %v397_v18 = vrot.slane %v396_v16, 4  ;;  %v450_v19 = vsel %vm335_vm0, %v438_v4, 0.0  ;;  %v365_v20 = vrot.slane %v364_v10, 4 }
 0x101   : > { %v353_v21 = vrot.slane %v352_v13, 2  ;;  %v412_v22 = vadd.f32 %v411_v14, %v410_v7  ;;  %v466_v23 = vadd.f32 %v465_v15, %v464_v8  ;;  %v451_v24 = vrot.slane %v450_v19, 4 }
 0x102   : > { %v339_v25 = vrot.slane %v338_v17, 2  ;;  %v398_v26 = vadd.f32 %v397_v18, %v396_v16  ;;  %v388_v27 = vrot.slane %v322_v0, 2  ;;  %v366_v31 = vadd.f32 %v365_v20, %v364_v10 }
 0x103   : > { %v413_v28 = vrot.slane %v412_v22, 2  ;;  %v467_v29 = vrot.slane %v466_v23, 2  ;;  %v452_v30 = vadd.f32 %v451_v24, %v450_v19  ;;  %v354_v32 = vadd.f32 %v353_v21, %v352_v13 }
 0x104   : > { %v340_v33 = vadd.f32 %v339_v25, %v338_v17  ;;  %v399_v34 = vrot.slane %v398_v26, 2  ;;  %v424_v35 = vsel %vm335_vm0, %v388_v27, 0.0  ;;  %v367_v45 = vrot.slane %v366_v31, 2 }
 0x105   : > { %v414_v36 = vadd.f32 %v413_v28, %v412_v22  ;;  %v468_v37 = vadd.f32 %v467_v29, %v466_v23  ;;  %v453_v38 = vrot.slane %v452_v30, 2  ;;  %v425_v40 = vrot.slane %v424_v35, 4 }
 0x106   : > { %v400_v39 = vadd.f32 %v399_v34, %v398_v26  ;;  %v355_v42 = vrot.slane %v354_v32, 1  ;;  %v341_v43 = vrot.slane %v340_v33, 1  ;;  %v442_v47 = vrot.slane %v322_v0, 4 }
 0x107   : > { %v415_v41 = vrot.slane %v414_v36, 1  ;;  %v454_v44 = vadd.f32 %v453_v38, %v452_v30  ;;  %v469_v46 = vrot.slane %v468_v37, 1  ;;  %v426_v50 = vadd.f32 %v425_v40, %v424_v35 }
 0x108   : > { %v401_v49 = vrot.slane %v400_v39, 1  ;;  %v357_v51 = vsel %vm335_vm0, %v759_v5, 0.0  ;;  %v356_v53 = vadd.f32 %v355_v42, %v354_v32  ;;  %v342_v54 = vadd.f32 %v341_v43, %v340_v33 }
 0x109   : > { %v416_v48 = vadd.f32 %v415_v41, %v414_v36  ;;  %v358_v52 = vrot.slane %v357_v51, 4  ;;  %v455_v55 = vrot.slane %v454_v44, 1  ;;  %v773_v56 = vadd.f32 %v367_v45, %v366_v31 }
 0x10a   : > { %v470_v57 = vadd.f32 %v469_v46, %v468_v37  ;;  %v478_v58 = vsel %vm335_vm0, %v442_v47, 0.0  ;;  %v387_v60 = vrot.slane %v759_v5, 2  ;;  %v402_v62 = vadd.f32 %v401_v49, %v400_v39 }
 0x10b   : > { %v359_v59 = vadd.f32 %v358_v52, %v357_v51  ;;  %v495_v61 = vsel %vm492_vm1, %v356_v53, %v416_v48  ;;  %v427_v63 = vrot.slane %v426_v50, 2  ;;  %v441_v0 = vrot.slane %v759_v5, 4 }
 0x10c   : > { %v417_v2 = vsel %vm335_vm0, %v387_v60, 0.0  ;;  %v343_v3 = vsel %vm335_vm0, %v764_v11, 0.0  ;;  %v385_v4 = vrot.slane %v764_v11, 2  ;;  %v783_v6 = vadd.f32 %v455_v55, %v454_v44 }
 0x10d   : > { %v360_v1 = vrot.slane %v359_v59, 2  ;;  %v479_v7 = vrot.slane %v478_v58, 4  ;;  %v418_v8 = vrot.slane %v417_v2, 4  ;;  %v471_v9 = vsel %vm335_vm0, %v441_v0, 0.0 }
 0x10e   : > { %v472_v5 = vrot.slane %v471_v9, 4  ;;  %v344_v13 = vrot.slane %v343_v3, 4  ;;  %v403_v14 = vsel %vm335_vm0, %v385_v4, 0.0  ;;  %v501_v15 = vsel %vm335_vm0, %v495_v61, %v470_v57 }
 0x10f   : > { %v361_v10 = vadd.f32 %v360_v1, %v359_v59  ;;  %v493_v16 = vsel %vm492_vm1, %v342_v54, %v402_v62  ;;  %v419_v17 = vadd.f32 %v418_v8, %v417_v2  ;;  %v404_v18 = vrot.slane %v403_v14, 4 }
 0x110   : > { %v793_v19 = vadd.f32 %v427_v63, %v426_v50  ;;  %v473_v20 = vadd.f32 %v472_v5, %v471_v9  ;;  %v345_v21 = vadd.f32 %v344_v13, %v343_v3  ;;  %v439_v22 = vrot.slane %v764_v11, 4 }
 0x111   : > { %v480_v23 = vadd.f32 %v479_v7, %v478_v58  ;;  %v420_v24 = vrot.slane %v419_v17, 2  ;;  %v405_v25 = vadd.f32 %v404_v18, %v403_v14  ;;  %v371_v26 = vsel %vm335_vm0, %v766_v12, 0.0 }
 0x112   : > { %v362_v27 = vrot.slane %v361_v10, 1  ;;  %v474_v28 = vrot.slane %v473_v20, 2  ;;  %v346_v29 = vrot.slane %v345_v21, 2  ;;  %v457_v30 = vsel %vm335_vm0, %v439_v22, 0.0 }
 0x113   : > { %v508_v31 = vsel %vm505_vm2, %v501_v15, 0.0  ;;  %v421_v32 = vadd.f32 %v420_v24, %v419_v17  ;;  %v406_v33 = vrot.slane %v405_v25, 2  ;;  %v458_v34 = vrot.slane %v457_v30, 4 }
 0x114   : > { %v475_v11 = vadd.f32 %v474_v28, %v473_v20  ;;  %v347_v35 = vadd.f32 %v346_v29, %v345_v21  ;;  %v372_v36 = vrot.slane %v371_v26, 4  ;;  %v389_v37 = vrot.slane %v766_v12, 2 }
 0x115   : > { %v481_v38 = vrot.slane %v480_v23, 2  ;;  %v422_v39 = vrot.slane %v421_v32, 1  ;;  %v407_v40 = vadd.f32 %v406_v33, %v405_v25  ;;  %v459_v41 = vadd.f32 %v458_v34, %v457_v30 }
 0x116   : > { %v363_v42 = vadd.f32 %v362_v27, %v361_v10  ;;  %v476_v43 = vrot.slane %v475_v11, 1  ;;  %v348_v44 = vrot.slane %v347_v35, 1  ;;  %v373_v45 = vadd.f32 %v372_v36, %v371_v26 }
 0x117   : > { %v423_v46 = vadd.f32 %v422_v39, %v421_v32  ;;  %v408_v47 = vrot.slane %v407_v40, 1  ;;  %v460_v48 = vrot.slane %v459_v41, 2  ;;  %v431_v49 = vsel %vm335_vm0, %v389_v37, 0.0 }
 0x118   : > { %v429_v50 = vrot.slane %v793_v19, 1  ;;  %v477_v51 = vadd.f32 %v476_v43, %v475_v11  ;;  %v374_v52 = vrot.slane %v373_v45, 2  ;;  %v432_v53 = vrot.slane %v431_v49, 4 }
 0x119   : > { %v496_v54 = vsel %vm492_vm1, %v363_v42, %v423_v46  ;;  %v409_v55 = vadd.f32 %v408_v47, %v407_v40  ;;  %v461_v57 = vadd.f32 %v460_v48, %v459_v41  ;;  %v443_v58 = vrot.slane %v766_v12, 4 }
 0x11a   : > { %v482_v59 = vadd.f32 %v481_v38, %v480_v23  ;;  %v502_v60 = vsel %vm335_vm0, %v496_v54, %v477_v51  ;;  %v349_v61 = vadd.f32 %v348_v44, %v347_v35  ;;  %v433_v62 = vadd.f32 %v432_v53, %v431_v49 }
 0x11b   : > { %v509_v63 = vsel %vm505_vm2, %v502_v60, 0.0  ;;  %v462_v0 = vrot.slane %v461_v57, 1  ;;  %v375_v1 = vadd.f32 %v374_v52, %v373_v45  ;;  %v485_v2 = vsel %vm335_vm0, %v443_v58, 0.0 }
 0x11c   : > { %v513_v3 = vadd.f32 %v509_v63, %v508_v31  ;;  %v494_v4 = vsel %vm492_vm1, %v349_v61, %v409_v55  ;;  %v434_v7 = vrot.slane %v433_v62, 2  ;;  %v486_v8 = vrot.slane %v485_v2, 4 }
 0x11d   : > { %v499_v12 = vsel %vm335_vm0, %v493_v16, %v783_v6  ;;  %v369_v9 = vrot.slane %v773_v56, 1  ;;  %v463_v10 = vadd.f32 %v462_v0, %v461_v57  ;;  %v483_v5 = vrot.slane %v482_v59, 1 }
 0x11e   : > { %v516_v13 = vmul.f32 0.25, %v513_v3  ;;  %v435_v14 = vadd.f32 %v434_v7, %v433_v62  ;;  %v487_v15 = vadd.f32 %v486_v8, %v485_v2  ;;  %v430_v17 = vadd.f32 %v429_v50, %v793_v19 }
 0x11f   : > { %v500_v18 = vsel %vm335_vm0, %v494_v4, %v463_v10  ;;  %v376_v20 = vrot.slane %v375_v1, 1  ;;  %v506_v6 = vsel %vm505_vm2, %v499_v12, 0.0  ;;  %v370_v23 = vadd.f32 %v369_v9, %v773_v56 }
 0x120   : > { %519 = vst [vmem:[%s822_s11 + $0x8] sm:$0xff] %v516_v13  ;;  %v507_v16 = vsel %vm505_vm2, %v500_v18, 0.0  ;;  %v436_v21 = vrot.slane %v435_v14, 1  ;;  %v488_v22 = vrot.slane %v487_v15, 2  ;;  %v484_v25 = vadd.f32 %v483_v5, %v482_v59 }
 0x121   : > { %v512_v24 = vadd.f32 %v507_v16, %v506_v6  ;;  %v497_v19 = vsel %vm492_vm1, %v370_v23, %v430_v17  ;;  %v377_v29 = vadd.f32 %v376_v20, %v375_v1 }
 0x122   : > { %v437_v26 = vadd.f32 %v436_v21, %v435_v14  ;;  %v489_v27 = vadd.f32 %v488_v22, %v487_v15  ;;  %v503_v32 = vsel %vm335_vm0, %v497_v19, %v484_v25 }
 0x123   : > { %v515_v28 = vmul.f32 0.25, %v512_v24  ;;  %v510_v56 = vsel %vm505_vm2, %v503_v32, 0.0 }
 0x124   : > { %v490_v30 = vrot.slane %v489_v27, 1  ;;  %v498_v31 = vsel %vm492_vm1, %v377_v29, %v437_v26 }
 0x125   : > { %518 = vst [vmem:[%s822_s11] sm:$0xff] %v515_v28 }
 0x126   : > { %v491_v33 = vadd.f32 %v490_v30, %v489_v27 }
 0x128   : > { %v504_v34 = vsel %vm335_vm0, %v498_v31, %v491_v33 }
 0x129   : > { %v511_v11 = vsel %vm505_vm2, %v504_v34, 0.0 }
 0x12a   : > { %v514_v35 = vadd.f32 %v511_v11, %v510_v56 }
 0x12c   : > { %v517_v36 = vmul.f32 0.25, %v514_v35 }
 0x12e   : > { %520 = vst [vmem:[%s822_s11 + $0x10] sm:$0xff] %v517_v36 }
 0x12f PF: > { %s14_s15 = sadd.s32 1, %s654_s15  }
 0x130   : > { %p11_p5 = scmp.ge.s32.totalorder %s14_s15, 4  }
 0x132   :  { %13 = sbr.rel (!%p11_p5) target bundleno = 1 (0x1), region = 66 }

// kernel: densenet_forward.9
= control target key start
LH: loop header
LB: loop body
LE: loop exit
PB: predicated region body
PF: predicated region fallthrough
CT: control target
= control target key end

     0   :  { %s662_s24 = smov 0   ;;  %s810_s0 = inlined_call_operand.vmem [shape: f32[48,128], index: 0, kind: input, shape index: {}]   ;;  %s811_s1 = inlined_call_operand.vmem [shape: f32[1,128], index: 1, kind: input, shape index: {}]   ;;  %s812_s2 = inlined_call_operand.vmem [shape: f32[1,128], index: 2, kind: input, shape index: {}]   ;;  %s813_s3 = inlined_call_operand.vmem [shape: f32[128,128], index: 3, kind: input, shape index: {}]   ;;  %s814_s4 = inlined_call_operand.vmem [shape: f32[1,128], index: 4, kind: input, shape index: {}]   ;;  %s815_s5 = inlined_call_operand.vmem [shape: f32[128,128], index: 5, kind: input, shape index: {}]   ;;  %s816_s6 = inlined_call_operand.vmem [shape: f32[1,128], index: 6, kind: input, shape index: {}]   ;;  %s817_s7 = inlined_call_operand.vmem [shape: f32[16,128], index: 7, kind: output, shape index: {}]  }
   0x1 LB: > { %s668_s25 = sadd.s32 4294967295, %s618_s24   ;;  %p535_p0 = scmp.ge.s32.totalorder %s618_s24, 1  ;;  %s618_s24 = sphi %s662_s24, %s17_s24  }
   0x2   : > { %p238_p1 = scmp.lt.s32.totalorder %s618_s24, 3 }
   0x4   : > { %p239_p2 = pnand %p535_p0, %p238_p1 }
   0x5   : > { %v332_v0 = vld [vmem:[%s813_s3] sm:$0xff] (!%p239_p2)  ;;  %v333_v1 = vld [vmem:[%s813_s3 + $0x8] sm:$0xff] (!%p239_p2)  ;;  %v334_v2 = vld [vmem:[%s813_s3 + $0x10] sm:$0xff] (!%p239_p2)  ;;  %s269_s9 = smul.u32 (!%p239_p2), 3, %s668_s25  ;;  %v620_v3 = vmov (!%p239_p2), 0.0   ;;  %vm621_vm0 = vmmov (!%p239_p2), 0  }
   0x6   : > { %242 = sbr.rel (%p239_p2) target bundleno = 476 (0x1dc), region = 48  ;;  %562 = vmatprep.subr.bf16.mxu0 (!%p239_p2), %v620_v3  ;;  %v349_v4 = vpack.c.bf16 (!%p239_p2), %v333_v1, %v332_v0  ;;  %v335_v5 = vld [vmem:[%s813_s3 + $0x18] sm:$0xff] (!%p239_p2)  ;;  %578 = vmatprep.mubr.msk.bf16.mxu0 (!%p239_p2), %vm621_vm0, %v620_v3  ;;  %v336_v7 = vld [vmem:[%s813_s3 + $0x20] sm:$0xff] (!%p239_p2)  ;;  %v337_v8 = vld [vmem:[%s813_s3 + $0x28] sm:$0xff] (!%p239_p2)  ;;  %vm303_vm1 = vcmask (!%p239_p2), 1042432   ;;  %vm325_vm2 = vcmask (!%p239_p2), 1040384  }
   0x7   : > { %p270_p3 = scmp.lt.s32.totalorder (!%p239_p2), %s269_s9, 5  ;;  %582 = vmatprep.subr.bf16.mxu1 (!%p239_p2), %v620_v3  ;;  %598 = vmatprep.mubr.msk.bf16.mxu1 (!%p239_p2), %vm621_vm0, %v620_v3  ;;  %v350_v6 = vpack.c.bf16 (!%p239_p2), %v335_v5, %v334_v2  ;;  %v538_v9 = vld [vmem:[%s811_s1] ss:$0 sm:$0xff] (!%p239_p2)  ;;  %v338_v10 = vld [vmem:[%s813_s3 + $0x30] sm:$0xff] (!%p239_p2)  ;;  %v406_v12 = vld [vmem:[%s815_s5 + $0x8] sm:$0xff] (!%p239_p2)  ;;  %v351_v14 = vpack.c.bf16 (!%p239_p2), %v337_v8, %v336_v7  ;;  %p275_p4 = scmp.lt.s32.totalorder (!%p239_p2), %s668_s25, 1 }
   0x8   : > { %563 = vmatpush3.bf16.msra.mxu0 (!%p239_p2), %v349_v4  ;;  %v405_v11 = vld [vmem:[%s815_s5] sm:$0xff] (!%p239_p2)  ;;  %v407_v13 = vld [vmem:[%s815_s5 + $0x10] sm:$0xff] (!%p239_p2)  ;;  %v339_v15 = vld [vmem:[%s813_s3 + $0x38] sm:$0xff] (!%p239_p2) }
   0x9   : > { %564 = vmatprep.subr.bf16.mxu0 (!%p239_p2), %v620_v3  ;;  %v539_v16 = vld [vmem:[%s812_s2] ss:$0 sm:$0xff] (!%p239_p2)  ;;  %v422_v17 = vpack.c.bf16 (!%p239_p2), %v406_v12, %v405_v11  ;;  %v408_v18 = vld [vmem:[%s815_s5 + $0x18] sm:$0xff] (!%p239_p2)  ;;  %v410_v27 = vld [vmem:[%s815_s5 + $0x28] sm:$0xff] (!%p239_p2)  ;;  %v352_v28 = vpack.c.bf16 (!%p239_p2), %v339_v15, %v338_v10 }
   0xa   : > { %v423_v25 = vpack.c.bf16 (!%p239_p2), %v408_v18, %v407_v13  ;;  %v409_v26 = vld [vmem:[%s815_s5 + $0x20] sm:$0xff] (!%p239_p2)  ;;  %v341_v33 = vld [vmem:[%s813_s3 + $0x48] sm:$0xff] (!%p239_p2)  ;;  %v411_v41 = vld [vmem:[%s815_s5 + $0x30] sm:$0xff] (!%p239_p2) }
   0xb   : > { %583 = vmatpush3.bf16.msra.mxu1 (!%p239_p2), %v422_v17  ;;  %v340_v32 = vld [vmem:[%s813_s3 + $0x40] sm:$0xff] (!%p239_p2)  ;;  %v424_v37 = vpack.c.bf16 (!%p239_p2), %v410_v27, %v409_v26  ;;  %v412_v42 = vld [vmem:[%s815_s5 + $0x38] sm:$0xff] (!%p239_p2)  ;;  %v342_v44 = vld [vmem:[%s813_s3 + $0x50] sm:$0xff] (!%p239_p2) }
   0xc   : > { %565 = vmatpush3.bf16.msra.mxu0 (!%p239_p2), %v350_v6  ;;  %584 = vmatprep.subr.bf16.mxu1 (!%p239_p2), %v620_v3  ;;  %v353_v43 = vpack.c.bf16 (!%p239_p2), %v341_v33, %v340_v32  ;;  %v343_v45 = vld [vmem:[%s813_s3 + $0x58] sm:$0xff] (!%p239_p2)  ;;  %v425_v49 = vpack.c.bf16 (!%p239_p2), %v412_v42, %v411_v41  ;;  %v413_v53 = vld [vmem:[%s815_s5 + $0x40] sm:$0xff] (!%p239_p2)  ;;  %v414_v54 = vld [vmem:[%s815_s5 + $0x48] sm:$0xff] (!%p239_p2) }
   0xd   : > { %s819_s9 = smov (!%p270_p3, %s269_s9), 5  ;;  %566 = vmatprep.subr.bf16.mxu0 %v620_v3  ;;  %v354_v55 = vpack.c.bf16 %v343_v45, %v342_v44  ;;  %v344_v56 = vld [vmem:[%s813_s3 + $0x60] sm:$0xff]  ;;  %v345_v57 = vld [vmem:[%s813_s3 + $0x68] sm:$0xff]  ;;  %v426_v61 = vpack.c.bf16 %v414_v54, %v413_v53  ;;  %v415_v1 = vld [vmem:[%s815_s5 + $0x50] sm:$0xff]  ;;  %s821_s25 = smov (!%p275_p4, %s668_s25), 1 }
   0xe   : > { %s536_s20 = sshll.u32 %s819_s9, 3  ;;  %v416_v2 = vld [vmem:[%s815_s5 + $0x58] sm:$0xff]  ;;  %v355_v4 = vpack.c.bf16 %v345_v57, %v344_v56  ;;  %v346_v5 = vld [vmem:[%s813_s3 + $0x70] sm:$0xff]  ;;  %s537_s15 = sshll.u32 %s821_s25, 3  ;;  %v541_v32 = vld [vmem:[%s816_s6] ss:$0 sm:$0xff] }
   0xf   : > { %s273_s10 = scalar_lea.vmem %s810_s0, %s536_s20  ;;  %585 = vmatpush3.bf16.msra.mxu1 %v423_v25  ;;  %v347_v6 = vld [vmem:[%s813_s3 + $0x78] sm:$0xff]  ;;  %v427_v10 = vpack.c.bf16 %v416_v2, %v415_v1  ;;  %v540_v25 = vld [vmem:[%s814_s4] ss:$0 sm:$0xff]  ;;  %s278_s20 = scalar_lea.vmem %s817_s7, %s537_s15 }
  0x10   : > { %v280_v19 = vld [vmem:[%s273_s10] sm:$0xff]  ;;  %v281_v20 = vld [vmem:[%s273_s10 + $0x8] sm:$0xff]  ;;  %v282_v21 = vld [vmem:[%s273_s10 + $0x10] sm:$0xff]  ;;  %567 = vmatpush3.bf16.msra.mxu0 %v351_v14  ;;  %586 = vmatprep.subr.bf16.mxu1 %v620_v3  ;;  %v356_v14 = vpack.c.bf16 %v347_v6, %v346_v5 }
  0x11   : > { %v290_v22 = vmul.f32 %v538_v9, %v280_v19  ;;  %v291_v23 = vmul.f32 %v538_v9, %v281_v20  ;;  %v292_v24 = vmul.f32 %v538_v9, %v282_v21  ;;  %568 = vmatprep.subr.bf16.mxu0 %v620_v3  ;;  %v417_v19 = vld [vmem:[%s815_s5 + $0x60] sm:$0xff]  ;;  %v418_v20 = vld [vmem:[%s815_s5 + $0x68] sm:$0xff] }
  0x12   : > { %v428_v21 = vpack.c.bf16 %v418_v20, %v417_v19 }
  0x13   : > { %v300_v29 = vadd.f32 %v539_v16, %v290_v22  ;;  %v301_v30 = vadd.f32 %v539_v16, %v291_v23  ;;  %v302_v31 = vadd.f32 %v539_v16, %v292_v24  ;;  %587 = vmatpush3.bf16.msra.mxu1 %v424_v37  ;;  %v419_v22 = vld [vmem:[%s815_s5 + $0x70] sm:$0xff]  ;;  %v420_v23 = vld [vmem:[%s815_s5 + $0x78] sm:$0xff] }
  0x14   : > { %569 = vmatpush3.bf16.msra.mxu0 %v352_v28  ;;  %588 = vmatprep.subr.bf16.mxu1 %v620_v3  ;;  %v429_v24 = vpack.c.bf16 %v420_v23, %v419_v22 }
  0x15   : > { %v304_v34 = vsel %vm303_vm1, %v300_v29, 0.0  ;;  %v311_v35 = vsel %vm303_vm1, %v301_v30, 0.0  ;;  %v318_v36 = vsel %vm303_vm1, %v302_v31, 0.0  ;;  %570 = vmatprep.subr.bf16.mxu0 %v620_v3 }
  0x16   : > { %v305_v38 = vrot.slane %v304_v34, 4  ;;  %v312_v39 = vrot.slane %v311_v35, 4  ;;  %v319_v40 = vrot.slane %v318_v36, 4 }
  0x17   : > { %589 = vmatpush3.bf16.msra.mxu1 %v425_v49 }
  0x18   : > { %v306_v46 = vadd.f32 %v305_v38, %v304_v34  ;;  %v313_v47 = vadd.f32 %v312_v39, %v311_v35  ;;  %v320_v48 = vadd.f32 %v319_v40, %v318_v36  ;;  %571 = vmatpush3.bf16.msra.mxu0 %v353_v43  ;;  %590 = vmatprep.subr.bf16.mxu1 %v620_v3 }
  0x19   : > { %572 = vmatprep.subr.bf16.mxu0 %v620_v3 }
  0x1a   : > { %v307_v50 = vrot.slane %v306_v46, 2  ;;  %v314_v51 = vrot.slane %v313_v47, 2  ;;  %v321_v52 = vrot.slane %v320_v48, 2 }
  0x1b   : > { %591 = vmatpush3.bf16.msra.mxu1 %v426_v61 }
  0x1c   : > { %v308_v58 = vadd.f32 %v307_v50, %v306_v46  ;;  %v315_v59 = vadd.f32 %v314_v51, %v313_v47  ;;  %v322_v60 = vadd.f32 %v321_v52, %v320_v48  ;;  %573 = vmatpush3.bf16.msra.mxu0 %v354_v55  ;;  %592 = vmatprep.subr.bf16.mxu1 %v620_v3 }
  0x1d   : > { %574 = vmatprep.subr.bf16.mxu0 %v620_v3 }
  0x1e   : > { %v309_v62 = vrot.slane %v308_v58, 1  ;;  %v316_v63 = vrot.slane %v315_v59, 1  ;;  %v323_v0 = vrot.slane %v322_v60, 1 }
  0x1f   : > { %593 = vmatpush3.bf16.msra.mxu1 %v427_v10 }
  0x20   : > { %v310_v7 = vadd.f32 %v309_v62, %v308_v58  ;;  %v317_v8 = vadd.f32 %v316_v63, %v315_v59  ;;  %v324_v9 = vadd.f32 %v323_v0, %v322_v60  ;;  %575 = vmatpush3.bf16.msra.mxu0 %v355_v4  ;;  %594 = vmatprep.subr.bf16.mxu1 %v620_v3 }
  0x21   : > { %576 = vmatprep.subr.bf16.mxu0 %v620_v3 }
  0x22   : > { %v326_v11 = vsel %vm325_vm2, %v310_v7, 0.0  ;;  %v327_v12 = vsel %vm325_vm2, %v317_v8, 0.0  ;;  %v328_v13 = vsel %vm325_vm2, %v324_v9, 0.0 }
  0x23   : > { %v329_v15 = vadd.f32 %v327_v12, %v326_v11  ;;  %595 = vmatpush3.bf16.msra.mxu1 %v428_v21 }
  0x24   : > { %577 = vmatpush3.bf16.msra.mxu0 %v356_v14  ;;  %596 = vmatprep.subr.bf16.mxu1 %v620_v3 }
  0x25   : > { %v330_v16 = vadd.f32 %v329_v15, %v328_v13 }
  0x27   : > { %v331_v17 = vmul.f32 0.11111111, %v330_v16  ;;  %597 = vmatpush3.bf16.msra.mxu1 %v429_v24 }
  0x29   : > { %v348_v18 = vpack.c.bf16 %v331_v17, %v331_v17 }
  0x2b   : > { %579 = vmatmul.mubr.bf16.vlgmr.msra.gmra.mrb[0].mxu0 %v348_v18 }
  0xfe   : > { %v398_v26 = vpop.f32.mrb[0].mxu0 }
  0xff   : > { %v399_v27 = vadd.f32 %v540_v25, %v398_v26  ;;  %v580_v28 = vpop.f32.mrb[1].mxu0 }
 0x100   : > { %v401_v29 = vpop.f32.mrb[2].mxu0 }
 0x101   : > { %v404_v30 = vmax.f32 %v399_v27, 0.0  ;;  %v581_v3 = vpop.f32.mrb[3].mxu0 }
 0x103   : > { %v421_v31 = vpack.c.bf16 %v404_v30, %v404_v30 }
 0x105   : > { %599 = vmatmul.mubr.bf16.vlgmr.msra.gmra.mrb[0].mxu1 %v421_v31 }
 0x1d8   : > { %v471_v33 = vpop.f32.mrb[0].mxu1 }
 0x1d9   : > { %v472_v34 = vadd.f32 %v541_v32, %v471_v33  ;;  %v600_v35 = vpop.f32.mrb[1].mxu1 }
 0x1da   : > { %v474_v36 = vpop.f32.mrb[2].mxu1 }
 0x1db   : > { %477 = vst [vmem:[%s278_s20] sm:$0xff] %v472_v34  ;;  %v601_v37 = vpop.f32.mrb[3].mxu1 }
 0x1dc PF: > { %s17_s24 = sadd.s32 1, %s618_s24  }
 0x1dd   : > { %p14_p5 = scmp.ge.s32.totalorder %s17_s24, 4  }
 0x1df   :  { %16 = sbr.rel (!%p14_p5) target bundleno = 1 (0x1), region = 78 }

// kernel: densenet_forward.8
= control target key start
LH: loop header
LB: loop body
LE: loop exit
PB: predicated region body
PF: predicated region fallthrough
CT: control target
= control target key end

     0   :  { %s3115_s24 = smov 0   ;;  %s4362_s0 = inlined_call_operand.vmem [shape: f32[48,128], index: 0, kind: input, shape index: {}]   ;;  %s4363_s1 = inlined_call_operand.vmem [shape: f32[2,1,128], index: 1, kind: input, shape index: {}]   ;;  %s4364_s2 = inlined_call_operand.vmem [shape: f32[2,1,128], index: 2, kind: input, shape index: {}]   ;;  %s4365_s3 = inlined_call_operand.vmem [shape: f32[2,128,128], index: 3, kind: input, shape index: {}]   ;;  %s4366_s4 = inlined_call_operand.vmem [shape: f32[2,1,128], index: 4, kind: input, shape index: {}]   ;;  %s4367_s5 = inlined_call_operand.vmem [shape: f32[2,1,128], index: 5, kind: input, shape index: {}]   ;;  %s4368_s6 = inlined_call_operand.vmem [shape: f32[18,128,128], index: 6, kind: input, shape index: {}]   ;;  %s4369_s7 = inlined_call_operand.vmem [shape: f32[48,128], index: 7, kind: output, shape index: {}]  }
   0x1 LB: > { %s2046_s25 = sadd.s32 4294967295, %s3071_s24   ;;  %p2050_p0 = scmp.ge.s32.totalorder %s3071_s24, 1  ;;  %s3071_s24 = sphi %s3115_s24, %s17_s24  }
   0x2   : > { %p238_p1 = scmp.lt.s32.totalorder %s3071_s24, 3 }
   0x4   : > { %p239_p2 = pnand %p2050_p0, %p238_p1 }
   0x5   : > { %v314_v0 = vld [vmem:[%s4365_s3] sm:$0xff] (!%p239_p2)  ;;  %v315_v1 = vld [vmem:[%s4365_s3 + $0x8] sm:$0xff] (!%p239_p2)  ;;  %v316_v2 = vld [vmem:[%s4365_s3 + $0x10] sm:$0xff] (!%p239_p2)  ;;  %s270_s9 = smul.u32 (!%p239_p2), 3, %s2046_s25  ;;  %vm423_vm1 = vcmask (!%p239_p2), 1040384   ;;  %vm582_vm3 = vcmask (!%p239_p2), 1046528  }
   0x6   : > { %242 = sbr.rel (%p239_p2) target bundleno = 1194 (0x4aa), region = 48  ;;  %v332_v3 = vpack.c.bf16 (!%p239_p2), %v315_v1, %v314_v0  ;;  %v317_v4 = vld [vmem:[%s4365_s3 + $0x18] sm:$0xff] (!%p239_p2)  ;;  %v318_v6 = vld [vmem:[%s4365_s3 + $0x20] sm:$0xff] (!%p239_p2)  ;;  %v319_v7 = vld [vmem:[%s4365_s3 + $0x28] sm:$0xff] (!%p239_p2) }
   0x7   : > { %v333_v5 = vpack.c.bf16 (!%p239_p2), %v317_v4, %v316_v2  ;;  %p271_p3 = scmp.lt.s32.totalorder (!%p239_p2), %s270_s9, 5  ;;  %v334_v8 = vpack.c.bf16 (!%p239_p2), %v319_v7, %v318_v6  ;;  %v320_v9 = vld [vmem:[%s4365_s3 + $0x30] sm:$0xff] (!%p239_p2)  ;;  %v321_v10 = vld [vmem:[%s4365_s3 + $0x38] sm:$0xff] (!%p239_p2)  ;;  %v2054_v11 = vld [vmem:[%s4363_s1] ss:$0 sm:$0xff] (!%p239_p2) }
   0x8   : > { %2652 = vmatprep.subr.bf16.mxu0 (!%p239_p2), %v332_v3  ;;  %v2058_v12 = vld [vmem:[%s4368_s6 + $0x80] sm:$0xff] (!%p239_p2)  ;;  %v2059_v13 = vld [vmem:[%s4368_s6 + $0x88] sm:$0xff] (!%p239_p2)  ;;  %v2060_v15 = vld [vmem:[%s4368_s6 + $0x90] sm:$0xff] (!%p239_p2)  ;;  %v335_v21 = vpack.c.bf16 (!%p239_p2), %v321_v10, %v320_v9 }
   0x9   : > { %2653 = vmatpush3.bf16.msra.mxu0 (!%p239_p2), %v332_v3  ;;  %v472_v14 = vpack.c.bf16 (!%p239_p2), %v2059_v13, %v2058_v12  ;;  %v2061_v16 = vld [vmem:[%s4368_s6 + $0x98] sm:$0xff] (!%p239_p2)  ;;  %v2055_v19 = vld [vmem:[%s4364_s2] ss:$0 sm:$0xff] (!%p239_p2)  ;;  %v323_v26 = vld [vmem:[%s4365_s3 + $0x48] sm:$0xff] (!%p239_p2) }
   0xa   : > { %2654 = vmatprep.subr.bf16.mxu0 (!%p239_p2), %v333_v5  ;;  %v473_v20 = vpack.c.bf16 (!%p239_p2), %v2061_v16, %v2060_v15  ;;  %v2062_v24 = vld [vmem:[%s4368_s6 + $0xa0] sm:$0xff] (!%p239_p2)  ;;  %v2063_v27 = vld [vmem:[%s4368_s6 + $0xa8] sm:$0xff] (!%p239_p2)  ;;  %v2064_v31 = vld [vmem:[%s4368_s6 + $0xb0] sm:$0xff] (!%p239_p2) }
   0xb   : > { %2672 = vmatprep.subr.bf16.mxu1 (!%p239_p2), %v472_v14  ;;  %v322_v25 = vld [vmem:[%s4365_s3 + $0x40] sm:$0xff] (!%p239_p2)  ;;  %v474_v30 = vpack.c.bf16 (!%p239_p2), %v2063_v27, %v2062_v24  ;;  %v2065_v32 = vld [vmem:[%s4368_s6 + $0xb8] sm:$0xff] (!%p239_p2)  ;;  %v324_v36 = vld [vmem:[%s4365_s3 + $0x50] sm:$0xff] (!%p239_p2) }
   0xc   : > { %2673 = vmatpush3.bf16.msra.mxu1 (!%p239_p2), %v472_v14  ;;  %v336_v33 = vpack.c.bf16 (!%p239_p2), %v323_v26, %v322_v25  ;;  %v325_v37 = vld [vmem:[%s4365_s3 + $0x58] sm:$0xff] (!%p239_p2)  ;;  %v475_v39 = vpack.c.bf16 (!%p239_p2), %v2065_v32, %v2064_v31  ;;  %v2066_v41 = vld [vmem:[%s4368_s6 + $0xc0] sm:$0xff] (!%p239_p2)  ;;  %v2067_v42 = vld [vmem:[%s4368_s6 + $0xc8] sm:$0xff] (!%p239_p2) }
   0xd   : > { %s4375_s9 = smov (!%p271_p3, %s270_s9), 5  ;;  %2655 = vmatpush3.bf16.msra.mxu0 %v333_v5  ;;  %2674 = vmatprep.subr.bf16.mxu1 %v473_v20  ;;  %v337_v43 = vpack.c.bf16 %v325_v37, %v324_v36  ;;  %v326_v44 = vld [vmem:[%s4365_s3 + $0x60] sm:$0xff]  ;;  %v327_v45 = vld [vmem:[%s4365_s3 + $0x68] sm:$0xff]  ;;  %v476_v47 = vpack.c.bf16 %v2067_v42, %v2066_v41  ;;  %v328_v49 = vld [vmem:[%s4365_s3 + $0x70] sm:$0xff]  ;;  %v3073_v41 = vmov 0.0  }
   0xe   : > { %s2051_s20 = sshll.u32 %s4375_s9, 3  ;;  %2656 = vmatprep.subr.bf16.mxu0 %v334_v8  ;;  %v338_v48 = vpack.c.bf16 %v327_v45, %v326_v44  ;;  %v329_v50 = vld [vmem:[%s4365_s3 + $0x78] sm:$0xff]  ;;  %v427_v53 = vld [vmem:[%s4368_s6] sm:$0xff]  ;;  %v428_v54 = vld [vmem:[%s4368_s6 + $0x8] sm:$0xff] }
   0xf   : > { %s3164_s30 = scalar_lea.vmem %s4362_s0, %s2051_s20  ;;  %v339_v52 = vpack.c.bf16 %v329_v50, %v328_v49  ;;  %v445_v56 = vpack.c.bf16 %v428_v54, %v427_v53  ;;  %v429_v57 = vld [vmem:[%s4368_s6 + $0x10] sm:$0xff]  ;;  %v430_v58 = vld [vmem:[%s4368_s6 + $0x18] sm:$0xff]  ;;  %v431_v61 = vld [vmem:[%s4368_s6 + $0x20] sm:$0xff]  ;;  %v3326_v53 = vrot.slane %v3073_v41, 1  ;;  %s280_s25 = scalar_lea.vmem %s4369_s7, %s2051_s20 }
  0x10   : > { %v283_v17 = vld [vmem:[%s3164_s30] sm:$0xff]  ;;  %v284_v18 = vld [vmem:[%s3164_s30 + $0x8] sm:$0xff]  ;;  %2675 = vmatpush3.bf16.msra.mxu1 %v473_v20  ;;  %v285_v40 = vld [vmem:[%s3164_s30 + $0x10] sm:$0xff]  ;;  %v446_v60 = vpack.c.bf16 %v430_v58, %v429_v57 }
  0x11   : > { %v298_v22 = vmul.f32 %v2054_v11, %v283_v17  ;;  %v299_v23 = vmul.f32 %v2054_v11, %v284_v18  ;;  %2657 = vmatpush3.bf16.msra.mxu0 %v334_v8  ;;  %2676 = vmatprep.subr.bf16.mxu1 %v474_v30  ;;  %v300_v46 = vmul.f32 %v2054_v11, %v285_v40  ;;  %v432_v62 = vld [vmem:[%s4368_s6 + $0x28] sm:$0xff]  ;;  %v433_v0 = vld [vmem:[%s4368_s6 + $0x30] sm:$0xff]  ;;  %v434_v1 = vld [vmem:[%s4368_s6 + $0x38] sm:$0xff] }
  0x12   : > { %2658 = vmatprep.subr.bf16.mxu0 %v335_v21  ;;  %v447_v63 = vpack.c.bf16 %v432_v62, %v431_v61  ;;  %v448_v2 = vpack.c.bf16 %v434_v1, %v433_v0  ;;  %v435_v3 = vld [vmem:[%s4368_s6 + $0x40] sm:$0xff]  ;;  %v436_v4 = vld [vmem:[%s4368_s6 + $0x48] sm:$0xff]  ;;  %v2068_v6 = vld [vmem:[%s4368_s6 + $0xd0] sm:$0xff] }
  0x13   : > { %v308_v28 = vadd.f32 %v2055_v19, %v298_v22  ;;  %v309_v29 = vadd.f32 %v2055_v19, %v299_v23  ;;  %v310_v51 = vadd.f32 %v2055_v19, %v300_v46  ;;  %v449_v5 = vpack.c.bf16 %v436_v4, %v435_v3  ;;  %v2069_v7 = vld [vmem:[%s4368_s6 + $0xd8] sm:$0xff]  ;;  %v437_v9 = vld [vmem:[%s4368_s6 + $0x50] sm:$0xff]  ;;  %v2070_v12 = vld [vmem:[%s4368_s6 + $0xe0] sm:$0xff] }
  0x14   : > { %2677 = vmatpush3.bf16.msra.mxu1 %v474_v30  ;;  %v477_v8 = vpack.c.bf16 %v2069_v7, %v2068_v6  ;;  %v438_v10 = vld [vmem:[%s4368_s6 + $0x58] sm:$0xff]  ;;  %v2071_v13 = vld [vmem:[%s4368_s6 + $0xe8] sm:$0xff]  ;;  %v439_v15 = vld [vmem:[%s4368_s6 + $0x60] sm:$0xff]  ;;  %v286_v30 = vlaneseq }
  0x15   : > { %v311_v34 = vmax.f32 %v308_v28, 0.0  ;;  %v312_v35 = vmax.f32 %v309_v29, 0.0  ;;  %2659 = vmatpush3.bf16.msra.mxu0 %v335_v21  ;;  %2678 = vmatprep.subr.bf16.mxu1 %v475_v39  ;;  %v313_v55 = vmax.f32 %v310_v51, 0.0  ;;  %v450_v11 = vpack.c.bf16 %v438_v10, %v437_v9  ;;  %v440_v16 = vld [vmem:[%s4368_s6 + $0x68] sm:$0xff]  ;;  %v2072_v18 = vld [vmem:[%s4368_s6 + $0xf0] sm:$0xff]  ;;  %v2073_v19 = vld [vmem:[%s4368_s6 + $0xf8] sm:$0xff] }
  0x16   : > { %2660 = vmatprep.subr.bf16.mxu0 %v336_v33  ;;  %v478_v14 = vpack.c.bf16 %v2071_v13, %v2070_v12  ;;  %v451_v17 = vpack.c.bf16 %v440_v16, %v439_v15  ;;  %v479_v20 = vpack.c.bf16 %v2073_v19, %v2072_v18  ;;  %v441_v21 = vld [vmem:[%s4368_s6 + $0x70] sm:$0xff]  ;;  %v442_v22 = vld [vmem:[%s4368_s6 + $0x78] sm:$0xff]  ;;  %v2084_v24 = vld [vmem:[%s4368_s6 + $0x100] sm:$0xff]  ;;  %v287_v31 = vshrl.u32 %v286_v30, 7 }
  0x17   : > { %v330_v38 = vpack.c.bf16 %v312_v35, %v311_v34  ;;  %v331_v59 = vpack.c.bf16 %v313_v55, %v313_v55  ;;  %v452_v23 = vpack.c.bf16 %v442_v22, %v441_v21  ;;  %v2085_v25 = vld [vmem:[%s4368_s6 + $0x108] sm:$0xff]  ;;  %v2106_v27 = vld [vmem:[%s4368_s6 + $0x180] sm:$0xff]  ;;  %vm2074_vm2 = vmneg %vm423_vm1 }
  0x18   : > { %2679 = vmatpush3.bf16.msra.mxu1 %v475_v39  ;;  %v3292_v26 = vpack.c.bf16 %v2085_v25, %v2084_v24  ;;  %v2107_v28 = vld [vmem:[%s4368_s6 + $0x188] sm:$0xff]  ;;  %v2056_v32 = vld [vmem:[%s4366_s4] ss:$0 sm:$0xff]  ;;  %vm288_vm0 = vcmp.lt.s32.totalorder %v287_v31, 3  ;;  %v2086_v49 = vld [vmem:[%s4368_s6 + $0x110] sm:$0xff] }
  0x19   : > { %2668 = vmatprep.mubr.bf16.mxu0 %v330_v38  ;;  %2661 = vmatpush3.bf16.msra.mxu0 %v336_v33  ;;  %v3301_v29 = vpack.c.bf16 %v2107_v28, %v2106_v27  ;;  %v2057_v34 = vld [vmem:[%s4367_s5] ss:$0 sm:$0xff]  ;;  %v3311_v42 = vsel %vm288_vm0, 1.0, %v3073_v41  ;;  %v2087_v54 = vld [vmem:[%s4368_s6 + $0x118] sm:$0xff]  ;;  %v2108_v55 = vld [vmem:[%s4368_s6 + $0x190] sm:$0xff] }
  0x1a   : > { %2662 = vmatprep.subr.bf16.mxu0 %v337_v43  ;;  %2680 = vmatprep.subr.bf16.mxu1 %v476_v47  ;;  %vm3347_vm4 = vmpackc.low %vm2074_vm2, %vm2074_vm2  ;;  %v2088_v7 = vld [vmem:[%s4368_s6 + $0x120] sm:$0xff]  ;;  %v2111_v16 = vld [vmem:[%s4368_s6 + $0x1a8] sm:$0xff] }
  0x1b   : > { %vm3354_vm5 = vmpackc.low %vm582_vm3, %vm582_vm3  ;;  %v2110_v15 = vld [vmem:[%s4368_s6 + $0x1a0] sm:$0xff]  ;;  %v2091_v21 = vld [vmem:[%s4368_s6 + $0x138] sm:$0xff] }
  0x1c   : > { %2681 = vmatpush3.bf16.msra.mxu1 %v476_v47  ;;  %v689_v22 = vpack.c.bf16 %v2111_v16, %v2110_v15  ;;  %v2113_v24 = vld [vmem:[%s4368_s6 + $0x1b8] sm:$0xff]  ;;  %v2093_v27 = vld [vmem:[%s4368_s6 + $0x148] sm:$0xff]  ;;  %v2136_v15 = vld [vmem:[%s4368_s6 + $0x220] sm:$0xff] }
  0x1d   : > { %2663 = vmatpush3.bf16.msra.mxu0 %v337_v43  ;;  %2682 = vmatprep.subr.bf16.mxu1 %v477_v8  ;;  %v2115_v30 = vld [vmem:[%s4368_s6 + $0x1c8] sm:$0xff]  ;;  %v2435_v62 = vld [vmem:[%s4368_s6 + $0x8b8] sm:$0xff] }
  0x1e   : > { %2664 = vmatprep.subr.bf16.mxu0 %v338_v48  ;;  %v2137_v16 = vld [vmem:[%s4368_s6 + $0x228] sm:$0xff] }
  0x20   : > { %2683 = vmatpush3.bf16.msra.mxu1 %v477_v8  ;;  %v2089_v8 = vld [vmem:[%s4368_s6 + $0x128] sm:$0xff] }
  0x21   : > { %2665 = vmatpush3.bf16.msra.mxu0 %v338_v48  ;;  %2684 = vmatprep.subr.bf16.mxu1 %v478_v14  ;;  %v607_v19 = vpack.c.bf16 %v2089_v8, %v2088_v7  ;;  %v2150_v7 = vld [vmem:[%s4368_s6 + $0x290] sm:$0xff]  ;;  %v2151_v8 = vld [vmem:[%s4368_s6 + $0x298] sm:$0xff] }
  0x22   : > { %2666 = vmatprep.subr.bf16.mxu0 %v339_v52 }
  0x24   : > { %2685 = vmatpush3.bf16.msra.mxu1 %v478_v14 }
  0x25   : > { %2667 = vmatpush3.bf16.msra.mxu0 %v339_v52  ;;  %2686 = vmatprep.subr.bf16.mxu1 %v479_v20  ;;  %v3323_v52 = vrot.slane %v3073_v41, 7 }
  0x26   : > { %2692 = vmatprep.subr.bf16.mxu0 %v445_v56 }
  0x28   : > { %2669 = vmatmul.mubr.bf16.vlgmr.msra.gmra.mrb[0].mxu0 %v331_v59  ;;  %2687 = vmatpush3.bf16.msra.mxu1 %v479_v20  ;;  %v2090_v20 = vld [vmem:[%s4368_s6 + $0x130] sm:$0xff] }
  0x29   : > { %2693 = vmatpush3.bf16.msra.mxu0 %v445_v56  ;;  %2712 = vmatprep.subr.bf16.mxu1 %v3292_v26  ;;  %v2109_v56 = vld [vmem:[%s4368_s6 + $0x198] sm:$0xff]  ;;  %v608_v25 = vpack.c.bf16 %v2091_v21, %v2090_v20  ;;  %v847_v20 = vpack.c.bf16 %v2151_v8, %v2150_v7  ;;  %v2152_v21 = vld [vmem:[%s4368_s6 + $0x2a0] sm:$0xff]  ;;  %v2198_v8 = vld [vmem:[%s4368_s6 + $0x390] sm:$0xff] }
  0x2a   : > { %2694 = vmatprep.subr.bf16.mxu0 %v446_v60  ;;  %v688_v0 = vpack.c.bf16 %v2109_v56, %v2108_v55  ;;  %v2132_v56 = vld [vmem:[%s4368_s6 + $0x200] sm:$0xff] }
  0x2d   : > { %2695 = vmatpush3.bf16.msra.mxu0 %v446_v60 }
  0x2e   : > { %2696 = vmatprep.subr.bf16.mxu0 %v447_v63 }
  0x31   : > { %2697 = vmatpush3.bf16.msra.mxu0 %v447_v63  ;;  %v606_v63 = vpack.c.bf16 %v2087_v54, %v2086_v49  ;;  %v2121_v54 = vld [vmem:[%s4368_s6 + $0x1f8] sm:$0xff] }
  0x32   : > { %2698 = vmatprep.subr.bf16.mxu0 %v448_v2 }
  0x35   : > { %2699 = vmatpush3.bf16.msra.mxu0 %v448_v2 }
  0x36   : > { %2700 = vmatprep.subr.bf16.mxu0 %v449_v5 }
  0x39   : > { %2701 = vmatpush3.bf16.msra.mxu0 %v449_v5 }
  0x3a   : > { %2702 = vmatprep.subr.bf16.mxu0 %v450_v11 }
  0x3d   : > { %2703 = vmatpush3.bf16.msra.mxu0 %v450_v11 }
  0x3e   : > { %2704 = vmatprep.subr.bf16.mxu0 %v451_v17 }
  0x41   : > { %2705 = vmatpush3.bf16.msra.mxu0 %v451_v17 }
  0x42   : > { %2706 = vmatprep.subr.bf16.mxu0 %v452_v23 }
  0x45   : > { %2707 = vmatpush3.bf16.msra.mxu0 %v452_v23  ;;  %v2112_v23 = vld [vmem:[%s4368_s6 + $0x1b0] sm:$0xff] }
  0x46   : > { %2732 = vmatprep.subr.bf16.mxu0 %v3301_v29  ;;  %v690_v28 = vpack.c.bf16 %v2113_v24, %v2112_v23  ;;  %v767_v23 = vpack.c.bf16 %v2137_v16, %v2136_v15  ;;  %v2174_v16 = vld [vmem:[%s4368_s6 + $0x320] sm:$0xff] }
  0xfb   : > { %v2670_v33 = vpop.f32.mrb[0].mxu0 }
  0xfc   : > { %v397_v35 = vmul.f32 %v2670_v33, %v2056_v32  ;;  %v374_v36 = vpop.f32.mrb[1].mxu0  ;;  %v2095_v33 = vld [vmem:[%s4368_s6 + $0x158] sm:$0xff] }
  0xfd   : > { %v395_v37 = vmul.f32 %v2056_v32, %v374_v36  ;;  %v2671_v38 = vpop.f32.mrb[2].mxu0  ;;  %v2117_v36 = vld [vmem:[%s4368_s6 + $0x1d8] sm:$0xff] }
  0xfe   : > { %v407_v39 = vadd.f32 %v2057_v34, %v397_v35  ;;  %v377_v40 = vpop.f32.mrb[3].mxu0  ;;  %v2116_v35 = vld [vmem:[%s4368_s6 + $0x1d0] sm:$0xff]  ;;  %v2096_v38 = vld [vmem:[%s4368_s6 + $0x160] sm:$0xff] }
  0xff   : > { %v405_v43 = vadd.f32 %v2057_v34, %v395_v37  ;;  %v396_v44 = vmul.f32 %v2056_v32, %v377_v40  ;;  %v2094_v32 = vld [vmem:[%s4368_s6 + $0x150] sm:$0xff]  ;;  %v692_v40 = vpack.c.bf16 %v2117_v36, %v2116_v35 }
 0x100   : > { %v410_v45 = vmax.f32 %v407_v39, 0.0  ;;  %v610_v37 = vpack.c.bf16 %v2095_v33, %v2094_v32  ;;  %v2097_v39 = vld [vmem:[%s4368_s6 + $0x168] sm:$0xff]  ;;  %v2142_v33 = vld [vmem:[%s4368_s6 + $0x250] sm:$0xff] }
 0x101   : > { %v408_v46 = vmax.f32 %v405_v43, 0.0  ;;  %v406_v47 = vadd.f32 %v2057_v34, %v396_v44  ;;  %v2118_v43 = vld [vmem:[%s4368_s6 + $0x1e0] sm:$0xff]  ;;  %v2119_v44 = vld [vmem:[%s4368_s6 + $0x1e8] sm:$0xff]  ;;  %v2158_v36 = vld [vmem:[%s4368_s6 + $0x2d0] sm:$0xff] }
 0x102   : > { %v3314_v48 = vmul.f32 %v3311_v42, %v410_v45  ;;  %v611_v45 = vpack.c.bf16 %v2097_v39, %v2096_v38  ;;  %v693_v49 = vpack.c.bf16 %v2119_v44, %v2118_v43  ;;  %v2144_v39 = vld [vmem:[%s4368_s6 + $0x260] sm:$0xff] }
 0x103   : > { %v3320_v50 = vmul.f32 %v3311_v42, %v408_v46  ;;  %v409_v51 = vmax.f32 %v406_v47, 0.0  ;;  %v2098_v46 = vld [vmem:[%s4368_s6 + $0x170] sm:$0xff]  ;;  %v2099_v47 = vld [vmem:[%s4368_s6 + $0x178] sm:$0xff]  ;;  %v2160_v44 = vld [vmem:[%s4368_s6 + $0x2e0] sm:$0xff] }
 0x104   : > { %v3345_v61 = vrot.slane %v3314_v48, 7  ;;  %v3363_v6 = vrot.slane %v3314_v48, 1  ;;  %v612_v55 = vpack.c.bf16 %v2099_v47, %v2098_v46  ;;  %v2146_v47 = vld [vmem:[%s4368_s6 + $0x270] sm:$0xff] }
 0x105   : > { %v3338_v57 = vmul.f32 %v3311_v42, %v409_v51  ;;  %v470_v58 = vpack.c.bf16 %v3320_v50, %v3073_v41  ;;  %v418_v59 = vrot.slane %v3320_v50, 7  ;;  %v577_v60 = vrot.slane %v3320_v50, 1  ;;  %v2120_v51 = vld [vmem:[%s4368_s6 + $0x1f0] sm:$0xff] }
 0x107   : > { %2688 = vmatprep.mubr.bf16.mxu1 %v470_v58  ;;  %v471_v1 = vpack.c.bf16 %v3338_v57, %v3338_v57  ;;  %v2077_v2 = vpack.c.bf16 %v418_v59, %v3323_v52  ;;  %v2101_v4 = vpack.c.bf16 %v577_v60, %v3326_v53  ;;  %v3360_v5 = vrot.slane %v3338_v57, 7  ;;  %v2133_v58 = vld [vmem:[%s4368_s6 + $0x208] sm:$0xff] }
 0x108   : > { %v3372_v9 = vrot.slane %v3338_v57, 1  ;;  %v763_v10 = vpack.c.bf16 %v3338_v57, %v3320_v50  ;;  %v1000_v11 = vpack.c.bf16 %v3314_v48, %v3338_v57  ;;  %v2138_v50 = vld [vmem:[%s4368_s6 + $0x230] sm:$0xff] }
 0x109   : > { %2689 = vmatmul.mubr.bf16.vlgmr.msra.gmra.mrb[0].mxu1 %v471_v1  ;;  %2708 = vmatprep.mubr.msk.bf16.mxu0 %vm3347_vm4, %v2077_v2  ;;  %v2082_v12 = vpack.c.bf16 %v3360_v5, %v3360_v5  ;;  %v2125_v13 = vpack.c.bf16 %v3360_v5, %v418_v59  ;;  %v2189_v14 = vpack.c.bf16 %v3345_v61, %v3360_v5  ;;  %v2134_v1 = vld [vmem:[%s4368_s6 + $0x210] sm:$0xff]  ;;  %v2135_v2 = vld [vmem:[%s4368_s6 + $0x218] sm:$0xff] }
 0x10a   : > { %2713 = vmatpush3.bf16.msra.mxu1 %v3292_v26  ;;  %2728 = vmatprep.mubr.msk.bf16.mxu1 %vm3354_vm5, %v2101_v4  ;;  %v3395_v17 = vpack.c.bf16 %v3372_v9, %v577_v60  ;;  %v2229_v18 = vpack.c.bf16 %v3363_v6, %v3372_v9  ;;  %v2092_v26 = vld [vmem:[%s4368_s6 + $0x140] sm:$0xff]  ;;  %v694_v59 = vpack.c.bf16 %v2121_v54, %v2120_v51  ;;  %v2162_v54 = vld [vmem:[%s4368_s6 + $0x2f0] sm:$0xff]  ;;  %v2177_v5 = vld [vmem:[%s4368_s6 + $0x338] sm:$0xff] }
 0x10b   : > { %2709 = vmatmul.mubr.msk.bf16.vlgmr.msra.gmra.mrb[4].mxu0 %vm3347_vm4, %v2082_v12  ;;  %2714 = vmatprep.subr.bf16.mxu1 %v606_v63  ;;  %v609_v31 = vpack.c.bf16 %v2093_v27, %v2092_v26  ;;  %v2148_v60 = vld [vmem:[%s4368_s6 + $0x280] sm:$0xff]  ;;  %v2104_v12 = vpack.c.bf16 %v3372_v9, %v3372_v9  ;;  %v2155_v26 = vld [vmem:[%s4368_s6 + $0x2b8] sm:$0xff]  ;;  %v2221_v9 = vld [vmem:[%s4368_s6 + $0x448] sm:$0xff] }
 0x10c   : > { %2733 = vmatpush3.bf16.msra.mxu0 %v3301_v29  ;;  %2748 = vmatprep.mubr.msk.bf16.mxu0 %vm3347_vm4, %v2125_v13  ;;  %v2114_v29 = vld [vmem:[%s4368_s6 + $0x1c0] sm:$0xff]  ;;  %v766_v13 = vpack.c.bf16 %v2135_v2, %v2134_v1  ;;  %v2172_v2 = vld [vmem:[%s4368_s6 + $0x310] sm:$0xff] }
 0x10d   : > { %2734 = vmatprep.subr.bf16.mxu0 %v688_v0  ;;  %v691_v34 = vpack.c.bf16 %v2115_v30, %v2114_v29  ;;  %v2140_v27 = vld [vmem:[%s4368_s6 + $0x240] sm:$0xff] }
 0x10e   : > { %2715 = vmatpush3.bf16.msra.mxu1 %v606_v63  ;;  %v2149_v63 = vld [vmem:[%s4368_s6 + $0x288] sm:$0xff]  ;;  %v2156_v30 = vld [vmem:[%s4368_s6 + $0x2c0] sm:$0xff] }
 0x10f   : > { %2716 = vmatprep.subr.bf16.mxu1 %v607_v19  ;;  %v846_v4 = vpack.c.bf16 %v2149_v63, %v2148_v60  ;;  %v2196_v63 = vld [vmem:[%s4368_s6 + $0x380] sm:$0xff] }
 0x110   : > { %2735 = vmatpush3.bf16.msra.mxu0 %v688_v0  ;;  %v765_v0 = vpack.c.bf16 %v2133_v58, %v2132_v56  ;;  %v2170_v58 = vld [vmem:[%s4368_s6 + $0x300] sm:$0xff] }
 0x111   : > { %2736 = vmatprep.subr.bf16.mxu0 %v689_v22 }
 0x112   : > { %2717 = vmatpush3.bf16.msra.mxu1 %v607_v19  ;;  %v2130_v19 = vpack.c.bf16 %v3345_v61, %v3345_v61  ;;  %v2176_v61 = vld [vmem:[%s4368_s6 + $0x330] sm:$0xff] }
 0x113   : > { %2718 = vmatprep.subr.bf16.mxu1 %v608_v25  ;;  %v927_v57 = vpack.c.bf16 %v2177_v5, %v2176_v61  ;;  %v2238_v61 = vld [vmem:[%s4365_s3 + $0x80] sm:$0xff]  ;;  %v2239_v5 = vld [vmem:[%s4365_s3 + $0x88] sm:$0xff] }
 0x114   : > { %2737 = vmatpush3.bf16.msra.mxu0 %v689_v22  ;;  %v2153_v22 = vld [vmem:[%s4368_s6 + $0x2a8] sm:$0xff] }
 0x115   : > { %2738 = vmatprep.subr.bf16.mxu0 %v690_v28  ;;  %v848_v24 = vpack.c.bf16 %v2153_v22, %v2152_v21  ;;  %v2200_v22 = vld [vmem:[%s4368_s6 + $0x3a0] sm:$0xff] }
 0x116   : > { %2719 = vmatpush3.bf16.msra.mxu1 %v608_v25  ;;  %v2154_v25 = vld [vmem:[%s4368_s6 + $0x2b0] sm:$0xff] }
 0x117   : > { %2720 = vmatprep.subr.bf16.mxu1 %v609_v31  ;;  %v849_v29 = vpack.c.bf16 %v2155_v26, %v2154_v25  ;;  %v2204_v26 = vld [vmem:[%s4368_s6 + $0x3c0] sm:$0xff] }
 0x118   : > { %2739 = vmatpush3.bf16.msra.mxu0 %v690_v28  ;;  %v2141_v28 = vld [vmem:[%s4368_s6 + $0x248] sm:$0xff] }
 0x119   : > { %2740 = vmatprep.subr.bf16.mxu0 %v691_v34  ;;  %v769_v32 = vpack.c.bf16 %v2141_v28, %v2140_v27  ;;  %v2180_v28 = vld [vmem:[%s4368_s6 + $0x350] sm:$0xff] }
 0x11a   : > { %2721 = vmatpush3.bf16.msra.mxu1 %v609_v31  ;;  %v2157_v31 = vld [vmem:[%s4368_s6 + $0x2c8] sm:$0xff] }
 0x11b   : > { %2722 = vmatprep.subr.bf16.mxu1 %v610_v37  ;;  %v850_v35 = vpack.c.bf16 %v2157_v31, %v2156_v30  ;;  %v2206_v31 = vld [vmem:[%s4368_s6 + $0x3d0] sm:$0xff] }
 0x11c   : > { %2741 = vmatpush3.bf16.msra.mxu0 %v691_v34  ;;  %v2143_v34 = vld [vmem:[%s4368_s6 + $0x258] sm:$0xff] }
 0x11d   : > { %2742 = vmatprep.subr.bf16.mxu0 %v692_v40  ;;  %v770_v38 = vpack.c.bf16 %v2143_v34, %v2142_v33  ;;  %v2182_v34 = vld [vmem:[%s4368_s6 + $0x360] sm:$0xff] }
 0x11e   : > { %2723 = vmatpush3.bf16.msra.mxu1 %v610_v37  ;;  %v2159_v37 = vld [vmem:[%s4368_s6 + $0x2d8] sm:$0xff] }
 0x11f   : > { %2724 = vmatprep.subr.bf16.mxu1 %v611_v45  ;;  %v851_v43 = vpack.c.bf16 %v2159_v37, %v2158_v36  ;;  %v2208_v37 = vld [vmem:[%s4368_s6 + $0x3e0] sm:$0xff] }
 0x120   : > { %2743 = vmatpush3.bf16.msra.mxu0 %v692_v40  ;;  %v2145_v40 = vld [vmem:[%s4368_s6 + $0x268] sm:$0xff] }
 0x121   : > { %2744 = vmatprep.subr.bf16.mxu0 %v693_v49  ;;  %v771_v46 = vpack.c.bf16 %v2145_v40, %v2144_v39  ;;  %v2184_v40 = vld [vmem:[%s4368_s6 + $0x370] sm:$0xff] }
 0x122   : > { %2725 = vmatpush3.bf16.msra.mxu1 %v611_v45  ;;  %v2161_v45 = vld [vmem:[%s4368_s6 + $0x2e8] sm:$0xff] }
 0x123   : > { %2726 = vmatprep.subr.bf16.mxu1 %v612_v55  ;;  %v852_v51 = vpack.c.bf16 %v2161_v45, %v2160_v44  ;;  %v2210_v45 = vld [vmem:[%s4368_s6 + $0x3f0] sm:$0xff] }
 0x124   : > { %2745 = vmatpush3.bf16.msra.mxu0 %v693_v49  ;;  %v2147_v49 = vld [vmem:[%s4368_s6 + $0x278] sm:$0xff] }
 0x125   : > { %2746 = vmatprep.subr.bf16.mxu0 %v694_v59  ;;  %v772_v56 = vpack.c.bf16 %v2147_v49, %v2146_v47  ;;  %v2212_v49 = vld [vmem:[%s4368_s6 + $0x400] sm:$0xff] }
 0x126   : > { %2727 = vmatpush3.bf16.msra.mxu1 %v612_v55  ;;  %v2163_v55 = vld [vmem:[%s4368_s6 + $0x2f8] sm:$0xff] }
 0x127   : > { %2752 = vmatprep.subr.bf16.mxu1 %v765_v0  ;;  %v853_v60 = vpack.c.bf16 %v2163_v55, %v2162_v54 }
 0x128   : > { %2747 = vmatpush3.bf16.msra.mxu0 %v694_v59  ;;  %v2171_v59 = vld [vmem:[%s4368_s6 + $0x308] sm:$0xff] }
 0x129   : > { %2729 = vmatmul.mubr.msk.bf16.vlgmr.msra.gmra.mrb[4].mxu1 %vm3354_vm5, %v2104_v12  ;;  %2772 = vmatprep.subr.bf16.mxu0 %v846_v4  ;;  %v924_v1 = vpack.c.bf16 %v2171_v59, %v2170_v58  ;;  %v2199_v12 = vld [vmem:[%s4368_s6 + $0x398] sm:$0xff]  ;;  %v3698_v59 = vpack.c.bf16 %v3323_v52, %v3323_v52 }
 0x12a   : > { %2753 = vmatpush3.bf16.msra.mxu1 %v765_v0  ;;  %2768 = vmatprep.mubr.bf16.mxu1 %v763_v10  ;;  %v2139_v10 = vld [vmem:[%s4368_s6 + $0x238] sm:$0xff]  ;;  %v2197_v0 = vld [vmem:[%s4368_s6 + $0x388] sm:$0xff]  ;;  %v1003_v21 = vpack.c.bf16 %v2199_v12, %v2198_v8  ;;  %v2222_v12 = vld [vmem:[%s4368_s6 + $0x450] sm:$0xff] }
 0x12b   : > { %2749 = vmatmul.mubr.msk.bf16.vlgmr.msra.gmra.mrb[8].mxu0 %vm3347_vm4, %v2130_v19  ;;  %2754 = vmatprep.subr.bf16.mxu1 %v766_v13  ;;  %v1002_v7 = vpack.c.bf16 %v2197_v0, %v2196_v63  ;;  %v2175_v19 = vld [vmem:[%s4368_s6 + $0x328] sm:$0xff]  ;;  %v2215_v58 = vld [vmem:[%s4368_s6 + $0x418] sm:$0xff]  ;;  %v2216_v63 = vld [vmem:[%s4368_s6 + $0x420] sm:$0xff] }
 0x12c   : > { %2773 = vmatpush3.bf16.msra.mxu0 %v846_v4  ;;  %2788 = vmatprep.mubr.msk.bf16.mxu0 %vm3354_vm5, %v3395_v17  ;;  %v768_v17 = vpack.c.bf16 %v2139_v10, %v2138_v50  ;;  %v2173_v4 = vld [vmem:[%s4368_s6 + $0x318] sm:$0xff]  ;;  %v926_v50 = vpack.c.bf16 %v2175_v19, %v2174_v16  ;;  %v2202_v10 = vld [vmem:[%s4368_s6 + $0x3b0] sm:$0xff]  ;;  %v2217_v0 = vld [vmem:[%s4368_s6 + $0x428] sm:$0xff] }
 0x12d   : > { %2774 = vmatprep.subr.bf16.mxu0 %v847_v20  ;;  %v925_v15 = vpack.c.bf16 %v2173_v4, %v2172_v2  ;;  %v1082_v2 = vpack.c.bf16 %v2217_v0, %v2216_v63  ;;  %v2218_v4 = vld [vmem:[%s4368_s6 + $0x430] sm:$0xff]  ;;  %v2224_v16 = vld [vmem:[%s4368_s6 + $0x460] sm:$0xff]  ;;  %v2225_v19 = vld [vmem:[%s4368_s6 + $0x468] sm:$0xff] }
 0x12e   : > { %2755 = vmatpush3.bf16.msra.mxu1 %v766_v13  ;;  %v764_v13 = vpack.c.bf16 %v3314_v48, %v3314_v48  ;;  %v2203_v48 = vld [vmem:[%s4368_s6 + $0x3b8] sm:$0xff]  ;;  %v2258_v63 = vld [vmem:[%s4368_s6 + $0x480] sm:$0xff] }
 0x12f   : > { %2756 = vmatprep.subr.bf16.mxu1 %v767_v23  ;;  %v1005_v25 = vpack.c.bf16 %v2203_v48, %v2202_v10  ;;  %v1186_v10 = vpack.c.bf16 %v2239_v5, %v2238_v61  ;;  %v2241_v48 = vld [vmem:[%s4365_s3 + $0x98] sm:$0xff] }
 0x130   : > { %2775 = vmatpush3.bf16.msra.mxu0 %v847_v20  ;;  %v2168_v20 = vpack.c.bf16 %v3363_v6, %v3363_v6  ;;  %v2220_v6 = vld [vmem:[%s4368_s6 + $0x440] sm:$0xff] }
 0x131   : > { %2776 = vmatprep.subr.bf16.mxu0 %v848_v24 }
 0x132   : > { %2757 = vmatpush3.bf16.msra.mxu1 %v767_v23  ;;  %v2201_v23 = vld [vmem:[%s4368_s6 + $0x3a8] sm:$0xff] }
 0x133   : > { %2758 = vmatprep.subr.bf16.mxu1 %v768_v17 }
 0x134   : > { %2777 = vmatpush3.bf16.msra.mxu0 %v848_v24  ;;  %v2179_v24 = vld [vmem:[%s4368_s6 + $0x348] sm:$0xff] }
 0x135   : > { %2778 = vmatprep.subr.bf16.mxu0 %v849_v29 }
 0x136   : > { %2759 = vmatpush3.bf16.msra.mxu1 %v768_v17  ;;  %v2205_v17 = vld [vmem:[%s4368_s6 + $0x3c8] sm:$0xff] }
 0x137   : > { %2760 = vmatprep.subr.bf16.mxu1 %v769_v32  ;;  %v1006_v30 = vpack.c.bf16 %v2205_v17, %v2204_v26  ;;  %v2244_v26 = vld [vmem:[%s4365_s3 + $0xb0] sm:$0xff]  ;;  %v2245_v17 = vld [vmem:[%s4365_s3 + $0xb8] sm:$0xff] }
 0x138   : > { %2779 = vmatpush3.bf16.msra.mxu0 %v849_v29  ;;  %v2181_v29 = vld [vmem:[%s4368_s6 + $0x358] sm:$0xff] }
 0x139   : > { %2780 = vmatprep.subr.bf16.mxu0 %v850_v35  ;;  %v929_v33 = vpack.c.bf16 %v2181_v29, %v2180_v28  ;;  %v2246_v28 = vld [vmem:[%s4365_s3 + $0xc0] sm:$0xff]  ;;  %v2247_v29 = vld [vmem:[%s4365_s3 + $0xc8] sm:$0xff] }
 0x13a   : > { %2761 = vmatpush3.bf16.msra.mxu1 %v769_v32  ;;  %v2207_v32 = vld [vmem:[%s4368_s6 + $0x3d8] sm:$0xff] }
 0x13b   : > { %2762 = vmatprep.subr.bf16.mxu1 %v770_v38  ;;  %v1007_v36 = vpack.c.bf16 %v2207_v32, %v2206_v31 }
 0x13c   : > { %2781 = vmatpush3.bf16.msra.mxu0 %v850_v35  ;;  %v2183_v35 = vld [vmem:[%s4368_s6 + $0x368] sm:$0xff] }
 0x13d   : > { %2782 = vmatprep.subr.bf16.mxu0 %v851_v43  ;;  %v930_v39 = vpack.c.bf16 %v2183_v35, %v2182_v34  ;;  %v2248_v35 = vld [vmem:[%s4365_s3 + $0xd0] sm:$0xff] }
 0x13e   : > { %2763 = vmatpush3.bf16.msra.mxu1 %v770_v38  ;;  %v2209_v38 = vld [vmem:[%s4368_s6 + $0x3e8] sm:$0xff] }
 0x13f   : > { %2764 = vmatprep.subr.bf16.mxu1 %v771_v46  ;;  %v1008_v44 = vpack.c.bf16 %v2209_v38, %v2208_v37 }
 0x140   : > { %2783 = vmatpush3.bf16.msra.mxu0 %v851_v43  ;;  %v2185_v43 = vld [vmem:[%s4368_s6 + $0x378] sm:$0xff] }
 0x141   : > { %2784 = vmatprep.subr.bf16.mxu0 %v852_v51  ;;  %v931_v47 = vpack.c.bf16 %v2185_v43, %v2184_v40 }
 0x142   : > { %2765 = vmatpush3.bf16.msra.mxu1 %v771_v46  ;;  %v2211_v46 = vld [vmem:[%s4368_s6 + $0x3f8] sm:$0xff] }
 0x143   : > { %2766 = vmatprep.subr.bf16.mxu1 %v772_v56  ;;  %v1009_v54 = vpack.c.bf16 %v2211_v46, %v2210_v45 }
 0x144   : > { %2785 = vmatpush3.bf16.msra.mxu0 %v852_v51  ;;  %v2213_v51 = vld [vmem:[%s4368_s6 + $0x408] sm:$0xff] }
 0x145   : > { %2786 = vmatprep.subr.bf16.mxu0 %v853_v60  ;;  %v1080_v55 = vpack.c.bf16 %v2213_v51, %v2212_v49  ;;  %v2251_v49 = vld [vmem:[%s4365_s3 + $0xe8] sm:$0xff] }
 0x146   : > { %2767 = vmatpush3.bf16.msra.mxu1 %v772_v56  ;;  %v2214_v56 = vld [vmem:[%s4368_s6 + $0x410] sm:$0xff] }
 0x147   : > { %2792 = vmatprep.subr.bf16.mxu1 %v924_v1 }
 0x148   : > { %2787 = vmatpush3.bf16.msra.mxu0 %v853_v60  ;;  %v1081_v60 = vpack.c.bf16 %v2215_v58, %v2214_v56  ;;  %v2274_v58 = vld [vmem:[%s4368_s6 + $0x500] sm:$0xff] }
 0x149   : > { %2769 = vmatmul.mubr.bf16.vlgmr.msra.gmra.mrb[8].mxu1 %v764_v13  ;;  %2812 = vmatprep.subr.bf16.mxu0 %v1002_v7  ;;  %v2223_v13 = vld [vmem:[%s4368_s6 + $0x458] sm:$0xff] }
 0x14a   : > { %2793 = vmatpush3.bf16.msra.mxu1 %v924_v1  ;;  %2808 = vmatprep.mubr.msk.bf16.mxu1 %vm3347_vm4, %v2189_v14  ;;  %v1004_v14 = vpack.c.bf16 %v2201_v23, %v2200_v22  ;;  %v3074_v1 = vmov 0.0|0.0   ;;  %v2227_v22 = vld [vmem:[%s4368_s6 + $0x478] sm:$0xff] }
 0x14b   : > { %2789 = vmatmul.mubr.msk.bf16.vlgmr.msra.gmra.mrb[12].mxu0 %vm3354_vm5, %v2168_v20  ;;  %2794 = vmatprep.subr.bf16.mxu1 %v925_v15  ;;  %v1086_v20 = vpack.c.bf16 %v2225_v19, %v2224_v16  ;;  %v2282_v19 = vld [vmem:[%s4368_s6 + $0x540] sm:$0xff] }
 0x14c   : > { %2813 = vmatpush3.bf16.msra.mxu0 %v1002_v7  ;;  %2828 = vmatprep.mubr.bf16.mxu0 %v1000_v11  ;;  %v2178_v11 = vld [vmem:[%s4368_s6 + $0x340] sm:$0xff]  ;;  %v2219_v7 = vld [vmem:[%s4368_s6 + $0x438] sm:$0xff] }
 0x14d   : > { %2814 = vmatprep.subr.bf16.mxu0 %v1003_v21  ;;  %v928_v27 = vpack.c.bf16 %v2179_v24, %v2178_v11  ;;  %v1083_v8 = vpack.c.bf16 %v2219_v7, %v2218_v4  ;;  %v2242_v11 = vld [vmem:[%s4365_s3 + $0xa0] sm:$0xff]  ;;  %v2243_v24 = vld [vmem:[%s4365_s3 + $0xa8] sm:$0xff]  ;;  %v2276_v4 = vld [vmem:[%s4368_s6 + $0x510] sm:$0xff] }
 0x14e   : > { %2795 = vmatpush3.bf16.msra.mxu1 %v925_v15  ;;  %v1085_v15 = vpack.c.bf16 %v2223_v13, %v2222_v12  ;;  %v2277_v7 = vld [vmem:[%s4368_s6 + $0x518] sm:$0xff]  ;;  %v2280_v13 = vld [vmem:[%s4368_s6 + $0x530] sm:$0xff] }
 0x14f   : > { %2796 = vmatprep.subr.bf16.mxu1 %v926_v50 }
 0x150   : > { %2815 = vmatpush3.bf16.msra.mxu0 %v1003_v21  ;;  %v2226_v21 = vld [vmem:[%s4368_s6 + $0x470] sm:$0xff] }
 0x151   : > { %2816 = vmatprep.subr.bf16.mxu0 %v1004_v14  ;;  %v1087_v23 = vpack.c.bf16 %v2227_v22, %v2226_v21 }
 0x152   : > { %2797 = vmatpush3.bf16.msra.mxu1 %v926_v50  ;;  %v3747_v50 = vpack.c.bf16 %v3326_v53, %v3326_v53 }
 0x153   : > { %2798 = vmatprep.subr.bf16.mxu1 %v927_v57 }
 0x154   : > { %2817 = vmatpush3.bf16.msra.mxu0 %v1004_v14  ;;  %v2240_v14 = vld [vmem:[%s4365_s3 + $0x90] sm:$0xff] }
 0x155   : > { %2818 = vmatprep.subr.bf16.mxu0 %v1005_v25 }
 0x156   : > { %2799 = vmatpush3.bf16.msra.mxu1 %v927_v57  ;;  %v1187_v57 = vpack.c.bf16 %v2241_v48, %v2240_v14 }
 0x157   : > { %2800 = vmatprep.subr.bf16.mxu1 %v928_v27 }
 0x158   : > { %2819 = vmatpush3.bf16.msra.mxu0 %v1005_v25  ;;  %v1188_v25 = vpack.c.bf16 %v2243_v24, %v2242_v11 }
 0x159   : > { %2820 = vmatprep.subr.bf16.mxu0 %v1006_v30 }
 0x15a   : > { %2801 = vmatpush3.bf16.msra.mxu1 %v928_v27  ;;  %v1189_v27 = vpack.c.bf16 %v2245_v17, %v2244_v26 }
 0x15b   : > { %2802 = vmatprep.subr.bf16.mxu1 %v929_v33 }
 0x15c   : > { %2821 = vmatpush3.bf16.msra.mxu0 %v1006_v30  ;;  %v1190_v30 = vpack.c.bf16 %v2247_v29, %v2246_v28 }
 0x15d   : > { %2822 = vmatprep.subr.bf16.mxu0 %v1007_v36 }
 0x15e   : > { %2803 = vmatpush3.bf16.msra.mxu1 %v929_v33 }
 0x15f   : > { %2804 = vmatprep.subr.bf16.mxu1 %v930_v39 }
 0x160   : > { %2823 = vmatpush3.bf16.msra.mxu0 %v1007_v36  ;;  %v2249_v36 = vld [vmem:[%s4365_s3 + $0xd8] sm:$0xff] }
 0x161   : > { %2824 = vmatprep.subr.bf16.mxu0 %v1008_v44  ;;  %v1191_v40 = vpack.c.bf16 %v2249_v36, %v2248_v35 }
 0x162   : > { %2805 = vmatpush3.bf16.msra.mxu1 %v930_v39 }
 0x163   : > { %2806 = vmatprep.subr.bf16.mxu1 %v931_v47 }
 0x164   : > { %2825 = vmatpush3.bf16.msra.mxu0 %v1008_v44 }
 0x165   : > { %2826 = vmatprep.subr.bf16.mxu0 %v1009_v54 }
 0x166   : > { %2807 = vmatpush3.bf16.msra.mxu1 %v931_v47  ;;  %v2250_v47 = vld [vmem:[%s4365_s3 + $0xe0] sm:$0xff] }
 0x167   : > { %2832 = vmatprep.subr.bf16.mxu1 %v1080_v55  ;;  %v1192_v51 = vpack.c.bf16 %v2251_v49, %v2250_v47 }
 0x168   : > { %2827 = vmatpush3.bf16.msra.mxu0 %v1009_v54  ;;  %v2252_v54 = vld [vmem:[%s4365_s3 + $0xf0] sm:$0xff] }
 0x169   : > { %2809 = vmatmul.mubr.msk.bf16.vlgmr.msra.gmra.mrb[12].mxu1 %vm3347_vm4, %v3698_v59  ;;  %2852 = vmatprep.subr.bf16.mxu0 %v1186_v10 }
 0x16a   : > { %2833 = vmatpush3.bf16.msra.mxu1 %v1080_v55  ;;  %2848 = vmatprep.mubr.msk.bf16.mxu1 %vm3354_vm5, %v2229_v18  ;;  %v1084_v18 = vpack.c.bf16 %v2221_v9, %v2220_v6  ;;  %v2253_v55 = vld [vmem:[%s4365_s3 + $0xf8] sm:$0xff]  ;;  %v1325_v6 = vpack.c.bf16 %v2277_v7, %v2276_v4  ;;  %v2278_v9 = vld [vmem:[%s4368_s6 + $0x520] sm:$0xff] }
 0x16b   : > { %2829 = vmatmul.mubr.bf16.vlgmr.msra.gmra.mrb[16].mxu0 %v3074_v1  ;;  %2834 = vmatprep.subr.bf16.mxu1 %v1081_v60  ;;  %v1193_v56 = vpack.c.bf16 %v2253_v55, %v2252_v54 }
 0x16c   : > { %2853 = vmatpush3.bf16.msra.mxu0 %v1186_v10 }
 0x16d   : > { %2854 = vmatprep.subr.bf16.mxu0 %v1187_v57 }
 0x16e   : > { %2835 = vmatpush3.bf16.msra.mxu1 %v1081_v60  ;;  %v2275_v60 = vld [vmem:[%s4368_s6 + $0x508] sm:$0xff] }
 0x16f   : > { %2836 = vmatprep.subr.bf16.mxu1 %v1082_v2  ;;  %v1324_v0 = vpack.c.bf16 %v2275_v60, %v2274_v58 }
 0x170   : > { %2855 = vmatpush3.bf16.msra.mxu0 %v1187_v57 }
 0x171   : > { %2856 = vmatprep.subr.bf16.mxu0 %v1188_v25 }
 0x172   : > { %2837 = vmatpush3.bf16.msra.mxu1 %v1082_v2  ;;  %v2259_v2 = vld [vmem:[%s4368_s6 + $0x488] sm:$0xff] }
 0x173   : > { %2838 = vmatprep.subr.bf16.mxu1 %v1083_v8 }
 0x174   : > { %2857 = vmatpush3.bf16.msra.mxu0 %v1188_v25 }
 0x175   : > { %2858 = vmatprep.subr.bf16.mxu0 %v1189_v27 }
 0x176   : > { %2839 = vmatpush3.bf16.msra.mxu1 %v1083_v8  ;;  %v3818_v8 = vpack.c.bf16 %v2259_v2, %v2258_v63 }
 0x177   : > { %2840 = vmatprep.subr.bf16.mxu1 %v1084_v18 }
 0x178   : > { %2859 = vmatpush3.bf16.msra.mxu0 %v1189_v27 }
 0x179   : > { %2860 = vmatprep.subr.bf16.mxu0 %v1190_v30 }
 0x17a   : > { %2841 = vmatpush3.bf16.msra.mxu1 %v1084_v18  ;;  %v2279_v18 = vld [vmem:[%s4368_s6 + $0x528] sm:$0xff] }
 0x17b   : > { %2842 = vmatprep.subr.bf16.mxu1 %v1085_v15  ;;  %v1326_v12 = vpack.c.bf16 %v2279_v18, %v2278_v9  ;;  %v2235_v9 = vld [vmem:[%s4363_s1 + $0x1] ss:$0 sm:$0xff] }
 0x17c   : > { %2861 = vmatpush3.bf16.msra.mxu0 %v1190_v30 }
 0x17d   : > { %2862 = vmatprep.subr.bf16.mxu0 %v1191_v40 }
 0x17e   : > { %2843 = vmatpush3.bf16.msra.mxu1 %v1085_v15  ;;  %v2281_v15 = vld [vmem:[%s4368_s6 + $0x538] sm:$0xff] }
 0x17f   : > { %2844 = vmatprep.subr.bf16.mxu1 %v1086_v20  ;;  %v1327_v16 = vpack.c.bf16 %v2281_v15, %v2280_v13  ;;  %v3062_v13 = vld [vmem:[%s3164_s30 + $0x10] sm:$0xff] }
 0x180   : > { %2863 = vmatpush3.bf16.msra.mxu0 %v1191_v40 }
 0x181   : > { %2864 = vmatprep.subr.bf16.mxu0 %v1192_v51 }
 0x182   : > { %2845 = vmatpush3.bf16.msra.mxu1 %v1086_v20  ;;  %v2283_v20 = vld [vmem:[%s4368_s6 + $0x548] sm:$0xff] }
 0x183   : > { %2846 = vmatprep.subr.bf16.mxu1 %v1087_v23  ;;  %v1328_v21 = vpack.c.bf16 %v2283_v20, %v2282_v19  ;;  %v2237_v19 = vld [vmem:[%s4364_s2 + $0x1] ss:$0 sm:$0xff] }
 0x184   : > { %2865 = vmatpush3.bf16.msra.mxu0 %v1192_v51  ;;  %v3063_v20 = vld [vmem:[%s3164_s30] sm:$0xff] }
 0x185   : > { %2866 = vmatprep.subr.bf16.mxu0 %v1193_v56 }
 0x186   : > { %2847 = vmatpush3.bf16.msra.mxu1 %v1087_v23 }
 0x187   : > { %2872 = vmatprep.subr.bf16.mxu1 %v1324_v0 }
 0x188   : > { %2867 = vmatpush3.bf16.msra.mxu0 %v1193_v56 }
 0x189   : > { %2849 = vmatmul.mubr.msk.bf16.vlgmr.msra.gmra.mrb[16].mxu1 %vm3354_vm5, %v3747_v50  ;;  %2892 = vmatprep.subr.bf16.mxu0 %v3818_v8 }
 0x18a   : > { %2873 = vmatpush3.bf16.msra.mxu1 %v1324_v0 }
 0x18b   : > { %2874 = vmatprep.subr.bf16.mxu1 %v1325_v6 }
 0x18e   : > { %2875 = vmatpush3.bf16.msra.mxu1 %v1325_v6 }
 0x18f   : > { %2876 = vmatprep.subr.bf16.mxu1 %v1326_v12 }
 0x192   : > { %2877 = vmatpush3.bf16.msra.mxu1 %v1326_v12 }
 0x193   : > { %2878 = vmatprep.subr.bf16.mxu1 %v1327_v16 }
 0x196   : > { %2879 = vmatpush3.bf16.msra.mxu1 %v1327_v16 }
 0x197   : > { %2880 = vmatprep.subr.bf16.mxu1 %v1328_v21 }
 0x19a   : > { %2881 = vmatpush3.bf16.msra.mxu1 %v1328_v21 }
 0x1dc   : > { %v2690_v31 = vpop.f32.mrb[0].mxu1 }
 0x1dd   : > { %v514_v32 = vpop.f32.mrb[1].mxu1 }
 0x1de   : > { %v2691_v33 = vpop.f32.mrb[2].mxu1  ;;  %v2710_v34 = vpop.f32.mrb[4].mxu0 }
 0x1df   : > { %v571_v37 = vadd.f32 %v2710_v34, %v2690_v31  ;;  %v517_v38 = vpop.f32.mrb[3].mxu1  ;;  %v562_v39 = vpop.f32.mrb[5].mxu0 }
 0x1e0   : > { %v563_v43 = vadd.f32 %v562_v39, %v514_v32  ;;  %v2711_v44 = vpop.f32.mrb[6].mxu0 }
 0x1e1   : > { %v565_v45 = vpop.f32.mrb[7].mxu0 }
 0x1e2   : > { %v566_v46 = vadd.f32 %v565_v45, %v517_v38 }
 0x1fc   : > { %v2730_v22 = vpop.f32.mrb[4].mxu1 }
 0x1fd   : > { %v663_v23 = vadd.f32 %v2730_v22, %v571_v37  ;;  %v647_v61 = vpop.f32.mrb[5].mxu1 }
 0x1fe   : > { %v661_v5 = vadd.f32 %v647_v61, %v563_v43  ;;  %v2731_v14 = vpop.f32.mrb[6].mxu1  ;;  %v2750_v10 = vpop.f32.mrb[8].mxu0 }
 0x1ff   : > { %v745_v48 = vadd.f32 %v2750_v10, %v663_v23  ;;  %v650_v57 = vpop.f32.mrb[7].mxu1  ;;  %v729_v11 = vpop.f32.mrb[9].mxu0 }
 0x200   : > { %v662_v24 = vadd.f32 %v650_v57, %v566_v46  ;;  %v743_v25 = vadd.f32 %v729_v11, %v661_v5  ;;  %v2751_v26 = vpop.f32.mrb[10].mxu0  ;;  %v3064_v5 = vld [vmem:[%s3164_s30 + $0x8] sm:$0xff] }
 0x201   : > { %v732_v17 = vpop.f32.mrb[11].mxu0 }
 0x202   : > { %v744_v27 = vadd.f32 %v732_v17, %v662_v24  ;;  %v2260_v17 = vld [vmem:[%s4368_s6 + $0x490] sm:$0xff] }
 0x21c   : > { %v2770_v28 = vpop.f32.mrb[8].mxu1 }
 0x21d   : > { %v823_v29 = vadd.f32 %v2770_v28, %v745_v48  ;;  %v807_v30 = vpop.f32.mrb[9].mxu1 }
 0x21e   : > { %v821_v31 = vadd.f32 %v807_v30, %v743_v25  ;;  %v2771_v32 = vpop.f32.mrb[10].mxu1  ;;  %v2790_v33 = vpop.f32.mrb[12].mxu0 }
 0x21f   : > { %v904_v34 = vadd.f32 %v2790_v33, %v823_v29  ;;  %v810_v35 = vpop.f32.mrb[11].mxu1  ;;  %v888_v36 = vpop.f32.mrb[13].mxu0  ;;  %v2263_v32 = vld [vmem:[%s4368_s6 + $0x4a8] sm:$0xff] }
 0x220   : > { %v822_v37 = vadd.f32 %v810_v35, %v744_v27  ;;  %v902_v38 = vadd.f32 %v888_v36, %v821_v31  ;;  %v2791_v39 = vpop.f32.mrb[14].mxu0  ;;  %v2261_v27 = vld [vmem:[%s4368_s6 + $0x498] sm:$0xff]  ;;  %v2262_v31 = vld [vmem:[%s4368_s6 + $0x4a0] sm:$0xff] }
 0x221   : > { %v891_v40 = vpop.f32.mrb[15].mxu0  ;;  %v1298_v30 = vpack.c.bf16 %v2261_v27, %v2260_v17  ;;  %v1299_v33 = vpack.c.bf16 %v2263_v32, %v2262_v31  ;;  %v2265_v35 = vld [vmem:[%s4368_s6 + $0x4b8] sm:$0xff]  ;;  %v2284_v39 = vld [vmem:[%s4368_s6 + $0x550] sm:$0xff] }
 0x222   : > { %v903_v43 = vadd.f32 %v891_v40, %v822_v37  ;;  %v2266_v37 = vld [vmem:[%s4368_s6 + $0x4c0] sm:$0xff]  ;;  %v2285_v40 = vld [vmem:[%s4368_s6 + $0x558] sm:$0xff]  ;;  %v2302_v27 = vld [vmem:[%s4368_s6 + $0x590] sm:$0xff] }
 0x223   : > { %v2324_v31 = vld [vmem:[%s4368_s6 + $0x610] sm:$0xff]  ;;  %v2325_v32 = vld [vmem:[%s4368_s6 + $0x618] sm:$0xff] }
 0x23c   : > { %v2810_v44 = vpop.f32.mrb[12].mxu1 }
 0x23d   : > { %v982_v45 = vadd.f32 %v2810_v44, %v904_v34  ;;  %v966_v46 = vpop.f32.mrb[13].mxu1  ;;  %v2264_v34 = vld [vmem:[%s4368_s6 + $0x4b0] sm:$0xff] }
 0x23e   : > { %v980_v47 = vadd.f32 %v966_v46, %v902_v38  ;;  %v2811_v49 = vpop.f32.mrb[14].mxu1  ;;  %v2830_v51 = vpop.f32.mrb[16].mxu0  ;;  %v1300_v36 = vpack.c.bf16 %v2265_v35, %v2264_v34  ;;  %v2268_v44 = vld [vmem:[%s4368_s6 + $0x4d0] sm:$0xff] }
 0x23f   : > { %v1060_v54 = vadd.f32 %v2830_v51, %v982_v45  ;;  %v969_v55 = vpop.f32.mrb[15].mxu1  ;;  %v1044_v56 = vpop.f32.mrb[17].mxu0  ;;  %v2269_v45 = vld [vmem:[%s4368_s6 + $0x4d8] sm:$0xff]  ;;  %v2287_v49 = vld [vmem:[%s4368_s6 + $0x568] sm:$0xff] }
 0x240   : > { %v981_v58 = vadd.f32 %v969_v55, %v903_v43  ;;  %v1058_v60 = vadd.f32 %v1044_v56, %v980_v47  ;;  %v2831_v63 = vpop.f32.mrb[18].mxu0  ;;  %v1329_v43 = vpack.c.bf16 %v2285_v40, %v2284_v39  ;;  %v1302_v46 = vpack.c.bf16 %v2269_v45, %v2268_v44  ;;  %v2286_v47 = vld [vmem:[%s4368_s6 + $0x560] sm:$0xff]  ;;  %v2271_v55 = vld [vmem:[%s4368_s6 + $0x4e8] sm:$0xff] }
 0x241   : > { %v1047_v0 = vpop.f32.mrb[19].mxu0  ;;  %v1330_v51 = vpack.c.bf16 %v2287_v49, %v2286_v47  ;;  %v2304_v44 = vld [vmem:[%s4368_s6 + $0x5a0] sm:$0xff]  ;;  %v2305_v45 = vld [vmem:[%s4368_s6 + $0x5a8] sm:$0xff] }
 0x242   : > { %v1059_v2 = vadd.f32 %v1047_v0, %v981_v58  ;;  %2882 = vmatprep.subr.bf16.mxu1 %v1329_v43  ;;  %v2288_v58 = vld [vmem:[%s4368_s6 + $0x570] sm:$0xff] }
 0x243   : > { %2883 = vmatpush3.bf16.msra.mxu1 %v1329_v43  ;;  %v2272_v0 = vld [vmem:[%s4368_s6 + $0x4f0] sm:$0xff] }
 0x244   : > { %2884 = vmatprep.subr.bf16.mxu1 %v1330_v51 }
 0x247   : > { %2885 = vmatpush3.bf16.msra.mxu1 %v1330_v51 }
 0x25c   : > { %v2850_v4 = vpop.f32.mrb[16].mxu1 }
 0x25d   : > { %v1138_v7 = vadd.f32 %v2850_v4, %v1060_v54  ;;  %v1122_v6 = vpop.f32.mrb[17].mxu1  ;;  %v2270_v54 = vld [vmem:[%s4368_s6 + $0x4e0] sm:$0xff] }
 0x25e   : > { %v1136_v18 = vadd.f32 %v1122_v6, %v1058_v60  ;;  %v2851_v12 = vpop.f32.mrb[18].mxu1  ;;  %v1303_v56 = vpack.c.bf16 %v2271_v55, %v2270_v54  ;;  %v2289_v60 = vld [vmem:[%s4368_s6 + $0x578] sm:$0xff]  ;;  %v2301_v6 = vld [vmem:[%s4368_s6 + $0x588] sm:$0xff]  ;;  %v2326_v54 = vld [vmem:[%s4368_s6 + $0x620] sm:$0xff] }
 0x25f   : > { %v3843_v15 = vadd.f32 %v3062_v13, %v1138_v7  ;;  %v1125_v16 = vpop.f32.mrb[19].mxu1  ;;  %v1331_v63 = vpack.c.bf16 %v2289_v60, %v2288_v58  ;;  %v2300_v7 = vld [vmem:[%s4368_s6 + $0x580] sm:$0xff]  ;;  %v2323_v12 = vld [vmem:[%s4368_s6 + $0x608] sm:$0xff]  ;;  %v1455_v60 = vpack.c.bf16 %v2305_v45, %v2304_v44  ;;  %v2351_v44 = vld [vmem:[%s4368_s6 + $0x698] sm:$0xff] }
 0x260   : > { %v3849_v21 = vadd.f32 %v3063_v20, %v1136_v18  ;;  %v1137_v22 = vadd.f32 %v1125_v16, %v1059_v2  ;;  %v2273_v2 = vld [vmem:[%s4368_s6 + $0x4f8] sm:$0xff]  ;;  %v2322_v18 = vld [vmem:[%s4368_s6 + $0x600] sm:$0xff]  ;;  %v2327_v55 = vld [vmem:[%s4368_s6 + $0x628] sm:$0xff] }
 0x261   : > { %v1152_v23 = vmul.f32 %v2235_v9, %v3843_v15  ;;  %2886 = vmatprep.subr.bf16.mxu1 %v1331_v63  ;;  %v1304_v4 = vpack.c.bf16 %v2273_v2, %v2272_v0  ;;  %v1535_v13 = vpack.c.bf16 %v2323_v12, %v2322_v18  ;;  %v2255_v16 = vld [vmem:[%s4366_s4 + $0x1] ss:$0 sm:$0xff]  ;;  %v2307_v0 = vld [vmem:[%s4368_s6 + $0x5b8] sm:$0xff]  ;;  %v1537_v2 = vpack.c.bf16 %v2327_v55, %v2326_v54  ;;  %v2309_v18 = vld [vmem:[%s4368_s6 + $0x5c8] sm:$0xff] }
 0x262   : > { %v1150_v61 = vmul.f32 %v2235_v9, %v3849_v21  ;;  %v3854_v14 = vadd.f32 %v3064_v5, %v1137_v22  ;;  %2887 = vmatpush3.bf16.msra.mxu1 %v1331_v63  ;;  %v2257_v20 = vld [vmem:[%s4367_s5 + $0x1] ss:$0 sm:$0xff]  ;;  %v2306_v63 = vld [vmem:[%s4368_s6 + $0x5b0] sm:$0xff] }
 0x263   : > { %v1163_v10 = vadd.f32 %v2237_v19, %v1152_v23 }
 0x264   : > { %v1151_v48 = vmul.f32 %v2235_v9, %v3854_v14  ;;  %v1161_v57 = vadd.f32 %v2237_v19, %v1150_v61  ;;  %v1453_v9 = vpack.c.bf16 %v2301_v6, %v2300_v7  ;;  %v2329_v7 = vld [vmem:[%s4368_s6 + $0x638] sm:$0xff]  ;;  %v1456_v6 = vpack.c.bf16 %v2307_v0, %v2306_v63  ;;  %v2353_v63 = vld [vmem:[%s4368_s6 + $0x6a8] sm:$0xff] }
 0x265   : > { %v1166_v24 = vmax.f32 %v1163_v10, 0.0 }
 0x266   : > { %v1162_v11 = vadd.f32 %v2237_v19, %v1151_v48  ;;  %v1164_v25 = vmax.f32 %v1161_v57, 0.0  ;;  %2912 = vmatprep.subr.bf16.mxu1 %v1453_v9 }
 0x267   : > { %v1185_v29 = vpack.c.bf16 %v1166_v24, %v1166_v24 }
 0x268   : > { %v1165_v26 = vmax.f32 %v1162_v11, 0.0 }
 0x26a   : > { %v1184_v28 = vpack.c.bf16 %v1165_v26, %v1164_v25 }
 0x26c   : > { %2868 = vmatprep.mubr.bf16.mxu0 %v1184_v28 }
 0x26d   : > { %2869 = vmatmul.mubr.bf16.vlgmr.msra.gmra.mrb[20].mxu0 %v1185_v29 }
 0x26e   : > { %2893 = vmatpush3.bf16.msra.mxu0 %v3818_v8  ;;  %v2267_v8 = vld [vmem:[%s4368_s6 + $0x4c8] sm:$0xff] }
 0x26f   : > { %2894 = vmatprep.subr.bf16.mxu0 %v1298_v30  ;;  %v1301_v38 = vpack.c.bf16 %v2267_v8, %v2266_v37 }
 0x272   : > { %2895 = vmatpush3.bf16.msra.mxu0 %v1298_v30  ;;  %v2303_v30 = vld [vmem:[%s4368_s6 + $0x598] sm:$0xff] }
 0x273   : > { %2896 = vmatprep.subr.bf16.mxu0 %v1299_v33  ;;  %v1454_v8 = vpack.c.bf16 %v2303_v30, %v2302_v27  ;;  %v2314_v27 = vld [vmem:[%s4368_s6 + $0x5f0] sm:$0xff] }
 0x276   : > { %2897 = vmatpush3.bf16.msra.mxu0 %v1299_v33 }
 0x277   : > { %2898 = vmatprep.subr.bf16.mxu0 %v1300_v36 }
 0x27a   : > { %2899 = vmatpush3.bf16.msra.mxu0 %v1300_v36 }
 0x27b   : > { %2900 = vmatprep.subr.bf16.mxu0 %v1301_v38 }
 0x27e   : > { %2901 = vmatpush3.bf16.msra.mxu0 %v1301_v38  ;;  %v1536_v38 = vpack.c.bf16 %v2325_v32, %v2324_v31  ;;  %v2336_v31 = vld [vmem:[%s4368_s6 + $0x670] sm:$0xff]  ;;  %v2337_v32 = vld [vmem:[%s4368_s6 + $0x678] sm:$0xff] }
 0x27f   : > { %2902 = vmatprep.subr.bf16.mxu0 %v1302_v46 }
 0x282   : > { %2903 = vmatpush3.bf16.msra.mxu0 %v1302_v46 }
 0x283   : > { %2904 = vmatprep.subr.bf16.mxu0 %v1303_v56 }
 0x286   : > { %2905 = vmatpush3.bf16.msra.mxu0 %v1303_v56 }
 0x287   : > { %2906 = vmatprep.subr.bf16.mxu0 %v1304_v4 }
 0x28a   : > { %2907 = vmatpush3.bf16.msra.mxu0 %v1304_v4  ;;  %v2328_v4 = vld [vmem:[%s4368_s6 + $0x630] sm:$0xff] }
 0x28b   : > { %2932 = vmatprep.subr.bf16.mxu0 %v1535_v13  ;;  %v1538_v12 = vpack.c.bf16 %v2329_v7, %v2328_v4  ;;  %v2368_v4 = vld [vmem:[%s4368_s6 + $0x720] sm:$0xff]  ;;  %v2369_v7 = vld [vmem:[%s4368_s6 + $0x728] sm:$0xff] }
 0x340   : > { %v2870_v19 = vpop.f32.mrb[20].mxu0 }
 0x341   : > { %v1252_v22 = vmul.f32 %v2870_v19, %v2255_v16  ;;  %v1228_v23 = vpop.f32.mrb[21].mxu0 }
 0x342   : > { %v1250_v61 = vmul.f32 %v2255_v16, %v1228_v23  ;;  %v2871_v5 = vpop.f32.mrb[22].mxu0 }
 0x343   : > { %v1263_v10 = vadd.f32 %v2257_v20, %v1252_v22  ;;  %v1231_v48 = vpop.f32.mrb[23].mxu0  ;;  %v2311_v22 = vld [vmem:[%s4368_s6 + $0x5d8] sm:$0xff] }
 0x344   : > { %v1261_v57 = vadd.f32 %v2257_v20, %v1250_v61  ;;  %v1251_v11 = vmul.f32 %v2255_v16, %v1231_v48  ;;  %v2331_v16 = vld [vmem:[%s4368_s6 + $0x648] sm:$0xff]  ;;  %v2332_v61 = vld [vmem:[%s4368_s6 + $0x650] sm:$0xff]  ;;  %v2333_v5 = vld [vmem:[%s4368_s6 + $0x658] sm:$0xff] }
 0x345   : > { %v1266_v24 = vmax.f32 %v1263_v10, 0.0  ;;  %v2312_v48 = vld [vmem:[%s4368_s6 + $0x5e0] sm:$0xff] }
 0x346   : > { %v1264_v25 = vmax.f32 %v1261_v57, 0.0  ;;  %v1262_v26 = vadd.f32 %v2257_v20, %v1251_v11  ;;  %v2310_v20 = vld [vmem:[%s4368_s6 + $0x5d0] sm:$0xff]  ;;  %v2313_v57 = vld [vmem:[%s4368_s6 + $0x5e8] sm:$0xff]  ;;  %v1540_v11 = vpack.c.bf16 %v2333_v5, %v2332_v61  ;;  %v2359_v5 = vld [vmem:[%s4368_s6 + $0x6d8] sm:$0xff] }
 0x347   : > { %v3937_v17 = vmul.f32 %v3311_v42, %v1266_v24  ;;  %v1458_v10 = vpack.c.bf16 %v2311_v22, %v2310_v20  ;;  %v2334_v24 = vld [vmem:[%s4368_s6 + $0x660] sm:$0xff]  ;;  %v2373_v22 = vld [vmem:[%s4368_s6 + $0x748] sm:$0xff]  ;;  %v2358_v61 = vld [vmem:[%s4368_s6 + $0x6d0] sm:$0xff] }
 0x348   : > { %v3943_v28 = vmul.f32 %v3311_v42, %v1264_v25  ;;  %v1265_v29 = vmax.f32 %v1262_v26, 0.0  ;;  %v2335_v25 = vld [vmem:[%s4368_s6 + $0x668] sm:$0xff]  ;;  %v1459_v26 = vpack.c.bf16 %v2313_v57, %v2312_v48  ;;  %v2372_v20 = vld [vmem:[%s4368_s6 + $0x740] sm:$0xff]  ;;  %v2374_v48 = vld [vmem:[%s4368_s6 + $0x750] sm:$0xff] }
 0x349   : > { %v3962_v37 = vrot.slane %v3937_v17, 7  ;;  %v1541_v30 = vpack.c.bf16 %v2335_v25, %v2334_v24  ;;  %v2375_v57 = vld [vmem:[%s4368_s6 + $0x758] sm:$0xff]  ;;  %v2360_v24 = vld [vmem:[%s4368_s6 + $0x6e0] sm:$0xff]  ;;  %v2361_v25 = vld [vmem:[%s4368_s6 + $0x6e8] sm:$0xff] }
 0x34a   : > { %v3955_v33 = vmul.f32 %v3311_v42, %v1265_v29  ;;  %v1322_v34 = vpack.c.bf16 %v3943_v28, %v3073_v41  ;;  %v1272_v35 = vrot.slane %v3943_v28, 7  ;;  %v1428_v36 = vrot.slane %v3943_v28, 1  ;;  %v2315_v29 = vld [vmem:[%s4368_s6 + $0x5f8] sm:$0xff] }
 0x34b   : > { %v3972_v41 = vrot.slane %v3937_v17, 1  ;;  %v2346_v0 = vpack.c.bf16 %v3962_v37, %v3962_v37 }
 0x34c   : > { %2888 = vmatprep.mubr.bf16.mxu1 %v1322_v34  ;;  %v1323_v39 = vpack.c.bf16 %v3955_v33, %v3955_v33  ;;  %v2293_v40 = vpack.c.bf16 %v1272_v35, %v3323_v52  ;;  %v2317_v42 = vpack.c.bf16 %v1428_v36, %v3326_v53  ;;  %v3969_v43 = vrot.slane %v3955_v33, 7 }
 0x34d   : > { %v3981_v46 = vrot.slane %v3955_v33, 1  ;;  %v1611_v52 = vpack.c.bf16 %v3955_v33, %v3943_v28  ;;  %v1847_v53 = vpack.c.bf16 %v3937_v17, %v3955_v33  ;;  %v1460_v34 = vpack.c.bf16 %v2315_v29, %v2314_v27  ;;  %v2354_v28 = vld [vmem:[%s4368_s6 + $0x6b0] sm:$0xff]  ;;  %v2376_v27 = vld [vmem:[%s4368_s6 + $0x760] sm:$0xff]  ;;  %v2377_v29 = vld [vmem:[%s4368_s6 + $0x768] sm:$0xff] }
 0x34e   : > { %2889 = vmatmul.mubr.bf16.vlgmr.msra.gmra.mrb[20].mxu1 %v1323_v39  ;;  %2908 = vmatprep.mubr.msk.bf16.mxu0 %vm3347_vm4, %v2293_v40  ;;  %v2298_v47 = vpack.c.bf16 %v3969_v43, %v3969_v43  ;;  %v2341_v49 = vpack.c.bf16 %v3969_v43, %v1272_v35  ;;  %v2405_v51 = vpack.c.bf16 %v3962_v37, %v3969_v43  ;;  %v2348_v35 = vld [vmem:[%s4368_s6 + $0x680] sm:$0xff]  ;;  %v2365_v39 = vld [vmem:[%s4368_s6 + $0x708] sm:$0xff]  ;;  %v2392_v37 = vld [vmem:[%s4368_s6 + $0x7b0] sm:$0xff] }
 0x34f   : > { %2913 = vmatpush3.bf16.msra.mxu1 %v1453_v9  ;;  %2928 = vmatprep.mubr.msk.bf16.mxu1 %vm3354_vm5, %v2317_v42  ;;  %v4003_v56 = vpack.c.bf16 %v3981_v46, %v1428_v36  ;;  %v2445_v58 = vpack.c.bf16 %v3972_v41, %v3981_v46  ;;  %v2308_v9 = vld [vmem:[%s4368_s6 + $0x5c0] sm:$0xff]  ;;  %v2349_v36 = vld [vmem:[%s4368_s6 + $0x688] sm:$0xff]  ;;  %v2350_v42 = vld [vmem:[%s4368_s6 + $0x690] sm:$0xff]  ;;  %v2320_v54 = vpack.c.bf16 %v3981_v46, %v3981_v46 }
 0x350   : > { %2909 = vmatmul.mubr.msk.bf16.vlgmr.msra.gmra.mrb[24].mxu0 %vm3347_vm4, %v2298_v47  ;;  %2914 = vmatprep.subr.bf16.mxu1 %v1454_v8  ;;  %v1457_v19 = vpack.c.bf16 %v2309_v18, %v2308_v9  ;;  %v1613_v40 = vpack.c.bf16 %v2349_v36, %v2348_v35  ;;  %v2366_v47 = vld [vmem:[%s4368_s6 + $0x710] sm:$0xff]  ;;  %v1614_v55 = vpack.c.bf16 %v2351_v44, %v2350_v42  ;;  %v2379_v36 = vld [vmem:[%s4368_s6 + $0x778] sm:$0xff]  ;;  %v2412_v42 = vld [vmem:[%s4368_s6 + $0x800] sm:$0xff] }
 0x351   : > { %2933 = vmatpush3.bf16.msra.mxu0 %v1535_v13  ;;  %2948 = vmatprep.mubr.msk.bf16.mxu0 %vm3347_vm4, %v2341_v49  ;;  %v2330_v13 = vld [vmem:[%s4368_s6 + $0x640] sm:$0xff]  ;;  %v2367_v49 = vld [vmem:[%s4368_s6 + $0x718] sm:$0xff]  ;;  %v1696_v9 = vpack.c.bf16 %v2369_v7, %v2368_v4  ;;  %v2370_v18 = vld [vmem:[%s4368_s6 + $0x730] sm:$0xff]  ;;  %v2384_v7 = vpack.c.bf16 %v3972_v41, %v3972_v41 }
 0x352   : > { %2934 = vmatprep.subr.bf16.mxu0 %v1536_v38  ;;  %v1539_v23 = vpack.c.bf16 %v2331_v16, %v2330_v13  ;;  %v2356_v13 = vld [vmem:[%s4368_s6 + $0x6c0] sm:$0xff]  ;;  %v2357_v16 = vld [vmem:[%s4368_s6 + $0x6c8] sm:$0xff]  ;;  %v2378_v35 = vld [vmem:[%s4368_s6 + $0x770] sm:$0xff] }
 0x353   : > { %2915 = vmatpush3.bf16.msra.mxu1 %v1454_v8  ;;  %v1542_v8 = vpack.c.bf16 %v2337_v32, %v2336_v31  ;;  %v2362_v31 = vld [vmem:[%s4368_s6 + $0x6f0] sm:$0xff]  ;;  %v2363_v32 = vld [vmem:[%s4368_s6 + $0x6f8] sm:$0xff]  ;;  %v2413_v44 = vld [vmem:[%s4368_s6 + $0x808] sm:$0xff] }
 0x354   : > { %2916 = vmatprep.subr.bf16.mxu1 %v1455_v60  ;;  %v2391_v4 = vld [vmem:[%s4368_s6 + $0x7a8] sm:$0xff]  ;;  %v2393_v43 = vld [vmem:[%s4368_s6 + $0x7b8] sm:$0xff]  ;;  %v2436_v41 = vld [vmem:[%s4368_s6 + $0x8c0] sm:$0xff] }
 0x355   : > { %2935 = vmatpush3.bf16.msra.mxu0 %v1536_v38  ;;  %v2364_v38 = vld [vmem:[%s4368_s6 + $0x700] sm:$0xff]  ;;  %v1774_v33 = vpack.c.bf16 %v2393_v43, %v2392_v37 }
 0x356   : > { %2936 = vmatprep.subr.bf16.mxu0 %v1537_v2  ;;  %v1694_v45 = vpack.c.bf16 %v2365_v39, %v2364_v38  ;;  %v2386_v38 = vld [vmem:[%s4368_s6 + $0x780] sm:$0xff]  ;;  %v2387_v39 = vld [vmem:[%s4368_s6 + $0x788] sm:$0xff] }
 0x357   : > { %2917 = vmatpush3.bf16.msra.mxu1 %v1455_v60  ;;  %v2352_v60 = vld [vmem:[%s4368_s6 + $0x6a0] sm:$0xff] }
 0x358   : > { %2918 = vmatprep.subr.bf16.mxu1 %v1456_v6 }
 0x359   : > { %2937 = vmatpush3.bf16.msra.mxu0 %v1537_v2  ;;  %v1695_v2 = vpack.c.bf16 %v2367_v49, %v2366_v47  ;;  %v2388_v47 = vld [vmem:[%s4368_s6 + $0x790] sm:$0xff]  ;;  %v2389_v49 = vld [vmem:[%s4368_s6 + $0x798] sm:$0xff] }
 0x35a   : > { %2938 = vmatprep.subr.bf16.mxu0 %v1538_v12 }
 0x35b   : > { %2919 = vmatpush3.bf16.msra.mxu1 %v1456_v6  ;;  %v1615_v6 = vpack.c.bf16 %v2353_v63, %v2352_v60  ;;  %v2415_v60 = vld [vmem:[%s4368_s6 + $0x818] sm:$0xff]  ;;  %v1612_v63 = vpack.c.bf16 %v3937_v17, %v3937_v17 }
 0x35c   : > { %2920 = vmatprep.subr.bf16.mxu1 %v1457_v19  ;;  %v2419_v17 = vld [vmem:[%s4368_s6 + $0x838] sm:$0xff] }
 0x35d   : > { %2939 = vmatpush3.bf16.msra.mxu0 %v1538_v12  ;;  %v2371_v12 = vld [vmem:[%s4368_s6 + $0x738] sm:$0xff] }
 0x35e   : > { %2940 = vmatprep.subr.bf16.mxu0 %v1539_v23 }
 0x35f   : > { %2921 = vmatpush3.bf16.msra.mxu1 %v1457_v19  ;;  %v1697_v19 = vpack.c.bf16 %v2371_v12, %v2370_v18  ;;  %v2418_v18 = vld [vmem:[%s4368_s6 + $0x830] sm:$0xff]  ;;  %v2395_v12 = vld [vmem:[%s4368_s6 + $0x7c8] sm:$0xff] }
 0x360   : > { %2922 = vmatprep.subr.bf16.mxu1 %v1458_v10 }
 0x361   : > { %2941 = vmatpush3.bf16.msra.mxu0 %v1539_v23  ;;  %v1617_v23 = vpack.c.bf16 %v2357_v16, %v2356_v13  ;;  %v2420_v13 = vld [vmem:[%s4368_s6 + $0x840] sm:$0xff]  ;;  %v2421_v16 = vld [vmem:[%s4368_s6 + $0x848] sm:$0xff] }
 0x362   : > { %2942 = vmatprep.subr.bf16.mxu0 %v1540_v11 }
 0x363   : > { %2923 = vmatpush3.bf16.msra.mxu1 %v1458_v10  ;;  %v1698_v10 = vpack.c.bf16 %v2373_v22, %v2372_v20  ;;  %v2396_v20 = vld [vmem:[%s4368_s6 + $0x7d0] sm:$0xff]  ;;  %v2397_v22 = vld [vmem:[%s4368_s6 + $0x7d8] sm:$0xff] }
 0x364   : > { %2924 = vmatprep.subr.bf16.mxu1 %v1459_v26 }
 0x365   : > { %2943 = vmatpush3.bf16.msra.mxu0 %v1540_v11  ;;  %v1618_v11 = vpack.c.bf16 %v2359_v5, %v2358_v61  ;;  %v2422_v61 = vld [vmem:[%s4368_s6 + $0x850] sm:$0xff]  ;;  %v2423_v5 = vld [vmem:[%s4368_s6 + $0x858] sm:$0xff] }
 0x366   : > { %2944 = vmatprep.subr.bf16.mxu0 %v1541_v30 }
 0x367   : > { %2925 = vmatpush3.bf16.msra.mxu1 %v1459_v26  ;;  %v1699_v26 = vpack.c.bf16 %v2375_v57, %v2374_v48  ;;  %v2398_v48 = vld [vmem:[%s4368_s6 + $0x7e0] sm:$0xff]  ;;  %v2399_v57 = vld [vmem:[%s4368_s6 + $0x7e8] sm:$0xff] }
 0x368   : > { %2926 = vmatprep.subr.bf16.mxu1 %v1460_v34 }
 0x369   : > { %2945 = vmatpush3.bf16.msra.mxu0 %v1541_v30  ;;  %v1619_v30 = vpack.c.bf16 %v2361_v25, %v2360_v24  ;;  %v2424_v24 = vld [vmem:[%s4368_s6 + $0x860] sm:$0xff]  ;;  %v2425_v25 = vld [vmem:[%s4368_s6 + $0x868] sm:$0xff] }
 0x36a   : > { %2946 = vmatprep.subr.bf16.mxu0 %v1542_v8 }
 0x36b   : > { %2927 = vmatpush3.bf16.msra.mxu1 %v1460_v34  ;;  %v1700_v34 = vpack.c.bf16 %v2377_v29, %v2376_v27  ;;  %v2400_v27 = vld [vmem:[%s4368_s6 + $0x7f0] sm:$0xff]  ;;  %v2401_v29 = vld [vmem:[%s4368_s6 + $0x7f8] sm:$0xff] }
 0x36c   : > { %2952 = vmatprep.subr.bf16.mxu1 %v1613_v40 }
 0x36d   : > { %2947 = vmatpush3.bf16.msra.mxu0 %v1542_v8  ;;  %v1620_v8 = vpack.c.bf16 %v2363_v32, %v2362_v31  ;;  %v2426_v31 = vld [vmem:[%s4368_s6 + $0x870] sm:$0xff]  ;;  %v2427_v32 = vld [vmem:[%s4368_s6 + $0x878] sm:$0xff] }
 0x36e   : > { %2929 = vmatmul.mubr.msk.bf16.vlgmr.msra.gmra.mrb[24].mxu1 %vm3354_vm5, %v2320_v54  ;;  %2972 = vmatprep.subr.bf16.mxu0 %v1694_v45  ;;  %v1848_v54 = vpack.c.bf16 %v2413_v44, %v2412_v42  ;;  %v2432_v44 = vld [vmem:[%s4368_s6 + $0x8a0] sm:$0xff] }
 0x36f   : > { %2953 = vmatpush3.bf16.msra.mxu1 %v1613_v40  ;;  %2968 = vmatprep.mubr.bf16.mxu1 %v1611_v52  ;;  %v2355_v52 = vld [vmem:[%s4368_s6 + $0x6b8] sm:$0xff]  ;;  %v1701_v40 = vpack.c.bf16 %v2379_v36, %v2378_v35  ;;  %v2428_v35 = vld [vmem:[%s4368_s6 + $0x880] sm:$0xff]  ;;  %v2429_v36 = vld [vmem:[%s4368_s6 + $0x888] sm:$0xff] }
 0x370   : > { %2949 = vmatmul.mubr.msk.bf16.vlgmr.msra.gmra.mrb[28].mxu0 %vm3347_vm4, %v2346_v0  ;;  %2954 = vmatprep.subr.bf16.mxu1 %v1614_v55  ;;  %v1772_v0 = vpack.c.bf16 %v2389_v49, %v2388_v47  ;;  %v2434_v49 = vld [vmem:[%s4368_s6 + $0x8b0] sm:$0xff] }
 0x371   : > { %2973 = vmatpush3.bf16.msra.mxu0 %v1694_v45  ;;  %2988 = vmatprep.mubr.msk.bf16.mxu0 %vm3354_vm5, %v4003_v56  ;;  %v1616_v56 = vpack.c.bf16 %v2355_v52, %v2354_v28  ;;  %v1771_v45 = vpack.c.bf16 %v2387_v39, %v2386_v38  ;;  %v2416_v28 = vld [vmem:[%s4368_s6 + $0x820] sm:$0xff]  ;;  %v2417_v52 = vld [vmem:[%s4368_s6 + $0x828] sm:$0xff]  ;;  %v1925_v38 = vpack.c.bf16 %v2429_v36, %v2428_v35  ;;  %v2430_v39 = vld [vmem:[%s4368_s6 + $0x890] sm:$0xff] }
 0x372   : > { %2974 = vmatprep.subr.bf16.mxu0 %v1695_v2 }
 0x373   : > { %2955 = vmatpush3.bf16.msra.mxu1 %v1614_v55  ;;  %v2414_v55 = vld [vmem:[%s4368_s6 + $0x810] sm:$0xff] }
 0x374   : > { %2956 = vmatprep.subr.bf16.mxu1 %v1615_v6 }
 0x375   : > { %2975 = vmatpush3.bf16.msra.mxu0 %v1695_v2  ;;  %v2390_v2 = vld [vmem:[%s4368_s6 + $0x7a0] sm:$0xff] }
 0x376   : > { %2976 = vmatprep.subr.bf16.mxu0 %v1696_v9 }
 0x377   : > { %2957 = vmatpush3.bf16.msra.mxu1 %v1615_v6  ;;  %v1849_v6 = vpack.c.bf16 %v2415_v60, %v2414_v55  ;;  %v2440_v60 = vld [vmem:[%s4368_s6 + $0x8e0] sm:$0xff] }
 0x378   : > { %2958 = vmatprep.subr.bf16.mxu1 %v1616_v56 }
 0x379   : > { %2977 = vmatpush3.bf16.msra.mxu0 %v1696_v9  ;;  %v1773_v9 = vpack.c.bf16 %v2391_v4, %v2390_v2  ;;  %v2442_v2 = vld [vmem:[%s4368_s6 + $0x8f0] sm:$0xff]  ;;  %v2443_v4 = vld [vmem:[%s4368_s6 + $0x8f8] sm:$0xff] }
 0x37a   : > { %2978 = vmatprep.subr.bf16.mxu0 %v1697_v19 }
 0x37b   : > { %2959 = vmatpush3.bf16.msra.mxu1 %v1616_v56  ;;  %v1851_v56 = vpack.c.bf16 %v2419_v17, %v2418_v18 }
 0x37c   : > { %2960 = vmatprep.subr.bf16.mxu1 %v1617_v23 }
 0x37d   : > { %2979 = vmatpush3.bf16.msra.mxu0 %v1697_v19 }
 0x37e   : > { %2980 = vmatprep.subr.bf16.mxu0 %v1698_v10 }
 0x37f   : > { %2961 = vmatpush3.bf16.msra.mxu1 %v1617_v23  ;;  %v1852_v23 = vpack.c.bf16 %v2421_v16, %v2420_v13 }
 0x380   : > { %2962 = vmatprep.subr.bf16.mxu1 %v1618_v11 }
 0x381   : > { %2981 = vmatpush3.bf16.msra.mxu0 %v1698_v10  ;;  %v1776_v10 = vpack.c.bf16 %v2397_v22, %v2396_v20 }
 0x382   : > { %2982 = vmatprep.subr.bf16.mxu0 %v1699_v26 }
 0x383   : > { %2963 = vmatpush3.bf16.msra.mxu1 %v1618_v11  ;;  %v1853_v11 = vpack.c.bf16 %v2423_v5, %v2422_v61 }
 0x384   : > { %2964 = vmatprep.subr.bf16.mxu1 %v1619_v30 }
 0x385   : > { %2983 = vmatpush3.bf16.msra.mxu0 %v1699_v26  ;;  %v1777_v26 = vpack.c.bf16 %v2399_v57, %v2398_v48 }
 0x386   : > { %2984 = vmatprep.subr.bf16.mxu0 %v1700_v34 }
 0x387   : > { %2965 = vmatpush3.bf16.msra.mxu1 %v1619_v30  ;;  %v1854_v30 = vpack.c.bf16 %v2425_v25, %v2424_v24 }
 0x388   : > { %2966 = vmatprep.subr.bf16.mxu1 %v1620_v8 }
 0x389   : > { %2985 = vmatpush3.bf16.msra.mxu0 %v1700_v34  ;;  %v1778_v34 = vpack.c.bf16 %v2401_v29, %v2400_v27 }
 0x38a   : > { %2986 = vmatprep.subr.bf16.mxu0 %v1701_v40 }
 0x38b   : > { %2967 = vmatpush3.bf16.msra.mxu1 %v1620_v8  ;;  %v1855_v8 = vpack.c.bf16 %v2427_v32, %v2426_v31 }
 0x38c   : > { %2992 = vmatprep.subr.bf16.mxu1 %v1771_v45 }
 0x38d   : > { %2987 = vmatpush3.bf16.msra.mxu0 %v1701_v40  ;;  %v2431_v40 = vld [vmem:[%s4368_s6 + $0x898] sm:$0xff] }
 0x38e   : > { %2969 = vmatmul.mubr.bf16.vlgmr.msra.gmra.mrb[28].mxu1 %v1612_v63  ;;  %3012 = vmatprep.subr.bf16.mxu0 %v1848_v54  ;;  %v1926_v42 = vpack.c.bf16 %v2431_v40, %v2430_v39  ;;  %v2441_v63 = vld [vmem:[%s4368_s6 + $0x8e8] sm:$0xff] }
 0x38f   : > { %2993 = vmatpush3.bf16.msra.mxu1 %v1771_v45  ;;  %3008 = vmatprep.mubr.msk.bf16.mxu1 %vm3347_vm4, %v2405_v51  ;;  %v1850_v51 = vpack.c.bf16 %v2417_v52, %v2416_v28  ;;  %v2433_v45 = vld [vmem:[%s4368_s6 + $0x8a8] sm:$0xff] }
 0x390   : > { %2989 = vmatmul.mubr.msk.bf16.vlgmr.msra.gmra.mrb[32].mxu0 %vm3354_vm5, %v2384_v7  ;;  %2994 = vmatprep.subr.bf16.mxu1 %v1772_v0  ;;  %v1927_v47 = vpack.c.bf16 %v2433_v45, %v2432_v44  ;;  %v1932_v7 = vpack.c.bf16 %v2443_v4, %v2442_v2 }
 0x391   : > { %3013 = vmatpush3.bf16.msra.mxu0 %v1848_v54  ;;  %3028 = vmatprep.mubr.bf16.mxu0 %v1847_v53  ;;  %v2394_v53 = vld [vmem:[%s4368_s6 + $0x7c0] sm:$0xff]  ;;  %v2439_v54 = vld [vmem:[%s4368_s6 + $0x8d8] sm:$0xff] }
 0x392   : > { %3014 = vmatprep.subr.bf16.mxu0 %v1849_v6  ;;  %v1775_v19 = vpack.c.bf16 %v2395_v12, %v2394_v53 }
 0x393   : > { %2995 = vmatpush3.bf16.msra.mxu1 %v1772_v0  ;;  %v1931_v0 = vpack.c.bf16 %v2441_v63, %v2440_v60 }
 0x394   : > { %2996 = vmatprep.subr.bf16.mxu1 %v1773_v9 }
 0x395   : > { %3015 = vmatpush3.bf16.msra.mxu0 %v1849_v6 }
 0x396   : > { %3016 = vmatprep.subr.bf16.mxu0 %v1850_v51 }
 0x397   : > { %2997 = vmatpush3.bf16.msra.mxu1 %v1773_v9 }
 0x398   : > { %2998 = vmatprep.subr.bf16.mxu1 %v1774_v33 }
 0x399   : > { %3017 = vmatpush3.bf16.msra.mxu0 %v1850_v51 }
 0x39a   : > { %3018 = vmatprep.subr.bf16.mxu0 %v1851_v56 }
 0x39b   : > { %2999 = vmatpush3.bf16.msra.mxu1 %v1774_v33 }
 0x39c   : > { %3000 = vmatprep.subr.bf16.mxu1 %v1775_v19 }
 0x39d   : > { %3019 = vmatpush3.bf16.msra.mxu0 %v1851_v56 }
 0x39e   : > { %3020 = vmatprep.subr.bf16.mxu0 %v1852_v23 }
 0x39f   : > { %3001 = vmatpush3.bf16.msra.mxu1 %v1775_v19 }
 0x3a0   : > { %3002 = vmatprep.subr.bf16.mxu1 %v1776_v10 }
 0x3a1   : > { %3021 = vmatpush3.bf16.msra.mxu0 %v1852_v23 }
 0x3a2   : > { %3022 = vmatprep.subr.bf16.mxu0 %v1853_v11 }
 0x3a3   : > { %3003 = vmatpush3.bf16.msra.mxu1 %v1776_v10 }
 0x3a4   : > { %3004 = vmatprep.subr.bf16.mxu1 %v1777_v26 }
 0x3a5   : > { %3023 = vmatpush3.bf16.msra.mxu0 %v1853_v11 }
 0x3a6   : > { %3024 = vmatprep.subr.bf16.mxu0 %v1854_v30 }
 0x3a7   : > { %3005 = vmatpush3.bf16.msra.mxu1 %v1777_v26 }
 0x3a8   : > { %3006 = vmatprep.subr.bf16.mxu1 %v1778_v34 }
 0x3a9   : > { %3025 = vmatpush3.bf16.msra.mxu0 %v1854_v30 }
 0x3aa   : > { %3026 = vmatprep.subr.bf16.mxu0 %v1855_v8 }
 0x3ab   : > { %3007 = vmatpush3.bf16.msra.mxu1 %v1778_v34 }
 0x3ac   : > { %3032 = vmatprep.subr.bf16.mxu1 %v1925_v38 }
 0x3ad   : > { %3027 = vmatpush3.bf16.msra.mxu0 %v1855_v8 }
 0x3ae   : > { %3009 = vmatmul.mubr.msk.bf16.vlgmr.msra.gmra.mrb[32].mxu1 %vm3347_vm4, %v3698_v59  ;;  %v1928_v59 = vpack.c.bf16 %v2435_v62, %v2434_v49 }
 0x3af   : > { %3033 = vmatpush3.bf16.msra.mxu1 %v1925_v38  ;;  %3048 = vmatprep.mubr.msk.bf16.mxu1 %vm3354_vm5, %v2445_v58  ;;  %v2438_v58 = vld [vmem:[%s4368_s6 + $0x8d0] sm:$0xff] }
 0x3b0   : > { %3029 = vmatmul.mubr.bf16.vlgmr.msra.gmra.mrb[36].mxu0 %v3074_v1  ;;  %3034 = vmatprep.subr.bf16.mxu1 %v1926_v42  ;;  %v2437_v1 = vld [vmem:[%s4368_s6 + $0x8c8] sm:$0xff]  ;;  %v1930_v55 = vpack.c.bf16 %v2439_v54, %v2438_v58 }
 0x3b1   : > { %v1929_v46 = vpack.c.bf16 %v2437_v1, %v2436_v41 }
 0x3b3   : > { %3035 = vmatpush3.bf16.msra.mxu1 %v1926_v42 }
 0x3b4   : > { %3036 = vmatprep.subr.bf16.mxu1 %v1927_v47 }
 0x3b7   : > { %3037 = vmatpush3.bf16.msra.mxu1 %v1927_v47 }
 0x3b8   : > { %3038 = vmatprep.subr.bf16.mxu1 %v1928_v59 }
 0x3bb   : > { %3039 = vmatpush3.bf16.msra.mxu1 %v1928_v59 }
 0x3bc   : > { %3040 = vmatprep.subr.bf16.mxu1 %v1929_v46 }
 0x3bf   : > { %3041 = vmatpush3.bf16.msra.mxu1 %v1929_v46 }
 0x3c0   : > { %3042 = vmatprep.subr.bf16.mxu1 %v1930_v55 }
 0x3c3   : > { %3043 = vmatpush3.bf16.msra.mxu1 %v1930_v55 }
 0x3c4   : > { %3044 = vmatprep.subr.bf16.mxu1 %v1931_v0 }
 0x3c7   : > { %3045 = vmatpush3.bf16.msra.mxu1 %v1931_v0 }
 0x3c8   : > { %3046 = vmatprep.subr.bf16.mxu1 %v1932_v7 }
 0x3cb   : > { %3047 = vmatpush3.bf16.msra.mxu1 %v1932_v7 }
 0x3ce   : > { %3049 = vmatmul.mubr.msk.bf16.vlgmr.msra.gmra.mrb[36].mxu1 %vm3354_vm5, %v3747_v50 }
 0x421   : > { %v2890_v6 = vpop.f32.mrb[20].mxu1 }
 0x422   : > { %v1366_v28 = vpop.f32.mrb[21].mxu1 }
 0x423   : > { %v2891_v52 = vpop.f32.mrb[22].mxu1  ;;  %v2910_v9 = vpop.f32.mrb[24].mxu0 }
 0x424   : > { %v1423_v37 = vadd.f32 %v2910_v9, %v2890_v6  ;;  %v1369_v43 = vpop.f32.mrb[23].mxu1  ;;  %v1414_v51 = vpop.f32.mrb[25].mxu0 }
 0x425   : > { %v1415_v18 = vadd.f32 %v1414_v51, %v1366_v28  ;;  %v2911_v17 = vpop.f32.mrb[26].mxu0 }
 0x426   : > { %v1417_v33 = vpop.f32.mrb[27].mxu0 }
 0x427   : > { %v1418_v53 = vadd.f32 %v1417_v33, %v1369_v43 }
 0x441   : > { %v2930_v12 = vpop.f32.mrb[24].mxu1 }
 0x442   : > { %v1511_v56 = vadd.f32 %v2930_v12, %v1423_v37  ;;  %v1495_v13 = vpop.f32.mrb[25].mxu1 }
 0x443   : > { %v1509_v16 = vadd.f32 %v1495_v13, %v1415_v18  ;;  %v2931_v19 = vpop.f32.mrb[26].mxu1  ;;  %v2950_v20 = vpop.f32.mrb[28].mxu0 }
 0x444   : > { %v1593_v22 = vadd.f32 %v2950_v20, %v1511_v56  ;;  %v1498_v3 = vpop.f32.mrb[27].mxu1  ;;  %v1577_v50 = vpop.f32.mrb[29].mxu0 }
 0x445   : > { %v1510_v23 = vadd.f32 %v1498_v3, %v1418_v53  ;;  %v1591_v61 = vadd.f32 %v1577_v50, %v1509_v16  ;;  %v2951_v5 = vpop.f32.mrb[30].mxu0 }
 0x446   : > { %v1580_v10 = vpop.f32.mrb[31].mxu0 }
 0x447   : > { %v1592_v48 = vadd.f32 %v1580_v10, %v1510_v23 }
 0x461   : > { %v2970_v57 = vpop.f32.mrb[28].mxu1 }
 0x462   : > { %v1671_v11 = vadd.f32 %v2970_v57, %v1593_v22  ;;  %v1655_v24 = vpop.f32.mrb[29].mxu1 }
 0x463   : > { %v1669_v25 = vadd.f32 %v1655_v24, %v1591_v61  ;;  %v2971_v26 = vpop.f32.mrb[30].mxu1  ;;  %v2990_v27 = vpop.f32.mrb[32].mxu0 }
 0x464   : > { %v1752_v29 = vadd.f32 %v2990_v27, %v1671_v11  ;;  %v1658_v30 = vpop.f32.mrb[31].mxu1  ;;  %v1736_v31 = vpop.f32.mrb[33].mxu0 }
 0x465   : > { %v1670_v32 = vadd.f32 %v1658_v30, %v1592_v48  ;;  %v1750_v34 = vadd.f32 %v1736_v31, %v1669_v25  ;;  %v2991_v35 = vpop.f32.mrb[34].mxu0 }
 0x466   : > { %v1739_v36 = vpop.f32.mrb[35].mxu0 }
 0x467   : > { %v1751_v8 = vadd.f32 %v1739_v36, %v1670_v32 }
 0x481   : > { %v3010_v38 = vpop.f32.mrb[32].mxu1 }
 0x482   : > { %v1829_v39 = vadd.f32 %v3010_v38, %v1752_v29  ;;  %v1813_v40 = vpop.f32.mrb[33].mxu1 }
 0x483   : > { %v1827_v42 = vadd.f32 %v1813_v40, %v1750_v34  ;;  %v3011_v44 = vpop.f32.mrb[34].mxu1  ;;  %v3030_v45 = vpop.f32.mrb[36].mxu0 }
 0x484   : > { %v1906_v47 = vadd.f32 %v3030_v45, %v1829_v39  ;;  %v1816_v49 = vpop.f32.mrb[35].mxu1  ;;  %v1890_v62 = vpop.f32.mrb[37].mxu0 }
 0x485   : > { %v1828_v59 = vadd.f32 %v1816_v49, %v1751_v8  ;;  %v1904_v41 = vadd.f32 %v1890_v62, %v1827_v42  ;;  %v3031_v1 = vpop.f32.mrb[38].mxu0 }
 0x486   : > { %v1893_v46 = vpop.f32.mrb[39].mxu0 }
 0x487   : > { %v1905_v58 = vadd.f32 %v1893_v46, %v1828_v59 }
 0x4a1   : > { %v3050_v54 = vpop.f32.mrb[36].mxu1 }
 0x4a2   : > { %v1983_v55 = vadd.f32 %v3050_v54, %v1906_v47  ;;  %v1967_v60 = vpop.f32.mrb[37].mxu1 }
 0x4a3   : > { %v1981_v63 = vadd.f32 %v1967_v60, %v1904_v41  ;;  %v3051_v0 = vpop.f32.mrb[38].mxu1 }
 0x4a4   : > { %v1986_v2 = vadd.f32 %v1983_v55, %v3843_v15  ;;  %v1970_v4 = vpop.f32.mrb[39].mxu1 }
 0x4a5   : > { %v1984_v7 = vadd.f32 %v1981_v63, %v3849_v21  ;;  %v1982_v6 = vadd.f32 %v1970_v4, %v1905_v58 }
 0x4a6   : > { %1989 = vst [vmem:[%s280_s25 + $0x10] sm:$0xff] %v1986_v2 }
 0x4a7   : > { %1987 = vst [vmem:[%s280_s25] sm:$0xff] %v1984_v7  ;;  %v1985_v28 = vadd.f32 %v1982_v6, %v3854_v14 }
 0x4a9   : > { %1988 = vst [vmem:[%s280_s25 + $0x8] sm:$0xff] %v1985_v28 }
 0x4aa PF: > { %s17_s24 = sadd.s32 1, %s3071_s24  }
 0x4ab   : > { %p14_p4 = scmp.ge.s32.totalorder %s17_s24, 4  }
 0x4ad   :  { %16 = sbr.rel (!%p14_p4) target bundleno = 1 (0x1), region = 100 }

// kernel: densenet_forward.6
= control target key start
LH: loop header
LB: loop body
LE: loop exit
PB: predicated region body
PF: predicated region fallthrough
CT: control target
= control target key end

     0   :  { %s3931_s24 = smov 0   ;;  %s5400_s0 = inlined_call_operand.vmem [shape: f32[112,128], index: 0, kind: input, shape index: {}]   ;;  %s5401_s1 = inlined_call_operand.vmem [shape: f32[2,1,128], index: 1, kind: input, shape index: {}]   ;;  %s5402_s2 = inlined_call_operand.vmem [shape: f32[2,1,128], index: 2, kind: input, shape index: {}]   ;;  %s5403_s3 = inlined_call_operand.vmem [shape: f32[2,128,128], index: 3, kind: input, shape index: {}]   ;;  %s5404_s4 = inlined_call_operand.vmem [shape: f32[2,1,128], index: 4, kind: input, shape index: {}]   ;;  %s5405_s5 = inlined_call_operand.vmem [shape: f32[2,1,128], index: 5, kind: input, shape index: {}]   ;;  %s5406_s6 = inlined_call_operand.vmem [shape: f32[18,128,128], index: 6, kind: input, shape index: {}]   ;;  %s5407_s7 = inlined_call_operand.vmem [shape: f32[112,128], index: 7, kind: output, shape index: {}]  }
   0x1 LB: > { %s2578_s25 = sadd.s32 4294967295, %s3887_s24   ;;  %p2582_p0 = scmp.ge.s32.totalorder %s3887_s24, 1  ;;  %s3887_s24 = sphi %s3931_s24, %s17_s24  }
   0x2   : > { %p238_p1 = scmp.lt.s32.totalorder %s3887_s24, 3 }
   0x4   : > { %p239_p2 = pnand %p2582_p0, %p238_p1 }
   0x5   : > { %v330_v0 = vld [vmem:[%s5403_s3] sm:$0xff] (!%p239_p2)  ;;  %v331_v1 = vld [vmem:[%s5403_s3 + $0x8] sm:$0xff] (!%p239_p2)  ;;  %v332_v2 = vld [vmem:[%s5403_s3 + $0x10] sm:$0xff] (!%p239_p2)  ;;  %s270_s9 = smul.u32 (!%p239_p2), 7, %s2578_s25  ;;  %vm485_vm1 = vcmask (!%p239_p2), 1040384   ;;  %vm692_vm4 = vcmask (!%p239_p2), 1046528  }
   0x6   : > { %242 = sbr.rel (%p239_p2) target bundleno = 1457 (0x5b1), region = 48  ;;  %v350_v3 = vpack.c.bf16 (!%p239_p2), %v331_v1, %v330_v0  ;;  %v333_v4 = vld [vmem:[%s5403_s3 + $0x18] sm:$0xff] (!%p239_p2)  ;;  %v334_v6 = vld [vmem:[%s5403_s3 + $0x20] sm:$0xff] (!%p239_p2)  ;;  %v335_v7 = vld [vmem:[%s5403_s3 + $0x28] sm:$0xff] (!%p239_p2) }
   0x7   : > { %v351_v5 = vpack.c.bf16 (!%p239_p2), %v333_v4, %v332_v2  ;;  %p271_p3 = scmp.lt.s32.totalorder (!%p239_p2), %s270_s9, 13  ;;  %v352_v8 = vpack.c.bf16 (!%p239_p2), %v335_v7, %v334_v6  ;;  %v336_v9 = vld [vmem:[%s5403_s3 + $0x30] sm:$0xff] (!%p239_p2)  ;;  %v337_v10 = vld [vmem:[%s5403_s3 + $0x38] sm:$0xff] (!%p239_p2)  ;;  %v2586_v11 = vld [vmem:[%s5401_s1] ss:$0 sm:$0xff] (!%p239_p2) }
   0x8   : > { %3320 = vmatprep.subr.bf16.mxu1 (!%p239_p2), %v350_v3  ;;  %v2587_v14 = vld [vmem:[%s5402_s2] ss:$0 sm:$0xff] (!%p239_p2)  ;;  %v353_v15 = vpack.c.bf16 (!%p239_p2), %v337_v10, %v336_v9  ;;  %v339_v19 = vld [vmem:[%s5403_s3 + $0x48] sm:$0xff] (!%p239_p2)  ;;  %v340_v25 = vld [vmem:[%s5403_s3 + $0x50] sm:$0xff] (!%p239_p2) }
   0x9   : > { %3321 = vmatpush3.bf16.msra.mxu1 (!%p239_p2), %v350_v3  ;;  %v338_v18 = vld [vmem:[%s5403_s3 + $0x40] sm:$0xff] (!%p239_p2)  ;;  %v341_v26 = vld [vmem:[%s5403_s3 + $0x58] sm:$0xff] (!%p239_p2)  ;;  %v343_v34 = vld [vmem:[%s5403_s3 + $0x68] sm:$0xff] (!%p239_p2) }
   0xa   : > { %3322 = vmatprep.subr.bf16.mxu1 (!%p239_p2), %v351_v5  ;;  %v354_v22 = vpack.c.bf16 (!%p239_p2), %v339_v19, %v338_v18  ;;  %v355_v30 = vpack.c.bf16 (!%p239_p2), %v341_v26, %v340_v25  ;;  %v342_v33 = vld [vmem:[%s5403_s3 + $0x60] sm:$0xff] (!%p239_p2)  ;;  %v344_v40 = vld [vmem:[%s5403_s3 + $0x70] sm:$0xff] (!%p239_p2)  ;;  %v345_v41 = vld [vmem:[%s5403_s3 + $0x78] sm:$0xff] (!%p239_p2) }
   0xb   : > { %v356_v39 = vpack.c.bf16 (!%p239_p2), %v343_v34, %v342_v33  ;;  %v357_v47 = vpack.c.bf16 (!%p239_p2), %v345_v41, %v344_v40  ;;  %v2590_v48 = vld [vmem:[%s5406_s6 + $0x80] sm:$0xff] (!%p239_p2)  ;;  %v2591_v49 = vld [vmem:[%s5406_s6 + $0x88] sm:$0xff] (!%p239_p2)  ;;  %v2592_v56 = vld [vmem:[%s5406_s6 + $0x90] sm:$0xff] (!%p239_p2)  ;;  %v3889_v33 = vmov (!%p239_p2), 0.0  }
   0xc   : > { %v542_v55 = vpack.c.bf16 (!%p239_p2), %v2591_v49, %v2590_v48  ;;  %v2593_v57 = vld [vmem:[%s5406_s6 + $0x98] sm:$0xff] (!%p239_p2)  ;;  %v2594_v62 = vld [vmem:[%s5406_s6 + $0xa0] sm:$0xff] (!%p239_p2)  ;;  %v2595_v63 = vld [vmem:[%s5406_s6 + $0xa8] sm:$0xff] (!%p239_p2) }
   0xd   : > { %s5413_s9 = smov (!%p271_p3, %s270_s9), 13  ;;  %3323 = vmatpush3.bf16.msra.mxu1 %v351_v5  ;;  %v543_v61 = vpack.c.bf16 %v2593_v57, %v2592_v56  ;;  %v544_v1 = vpack.c.bf16 %v2595_v63, %v2594_v62  ;;  %v2596_v2 = vld [vmem:[%s5406_s6 + $0xb0] sm:$0xff]  ;;  %v2597_v3 = vld [vmem:[%s5406_s6 + $0xb8] sm:$0xff]  ;;  %v2598_v6 = vld [vmem:[%s5406_s6 + $0xc0] sm:$0xff] }
   0xe   : > { %s2583_s20 = sshll.u32 %s5413_s9, 3  ;;  %3324 = vmatprep.subr.bf16.mxu1 %v352_v8  ;;  %v545_v5 = vpack.c.bf16 %v2597_v3, %v2596_v2  ;;  %v2599_v7 = vld [vmem:[%s5406_s6 + $0xc8] sm:$0xff]  ;;  %v2600_v9 = vld [vmem:[%s5406_s6 + $0xd0] sm:$0xff]  ;;  %v2601_v10 = vld [vmem:[%s5406_s6 + $0xd8] sm:$0xff] }
   0xf   : > { %s3974_s26 = scalar_lea.vmem %s5400_s0, %s2583_s20  ;;  %v493_v18 = vld [vmem:[%s5406_s6] sm:$0xff]  ;;  %v494_v19 = vld [vmem:[%s5406_s6 + $0x8] sm:$0xff]  ;;  %v495_v41 = vld [vmem:[%s5406_s6 + $0x10] sm:$0xff]  ;;  %s280_s23 = scalar_lea.vmem %s5407_s7, %s2583_s20 }
  0x10   : > { %v283_v12 = vld [vmem:[%s3974_s26] sm:$0xff]  ;;  %v284_v13 = vld [vmem:[%s3974_s26 + $0x8] sm:$0xff]  ;;  %v285_v28 = vld [vmem:[%s3974_s26 + $0x10] sm:$0xff] }
  0x11   : > { %v302_v16 = vmul.f32 %v2586_v11, %v283_v12  ;;  %v303_v17 = vmul.f32 %v2586_v11, %v284_v13  ;;  %3325 = vmatpush3.bf16.msra.mxu1 %v352_v8  ;;  %v286_v29 = vld [vmem:[%s3974_s26 + $0x18] sm:$0xff]  ;;  %v287_v31 = vld [vmem:[%s3974_s26 + $0x20] sm:$0xff]  ;;  %v288_v32 = vld [vmem:[%s3974_s26 + $0x28] sm:$0xff]  ;;  %v304_v35 = vmul.f32 %v2586_v11, %v285_v28  ;;  %v546_v8 = vpack.c.bf16 %v2599_v7, %v2598_v6 }
  0x12   : > { %3326 = vmatprep.subr.bf16.mxu1 %v353_v15  ;;  %v305_v36 = vmul.f32 %v2586_v11, %v286_v29  ;;  %v306_v37 = vmul.f32 %v2586_v11, %v287_v31  ;;  %v307_v38 = vmul.f32 %v2586_v11, %v288_v32  ;;  %v289_v46 = vld [vmem:[%s3974_s26 + $0x30] sm:$0xff]  ;;  %v2602_v12 = vld [vmem:[%s5406_s6 + $0xe0] sm:$0xff]  ;;  %v2603_v13 = vld [vmem:[%s5406_s6 + $0xe8] sm:$0xff] }
  0x13   : > { %v316_v20 = vadd.f32 %v2587_v14, %v302_v16  ;;  %v317_v21 = vadd.f32 %v2587_v14, %v303_v17  ;;  %v318_v42 = vadd.f32 %v2587_v14, %v304_v35  ;;  %v308_v52 = vmul.f32 %v2586_v11, %v289_v46  ;;  %v2605_v16 = vld [vmem:[%s5406_s6 + $0xf8] sm:$0xff]  ;;  %v2589_v25 = vld [vmem:[%s5405_s5] ss:$0 sm:$0xff]  ;;  %vm2606_vm2 = vmneg %vm485_vm1 }
  0x14   : > { %v319_v43 = vadd.f32 %v2587_v14, %v305_v36  ;;  %v320_v44 = vadd.f32 %v2587_v14, %v306_v37  ;;  %v321_v45 = vadd.f32 %v2587_v14, %v307_v38  ;;  %v547_v11 = vpack.c.bf16 %v2601_v10, %v2600_v9  ;;  %v497_v10 = vld [vmem:[%s5406_s6 + $0x20] sm:$0xff]  ;;  %vm4174_vm3 = vmpackc.low %vm2606_vm2, %vm2606_vm2 }
  0x15   : > { %v323_v23 = vmax.f32 %v316_v20, 0.0  ;;  %v324_v24 = vmax.f32 %v317_v21, 0.0  ;;  %3327 = vmatpush3.bf16.msra.mxu1 %v353_v15  ;;  %v325_v50 = vmax.f32 %v318_v42, 0.0  ;;  %v322_v59 = vadd.f32 %v2587_v14, %v308_v52  ;;  %v2604_v15 = vld [vmem:[%s5406_s6 + $0xf0] sm:$0xff]  ;;  %v496_v42 = vld [vmem:[%s5406_s6 + $0x18] sm:$0xff]  ;;  %vm4257_vm5 = vmpackc.low %vm692_vm4, %vm692_vm4 }
  0x16   : > { %3328 = vmatprep.subr.bf16.mxu1 %v354_v22  ;;  %v326_v51 = vmax.f32 %v319_v43, 0.0  ;;  %v327_v53 = vmax.f32 %v320_v44, 0.0  ;;  %v328_v54 = vmax.f32 %v321_v45, 0.0  ;;  %v548_v14 = vpack.c.bf16 %v2603_v13, %v2602_v12 }
  0x17   : > { %v346_v27 = vpack.c.bf16 %v324_v24, %v323_v23  ;;  %v329_v0 = vmax.f32 %v322_v59, 0.0  ;;  %v549_v17 = vpack.c.bf16 %v2605_v16, %v2604_v15  ;;  %v4064_v20 = vpack.c.bf16 %v494_v19, %v493_v18  ;;  %v2588_v23 = vld [vmem:[%s5404_s4] ss:$0 sm:$0xff] }
  0x18   : > { %v347_v58 = vpack.c.bf16 %v326_v51, %v325_v50  ;;  %v348_v60 = vpack.c.bf16 %v328_v54, %v327_v53  ;;  %v290_v21 = vlaneseq  ;;  %v514_v51 = vpack.c.bf16 %v496_v42, %v495_v41 }
  0x19   : > { %3336 = vmatprep.mubr.bf16.mxu1 %v346_v27  ;;  %3329 = vmatpush3.bf16.msra.mxu1 %v354_v22  ;;  %v349_v4 = vpack.c.bf16 %v329_v0, %v329_v0 }
  0x1a   : > { %3330 = vmatprep.subr.bf16.mxu1 %v355_v30  ;;  %v291_v22 = vshrl.u32 %v290_v21, 7 }
  0x1c   : > { %vm292_vm0 = vcmp.lt.s32.totalorder %v291_v22, 7 }
  0x1d   : > { %3331 = vmatpush3.bf16.msra.mxu1 %v355_v30  ;;  %v4074_v34 = vsel %vm292_vm0, 1.0, %v3889_v33 }
  0x1e   : > { %3332 = vmatprep.subr.bf16.mxu1 %v356_v39 }
  0x21   : > { %3333 = vmatpush3.bf16.msra.mxu1 %v356_v39 }
  0x22   : > { %3334 = vmatprep.subr.bf16.mxu1 %v357_v47 }
  0x25   : > { %3335 = vmatpush3.bf16.msra.mxu1 %v357_v47 }
  0x26   : > { %3344 = vmatprep.subr.bf16.mxu1 %v542_v55 }
  0x28   : > { %3337 = vmatmul.mubr.bf16.vlgmr.msra.gmra.mrb[0].mxu1 %v347_v58 }
  0x29   : > { %3340 = vmatprep.mubr.bf16.mxu1 %v348_v60  ;;  %3345 = vmatpush3.bf16.msra.mxu1 %v542_v55 }
  0x2a   : > { %3346 = vmatprep.subr.bf16.mxu1 %v543_v61 }
  0x2d   : > { %3347 = vmatpush3.bf16.msra.mxu1 %v543_v61 }
  0x2e   : > { %3348 = vmatprep.subr.bf16.mxu1 %v544_v1 }
  0x30   : > { %3341 = vmatmul.mubr.bf16.gmra.mrb[4].mxu1 %v349_v4 }
  0x31   : > { %3349 = vmatpush3.bf16.msra.mxu1 %v544_v1 }
  0x32   : > { %3350 = vmatprep.subr.bf16.mxu1 %v545_v5 }
  0x35   : > { %3351 = vmatpush3.bf16.msra.mxu1 %v545_v5 }
  0x36   : > { %3352 = vmatprep.subr.bf16.mxu1 %v546_v8 }
  0x39   : > { %3353 = vmatpush3.bf16.msra.mxu1 %v546_v8 }
  0x3a   : > { %3354 = vmatprep.subr.bf16.mxu1 %v547_v11 }
  0x3d   : > { %3355 = vmatpush3.bf16.msra.mxu1 %v547_v11  ;;  %v498_v11 = vld [vmem:[%s5406_s6 + $0x28] sm:$0xff] }
  0x3e   : > { %3356 = vmatprep.subr.bf16.mxu1 %v548_v14  ;;  %v515_v19 = vpack.c.bf16 %v498_v11, %v497_v10  ;;  %v2631_v10 = vld [vmem:[%s5406_s6 + $0x128] sm:$0xff] }
  0x41   : > { %3357 = vmatpush3.bf16.msra.mxu1 %v548_v14 }
  0x42   : > { %3358 = vmatprep.subr.bf16.mxu1 %v549_v17 }
  0x45   : > { %3359 = vmatpush3.bf16.msra.mxu1 %v549_v17  ;;  %v4132_v17 = vrot.slane %v3889_v33, 7 }
  0x46   : > { %3368 = vmatprep.subr.bf16.mxu1 %v4064_v20 }
  0xfb   : > { %v3338_v24 = vpop.f32.mrb[0].mxu1 }
  0xfc   : > { %v431_v26 = vmul.f32 %v3338_v24, %v2588_v23  ;;  %v392_v27 = vpop.f32.mrb[1].mxu1 }
  0xfd   : > { %v429_v28 = vmul.f32 %v2588_v23, %v392_v27  ;;  %v3339_v29 = vpop.f32.mrb[2].mxu1 }
  0xfe   : > { %v445_v30 = vadd.f32 %v2589_v25, %v431_v26  ;;  %v432_v31 = vmul.f32 %v3339_v29, %v2588_v23  ;;  %v395_v32 = vpop.f32.mrb[3].mxu1  ;;  %v500_v26 = vld [vmem:[%s5406_s6 + $0x38] sm:$0xff] }
  0xff   : > { %v443_v35 = vadd.f32 %v2589_v25, %v429_v28  ;;  %v430_v36 = vmul.f32 %v2588_v23, %v395_v32 }
 0x100   : > { %v452_v37 = vmax.f32 %v445_v30, 0.0  ;;  %v446_v38 = vadd.f32 %v2589_v25, %v432_v31 }
 0x101   : > { %v450_v39 = vmax.f32 %v443_v35, 0.0  ;;  %v444_v40 = vadd.f32 %v2589_v25, %v430_v36 }
 0x102   : > { %v4083_v43 = vmul.f32 %v4074_v34, %v452_v37  ;;  %v453_v44 = vmax.f32 %v446_v38, 0.0  ;;  %v3046_v37 = vld [vmem:[%s5406_s6 + $0x860] sm:$0xff] }
 0x103   : > { %v4086_v45 = vmul.f32 %v4074_v34, %v450_v39  ;;  %v451_v46 = vmax.f32 %v444_v40, 0.0  ;;  %v3342_v47 = vpop.f32.mrb[4].mxu1 }
 0x104   : > { %v4089_v48 = vmul.f32 %v4074_v34, %v453_v44  ;;  %v435_v49 = vmul.f32 %v3342_v47, %v2588_v23  ;;  %v408_v50 = vpop.f32.mrb[5].mxu1  ;;  %v474_v52 = vrot.slane %v4083_v43, 7  ;;  %v681_v57 = vrot.slane %v4083_v43, 1  ;;  %v501_v44 = vld [vmem:[%s5406_s6 + $0x40] sm:$0xff] }
 0x105   : > { %v4093_v53 = vmul.f32 %v4074_v34, %v451_v46  ;;  %v433_v54 = vmul.f32 %v2588_v23, %v408_v50  ;;  %v3343_v55 = vpop.f32.mrb[6].mxu1  ;;  %v538_v56 = vpack.c.bf16 %v4086_v45, %v3889_v33  ;;  %v472_v4 = vrot.slane %v4086_v45, 7  ;;  %v502_v46 = vld [vmem:[%s5406_s6 + $0x48] sm:$0xff] }
 0x106   : > { %v449_v58 = vadd.f32 %v2589_v25, %v435_v49  ;;  %v411_v59 = vpop.f32.mrb[7].mxu1  ;;  %v475_v60 = vrot.slane %v4089_v48, 7  ;;  %v682_v61 = vrot.slane %v4089_v48, 1  ;;  %v679_v21 = vrot.slane %v4086_v45, 1  ;;  %v504_v55 = vld [vmem:[%s5406_s6 + $0x58] sm:$0xff] }
 0x107   : > { %v473_v62 = vrot.slane %v4093_v53, 7  ;;  %v680_v63 = vrot.slane %v4093_v53, 1  ;;  %v447_v0 = vadd.f32 %v2589_v25, %v433_v54  ;;  %v434_v1 = vmul.f32 %v2588_v23, %v411_v59  ;;  %3360 = vmatprep.mubr.bf16.mxu1 %v538_v56  ;;  %v503_v54 = vld [vmem:[%s5406_s6 + $0x50] sm:$0xff] }
 0x108   : > { %v456_v2 = vmax.f32 %v449_v58, 0.0  ;;  %v4104_v3 = vpack.c.bf16 %v4083_v43, %v4093_v53  ;;  %v4107_v5 = vpack.c.bf16 %v475_v60, %v474_v52  ;;  %v4123_v13 = vpack.c.bf16 %v682_v61, %v681_v57  ;;  %v506_v58 = vld [vmem:[%s5406_s6 + $0x68] sm:$0xff] }
 0x109   : > { %v4109_v6 = vpack.c.bf16 %v474_v52, %v473_v62  ;;  %v4111_v7 = vpack.c.bf16 %v681_v57, %v680_v63  ;;  %v454_v8 = vmax.f32 %v447_v0, 0.0  ;;  %v448_v9 = vadd.f32 %v2589_v25, %v434_v1  ;;  %v499_v25 = vld [vmem:[%s5406_s6 + $0x30] sm:$0xff]  ;;  %v505_v57 = vld [vmem:[%s5406_s6 + $0x60] sm:$0xff]  ;;  %v2627_v0 = vld [vmem:[%s5406_s6 + $0x108] sm:$0xff] }
 0x10a   : > { %v4120_v12 = vmul.f32 %v4074_v34, %v456_v2  ;;  %3361 = vmatmul.mubr.bf16.vlgmr.msra.gmra.mrb[8].mxu1 %v4104_v3  ;;  %v4125_v14 = vpack.c.bf16 %v473_v62, %v472_v4  ;;  %v921_v18 = vpack.c.bf16 %v4093_v53, %v4086_v45  ;;  %v922_v23 = vpack.c.bf16 %v4089_v48, %v4083_v43  ;;  %v2628_v2 = vld [vmem:[%s5406_s6 + $0x110] sm:$0xff]  ;;  %v2703_v45 = vld [vmem:[%s5406_s6 + $0x268] sm:$0xff] }
 0x10b   : > { %v4128_v15 = vmul.f32 %v4074_v34, %v454_v8  ;;  %v455_v16 = vmax.f32 %v448_v9, 0.0  ;;  %3369 = vmatpush3.bf16.msra.mxu1 %v4064_v20  ;;  %v4159_v29 = vpack.c.bf16 %v680_v63, %v679_v21  ;;  %v516_v38 = vpack.c.bf16 %v500_v26, %v499_v25  ;;  %v2626_v63 = vld [vmem:[%s5406_s6 + $0x100] sm:$0xff]  ;;  %v2633_v25 = vld [vmem:[%s5406_s6 + $0x138] sm:$0xff] }
 0x10c   : > { %3370 = vmatprep.subr.bf16.mxu1 %v514_v51  ;;  %v4138_v22 = vrot.slane %v4120_v12, 7  ;;  %v4162_v30 = vrot.slane %v4120_v12, 1  ;;  %v2609_v42 = vpack.c.bf16 %v472_v4, %v4132_v17  ;;  %v517_v52 = vpack.c.bf16 %v502_v46, %v501_v44  ;;  %v2629_v4 = vld [vmem:[%s5406_s6 + $0x118] sm:$0xff]  ;;  %v2630_v9 = vld [vmem:[%s5406_s6 + $0x120] sm:$0xff] }
 0x10d   : > { %v4143_v24 = vmul.f32 %v4074_v34, %v455_v16  ;;  %v4147_v20 = vpack.c.bf16 %v4128_v15, %v4089_v48  ;;  %v476_v27 = vrot.slane %v4128_v15, 7  ;;  %v683_v28 = vrot.slane %v4128_v15, 1  ;;  %v2637_v46 = vld [vmem:[%s5406_s6 + $0x158] sm:$0xff] }
 0x10e   : > { %v518_v56 = vpack.c.bf16 %v504_v55, %v503_v54  ;;  %v519_v59 = vpack.c.bf16 %v506_v58, %v505_v57  ;;  %v721_v1 = vpack.c.bf16 %v2627_v0, %v2626_v63  ;;  %v722_v8 = vpack.c.bf16 %v2629_v4, %v2628_v2  ;;  %v2638_v54 = vld [vmem:[%s5406_s6 + $0x160] sm:$0xff]  ;;  %v2639_v55 = vld [vmem:[%s5406_s6 + $0x168] sm:$0xff]  ;;  %v2640_v57 = vld [vmem:[%s5406_s6 + $0x170] sm:$0xff] }
 0x10f   : > { %3371 = vmatpush3.bf16.msra.mxu1 %v514_v51  ;;  %3364 = vmatprep.mubr.bf16.mxu1 %v4147_v20  ;;  %v541_v31 = vpack.c.bf16 %v4143_v24, %v4143_v24  ;;  %v4167_v32 = vpack.c.bf16 %v476_v27, %v475_v60  ;;  %v4170_v35 = vrot.slane %v4143_v24, 7  ;;  %v4172_v36 = vpack.c.bf16 %v683_v28, %v682_v61  ;;  %v507_v60 = vld [vmem:[%s5406_s6 + $0x70] sm:$0xff]  ;;  %v508_v61 = vld [vmem:[%s5406_s6 + $0x78] sm:$0xff]  ;;  %v2658_v2 = vld [vmem:[%s5406_s6 + $0x1a0] sm:$0xff] }
 0x110   : > { %3372 = vmatprep.subr.bf16.mxu1 %v515_v19  ;;  %v4179_v39 = vrot.slane %v4143_v24, 1  ;;  %v923_v40 = vpack.c.bf16 %v4143_v24, %v4128_v15  ;;  %v1222_v41 = vpack.c.bf16 %v4120_v12, %v4143_v24  ;;  %v520_v62 = vpack.c.bf16 %v508_v61, %v507_v60  ;;  %v2641_v58 = vld [vmem:[%s5406_s6 + $0x178] sm:$0xff]  ;;  %v2654_v60 = vld [vmem:[%s5406_s6 + $0x180] sm:$0xff]  ;;  %v2655_v61 = vld [vmem:[%s5406_s6 + $0x188] sm:$0xff] }
 0x111   : > { %v4193_v47 = vpack.c.bf16 %v4170_v35, %v476_v27  ;;  %v2763_v49 = vpack.c.bf16 %v4138_v22, %v4170_v35  ;;  %v723_v11 = vpack.c.bf16 %v2631_v10, %v2630_v9  ;;  %v4247_v16 = vrot.slane %v3889_v33, 1  ;;  %v2656_v63 = vld [vmem:[%s5406_s6 + $0x190] sm:$0xff]  ;;  %v2657_v0 = vld [vmem:[%s5406_s6 + $0x198] sm:$0xff]  ;;  %v2659_v4 = vld [vmem:[%s5406_s6 + $0x1a8] sm:$0xff] }
 0x112   : > { %3365 = vmatmul.mubr.bf16.gmra.mrb[12].mxu1 %v541_v31  ;;  %v4198_v50 = vpack.c.bf16 %v4179_v39, %v683_v28  ;;  %v2809_v51 = vpack.c.bf16 %v4162_v30, %v4179_v39  ;;  %v2624_v26 = vpack.c.bf16 %v4170_v35, %v4170_v35  ;;  %v2660_v9 = vld [vmem:[%s5406_s6 + $0x1b0] sm:$0xff]  ;;  %v2661_v10 = vld [vmem:[%s5406_s6 + $0x1b8] sm:$0xff]  ;;  %v924_v43 = vpack.c.bf16 %v4120_v12, %v4120_v12  ;;  %v2714_v15 = vld [vmem:[%s5406_s6 + $0x2c0] sm:$0xff] }
 0x113   : > { %3373 = vmatpush3.bf16.msra.mxu1 %v515_v19  ;;  %3384 = vmatprep.mubr.msk.bf16.mxu1 %vm4174_vm3, %v2609_v42  ;;  %v2632_v19 = vld [vmem:[%s5406_s6 + $0x130] sm:$0xff]  ;;  %v2643_v31 = vpack.c.bf16 %v679_v21, %v4247_v16  ;;  %v2635_v42 = vld [vmem:[%s5406_s6 + $0x148] sm:$0xff]  ;;  %v2778_v35 = vld [vmem:[%s5406_s6 + $0x3c0] sm:$0xff]  ;;  %v3890_v24 = vmov 0.0|0.0  }
 0x114   : > { %3374 = vmatprep.subr.bf16.mxu1 %v516_v38  ;;  %v724_v28 = vpack.c.bf16 %v2633_v25, %v2632_v19  ;;  %v2636_v21 = vld [vmem:[%s5406_s6 + $0x150] sm:$0xff]  ;;  %v828_v19 = vpack.c.bf16 %v2661_v10, %v2660_v9  ;;  %v2662_v25 = vld [vmem:[%s5406_s6 + $0x1c0] sm:$0xff]  ;;  %v2701_v10 = vld [vmem:[%s5406_s6 + $0x258] sm:$0xff] }
 0x115   : > { %v2700_v9 = vld [vmem:[%s5406_s6 + $0x250] sm:$0xff]  ;;  %v2795_v12 = vld [vmem:[%s5406_s6 + $0x448] sm:$0xff] }
 0x117   : > { %3375 = vmatpush3.bf16.msra.mxu1 %v516_v38  ;;  %v2634_v38 = vld [vmem:[%s5406_s6 + $0x140] sm:$0xff] }
 0x118   : > { %3376 = vmatprep.subr.bf16.mxu1 %v517_v52  ;;  %v725_v44 = vpack.c.bf16 %v2635_v42, %v2634_v38  ;;  %v2665_v38 = vld [vmem:[%s5406_s6 + $0x1d8] sm:$0xff] }
 0x11b   : > { %3377 = vmatpush3.bf16.msra.mxu1 %v517_v52  ;;  %v726_v52 = vpack.c.bf16 %v2637_v46, %v2636_v21  ;;  %v2668_v46 = vld [vmem:[%s5406_s6 + $0x1f0] sm:$0xff] }
 0x11c   : > { %3378 = vmatprep.subr.bf16.mxu1 %v518_v56 }
 0x11f   : > { %3379 = vmatpush3.bf16.msra.mxu1 %v518_v56  ;;  %v727_v56 = vpack.c.bf16 %v2639_v55, %v2638_v54  ;;  %v2690_v55 = vld [vmem:[%s5406_s6 + $0x200] sm:$0xff] }
 0x120   : > { %3380 = vmatprep.subr.bf16.mxu1 %v519_v59 }
 0x123   : > { %3381 = vmatpush3.bf16.msra.mxu1 %v519_v59  ;;  %v728_v59 = vpack.c.bf16 %v2641_v58, %v2640_v57  ;;  %v2692_v58 = vld [vmem:[%s5406_s6 + $0x210] sm:$0xff] }
 0x124   : > { %3382 = vmatprep.subr.bf16.mxu1 %v520_v62 }
 0x127   : > { %3383 = vmatpush3.bf16.msra.mxu1 %v520_v62  ;;  %v825_v62 = vpack.c.bf16 %v2655_v61, %v2654_v60  ;;  %v2694_v61 = vld [vmem:[%s5406_s6 + $0x220] sm:$0xff] }
 0x128   : > { %3392 = vmatprep.subr.bf16.mxu1 %v721_v1 }
 0x12a   : > { %3385 = vmatmul.mubr.msk.bf16.vlgmr.msra.gmra.mrb[8].mxu1 %vm4174_vm3, %v4109_v6 }
 0x12b   : > { %3388 = vmatprep.mubr.msk.bf16.mxu1 %vm4174_vm3, %v4167_v32  ;;  %3393 = vmatpush3.bf16.msra.mxu1 %v721_v1  ;;  %v826_v1 = vpack.c.bf16 %v2657_v0, %v2656_v63  ;;  %v2696_v0 = vld [vmem:[%s5406_s6 + $0x230] sm:$0xff] }
 0x12c   : > { %3394 = vmatprep.subr.bf16.mxu1 %v722_v8 }
 0x12f   : > { %3395 = vmatpush3.bf16.msra.mxu1 %v722_v8  ;;  %v827_v8 = vpack.c.bf16 %v2659_v4, %v2658_v2  ;;  %v2688_v2 = vpack.c.bf16 %v4138_v22, %v4138_v22  ;;  %v2699_v4 = vld [vmem:[%s5406_s6 + $0x248] sm:$0xff] }
 0x130   : > { %3396 = vmatprep.subr.bf16.mxu1 %v723_v11 }
 0x132   : > { %3389 = vmatmul.mubr.msk.bf16.gmra.mrb[16].mxu1 %vm4174_vm3, %v2624_v26  ;;  %v2663_v26 = vld [vmem:[%s5406_s6 + $0x1c8] sm:$0xff] }
 0x133   : > { %3397 = vmatpush3.bf16.msra.mxu1 %v723_v11  ;;  %3408 = vmatprep.mubr.msk.bf16.mxu1 %vm4257_vm5, %v2643_v31  ;;  %v2652_v11 = vpack.c.bf16 %v4179_v39, %v4179_v39  ;;  %v2664_v31 = vld [vmem:[%s5406_s6 + $0x1d0] sm:$0xff] }
 0x134   : > { %3398 = vmatprep.subr.bf16.mxu1 %v724_v28  ;;  %v830_v42 = vpack.c.bf16 %v2665_v38, %v2664_v31  ;;  %v2707_v31 = vld [vmem:[%s5406_s6 + $0x288] sm:$0xff] }
 0x137   : > { %3399 = vmatpush3.bf16.msra.mxu1 %v724_v28  ;;  %v829_v28 = vpack.c.bf16 %v2663_v26, %v2662_v25  ;;  %v2705_v25 = vld [vmem:[%s5406_s6 + $0x278] sm:$0xff] }
 0x138   : > { %3400 = vmatprep.subr.bf16.mxu1 %v725_v44 }
 0x13b   : > { %3401 = vmatpush3.bf16.msra.mxu1 %v725_v44  ;;  %v2666_v44 = vld [vmem:[%s5406_s6 + $0x1e0] sm:$0xff] }
 0x13c   : > { %3402 = vmatprep.subr.bf16.mxu1 %v726_v52 }
 0x13f   : > { %3403 = vmatpush3.bf16.msra.mxu1 %v726_v52  ;;  %v2669_v52 = vld [vmem:[%s5406_s6 + $0x1f8] sm:$0xff] }
 0x140   : > { %3404 = vmatprep.subr.bf16.mxu1 %v727_v56  ;;  %v832_v54 = vpack.c.bf16 %v2669_v52, %v2668_v46  ;;  %v2711_v46 = vld [vmem:[%s5406_s6 + $0x2a8] sm:$0xff] }
 0x143   : > { %3405 = vmatpush3.bf16.msra.mxu1 %v727_v56  ;;  %v2691_v56 = vld [vmem:[%s5406_s6 + $0x208] sm:$0xff] }
 0x144   : > { %3406 = vmatprep.subr.bf16.mxu1 %v728_v59  ;;  %v925_v57 = vpack.c.bf16 %v2691_v56, %v2690_v55  ;;  %v2713_v55 = vld [vmem:[%s5406_s6 + $0x2b8] sm:$0xff]  ;;  %v2716_v56 = vld [vmem:[%s5406_s6 + $0x2d0] sm:$0xff] }
 0x147   : > { %3407 = vmatpush3.bf16.msra.mxu1 %v728_v59  ;;  %v2693_v59 = vld [vmem:[%s5406_s6 + $0x218] sm:$0xff] }
 0x148   : > { %3416 = vmatprep.subr.bf16.mxu1 %v825_v62  ;;  %v926_v60 = vpack.c.bf16 %v2693_v59, %v2692_v58  ;;  %v2718_v59 = vld [vmem:[%s5406_s6 + $0x2e0] sm:$0xff] }
 0x14a   : > { %3409 = vmatmul.mubr.msk.bf16.vlgmr.msra.gmra.mrb[8].mxu1 %vm4257_vm5, %v4111_v7 }
 0x14b   : > { %3412 = vmatprep.mubr.msk.bf16.mxu1 %vm4257_vm5, %v4172_v36  ;;  %3417 = vmatpush3.bf16.msra.mxu1 %v825_v62  ;;  %v2695_v62 = vld [vmem:[%s5406_s6 + $0x228] sm:$0xff] }
 0x14c   : > { %3418 = vmatprep.subr.bf16.mxu1 %v826_v1  ;;  %v927_v63 = vpack.c.bf16 %v2695_v62, %v2694_v61  ;;  %v2720_v61 = vld [vmem:[%s5406_s6 + $0x2f0] sm:$0xff]  ;;  %v2721_v62 = vld [vmem:[%s5406_s6 + $0x2f8] sm:$0xff] }
 0x14f   : > { %3419 = vmatpush3.bf16.msra.mxu1 %v826_v1  ;;  %v2697_v1 = vld [vmem:[%s5406_s6 + $0x238] sm:$0xff] }
 0x150   : > { %3420 = vmatprep.subr.bf16.mxu1 %v827_v8 }
 0x152   : > { %3413 = vmatmul.mubr.msk.bf16.gmra.mrb[20].mxu1 %vm4257_vm5, %v2652_v11  ;;  %v930_v11 = vpack.c.bf16 %v2701_v10, %v2700_v9  ;;  %v2739_v9 = vld [vmem:[%s5406_s6 + $0x328] sm:$0xff] }
 0x153   : > { %3421 = vmatpush3.bf16.msra.mxu1 %v827_v8  ;;  %3432 = vmatprep.mubr.msk.bf16.mxu1 %vm4174_vm3, %v4125_v14  ;;  %v2667_v14 = vld [vmem:[%s5406_s6 + $0x1e8] sm:$0xff] }
 0x154   : > { %3422 = vmatprep.subr.bf16.mxu1 %v828_v19  ;;  %v831_v21 = vpack.c.bf16 %v2667_v14, %v2666_v44  ;;  %v2709_v44 = vld [vmem:[%s5406_s6 + $0x298] sm:$0xff] }
 0x157   : > { %3423 = vmatpush3.bf16.msra.mxu1 %v828_v19  ;;  %v2702_v19 = vld [vmem:[%s5406_s6 + $0x260] sm:$0xff] }
 0x158   : > { %3424 = vmatprep.subr.bf16.mxu1 %v829_v28  ;;  %v931_v53 = vpack.c.bf16 %v2703_v45, %v2702_v19  ;;  %v2741_v19 = vld [vmem:[%s5406_s6 + $0x338] sm:$0xff]  ;;  %v2732_v45 = vpack.c.bf16 %v4162_v30, %v4162_v30 }
 0x15b   : > { %3425 = vmatpush3.bf16.msra.mxu1 %v829_v28  ;;  %v2706_v28 = vld [vmem:[%s5406_s6 + $0x280] sm:$0xff] }
 0x15c   : > { %3426 = vmatprep.subr.bf16.mxu1 %v830_v42  ;;  %v1028_v38 = vpack.c.bf16 %v2707_v31, %v2706_v28  ;;  %v2746_v31 = vld [vmem:[%s5406_s6 + $0x360] sm:$0xff] }
 0x15f   : > { %3427 = vmatpush3.bf16.msra.mxu1 %v830_v42  ;;  %v2708_v42 = vld [vmem:[%s5406_s6 + $0x290] sm:$0xff] }
 0x160   : > { %3428 = vmatprep.subr.bf16.mxu1 %v831_v21  ;;  %v1029_v14 = vpack.c.bf16 %v2709_v44, %v2708_v42  ;;  %v2748_v42 = vld [vmem:[%s5406_s6 + $0x370] sm:$0xff]  ;;  %v2749_v44 = vld [vmem:[%s5406_s6 + $0x378] sm:$0xff] }
 0x163   : > { %3429 = vmatpush3.bf16.msra.mxu1 %v831_v21  ;;  %v2710_v21 = vld [vmem:[%s5406_s6 + $0x2a0] sm:$0xff] }
 0x164   : > { %3430 = vmatprep.subr.bf16.mxu1 %v832_v54  ;;  %v1030_v52 = vpack.c.bf16 %v2711_v46, %v2710_v21  ;;  %v2770_v21 = vld [vmem:[%s5406_s6 + $0x380] sm:$0xff]  ;;  %v2771_v46 = vld [vmem:[%s5406_s6 + $0x388] sm:$0xff] }
 0x167   : > { %3431 = vmatpush3.bf16.msra.mxu1 %v832_v54  ;;  %v2712_v54 = vld [vmem:[%s5406_s6 + $0x2b0] sm:$0xff] }
 0x168   : > { %3440 = vmatprep.subr.bf16.mxu1 %v925_v57  ;;  %v1031_v48 = vpack.c.bf16 %v2713_v55, %v2712_v54  ;;  %v2772_v54 = vld [vmem:[%s5406_s6 + $0x390] sm:$0xff]  ;;  %v2773_v55 = vld [vmem:[%s5406_s6 + $0x398] sm:$0xff] }
 0x16a   : > { %3433 = vmatmul.mubr.msk.bf16.vlgmr.msra.gmra.mrb[8].mxu1 %vm4174_vm3, %v4107_v5  ;;  %v928_v5 = vpack.c.bf16 %v2697_v1, %v2696_v0  ;;  %v2734_v0 = vld [vmem:[%s5406_s6 + $0x300] sm:$0xff]  ;;  %v2735_v1 = vld [vmem:[%s5406_s6 + $0x308] sm:$0xff] }
 0x16b   : > { %3436 = vmatprep.mubr.msk.bf16.mxu1 %vm4174_vm3, %v4193_v47  ;;  %3441 = vmatpush3.bf16.msra.mxu1 %v925_v57  ;;  %v2698_v47 = vld [vmem:[%s5406_s6 + $0x240] sm:$0xff]  ;;  %v2717_v57 = vld [vmem:[%s5406_s6 + $0x2d8] sm:$0xff] }
 0x16c   : > { %3442 = vmatprep.subr.bf16.mxu1 %v926_v60  ;;  %v929_v8 = vpack.c.bf16 %v2699_v4, %v2698_v47  ;;  %v1033_v58 = vpack.c.bf16 %v2717_v57, %v2716_v56  ;;  %v2737_v47 = vld [vmem:[%s5406_s6 + $0x318] sm:$0xff] }
 0x16d   : > { %v2777_v56 = vld [vmem:[%s5406_s6 + $0x3b8] sm:$0xff] }
 0x16f   : > { %3443 = vmatpush3.bf16.msra.mxu1 %v926_v60 }
 0x170   : > { %3444 = vmatprep.subr.bf16.mxu1 %v927_v63 }
 0x172   : > { %3437 = vmatmul.mubr.msk.bf16.gmra.mrb[24].mxu1 %vm4174_vm3, %v2688_v2  ;;  %v1126_v2 = vpack.c.bf16 %v2735_v1, %v2734_v0  ;;  %v2786_v1 = vld [vmem:[%s5406_s6 + $0x400] sm:$0xff] }
 0x173   : > { %3445 = vmatpush3.bf16.msra.mxu1 %v927_v63  ;;  %3456 = vmatprep.mubr.bf16.mxu1 %v921_v18  ;;  %v2704_v18 = vld [vmem:[%s5406_s6 + $0x270] sm:$0xff]  ;;  %v1035_v63 = vpack.c.bf16 %v2721_v62, %v2720_v61 }
 0x174   : > { %3446 = vmatprep.subr.bf16.mxu1 %v928_v5  ;;  %v932_v26 = vpack.c.bf16 %v2705_v25, %v2704_v18  ;;  %v2744_v25 = vld [vmem:[%s5406_s6 + $0x350] sm:$0xff] }
 0x175   : > { %v2784_v62 = vld [vmem:[%s5406_s6 + $0x3f0] sm:$0xff] }
 0x177   : > { %3447 = vmatpush3.bf16.msra.mxu1 %v928_v5  ;;  %v2736_v5 = vld [vmem:[%s5406_s6 + $0x310] sm:$0xff] }
 0x178   : > { %3448 = vmatprep.subr.bf16.mxu1 %v929_v8  ;;  %v1127_v4 = vpack.c.bf16 %v2737_v47, %v2736_v5  ;;  %v2788_v47 = vld [vmem:[%s5406_s6 + $0x410] sm:$0xff] }
 0x17b   : > { %3449 = vmatpush3.bf16.msra.mxu1 %v929_v8  ;;  %v2738_v8 = vld [vmem:[%s5406_s6 + $0x320] sm:$0xff] }
 0x17c   : > { %3450 = vmatprep.subr.bf16.mxu1 %v930_v11  ;;  %v1128_v10 = vpack.c.bf16 %v2739_v9, %v2738_v8 }
 0x17f   : > { %3451 = vmatpush3.bf16.msra.mxu1 %v930_v11  ;;  %v2740_v11 = vld [vmem:[%s5406_s6 + $0x330] sm:$0xff] }
 0x180   : > { %3452 = vmatprep.subr.bf16.mxu1 %v931_v53 }
 0x183   : > { %3453 = vmatpush3.bf16.msra.mxu1 %v931_v53  ;;  %v2743_v53 = vld [vmem:[%s5406_s6 + $0x348] sm:$0xff] }
 0x184   : > { %3454 = vmatprep.subr.bf16.mxu1 %v932_v26 }
 0x187   : > { %3455 = vmatpush3.bf16.msra.mxu1 %v932_v26  ;;  %v2745_v26 = vld [vmem:[%s5406_s6 + $0x358] sm:$0xff] }
 0x188   : > { %3464 = vmatprep.subr.bf16.mxu1 %v1028_v38  ;;  %v1131_v28 = vpack.c.bf16 %v2745_v26, %v2744_v25  ;;  %v2796_v26 = vld [vmem:[%s5406_s6 + $0x450] sm:$0xff] }
 0x18a   : > { %3457 = vmatmul.mubr.bf16.vlgmr.msra.gmra.mrb[8].mxu1 %v922_v23  ;;  %v2715_v23 = vld [vmem:[%s5406_s6 + $0x2c8] sm:$0xff] }
 0x18b   : > { %3460 = vmatprep.mubr.bf16.mxu1 %v923_v40  ;;  %3465 = vmatpush3.bf16.msra.mxu1 %v1028_v38  ;;  %v1032_v40 = vpack.c.bf16 %v2715_v23, %v2714_v15  ;;  %v2775_v15 = vld [vmem:[%s5406_s6 + $0x3a8] sm:$0xff] }
 0x18c   : > { %3466 = vmatprep.subr.bf16.mxu1 %v1029_v14 }
 0x18f   : > { %3467 = vmatpush3.bf16.msra.mxu1 %v1029_v14  ;;  %v1133_v14 = vpack.c.bf16 %v2749_v44, %v2748_v42  ;;  %v2800_v42 = vld [vmem:[%s5406_s6 + $0x470] sm:$0xff]  ;;  %v2801_v44 = vld [vmem:[%s5406_s6 + $0x478] sm:$0xff] }
 0x190   : > { %3468 = vmatprep.subr.bf16.mxu1 %v1030_v52 }
 0x192   : > { %3461 = vmatmul.mubr.bf16.gmra.mrb[28].mxu1 %v924_v43  ;;  %v1225_v43 = vpack.c.bf16 %v2773_v55, %v2772_v54 }
 0x193   : > { %3469 = vmatpush3.bf16.msra.mxu1 %v1030_v52  ;;  %3480 = vmatprep.mubr.msk.bf16.mxu1 %vm4257_vm5, %v4159_v29  ;;  %v2719_v29 = vld [vmem:[%s5406_s6 + $0x2e8] sm:$0xff]  ;;  %v1224_v52 = vpack.c.bf16 %v2771_v46, %v2770_v21 }
 0x194   : > { %3470 = vmatprep.subr.bf16.mxu1 %v1031_v48  ;;  %v1034_v60 = vpack.c.bf16 %v2719_v29, %v2718_v59  ;;  %v2781_v59 = vld [vmem:[%s5406_s6 + $0x3d8] sm:$0xff] }
 0x197   : > { %3471 = vmatpush3.bf16.msra.mxu1 %v1031_v48  ;;  %v2774_v48 = vld [vmem:[%s5406_s6 + $0x3a0] sm:$0xff] }
 0x198   : > { %3472 = vmatprep.subr.bf16.mxu1 %v1032_v40  ;;  %v1226_v23 = vpack.c.bf16 %v2775_v15, %v2774_v48  ;;  %v4664_v15 = vpack.c.bf16 %v4247_v16, %v4247_v16 }
 0x19b   : > { %3473 = vmatpush3.bf16.msra.mxu1 %v1032_v40  ;;  %v2776_v40 = vld [vmem:[%s5406_s6 + $0x3b0] sm:$0xff] }
 0x19c   : > { %3474 = vmatprep.subr.bf16.mxu1 %v1033_v58  ;;  %v1227_v22 = vpack.c.bf16 %v2777_v56, %v2776_v40 }
 0x19f   : > { %3475 = vmatpush3.bf16.msra.mxu1 %v1033_v58  ;;  %v2780_v58 = vld [vmem:[%s5406_s6 + $0x3d0] sm:$0xff] }
 0x1a0   : > { %3476 = vmatprep.subr.bf16.mxu1 %v1034_v60  ;;  %v1229_v29 = vpack.c.bf16 %v2781_v59, %v2780_v58 }
 0x1a3   : > { %3477 = vmatpush3.bf16.msra.mxu1 %v1034_v60  ;;  %v2782_v60 = vld [vmem:[%s5406_s6 + $0x3e0] sm:$0xff] }
 0x1a4   : > { %3478 = vmatprep.subr.bf16.mxu1 %v1035_v63 }
 0x1a7   : > { %3479 = vmatpush3.bf16.msra.mxu1 %v1035_v63  ;;  %v2785_v63 = vld [vmem:[%s5406_s6 + $0x3f8] sm:$0xff] }
 0x1a8   : > { %3488 = vmatprep.subr.bf16.mxu1 %v1126_v2  ;;  %v1231_v0 = vpack.c.bf16 %v2785_v63, %v2784_v62  ;;  %v2821_v63 = vld [vmem:[%s5403_s3 + $0x98] sm:$0xff] }
 0x1aa   : > { %3481 = vmatmul.mubr.msk.bf16.vlgmr.msra.gmra.mrb[8].mxu1 %vm4257_vm5, %v4123_v13  ;;  %v1129_v13 = vpack.c.bf16 %v2741_v19, %v2740_v11 }
 0x1ab   : > { %3484 = vmatprep.mubr.msk.bf16.mxu1 %vm4257_vm5, %v4198_v50  ;;  %3489 = vmatpush3.bf16.msra.mxu1 %v1126_v2  ;;  %v2742_v50 = vld [vmem:[%s5406_s6 + $0x340] sm:$0xff]  ;;  %v2787_v2 = vld [vmem:[%s5406_s6 + $0x408] sm:$0xff] }
 0x1ac   : > { %3490 = vmatprep.subr.bf16.mxu1 %v1127_v4  ;;  %v1130_v18 = vpack.c.bf16 %v2743_v53, %v2742_v50  ;;  %v1322_v5 = vpack.c.bf16 %v2787_v2, %v2786_v1  ;;  %v2792_v53 = vld [vmem:[%s5406_s6 + $0x430] sm:$0xff]  ;;  %v2822_v1 = vld [vmem:[%s5403_s3 + $0xa0] sm:$0xff]  ;;  %v2823_v2 = vld [vmem:[%s5403_s3 + $0xa8] sm:$0xff] }
 0x1af   : > { %3491 = vmatpush3.bf16.msra.mxu1 %v1127_v4  ;;  %v2789_v4 = vld [vmem:[%s5406_s6 + $0x418] sm:$0xff] }
 0x1b0   : > { %3492 = vmatprep.subr.bf16.mxu1 %v1128_v10  ;;  %v1323_v11 = vpack.c.bf16 %v2789_v4, %v2788_v47  ;;  %v2824_v47 = vld [vmem:[%s5403_s3 + $0xb0] sm:$0xff]  ;;  %v2825_v4 = vld [vmem:[%s5403_s3 + $0xb8] sm:$0xff] }
 0x1b2   : > { %3485 = vmatmul.mubr.msk.bf16.gmra.mrb[32].mxu1 %vm4257_vm5, %v2732_v45  ;;  %v2790_v45 = vld [vmem:[%s5406_s6 + $0x420] sm:$0xff] }
 0x1b3   : > { %3493 = vmatpush3.bf16.msra.mxu1 %v1128_v10  ;;  %3504 = vmatprep.mubr.msk.bf16.mxu1 %vm4174_vm3, %v4109_v6  ;;  %v2747_v6 = vld [vmem:[%s5406_s6 + $0x368] sm:$0xff] }
 0x1b4   : > { %3494 = vmatprep.subr.bf16.mxu1 %v1129_v13  ;;  %v1132_v38 = vpack.c.bf16 %v2747_v6, %v2746_v31  ;;  %v2798_v6 = vld [vmem:[%s5406_s6 + $0x460] sm:$0xff] }
 0x1b7   : > { %3495 = vmatpush3.bf16.msra.mxu1 %v1129_v13  ;;  %v2791_v13 = vld [vmem:[%s5406_s6 + $0x428] sm:$0xff] }
 0x1b8   : > { %3496 = vmatprep.subr.bf16.mxu1 %v1130_v18  ;;  %v1324_v50 = vpack.c.bf16 %v2791_v13, %v2790_v45  ;;  %v2829_v45 = vld [vmem:[%s5403_s3 + $0xd8] sm:$0xff] }
 0x1bb   : > { %3497 = vmatpush3.bf16.msra.mxu1 %v1130_v18  ;;  %v2793_v18 = vld [vmem:[%s5406_s6 + $0x438] sm:$0xff] }
 0x1bc   : > { %3498 = vmatprep.subr.bf16.mxu1 %v1131_v28  ;;  %v1325_v25 = vpack.c.bf16 %v2793_v18, %v2792_v53  ;;  %v2830_v53 = vld [vmem:[%s5403_s3 + $0xe0] sm:$0xff]  ;;  %v2831_v18 = vld [vmem:[%s5403_s3 + $0xe8] sm:$0xff] }
 0x1bf   : > { %3499 = vmatpush3.bf16.msra.mxu1 %v1131_v28  ;;  %v2797_v28 = vld [vmem:[%s5406_s6 + $0x458] sm:$0xff] }
 0x1c0   : > { %3500 = vmatprep.subr.bf16.mxu1 %v1132_v38  ;;  %v1327_v31 = vpack.c.bf16 %v2797_v28, %v2796_v26 }
 0x1c3   : > { %3501 = vmatpush3.bf16.msra.mxu1 %v1132_v38 }
 0x1c4   : > { %3502 = vmatprep.subr.bf16.mxu1 %v1133_v14 }
 0x1c7   : > { %3503 = vmatpush3.bf16.msra.mxu1 %v1133_v14  ;;  %v1329_v14 = vpack.c.bf16 %v2801_v44, %v2800_v42  ;;  %v2854_v42 = vld [vmem:[%s5406_s6 + $0x500] sm:$0xff]  ;;  %v2855_v44 = vld [vmem:[%s5406_s6 + $0x508] sm:$0xff] }
 0x1c8   : > { %3512 = vmatprep.subr.bf16.mxu1 %v1224_v52 }
 0x1ca   : > { %3505 = vmatmul.mubr.msk.bf16.vlgmr.msra.gmra.mrb[8].mxu1 %vm4174_vm3, %v4167_v32  ;;  %v4568_v32 = vpack.c.bf16 %v4132_v17, %v4132_v17 }
 0x1cb   : > { %3508 = vmatprep.mubr.msk.bf16.mxu1 %vm4174_vm3, %v2763_v49  ;;  %3513 = vmatpush3.bf16.msra.mxu1 %v1224_v52  ;;  %v2779_v49 = vld [vmem:[%s5406_s6 + $0x3c8] sm:$0xff] }
 0x1cc   : > { %3514 = vmatprep.subr.bf16.mxu1 %v1225_v43  ;;  %v1228_v57 = vpack.c.bf16 %v2779_v49, %v2778_v35 }
 0x1cf   : > { %3515 = vmatpush3.bf16.msra.mxu1 %v1225_v43 }
 0x1d0   : > { %3516 = vmatprep.subr.bf16.mxu1 %v1226_v23 }
 0x1d2   : > { %3509 = vmatmul.mubr.msk.bf16.gmra.mrb[36].mxu1 %vm4174_vm3, %v4568_v32 }
 0x1d3   : > { %3517 = vmatpush3.bf16.msra.mxu1 %v1226_v23  ;;  %3528 = vmatprep.mubr.bf16.mxu1 %v4104_v3  ;;  %v2783_v3 = vld [vmem:[%s5406_s6 + $0x3e8] sm:$0xff] }
 0x1d4   : > { %3518 = vmatprep.subr.bf16.mxu1 %v1227_v22  ;;  %v1230_v61 = vpack.c.bf16 %v2783_v3, %v2782_v60  ;;  %v2818_v60 = vld [vmem:[%s5403_s3 + $0x80] sm:$0xff]  ;;  %v2819_v3 = vld [vmem:[%s5403_s3 + $0x88] sm:$0xff] }
 0x1d5   : > { %v1466_v62 = vpack.c.bf16 %v2819_v3, %v2818_v60  ;;  %v2815_v3 = vld [vmem:[%s5401_s1 + $0x1] ss:$0 sm:$0xff] }
 0x1d7   : > { %3519 = vmatpush3.bf16.msra.mxu1 %v1227_v22  ;;  %3560 = vmatprep.subr.bf16.mxu0 %v1466_v62 }
 0x1d8   : > { %3520 = vmatprep.subr.bf16.mxu1 %v1228_v57  ;;  %3561 = vmatpush3.bf16.msra.mxu0 %v1466_v62 }
 0x1db   : > { %3521 = vmatpush3.bf16.msra.mxu1 %v1228_v57 }
 0x1dc   : > { %3522 = vmatprep.subr.bf16.mxu1 %v1229_v29 }
 0x1df   : > { %3523 = vmatpush3.bf16.msra.mxu1 %v1229_v29 }
 0x1e0   : > { %3524 = vmatprep.subr.bf16.mxu1 %v1230_v61 }
 0x1e3   : > { %3525 = vmatpush3.bf16.msra.mxu1 %v1230_v61  ;;  %v2820_v61 = vld [vmem:[%s5403_s3 + $0x90] sm:$0xff] }
 0x1e4   : > { %3526 = vmatprep.subr.bf16.mxu1 %v1231_v0 }
 0x1e5   : > { %v3366_v8 = vpop.f32.mrb[12].mxu1 }
 0x1e6   : > { %v600_v9 = vpop.f32.mrb[13].mxu1 }
 0x1e7   : > { %3527 = vmatpush3.bf16.msra.mxu1 %v1231_v0  ;;  %v3367_v10 = vpop.f32.mrb[14].mxu1  ;;  %v1467_v0 = vpack.c.bf16 %v2821_v63, %v2820_v61  ;;  %v3874_v61 = vld [vmem:[%s3974_s26 + $0x10] sm:$0xff] }
 0x1e8   : > { %3536 = vmatprep.subr.bf16.mxu1 %v1322_v5  ;;  %v603_v19 = vpop.f32.mrb[15].mxu1  ;;  %v2827_v10 = vld [vmem:[%s5403_s3 + $0xc8] sm:$0xff] }
 0x1e9   : > { %3562 = vmatprep.subr.bf16.mxu0 %v1467_v0 }
 0x1ea   : > { %3529 = vmatmul.mubr.bf16.vlgmr.msra.gmra.mrb[8].mxu1 %v4147_v20  ;;  %v2794_v20 = vld [vmem:[%s5406_s6 + $0x440] sm:$0xff]  ;;  %3563 = vmatpush3.bf16.msra.mxu0 %v1467_v0 }
 0x1eb   : > { %3532 = vmatprep.mubr.bf16.mxu1 %v1222_v41  ;;  %3537 = vmatpush3.bf16.msra.mxu1 %v1322_v5  ;;  %v1326_v41 = vpack.c.bf16 %v2795_v12, %v2794_v20  ;;  %v1468_v5 = vpack.c.bf16 %v2823_v2, %v2822_v1  ;;  %v1472_v12 = vpack.c.bf16 %v2831_v18, %v2830_v53  ;;  %v3875_v0 = vld [vmem:[%s3974_s26] sm:$0xff] }
 0x1ec   : > { %3538 = vmatprep.subr.bf16.mxu1 %v1323_v11 }
 0x1ed   : > { %3564 = vmatprep.subr.bf16.mxu0 %v1468_v5 }
 0x1ee   : > { %3565 = vmatpush3.bf16.msra.mxu0 %v1468_v5 }
 0x1ef   : > { %3539 = vmatpush3.bf16.msra.mxu1 %v1323_v11 }
 0x1f0   : > { %3540 = vmatprep.subr.bf16.mxu1 %v1324_v50 }
 0x1f2   : > { %3533 = vmatmul.mubr.bf16.gmra.mrb[40].mxu1 %v3890_v24 }
 0x1f3   : > { %3541 = vmatpush3.bf16.msra.mxu1 %v1324_v50  ;;  %3552 = vmatprep.mubr.msk.bf16.mxu1 %vm4257_vm5, %v4111_v7  ;;  %v2799_v7 = vld [vmem:[%s5406_s6 + $0x468] sm:$0xff] }
 0x1f4   : > { %3542 = vmatprep.subr.bf16.mxu1 %v1325_v25  ;;  %v1328_v38 = vpack.c.bf16 %v2799_v7, %v2798_v6  ;;  %v2832_v6 = vld [vmem:[%s5403_s3 + $0xf0] sm:$0xff]  ;;  %v2833_v7 = vld [vmem:[%s5403_s3 + $0xf8] sm:$0xff] }
 0x1f7   : > { %3543 = vmatpush3.bf16.msra.mxu1 %v1325_v25 }
 0x1f8   : > { %3544 = vmatprep.subr.bf16.mxu1 %v1326_v41 }
 0x1fb   : > { %3545 = vmatpush3.bf16.msra.mxu1 %v1326_v41 }
 0x1fc   : > { %3546 = vmatprep.subr.bf16.mxu1 %v1327_v31 }
 0x1ff   : > { %3547 = vmatpush3.bf16.msra.mxu1 %v1327_v31 }
 0x200   : > { %3548 = vmatprep.subr.bf16.mxu1 %v1328_v38 }
 0x203   : > { %3549 = vmatpush3.bf16.msra.mxu1 %v1328_v38  ;;  %v1473_v38 = vpack.c.bf16 %v2833_v7, %v2832_v6 }
 0x204   : > { %3550 = vmatprep.subr.bf16.mxu1 %v1329_v14 }
 0x205   : > { %v3390_v21 = vpop.f32.mrb[16].mxu1 }
 0x206   : > { %v673_v46 = vadd.f32 %v3390_v21, %v3366_v8  ;;  %v664_v52 = vpop.f32.mrb[17].mxu1  ;;  %v1469_v8 = vpack.c.bf16 %v2825_v4, %v2824_v47  ;;  %v2817_v47 = vld [vmem:[%s5402_s2 + $0x1] ss:$0 sm:$0xff]  ;;  %v3876_v4 = vld [vmem:[%s3974_s26 + $0x18] sm:$0xff] }
 0x207   : > { %v665_v54 = vadd.f32 %v664_v52, %v600_v9  ;;  %v3391_v55 = vpop.f32.mrb[18].mxu1  ;;  %3551 = vmatpush3.bf16.msra.mxu1 %v1329_v14  ;;  %v2826_v9 = vld [vmem:[%s5403_s3 + $0xc0] sm:$0xff]  ;;  %v4723_v14 = vpack.c.bf16 %v2855_v44, %v2854_v42  ;;  %v2857_v42 = vld [vmem:[%s5406_s6 + $0x518] sm:$0xff] }
 0x208   : > { %v667_v43 = vpop.f32.mrb[19].mxu1  ;;  %3566 = vmatprep.subr.bf16.mxu0 %v1469_v8  ;;  %v1470_v11 = vpack.c.bf16 %v2827_v10, %v2826_v9 }
 0x209   : > { %v668_v48 = vadd.f32 %v667_v43, %v603_v19  ;;  %3567 = vmatpush3.bf16.msra.mxu0 %v1469_v8  ;;  %v2828_v19 = vld [vmem:[%s5403_s3 + $0xd0] sm:$0xff] }
 0x20a   : > { %3553 = vmatmul.mubr.msk.bf16.vlgmr.msra.gmra.mrb[8].mxu1 %vm4257_vm5, %v4172_v36  ;;  %3568 = vmatprep.subr.bf16.mxu0 %v1470_v11  ;;  %v1471_v13 = vpack.c.bf16 %v2829_v45, %v2828_v19 }
 0x20b   : > { %3556 = vmatprep.mubr.msk.bf16.mxu1 %vm4257_vm5, %v2809_v51 }
 0x20d   : > { %3569 = vmatpush3.bf16.msra.mxu0 %v1470_v11  ;;  %v3877_v11 = vld [vmem:[%s3974_s26 + $0x8] sm:$0xff] }
 0x20e   : > { %3570 = vmatprep.subr.bf16.mxu0 %v1471_v13 }
 0x211   : > { %3571 = vmatpush3.bf16.msra.mxu0 %v1471_v13 }
 0x212   : > { %3557 = vmatmul.mubr.msk.bf16.gmra.mrb[44].mxu1 %vm4257_vm5, %v4664_v15  ;;  %3572 = vmatprep.subr.bf16.mxu0 %v1472_v12 }
 0x215   : > { %3573 = vmatpush3.bf16.msra.mxu0 %v1472_v12 }
 0x216   : > { %3574 = vmatprep.subr.bf16.mxu0 %v1473_v38 }
 0x219   : > { %3575 = vmatpush3.bf16.msra.mxu0 %v1473_v38  ;;  %v2856_v38 = vld [vmem:[%s5406_s6 + $0x510] sm:$0xff] }
 0x21a   : > { %3584 = vmatprep.subr.bf16.mxu0 %v4723_v14 }
 0x225   : > { %v3414_v23 = vpop.f32.mrb[20].mxu1 }
 0x226   : > { %v799_v40 = vadd.f32 %v3414_v23, %v673_v46  ;;  %v779_v56 = vpop.f32.mrb[21].mxu1 }
 0x227   : > { %v797_v22 = vadd.f32 %v779_v56, %v665_v54  ;;  %v3415_v35 = vpop.f32.mrb[22].mxu1 }
 0x228   : > { %v782_v36 = vpop.f32.mrb[23].mxu1 }
 0x229   : > { %v798_v49 = vadd.f32 %v782_v36, %v668_v48 }
 0x245   : > { %v3438_v57 = vpop.f32.mrb[24].mxu1 }
 0x246   : > { %v903_v30 = vadd.f32 %v3438_v57, %v799_v40  ;;  %v883_v39 = vpop.f32.mrb[25].mxu1 }
 0x247   : > { %v901_v58 = vadd.f32 %v883_v39, %v797_v22  ;;  %v3439_v51 = vpop.f32.mrb[26].mxu1 }
 0x248   : > { %v886_v59 = vpop.f32.mrb[27].mxu1 }
 0x249   : > { %v902_v29 = vadd.f32 %v886_v59, %v798_v49 }
 0x265   : > { %v3462_v50 = vpop.f32.mrb[28].mxu1 }
 0x266   : > { %v1003_v25 = vadd.f32 %v3462_v50, %v903_v30  ;;  %v983_v20 = vpop.f32.mrb[29].mxu1 }
 0x267   : > { %v1001_v41 = vadd.f32 %v983_v20, %v901_v58  ;;  %v3463_v26 = vpop.f32.mrb[30].mxu1 }
 0x268   : > { %v986_v28 = vpop.f32.mrb[31].mxu1 }
 0x269   : > { %v1002_v31 = vadd.f32 %v986_v28, %v902_v29 }
 0x285   : > { %v3486_v21 = vpop.f32.mrb[32].mxu1 }
 0x286   : > { %v1106_v46 = vadd.f32 %v3486_v21, %v1003_v25  ;;  %v1086_v52 = vpop.f32.mrb[33].mxu1  ;;  %v3878_v21 = vld [vmem:[%s3974_s26 + $0x30] sm:$0xff] }
 0x287   : > { %v1104_v54 = vadd.f32 %v1086_v52, %v1001_v41  ;;  %v3487_v55 = vpop.f32.mrb[34].mxu1 }
 0x288   : > { %v1089_v43 = vpop.f32.mrb[35].mxu1 }
 0x289   : > { %v1105_v48 = vadd.f32 %v1089_v43, %v1002_v31 }
 0x2a5   : > { %v3510_v23 = vpop.f32.mrb[36].mxu1 }
 0x2a6   : > { %v1204_v40 = vadd.f32 %v3510_v23, %v1106_v46  ;;  %v1184_v56 = vpop.f32.mrb[37].mxu1 }
 0x2a7   : > { %v1202_v22 = vadd.f32 %v1184_v56, %v1104_v54  ;;  %v3511_v35 = vpop.f32.mrb[38].mxu1  ;;  %v3879_v54 = vld [vmem:[%s3974_s26 + $0x20] sm:$0xff]  ;;  %v1657_v56 = vpack.c.bf16 %v2857_v42, %v2856_v38 }
 0x2a8   : > { %v1187_v36 = vpop.f32.mrb[39].mxu1  ;;  %v3880_v35 = vld [vmem:[%s3974_s26 + $0x28] sm:$0xff] }
 0x2a9   : > { %v1203_v49 = vadd.f32 %v1187_v36, %v1105_v48 }
 0x2c5   : > { %v3534_v57 = vpop.f32.mrb[40].mxu1 }
 0x2c6   : > { %v1302_v30 = vadd.f32 %v3534_v57, %v1204_v40  ;;  %v1282_v39 = vpop.f32.mrb[41].mxu1  ;;  %v2859_v57 = vld [vmem:[%s5406_s6 + $0x528] sm:$0xff] }
 0x2c7   : > { %v1300_v58 = vadd.f32 %v1282_v39, %v1202_v22  ;;  %v3535_v51 = vpop.f32.mrb[42].mxu1 }
 0x2c8   : > { %v1285_v59 = vpop.f32.mrb[43].mxu1 }
 0x2c9   : > { %v1301_v29 = vadd.f32 %v1285_v59, %v1203_v49  ;;  %v2858_v49 = vld [vmem:[%s5406_s6 + $0x520] sm:$0xff] }
 0x2ca   : > { %v1658_v51 = vpack.c.bf16 %v2859_v57, %v2858_v49 }
 0x2dd   : > { %v3554_v60 = vpop.f32.mrb[8].mxu1 }
 0x2de   : > { %v4730_v62 = vadd.f32 %v3874_v61, %v3554_v60  ;;  %v1364_v63 = vpop.f32.mrb[9].mxu1  ;;  %v2861_v60 = vld [vmem:[%s5406_s6 + $0x538] sm:$0xff] }
 0x2df   : > { %v4733_v1 = vadd.f32 %v3875_v0, %v1364_v63  ;;  %v3555_v2 = vpop.f32.mrb[10].mxu1 }
 0x2e0   : > { %v1418_v5 = vmul.f32 %v2815_v3, %v4730_v62  ;;  %v4740_v8 = vadd.f32 %v3876_v4, %v3555_v2  ;;  %v1367_v9 = vpop.f32.mrb[11].mxu1 }
 0x2e1   : > { %v1416_v10 = vmul.f32 %v2815_v3, %v4733_v1  ;;  %v4744_v19 = vadd.f32 %v3877_v11, %v1367_v9  ;;  %v2864_v9 = vld [vmem:[%s5406_s6 + $0x550] sm:$0xff] }
 0x2e2   : > { %v1419_v45 = vmul.f32 %v2815_v3, %v4740_v8  ;;  %v1433_v53 = vadd.f32 %v2817_v47, %v1418_v5  ;;  %v2863_v5 = vld [vmem:[%s5406_s6 + $0x548] sm:$0xff] }
 0x2e3   : > { %v1417_v13 = vmul.f32 %v2815_v3, %v4744_v19  ;;  %v1431_v50 = vadd.f32 %v2817_v47, %v1416_v10  ;;  %v2865_v10 = vld [vmem:[%s5406_s6 + $0x558] sm:$0xff] }
 0x2e4   : > { %v1434_v18 = vadd.f32 %v2817_v47, %v1419_v45  ;;  %v1440_v44 = vmax.f32 %v1433_v53, 0.0  ;;  %v1661_v11 = vpack.c.bf16 %v2865_v10, %v2864_v9  ;;  %v2866_v45 = vld [vmem:[%s5406_s6 + $0x560] sm:$0xff]  ;;  %v2868_v53 = vld [vmem:[%s5406_s6 + $0x570] sm:$0xff] }
 0x2e5   : > { %v3558_v25 = vpop.f32.mrb[44].mxu1  ;;  %v1432_v20 = vadd.f32 %v2817_v47, %v1417_v13  ;;  %v1438_v6 = vmax.f32 %v1431_v50, 0.0  ;;  %v2867_v13 = vld [vmem:[%s5406_s6 + $0x568] sm:$0xff] }
 0x2e6   : > { %v1441_v12 = vmax.f32 %v1434_v18, 0.0  ;;  %v1400_v41 = vadd.f32 %v3558_v25, %v1302_v30  ;;  %v1380_v26 = vpop.f32.mrb[45].mxu1  ;;  %v1662_v50 = vpack.c.bf16 %v2867_v13, %v2866_v45  ;;  %v2869_v18 = vld [vmem:[%s5406_s6 + $0x578] sm:$0xff]  ;;  %v2842_v13 = vld [vmem:[%s5406_s6 + $0x4a0] sm:$0xff] }
 0x2e7   : > { %v1398_v28 = vadd.f32 %v1380_v26, %v1300_v58  ;;  %v3559_v31 = vpop.f32.mrb[46].mxu1  ;;  %v1439_v7 = vmax.f32 %v1432_v20, 0.0  ;;  %v1663_v25 = vpack.c.bf16 %v2869_v18, %v2868_v53  ;;  %v2838_v20 = vld [vmem:[%s5406_s6 + $0x480] sm:$0xff] }
 0x2e8   : > { %v4755_v46 = vadd.f32 %v3878_v21, %v1400_v41  ;;  %v1383_v52 = vpop.f32.mrb[47].mxu1  ;;  %v1463_v40 = vpack.c.bf16 %v1441_v12, %v1440_v44  ;;  %v2839_v12 = vld [vmem:[%s5406_s6 + $0x488] sm:$0xff]  ;;  %v2835_v26 = vld [vmem:[%s5404_s4 + $0x1] ss:$0 sm:$0xff] }
 0x2e9   : > { %v4758_v55 = vadd.f32 %v3879_v54, %v1398_v28  ;;  %v1399_v43 = vadd.f32 %v1383_v52, %v1301_v29  ;;  %v1462_v48 = vpack.c.bf16 %v1439_v7, %v1438_v6  ;;  %v2860_v29 = vld [vmem:[%s5406_s6 + $0x530] sm:$0xff]  ;;  %v1627_v41 = vpack.c.bf16 %v2839_v12, %v2838_v20  ;;  %v2837_v31 = vld [vmem:[%s5405_s5 + $0x1] ss:$0 sm:$0xff] }
 0x2ea   : > { %v1422_v23 = vmul.f32 %v2815_v3, %v4755_v46 }
 0x2eb   : > { %v1420_v22 = vmul.f32 %v2815_v3, %v4758_v55  ;;  %v4763_v36 = vadd.f32 %v3880_v35, %v1399_v43  ;;  %3576 = vmatprep.mubr.bf16.mxu0 %v1462_v48  ;;  %v2841_v35 = vld [vmem:[%s5406_s6 + $0x498] sm:$0xff] }
 0x2ec   : > { %3577 = vmatmul.mubr.bf16.vlgmr.msra.gmra.mrb[0].mxu0 %v1463_v40  ;;  %v1437_v30 = vadd.f32 %v2817_v47, %v1422_v23 }
 0x2ed   : > { %v1421_v39 = vmul.f32 %v2815_v3, %v4763_v36  ;;  %v1435_v58 = vadd.f32 %v2817_v47, %v1420_v22  ;;  %3585 = vmatpush3.bf16.msra.mxu0 %v4723_v14  ;;  %v1659_v3 = vpack.c.bf16 %v2861_v60, %v2860_v29  ;;  %v2862_v14 = vld [vmem:[%s5406_s6 + $0x540] sm:$0xff]  ;;  %v2840_v22 = vld [vmem:[%s5406_s6 + $0x490] sm:$0xff] }
 0x2ee   : > { %3586 = vmatprep.subr.bf16.mxu0 %v1657_v56  ;;  %v1444_v61 = vmax.f32 %v1437_v30, 0.0  ;;  %v1660_v4 = vpack.c.bf16 %v2863_v5, %v2862_v14 }
 0x2ef   : > { %v1436_v59 = vadd.f32 %v2817_v47, %v1421_v39  ;;  %v1442_v63 = vmax.f32 %v1435_v58, 0.0 }
 0x2f0   : > { %v1465_v47 = vpack.c.bf16 %v1444_v61, %v1444_v61 }
 0x2f1   : > { %v1443_v0 = vmax.f32 %v1436_v59, 0.0  ;;  %3587 = vmatpush3.bf16.msra.mxu0 %v1657_v56 }
 0x2f2   : > { %3588 = vmatprep.subr.bf16.mxu0 %v1658_v51 }
 0x2f3   : > { %v1464_v2 = vpack.c.bf16 %v1443_v0, %v1442_v63 }
 0x2f5   : > { %3580 = vmatprep.mubr.bf16.mxu0 %v1464_v2  ;;  %3589 = vmatpush3.bf16.msra.mxu0 %v1658_v51  ;;  %v1628_v51 = vpack.c.bf16 %v2841_v35, %v2840_v22 }
 0x2f6   : > { %3581 = vmatmul.mubr.bf16.gmra.mrb[4].mxu0 %v1465_v47  ;;  %3590 = vmatprep.subr.bf16.mxu0 %v1659_v3 }
 0x2f9   : > { %3591 = vmatpush3.bf16.msra.mxu0 %v1659_v3 }
 0x2fa   : > { %3592 = vmatprep.subr.bf16.mxu0 %v1660_v4 }
 0x2fd   : > { %3593 = vmatpush3.bf16.msra.mxu0 %v1660_v4 }
 0x2fe   : > { %3594 = vmatprep.subr.bf16.mxu0 %v1661_v11 }
 0x301   : > { %3595 = vmatpush3.bf16.msra.mxu0 %v1661_v11 }
 0x302   : > { %3596 = vmatprep.subr.bf16.mxu0 %v1662_v50 }
 0x305   : > { %3597 = vmatpush3.bf16.msra.mxu0 %v1662_v50  ;;  %v2843_v50 = vld [vmem:[%s5406_s6 + $0x4a8] sm:$0xff] }
 0x306   : > { %3598 = vmatprep.subr.bf16.mxu0 %v1663_v25 }
 0x309   : > { %3599 = vmatpush3.bf16.msra.mxu0 %v1663_v25 }
 0x30a   : > { %3608 = vmatprep.subr.bf16.mxu0 %v1627_v41 }
 0x3bf   : > { %v3578_v28 = vpop.f32.mrb[0].mxu0 }
 0x3c0   : > { %v1548_v6 = vmul.f32 %v3578_v28, %v2835_v26  ;;  %v1508_v7 = vpop.f32.mrb[1].mxu0 }
 0x3c1   : > { %v1546_v38 = vmul.f32 %v2835_v26, %v1508_v7  ;;  %v3579_v42 = vpop.f32.mrb[2].mxu0 }
 0x3c2   : > { %v1563_v44 = vadd.f32 %v2837_v31, %v1548_v6  ;;  %v1549_v21 = vmul.f32 %v3579_v42, %v2835_v26  ;;  %v1511_v52 = vpop.f32.mrb[3].mxu0 }
 0x3c3   : > { %v1561_v54 = vadd.f32 %v2837_v31, %v1546_v38  ;;  %v1547_v43 = vmul.f32 %v2835_v26, %v1511_v52 }
 0x3c4   : > { %v1570_v48 = vmax.f32 %v1563_v44, 0.0  ;;  %v1564_v23 = vadd.f32 %v2837_v31, %v1549_v21 }
 0x3c5   : > { %v1568_v40 = vmax.f32 %v1561_v54, 0.0  ;;  %v1562_v56 = vadd.f32 %v2837_v31, %v1547_v43  ;;  %v1629_v54 = vpack.c.bf16 %v2843_v50, %v2842_v13  ;;  %v2844_v43 = vld [vmem:[%s5406_s6 + $0x4b0] sm:$0xff] }
 0x3c6   : > { %v4822_v49 = vmul.f32 %v4074_v34, %v1570_v48  ;;  %v1571_v57 = vmax.f32 %v1564_v23, 0.0 }
 0x3c7   : > { %v4825_v30 = vmul.f32 %v4074_v34, %v1568_v40  ;;  %v1569_v39 = vmax.f32 %v1562_v56, 0.0 }
 0x3c8   : > { %v4828_v58 = vmul.f32 %v4074_v34, %v1571_v57  ;;  %v1590_v59 = vrot.slane %v4822_v49, 7  ;;  %v1794_v29 = vrot.slane %v4822_v49, 1 }
 0x3c9   : > { %v4833_v60 = vmul.f32 %v4074_v34, %v1569_v39  ;;  %v3582_v61 = vpop.f32.mrb[4].mxu0  ;;  %v1652_v63 = vpack.c.bf16 %v4825_v30, %v3889_v33  ;;  %v1588_v53 = vrot.slane %v4825_v30, 7  ;;  %v1792_v25 = vrot.slane %v4825_v30, 1 }
 0x3ca   : > { %v1552_v0 = vmul.f32 %v3582_v61, %v2835_v26  ;;  %v1524_v3 = vpop.f32.mrb[5].mxu0  ;;  %v1591_v2 = vrot.slane %v4828_v58, 7  ;;  %v1795_v14 = vrot.slane %v4828_v58, 1  ;;  %v2032_v5 = vpack.c.bf16 %v4828_v58, %v4822_v49 }
 0x3cb   : > { %v1589_v47 = vrot.slane %v4833_v60, 7  ;;  %v1793_v4 = vrot.slane %v4833_v60, 1  ;;  %v1550_v9 = vmul.f32 %v2835_v26, %v1524_v3  ;;  %v3583_v10 = vpop.f32.mrb[6].mxu0  ;;  %3600 = vmatprep.mubr.bf16.mxu0 %v1652_v63  ;;  %v4845_v11 = vpack.c.bf16 %v4822_v49, %v4833_v60 }
 0x3cc   : > { %v1567_v33 = vadd.f32 %v2837_v31, %v1552_v0  ;;  %v1527_v45 = vpop.f32.mrb[7].mxu0  ;;  %v4854_v18 = vpack.c.bf16 %v1591_v2, %v1590_v59  ;;  %v4862_v38 = vpack.c.bf16 %v1795_v14, %v1794_v29  ;;  %v2031_v44 = vpack.c.bf16 %v4833_v60, %v4825_v30  ;;  %v2849_v10 = vld [vmem:[%s5406_s6 + $0x4d8] sm:$0xff]  ;;  %v2967_v30 = vld [vmem:[%s5406_s6 + $0x6e8] sm:$0xff] }
 0x3cd   : > { %v4857_v20 = vpack.c.bf16 %v1590_v59, %v1589_v47  ;;  %v4859_v12 = vpack.c.bf16 %v1794_v29, %v1793_v4  ;;  %v1565_v28 = vadd.f32 %v2837_v31, %v1550_v9  ;;  %v1551_v6 = vmul.f32 %v2835_v26, %v1527_v45  ;;  %3601 = vmatmul.mubr.bf16.vlgmr.msra.gmra.mrb[8].mxu0 %v4845_v11  ;;  %v2845_v26 = vld [vmem:[%s5406_s6 + $0x4b8] sm:$0xff]  ;;  %v2846_v59 = vld [vmem:[%s5406_s6 + $0x4c0] sm:$0xff] }
 0x3ce   : > { %v1574_v7 = vmax.f32 %v1567_v33, 0.0  ;;  %3609 = vmatpush3.bf16.msra.mxu0 %v1627_v41  ;;  %v4864_v42 = vpack.c.bf16 %v1589_v47, %v1588_v53  ;;  %v4879_v48 = vpack.c.bf16 %v1793_v4, %v1792_v25  ;;  %v1630_v40 = vpack.c.bf16 %v2845_v26, %v2844_v43  ;;  %v2891_v43 = vld [vmem:[%s5406_s6 + $0x588] sm:$0xff] }
 0x3cf   : > { %v1572_v21 = vmax.f32 %v1565_v28, 0.0  ;;  %v1566_v52 = vadd.f32 %v2837_v31, %v1551_v6  ;;  %3610 = vmatprep.subr.bf16.mxu0 %v1628_v51  ;;  %v2873_v39 = vpack.c.bf16 %v1588_v53, %v4132_v17  ;;  %v2850_v53 = vld [vmem:[%s5406_s6 + $0x4e0] sm:$0xff]  ;;  %v2851_v28 = vld [vmem:[%s5406_s6 + $0x4e8] sm:$0xff] }
 0x3d0   : > { %v4875_v41 = vmul.f32 %v4074_v34, %v1574_v7  ;;  %v1633_v6 = vpack.c.bf16 %v2851_v28, %v2850_v53  ;;  %v2852_v7 = vld [vmem:[%s5406_s6 + $0x4f0] sm:$0xff]  ;;  %v2899_v53 = vld [vmem:[%s5406_s6 + $0x5c8] sm:$0xff] }
 0x3d1   : > { %v4882_v23 = vmul.f32 %v4074_v34, %v1572_v21  ;;  %v1573_v31 = vmax.f32 %v1566_v52, 0.0  ;;  %v2853_v21 = vld [vmem:[%s5406_s6 + $0x4f8] sm:$0xff] }
 0x3d2   : > { %3611 = vmatpush3.bf16.msra.mxu0 %v1628_v51  ;;  %v4901_v51 = vrot.slane %v4875_v41, 7  ;;  %v4919_v47 = vrot.slane %v4875_v41, 1  ;;  %v1634_v52 = vpack.c.bf16 %v2853_v21, %v2852_v7  ;;  %v2902_v7 = vld [vmem:[%s5406_s6 + $0x5e0] sm:$0xff]  ;;  %v2903_v21 = vld [vmem:[%s5406_s6 + $0x5e8] sm:$0xff]  ;;  %v2034_v49 = vpack.c.bf16 %v4875_v41, %v4875_v41 }
 0x3d3   : > { %v4885_v56 = vmul.f32 %v4074_v34, %v1573_v31  ;;  %3612 = vmatprep.subr.bf16.mxu0 %v1629_v54  ;;  %v4889_v22 = vpack.c.bf16 %v4882_v23, %v4828_v58  ;;  %v1592_v35 = vrot.slane %v4882_v23, 7  ;;  %v1796_v57 = vrot.slane %v4882_v23, 1  ;;  %v2847_v34 = vld [vmem:[%s5406_s6 + $0x4c8] sm:$0xff]  ;;  %v2892_v31 = vld [vmem:[%s5406_s6 + $0x590] sm:$0xff] }
 0x3d5   : > { %3604 = vmatprep.mubr.bf16.mxu0 %v4889_v22  ;;  %v1655_v29 = vpack.c.bf16 %v4885_v56, %v4885_v56  ;;  %v4906_v61 = vpack.c.bf16 %v1592_v35, %v1591_v2  ;;  %v4909_v17 = vrot.slane %v4885_v56, 7  ;;  %v4911_v63 = vpack.c.bf16 %v1796_v57, %v1795_v14  ;;  %v2848_v14 = vld [vmem:[%s5406_s6 + $0x4d0] sm:$0xff] }
 0x3d6   : > { %3613 = vmatpush3.bf16.msra.mxu0 %v1629_v54  ;;  %v4914_v0 = vrot.slane %v4885_v56, 1  ;;  %v2033_v3 = vpack.c.bf16 %v4885_v56, %v4882_v23  ;;  %v2331_v4 = vpack.c.bf16 %v4875_v41, %v4885_v56  ;;  %v1631_v2 = vpack.c.bf16 %v2847_v34, %v2846_v59  ;;  %v2890_v54 = vld [vmem:[%s5406_s6 + $0x580] sm:$0xff]  ;;  %v2896_v34 = vld [vmem:[%s5406_s6 + $0x5b0] sm:$0xff]  ;;  %v2979_v23 = vld [vmem:[%s5406_s6 + $0x748] sm:$0xff] }
 0x3d7   : > { %3605 = vmatmul.mubr.bf16.gmra.mrb[12].mxu0 %v1655_v29  ;;  %3614 = vmatprep.subr.bf16.mxu0 %v1630_v40  ;;  %v4924_v9 = vpack.c.bf16 %v4909_v17, %v1592_v35  ;;  %v3027_v45 = vpack.c.bf16 %v4901_v51, %v4909_v17  ;;  %v1632_v50 = vpack.c.bf16 %v2849_v10, %v2848_v14  ;;  %v2897_v29 = vld [vmem:[%s5406_s6 + $0x5b8] sm:$0xff]  ;;  %v3059_v41 = vld [vmem:[%s5406_s6 + $0x8c8] sm:$0xff] }
 0x3d8   : > { %3624 = vmatprep.mubr.msk.bf16.mxu0 %vm4174_vm3, %v2873_v39  ;;  %v4935_v33 = vpack.c.bf16 %v4914_v0, %v1796_v57  ;;  %v3073_v13 = vpack.c.bf16 %v4919_v47, %v4914_v0  ;;  %v1831_v26 = vpack.c.bf16 %v2891_v43, %v2890_v54  ;;  %v2894_v57 = vld [vmem:[%s5406_s6 + $0x5a0] sm:$0xff]  ;;  %v2895_v39 = vld [vmem:[%s5406_s6 + $0x5a8] sm:$0xff]  ;;  %v1834_v14 = vpack.c.bf16 %v2897_v29, %v2896_v34  ;;  %v2904_v54 = vld [vmem:[%s5406_s6 + $0x5f0] sm:$0xff] }
 0x3d9   : > { %v1833_v59 = vpack.c.bf16 %v2895_v39, %v2894_v57  ;;  %v2907_v10 = vpack.c.bf16 %v1792_v25, %v4247_v16  ;;  %v2900_v16 = vld [vmem:[%s5406_s6 + $0x5d0] sm:$0xff]  ;;  %v2901_v25 = vld [vmem:[%s5406_s6 + $0x5d8] sm:$0xff]  ;;  %v2922_v34 = vld [vmem:[%s5406_s6 + $0x620] sm:$0xff] }
 0x3da   : > { %3615 = vmatpush3.bf16.msra.mxu0 %v1630_v40  ;;  %v2893_v40 = vld [vmem:[%s5406_s6 + $0x598] sm:$0xff]  ;;  %v2920_v57 = vld [vmem:[%s5406_s6 + $0x610] sm:$0xff]  ;;  %v2923_v29 = vld [vmem:[%s5406_s6 + $0x628] sm:$0xff] }
 0x3db   : > { %3616 = vmatprep.subr.bf16.mxu0 %v1631_v2  ;;  %v1832_v35 = vpack.c.bf16 %v2893_v40, %v2892_v31  ;;  %v2905_v43 = vld [vmem:[%s5406_s6 + $0x5f8] sm:$0xff]  ;;  %v2918_v31 = vld [vmem:[%s5406_s6 + $0x600] sm:$0xff]  ;;  %v2919_v40 = vld [vmem:[%s5406_s6 + $0x608] sm:$0xff] }
 0x3dc   : > { %v2921_v39 = vld [vmem:[%s5406_s6 + $0x618] sm:$0xff] }
 0x3de   : > { %3617 = vmatpush3.bf16.msra.mxu0 %v1631_v2  ;;  %v2888_v2 = vpack.c.bf16 %v4909_v17, %v4909_v17  ;;  %v3043_v17 = vld [vmem:[%s5406_s6 + $0x848] sm:$0xff] }
 0x3df   : > { %3618 = vmatprep.subr.bf16.mxu0 %v1632_v50 }
 0x3e2   : > { %3619 = vmatpush3.bf16.msra.mxu0 %v1632_v50  ;;  %v2898_v50 = vld [vmem:[%s5406_s6 + $0x5c0] sm:$0xff] }
 0x3e3   : > { %3620 = vmatprep.subr.bf16.mxu0 %v1633_v6  ;;  %v1835_v28 = vpack.c.bf16 %v2899_v53, %v2898_v50  ;;  %v2916_v50 = vpack.c.bf16 %v4914_v0, %v4914_v0 }
 0x3e6   : > { %3621 = vmatpush3.bf16.msra.mxu0 %v1633_v6  ;;  %v1836_v6 = vpack.c.bf16 %v2901_v25, %v2900_v16  ;;  %v2927_v16 = vld [vmem:[%s5406_s6 + $0x648] sm:$0xff] }
 0x3e7   : > { %3622 = vmatprep.subr.bf16.mxu0 %v1634_v52 }
 0x3ea   : > { %3623 = vmatpush3.bf16.msra.mxu0 %v1634_v52  ;;  %v1837_v52 = vpack.c.bf16 %v2903_v21, %v2902_v7  ;;  %v2929_v7 = vld [vmem:[%s5406_s6 + $0x658] sm:$0xff] }
 0x3eb   : > { %3632 = vmatprep.subr.bf16.mxu0 %v1831_v26 }
 0x3ed   : > { %3625 = vmatmul.mubr.msk.bf16.vlgmr.msra.gmra.mrb[8].mxu0 %vm4174_vm3, %v4857_v20 }
 0x3ee   : > { %3628 = vmatprep.mubr.msk.bf16.mxu0 %vm4174_vm3, %v4906_v61  ;;  %3633 = vmatpush3.bf16.msra.mxu0 %v1831_v26  ;;  %v1838_v26 = vpack.c.bf16 %v2905_v43, %v2904_v54  ;;  %v2932_v43 = vld [vmem:[%s5406_s6 + $0x670] sm:$0xff] }
 0x3ef   : > { %3634 = vmatprep.subr.bf16.mxu0 %v1832_v35 }
 0x3f2   : > { %3635 = vmatpush3.bf16.msra.mxu0 %v1832_v35  ;;  %v1935_v35 = vpack.c.bf16 %v2919_v40, %v2918_v31  ;;  %v2954_v40 = vld [vmem:[%s5406_s6 + $0x680] sm:$0xff] }
 0x3f3   : > { %3636 = vmatprep.subr.bf16.mxu0 %v1833_v59 }
 0x3f5   : > { %3629 = vmatmul.mubr.msk.bf16.gmra.mrb[16].mxu0 %vm4174_vm3, %v2888_v2  ;;  %v1937_v2 = vpack.c.bf16 %v2923_v29, %v2922_v34  ;;  %v2958_v29 = vld [vmem:[%s5406_s6 + $0x6a0] sm:$0xff] }
 0x3f6   : > { %3637 = vmatpush3.bf16.msra.mxu0 %v1833_v59  ;;  %3648 = vmatprep.mubr.msk.bf16.mxu0 %vm4257_vm5, %v2907_v10  ;;  %v1936_v59 = vpack.c.bf16 %v2921_v39, %v2920_v57  ;;  %v2925_v10 = vld [vmem:[%s5406_s6 + $0x638] sm:$0xff]  ;;  %v2956_v39 = vld [vmem:[%s5406_s6 + $0x690] sm:$0xff] }
 0x3f7   : > { %3638 = vmatprep.subr.bf16.mxu0 %v1834_v14 }
 0x3fa   : > { %3639 = vmatpush3.bf16.msra.mxu0 %v1834_v14  ;;  %v2924_v14 = vld [vmem:[%s5406_s6 + $0x630] sm:$0xff] }
 0x3fb   : > { %3640 = vmatprep.subr.bf16.mxu0 %v1835_v28  ;;  %v1938_v53 = vpack.c.bf16 %v2925_v10, %v2924_v14  ;;  %v2960_v10 = vld [vmem:[%s5406_s6 + $0x6b0] sm:$0xff] }
 0x3fe   : > { %3641 = vmatpush3.bf16.msra.mxu0 %v1835_v28  ;;  %v2926_v28 = vld [vmem:[%s5406_s6 + $0x640] sm:$0xff] }
 0x3ff   : > { %3642 = vmatprep.subr.bf16.mxu0 %v1836_v6  ;;  %v1939_v25 = vpack.c.bf16 %v2927_v16, %v2926_v28  ;;  %v2963_v28 = vld [vmem:[%s5406_s6 + $0x6c8] sm:$0xff] }
 0x402   : > { %3643 = vmatpush3.bf16.msra.mxu0 %v1836_v6  ;;  %v2928_v6 = vld [vmem:[%s5406_s6 + $0x650] sm:$0xff] }
 0x403   : > { %3644 = vmatprep.subr.bf16.mxu0 %v1837_v52  ;;  %v1940_v21 = vpack.c.bf16 %v2929_v7, %v2928_v6  ;;  %v2965_v6 = vld [vmem:[%s5406_s6 + $0x6d8] sm:$0xff] }
 0x406   : > { %3645 = vmatpush3.bf16.msra.mxu0 %v1837_v52  ;;  %v2930_v52 = vld [vmem:[%s5406_s6 + $0x660] sm:$0xff] }
 0x407   : > { %3646 = vmatprep.subr.bf16.mxu0 %v1838_v26 }
 0x40a   : > { %3647 = vmatpush3.bf16.msra.mxu0 %v1838_v26  ;;  %v2933_v26 = vld [vmem:[%s5406_s6 + $0x678] sm:$0xff] }
 0x40b   : > { %3656 = vmatprep.subr.bf16.mxu0 %v1935_v35  ;;  %v1942_v31 = vpack.c.bf16 %v2933_v26, %v2932_v43  ;;  %v2971_v43 = vld [vmem:[%s5406_s6 + $0x708] sm:$0xff] }
 0x40d   : > { %3649 = vmatmul.mubr.msk.bf16.vlgmr.msra.gmra.mrb[8].mxu0 %vm4257_vm5, %v4859_v12 }
 0x40e   : > { %3652 = vmatprep.mubr.msk.bf16.mxu0 %vm4257_vm5, %v4911_v63  ;;  %3657 = vmatpush3.bf16.msra.mxu0 %v1935_v35  ;;  %v2955_v35 = vld [vmem:[%s5406_s6 + $0x688] sm:$0xff] }
 0x40f   : > { %3658 = vmatprep.subr.bf16.mxu0 %v1936_v59  ;;  %v2035_v57 = vpack.c.bf16 %v2955_v35, %v2954_v40  ;;  %v2973_v40 = vld [vmem:[%s5406_s6 + $0x718] sm:$0xff] }
 0x412   : > { %3659 = vmatpush3.bf16.msra.mxu0 %v1936_v59  ;;  %v2957_v59 = vld [vmem:[%s5406_s6 + $0x698] sm:$0xff] }
 0x413   : > { %3660 = vmatprep.subr.bf16.mxu0 %v1937_v2  ;;  %v2036_v34 = vpack.c.bf16 %v2957_v59, %v2956_v39  ;;  %v2975_v39 = vld [vmem:[%s5406_s6 + $0x728] sm:$0xff] }
 0x415   : > { %3653 = vmatmul.mubr.msk.bf16.gmra.mrb[20].mxu0 %vm4257_vm5, %v2916_v50  ;;  %v2961_v50 = vld [vmem:[%s5406_s6 + $0x6b8] sm:$0xff] }
 0x416   : > { %3661 = vmatpush3.bf16.msra.mxu0 %v1937_v2  ;;  %3672 = vmatprep.mubr.msk.bf16.mxu0 %vm4174_vm3, %v4864_v42  ;;  %v2931_v42 = vld [vmem:[%s5406_s6 + $0x668] sm:$0xff] }
 0x417   : > { %3662 = vmatprep.subr.bf16.mxu0 %v1938_v53  ;;  %v1941_v54 = vpack.c.bf16 %v2931_v42, %v2930_v52  ;;  %v2959_v2 = vld [vmem:[%s5406_s6 + $0x6a8] sm:$0xff]  ;;  %v2969_v52 = vld [vmem:[%s5406_s6 + $0x6f8] sm:$0xff] }
 0x418   : > { %v2037_v14 = vpack.c.bf16 %v2959_v2, %v2958_v29  ;;  %v2977_v29 = vld [vmem:[%s5406_s6 + $0x738] sm:$0xff]  ;;  %v2980_v2 = vld [vmem:[%s5406_s6 + $0x750] sm:$0xff] }
 0x41a   : > { %3663 = vmatpush3.bf16.msra.mxu0 %v1938_v53  ;;  %v2952_v53 = vpack.c.bf16 %v4901_v51, %v4901_v51  ;;  %v3042_v51 = vld [vmem:[%s5406_s6 + $0x840] sm:$0xff] }
 0x41b   : > { %3664 = vmatprep.subr.bf16.mxu0 %v1939_v25 }
 0x41e   : > { %3665 = vmatpush3.bf16.msra.mxu0 %v1939_v25  ;;  %v2964_v25 = vld [vmem:[%s5406_s6 + $0x6d0] sm:$0xff] }
 0x41f   : > { %3666 = vmatprep.subr.bf16.mxu0 %v1940_v21  ;;  %v2040_v7 = vpack.c.bf16 %v2965_v6, %v2964_v25  ;;  %v2999_v25 = vld [vmem:[%s5406_s6 + $0x788] sm:$0xff] }
 0x422   : > { %3667 = vmatpush3.bf16.msra.mxu0 %v1940_v21  ;;  %v2966_v21 = vld [vmem:[%s5406_s6 + $0x6e0] sm:$0xff] }
 0x423   : > { %3668 = vmatprep.subr.bf16.mxu0 %v1941_v54  ;;  %v2041_v60 = vpack.c.bf16 %v2967_v30, %v2966_v21  ;;  %v3001_v21 = vld [vmem:[%s5406_s6 + $0x798] sm:$0xff] }
 0x426   : > { %3669 = vmatpush3.bf16.msra.mxu0 %v1941_v54  ;;  %v2970_v54 = vld [vmem:[%s5406_s6 + $0x700] sm:$0xff] }
 0x427   : > { %3670 = vmatprep.subr.bf16.mxu0 %v1942_v31  ;;  %v2138_v26 = vpack.c.bf16 %v2971_v43, %v2970_v54  ;;  %v3005_v54 = vld [vmem:[%s5406_s6 + $0x7b8] sm:$0xff]  ;;  %v2996_v43 = vpack.c.bf16 %v4919_v47, %v4919_v47 }
 0x42a   : > { %3671 = vmatpush3.bf16.msra.mxu0 %v1942_v31  ;;  %v2972_v31 = vld [vmem:[%s5406_s6 + $0x710] sm:$0xff] }
 0x42b   : > { %3680 = vmatprep.subr.bf16.mxu0 %v2035_v57  ;;  %v2139_v35 = vpack.c.bf16 %v2973_v40, %v2972_v31  ;;  %v3008_v40 = vld [vmem:[%s5406_s6 + $0x7d0] sm:$0xff] }
 0x42d   : > { %3673 = vmatmul.mubr.msk.bf16.vlgmr.msra.gmra.mrb[8].mxu0 %vm4174_vm3, %v4854_v18  ;;  %v2038_v18 = vpack.c.bf16 %v2961_v50, %v2960_v10  ;;  %v2982_v50 = vld [vmem:[%s5406_s6 + $0x760] sm:$0xff] }
 0x42e   : > { %3676 = vmatprep.mubr.msk.bf16.mxu0 %vm4174_vm3, %v4924_v9  ;;  %3681 = vmatpush3.bf16.msra.mxu0 %v2035_v57  ;;  %v2962_v9 = vld [vmem:[%s5406_s6 + $0x6c0] sm:$0xff] }
 0x42f   : > { %3682 = vmatprep.subr.bf16.mxu0 %v2036_v34  ;;  %v2039_v16 = vpack.c.bf16 %v2963_v28, %v2962_v9  ;;  %v2974_v57 = vld [vmem:[%s5406_s6 + $0x720] sm:$0xff]  ;;  %v2985_v9 = vld [vmem:[%s5406_s6 + $0x778] sm:$0xff] }
 0x430   : > { %v2140_v59 = vpack.c.bf16 %v2975_v39, %v2974_v57  ;;  %v3010_v39 = vld [vmem:[%s5406_s6 + $0x7e0] sm:$0xff] }
 0x432   : > { %3683 = vmatpush3.bf16.msra.mxu0 %v2036_v34  ;;  %v2976_v34 = vld [vmem:[%s5406_s6 + $0x730] sm:$0xff] }
 0x433   : > { %3684 = vmatprep.subr.bf16.mxu0 %v2037_v14  ;;  %v2141_v58 = vpack.c.bf16 %v2977_v29, %v2976_v34  ;;  %v3012_v34 = vld [vmem:[%s5406_s6 + $0x7f0] sm:$0xff]  ;;  %v3013_v29 = vld [vmem:[%s5406_s6 + $0x7f8] sm:$0xff] }
 0x435   : > { %3677 = vmatmul.mubr.msk.bf16.gmra.mrb[24].mxu0 %vm4174_vm3, %v2952_v53 }
 0x436   : > { %3685 = vmatpush3.bf16.msra.mxu0 %v2037_v14  ;;  %3696 = vmatprep.mubr.bf16.mxu0 %v2031_v44  ;;  %v2968_v44 = vld [vmem:[%s5406_s6 + $0x6f0] sm:$0xff]  ;;  %v2981_v14 = vld [vmem:[%s5406_s6 + $0x758] sm:$0xff] }
 0x437   : > { %3686 = vmatprep.subr.bf16.mxu0 %v2038_v18  ;;  %v2042_v42 = vpack.c.bf16 %v2969_v52, %v2968_v44  ;;  %v2143_v10 = vpack.c.bf16 %v2981_v14, %v2980_v2  ;;  %v3003_v44 = vld [vmem:[%s5406_s6 + $0x7a8] sm:$0xff]  ;;  %v3037_v2 = vld [vmem:[%s5406_s6 + $0x818] sm:$0xff] }
 0x43a   : > { %3687 = vmatpush3.bf16.msra.mxu0 %v2038_v18  ;;  %v2984_v18 = vld [vmem:[%s5406_s6 + $0x770] sm:$0xff] }
 0x43b   : > { %3688 = vmatprep.subr.bf16.mxu0 %v2039_v16  ;;  %v2145_v28 = vpack.c.bf16 %v2985_v9, %v2984_v18  ;;  %v3041_v18 = vld [vmem:[%s5406_s6 + $0x838] sm:$0xff]  ;;  %v3044_v9 = vld [vmem:[%s5406_s6 + $0x850] sm:$0xff] }
 0x43e   : > { %3689 = vmatpush3.bf16.msra.mxu0 %v2039_v16  ;;  %v2998_v16 = vld [vmem:[%s5406_s6 + $0x780] sm:$0xff] }
 0x43f   : > { %3690 = vmatprep.subr.bf16.mxu0 %v2040_v7  ;;  %v2235_v6 = vpack.c.bf16 %v2999_v25, %v2998_v16  ;;  %v3048_v25 = vld [vmem:[%s5406_s6 + $0x870] sm:$0xff] }
 0x442   : > { %3691 = vmatpush3.bf16.msra.mxu0 %v2040_v7  ;;  %v3000_v7 = vld [vmem:[%s5406_s6 + $0x790] sm:$0xff] }
 0x443   : > { %3692 = vmatprep.subr.bf16.mxu0 %v2041_v60  ;;  %v2236_v30 = vpack.c.bf16 %v3001_v21, %v3000_v7  ;;  %v3050_v21 = vld [vmem:[%s5406_s6 + $0x880] sm:$0xff] }
 0x446   : > { %3693 = vmatpush3.bf16.msra.mxu0 %v2041_v60  ;;  %v3002_v60 = vld [vmem:[%s5406_s6 + $0x7a0] sm:$0xff] }
 0x447   : > { %3694 = vmatprep.subr.bf16.mxu0 %v2042_v42  ;;  %v2237_v52 = vpack.c.bf16 %v3003_v44, %v3002_v60  ;;  %v3052_v44 = vld [vmem:[%s5406_s6 + $0x890] sm:$0xff] }
 0x44a   : > { %3695 = vmatpush3.bf16.msra.mxu0 %v2042_v42  ;;  %v3004_v42 = vld [vmem:[%s5406_s6 + $0x7b0] sm:$0xff] }
 0x44b   : > { %3704 = vmatprep.subr.bf16.mxu0 %v2138_v26 }
 0x44d   : > { %3697 = vmatmul.mubr.bf16.vlgmr.msra.gmra.mrb[8].mxu0 %v2032_v5  ;;  %v2978_v5 = vld [vmem:[%s5406_s6 + $0x740] sm:$0xff] }
 0x44e   : > { %3700 = vmatprep.mubr.bf16.mxu0 %v2033_v3  ;;  %3705 = vmatpush3.bf16.msra.mxu0 %v2138_v26  ;;  %v2142_v3 = vpack.c.bf16 %v2979_v23, %v2978_v5  ;;  %v3007_v26 = vld [vmem:[%s5406_s6 + $0x7c8] sm:$0xff] }
 0x44f   : > { %3706 = vmatprep.subr.bf16.mxu0 %v2139_v35  ;;  %v3035_v5 = vld [vmem:[%s5406_s6 + $0x808] sm:$0xff] }
 0x452   : > { %3707 = vmatpush3.bf16.msra.mxu0 %v2139_v35  ;;  %v3009_v35 = vld [vmem:[%s5406_s6 + $0x7d8] sm:$0xff] }
 0x453   : > { %3708 = vmatprep.subr.bf16.mxu0 %v2140_v59  ;;  %v2240_v57 = vpack.c.bf16 %v3009_v35, %v3008_v40  ;;  %v3056_v35 = vld [vmem:[%s5406_s6 + $0x8b0] sm:$0xff] }
 0x455   : > { %3701 = vmatmul.mubr.bf16.gmra.mrb[28].mxu0 %v2034_v49  ;;  %v2242_v49 = vpack.c.bf16 %v3013_v29, %v3012_v34  ;;  %v3064_v29 = vld [vmem:[%s5406_s6 + $0x8f0] sm:$0xff] }
 0x456   : > { %3709 = vmatpush3.bf16.msra.mxu0 %v2140_v59  ;;  %3720 = vmatprep.mubr.msk.bf16.mxu0 %vm4257_vm5, %v4879_v48  ;;  %v2983_v48 = vld [vmem:[%s5406_s6 + $0x768] sm:$0xff] }
 0x457   : > { %3710 = vmatprep.subr.bf16.mxu0 %v2141_v58  ;;  %v2144_v53 = vpack.c.bf16 %v2983_v48, %v2982_v50  ;;  %v3039_v50 = vld [vmem:[%s5406_s6 + $0x828] sm:$0xff] }
 0x45a   : > { %3711 = vmatpush3.bf16.msra.mxu0 %v2141_v58  ;;  %v3034_v58 = vld [vmem:[%s5406_s6 + $0x800] sm:$0xff] }
 0x45b   : > { %3712 = vmatprep.subr.bf16.mxu0 %v2142_v3  ;;  %v2332_v23 = vpack.c.bf16 %v3035_v5, %v3034_v58 }
 0x45e   : > { %3713 = vmatpush3.bf16.msra.mxu0 %v2142_v3  ;;  %v3036_v3 = vld [vmem:[%s5406_s6 + $0x810] sm:$0xff] }
 0x45f   : > { %3714 = vmatprep.subr.bf16.mxu0 %v2143_v10  ;;  %v2333_v14 = vpack.c.bf16 %v3037_v2, %v3036_v3 }
 0x462   : > { %3715 = vmatpush3.bf16.msra.mxu0 %v2143_v10  ;;  %v3038_v10 = vld [vmem:[%s5406_s6 + $0x820] sm:$0xff] }
 0x463   : > { %3716 = vmatprep.subr.bf16.mxu0 %v2144_v53  ;;  %v2334_v48 = vpack.c.bf16 %v3039_v50, %v3038_v10 }
 0x466   : > { %3717 = vmatpush3.bf16.msra.mxu0 %v2144_v53  ;;  %v3040_v53 = vld [vmem:[%s5406_s6 + $0x830] sm:$0xff] }
 0x467   : > { %3718 = vmatprep.subr.bf16.mxu0 %v2145_v28 }
 0x46a   : > { %3719 = vmatpush3.bf16.msra.mxu0 %v2145_v28  ;;  %v3045_v28 = vld [vmem:[%s5406_s6 + $0x858] sm:$0xff] }
 0x46b   : > { %3728 = vmatprep.subr.bf16.mxu0 %v2235_v6  ;;  %v2337_v16 = vpack.c.bf16 %v3045_v28, %v3044_v9 }
 0x46d   : > { %3721 = vmatmul.mubr.msk.bf16.vlgmr.msra.gmra.mrb[8].mxu0 %vm4257_vm5, %v4862_v38  ;;  %v2238_v38 = vpack.c.bf16 %v3005_v54, %v3004_v42 }
 0x46e   : > { %3724 = vmatprep.mubr.msk.bf16.mxu0 %vm4257_vm5, %v4935_v33  ;;  %3729 = vmatpush3.bf16.msra.mxu0 %v2235_v6  ;;  %v3006_v33 = vld [vmem:[%s5406_s6 + $0x7c0] sm:$0xff]  ;;  %v3049_v6 = vld [vmem:[%s5406_s6 + $0x878] sm:$0xff] }
 0x46f   : > { %3730 = vmatprep.subr.bf16.mxu0 %v2236_v30  ;;  %v2239_v31 = vpack.c.bf16 %v3007_v26, %v3006_v33  ;;  %v2339_v7 = vpack.c.bf16 %v3049_v6, %v3048_v25  ;;  %v3054_v33 = vld [vmem:[%s5406_s6 + $0x8a0] sm:$0xff]  ;;  %v3055_v26 = vld [vmem:[%s5406_s6 + $0x8a8] sm:$0xff] }
 0x470   : > { %v2431_v40 = vpack.c.bf16 %v3055_v26, %v3054_v33 }
 0x472   : > { %3731 = vmatpush3.bf16.msra.mxu0 %v2236_v30  ;;  %v3051_v30 = vld [vmem:[%s5406_s6 + $0x888] sm:$0xff] }
 0x473   : > { %3732 = vmatprep.subr.bf16.mxu0 %v2237_v52  ;;  %v2429_v60 = vpack.c.bf16 %v3051_v30, %v3050_v21 }
 0x475   : > { %3725 = vmatmul.mubr.msk.bf16.gmra.mrb[32].mxu0 %vm4257_vm5, %v2996_v43 }
 0x476   : > { %3733 = vmatpush3.bf16.msra.mxu0 %v2237_v52  ;;  %3744 = vmatprep.mubr.msk.bf16.mxu0 %vm4174_vm3, %v4857_v20  ;;  %v3011_v20 = vld [vmem:[%s5406_s6 + $0x7e8] sm:$0xff]  ;;  %v3053_v52 = vld [vmem:[%s5406_s6 + $0x898] sm:$0xff] }
 0x477   : > { %3734 = vmatprep.subr.bf16.mxu0 %v2238_v38  ;;  %v2241_v59 = vpack.c.bf16 %v3011_v20, %v3010_v39  ;;  %v2430_v43 = vpack.c.bf16 %v3053_v52, %v3052_v44  ;;  %v3061_v20 = vld [vmem:[%s5406_s6 + $0x8d8] sm:$0xff] }
 0x47a   : > { %3735 = vmatpush3.bf16.msra.mxu0 %v2238_v38 }
 0x47b   : > { %3736 = vmatprep.subr.bf16.mxu0 %v2239_v31 }
 0x47e   : > { %3737 = vmatpush3.bf16.msra.mxu0 %v2239_v31 }
 0x47f   : > { %3738 = vmatprep.subr.bf16.mxu0 %v2240_v57 }
 0x482   : > { %3739 = vmatpush3.bf16.msra.mxu0 %v2240_v57  ;;  %v3057_v57 = vld [vmem:[%s5406_s6 + $0x8b8] sm:$0xff] }
 0x483   : > { %3740 = vmatprep.subr.bf16.mxu0 %v2241_v59  ;;  %v2432_v39 = vpack.c.bf16 %v3057_v57, %v3056_v35 }
 0x486   : > { %3741 = vmatpush3.bf16.msra.mxu0 %v2241_v59 }
 0x487   : > { %3742 = vmatprep.subr.bf16.mxu0 %v2242_v49 }
 0x48a   : > { %3743 = vmatpush3.bf16.msra.mxu0 %v2242_v49  ;;  %v3065_v49 = vld [vmem:[%s5406_s6 + $0x8f8] sm:$0xff] }
 0x48b   : > { %3752 = vmatprep.subr.bf16.mxu0 %v2332_v23  ;;  %v2436_v58 = vpack.c.bf16 %v3065_v49, %v3064_v29 }
 0x48d   : > { %3745 = vmatmul.mubr.msk.bf16.vlgmr.msra.gmra.mrb[8].mxu0 %vm4174_vm3, %v4906_v61  ;;  %v2335_v61 = vpack.c.bf16 %v3041_v18, %v3040_v53 }
 0x48e   : > { %3748 = vmatprep.mubr.msk.bf16.mxu0 %vm4174_vm3, %v3027_v45  ;;  %3753 = vmatpush3.bf16.msra.mxu0 %v2332_v23  ;;  %v2336_v45 = vpack.c.bf16 %v3043_v17, %v3042_v51 }
 0x48f   : > { %3754 = vmatprep.subr.bf16.mxu0 %v2333_v14 }
 0x492   : > { %3755 = vmatpush3.bf16.msra.mxu0 %v2333_v14 }
 0x493   : > { %3756 = vmatprep.subr.bf16.mxu0 %v2334_v48 }
 0x495   : > { %3749 = vmatmul.mubr.msk.bf16.gmra.mrb[36].mxu0 %vm4174_vm3, %v4568_v32  ;;  %v3047_v32 = vld [vmem:[%s5406_s6 + $0x868] sm:$0xff] }
 0x496   : > { %3757 = vmatpush3.bf16.msra.mxu0 %v2334_v48  ;;  %3768 = vmatprep.mubr.bf16.mxu0 %v4845_v11  ;;  %v2338_v11 = vpack.c.bf16 %v3047_v32, %v3046_v37 }
 0x497   : > { %3758 = vmatprep.subr.bf16.mxu0 %v2335_v61 }
 0x49a   : > { %3759 = vmatpush3.bf16.msra.mxu0 %v2335_v61 }
 0x49b   : > { %3760 = vmatprep.subr.bf16.mxu0 %v2336_v45 }
 0x49e   : > { %3761 = vmatpush3.bf16.msra.mxu0 %v2336_v45 }
 0x49f   : > { %3762 = vmatprep.subr.bf16.mxu0 %v2337_v16 }
 0x4a2   : > { %3763 = vmatpush3.bf16.msra.mxu0 %v2337_v16 }
 0x4a3   : > { %3764 = vmatprep.subr.bf16.mxu0 %v2338_v11 }
 0x4a6   : > { %3765 = vmatpush3.bf16.msra.mxu0 %v2338_v11 }
 0x4a7   : > { %3766 = vmatprep.subr.bf16.mxu0 %v2339_v7 }
 0x4aa   : > { %3767 = vmatpush3.bf16.msra.mxu0 %v2339_v7  ;;  %v3606_v42 = vpop.f32.mrb[12].mxu0 }
 0x4ab   : > { %v1714_v54 = vpop.f32.mrb[13].mxu0  ;;  %3776 = vmatprep.subr.bf16.mxu0 %v2429_v60 }
 0x4ac   : > { %v3607_v38 = vpop.f32.mrb[14].mxu0 }
 0x4ad   : > { %3769 = vmatmul.mubr.bf16.vlgmr.msra.gmra.mrb[8].mxu0 %v4889_v22  ;;  %v1717_v31 = vpop.f32.mrb[15].mxu0  ;;  %v3058_v22 = vld [vmem:[%s5406_s6 + $0x8c0] sm:$0xff] }
 0x4ae   : > { %3772 = vmatprep.mubr.bf16.mxu0 %v2331_v4  ;;  %3777 = vmatpush3.bf16.msra.mxu0 %v2429_v60  ;;  %v2433_v56 = vpack.c.bf16 %v3059_v41, %v3058_v22  ;;  %v3060_v4 = vld [vmem:[%s5406_s6 + $0x8d0] sm:$0xff] }
 0x4af   : > { %3778 = vmatprep.subr.bf16.mxu0 %v2430_v43  ;;  %v2434_v59 = vpack.c.bf16 %v3061_v20, %v3060_v4 }
 0x4b2   : > { %3779 = vmatpush3.bf16.msra.mxu0 %v2430_v43 }
 0x4b3   : > { %3780 = vmatprep.subr.bf16.mxu0 %v2431_v40 }
 0x4b5   : > { %3773 = vmatmul.mubr.bf16.gmra.mrb[40].mxu0 %v3890_v24  ;;  %v3062_v24 = vld [vmem:[%s5406_s6 + $0x8e0] sm:$0xff] }
 0x4b6   : > { %3781 = vmatpush3.bf16.msra.mxu0 %v2431_v40  ;;  %3792 = vmatprep.mubr.msk.bf16.mxu0 %vm4257_vm5, %v4859_v12  ;;  %v3063_v12 = vld [vmem:[%s5406_s6 + $0x8e8] sm:$0xff] }
 0x4b7   : > { %3782 = vmatprep.subr.bf16.mxu0 %v2432_v39  ;;  %v2435_v34 = vpack.c.bf16 %v3063_v12, %v3062_v24 }
 0x4ba   : > { %3783 = vmatpush3.bf16.msra.mxu0 %v2432_v39 }
 0x4bb   : > { %3784 = vmatprep.subr.bf16.mxu0 %v2433_v56 }
 0x4be   : > { %3785 = vmatpush3.bf16.msra.mxu0 %v2433_v56 }
 0x4bf   : > { %3786 = vmatprep.subr.bf16.mxu0 %v2434_v59 }
 0x4c2   : > { %3787 = vmatpush3.bf16.msra.mxu0 %v2434_v59 }
 0x4c3   : > { %3788 = vmatprep.subr.bf16.mxu0 %v2435_v34 }
 0x4c6   : > { %3789 = vmatpush3.bf16.msra.mxu0 %v2435_v34 }
 0x4c7   : > { %3790 = vmatprep.subr.bf16.mxu0 %v2436_v58 }
 0x4c8   : > { %v3630_v5 = vpop.f32.mrb[16].mxu0 }
 0x4c9   : > { %v1787_v23 = vadd.f32 %v3630_v5, %v3606_v42  ;;  %v1778_v3 = vpop.f32.mrb[17].mxu0 }
 0x4ca   : > { %v1779_v2 = vadd.f32 %v1778_v3, %v1714_v54  ;;  %v3631_v14 = vpop.f32.mrb[18].mxu0  ;;  %3791 = vmatpush3.bf16.msra.mxu0 %v2436_v58 }
 0x4cb   : > { %v1781_v10 = vpop.f32.mrb[19].mxu0 }
 0x4cc   : > { %v1782_v50 = vadd.f32 %v1781_v10, %v1717_v31 }
 0x4cd   : > { %3793 = vmatmul.mubr.msk.bf16.vlgmr.msra.gmra.mrb[8].mxu0 %vm4257_vm5, %v4911_v63 }
 0x4ce   : > { %3796 = vmatprep.mubr.msk.bf16.mxu0 %vm4257_vm5, %v3073_v13 }
 0x4d5   : > { %3797 = vmatmul.mubr.msk.bf16.gmra.mrb[44].mxu0 %vm4257_vm5, %v4664_v15 }
 0x4e8   : > { %v3654_v48 = vpop.f32.mrb[20].mxu0 }
 0x4e9   : > { %v1909_v53 = vadd.f32 %v3654_v48, %v1787_v23  ;;  %v1889_v18 = vpop.f32.mrb[21].mxu0 }
 0x4ea   : > { %v1907_v61 = vadd.f32 %v1889_v18, %v1779_v2  ;;  %v3655_v51 = vpop.f32.mrb[22].mxu0 }
 0x4eb   : > { %v1892_v17 = vpop.f32.mrb[23].mxu0 }
 0x4ec   : > { %v1908_v45 = vadd.f32 %v1892_v17, %v1782_v50 }
 0x508   : > { %v3678_v9 = vpop.f32.mrb[24].mxu0 }
 0x509   : > { %v2013_v28 = vadd.f32 %v3678_v9, %v1909_v53  ;;  %v1993_v63 = vpop.f32.mrb[25].mxu0 }
 0x50a   : > { %v2011_v16 = vadd.f32 %v1993_v63, %v1907_v61  ;;  %v3679_v37 = vpop.f32.mrb[26].mxu0 }
 0x50b   : > { %v1996_v0 = vpop.f32.mrb[27].mxu0 }
 0x50c   : > { %v2012_v47 = vadd.f32 %v1996_v0, %v1908_v45 }
 0x528   : > { %v3702_v32 = vpop.f32.mrb[28].mxu0 }
 0x529   : > { %v2113_v13 = vadd.f32 %v3702_v32, %v2013_v28  ;;  %v2093_v11 = vpop.f32.mrb[29].mxu0 }
 0x52a   : > { %v2111_v25 = vadd.f32 %v2093_v11, %v2011_v16  ;;  %v3703_v27 = vpop.f32.mrb[30].mxu0 }
 0x52b   : > { %v2096_v15 = vpop.f32.mrb[31].mxu0 }
 0x52c   : > { %v2112_v6 = vadd.f32 %v2096_v15, %v2012_v47 }
 0x548   : > { %v3726_v7 = vpop.f32.mrb[32].mxu0 }
 0x549   : > { %v2216_v21 = vadd.f32 %v3726_v7, %v2113_v13  ;;  %v2196_v30 = vpop.f32.mrb[33].mxu0 }
 0x54a   : > { %v2214_v60 = vadd.f32 %v2196_v30, %v2111_v25  ;;  %v3727_v44 = vpop.f32.mrb[34].mxu0 }
 0x54b   : > { %v2199_v52 = vpop.f32.mrb[35].mxu0 }
 0x54c   : > { %v2215_v42 = vadd.f32 %v2199_v52, %v2112_v6 }
 0x568   : > { %v3750_v54 = vpop.f32.mrb[36].mxu0 }
 0x569   : > { %v2313_v43 = vadd.f32 %v3750_v54, %v2216_v21  ;;  %v2293_v38 = vpop.f32.mrb[37].mxu0 }
 0x56a   : > { %v2311_v33 = vadd.f32 %v2293_v38, %v2214_v60  ;;  %v3751_v26 = vpop.f32.mrb[38].mxu0 }
 0x56b   : > { %v2296_v31 = vpop.f32.mrb[39].mxu0 }
 0x56c   : > { %v2312_v40 = vadd.f32 %v2296_v31, %v2215_v42 }
 0x588   : > { %v3774_v35 = vpop.f32.mrb[40].mxu0 }
 0x589   : > { %v2410_v57 = vadd.f32 %v3774_v35, %v2313_v43  ;;  %v2390_v39 = vpop.f32.mrb[41].mxu0 }
 0x58a   : > { %v2408_v22 = vadd.f32 %v2390_v39, %v2311_v33  ;;  %v3775_v41 = vpop.f32.mrb[42].mxu0 }
 0x58b   : > { %v2393_v56 = vpop.f32.mrb[43].mxu0 }
 0x58c   : > { %v2409_v4 = vadd.f32 %v2393_v56, %v2312_v40 }
 0x5a0   : > { %v3794_v20 = vpop.f32.mrb[8].mxu0 }
 0x5a1   : > { %v2510_v59 = vadd.f32 %v3794_v20, %v4730_v62  ;;  %v2471_v24 = vpop.f32.mrb[9].mxu0 }
 0x5a2   : > { %v2508_v12 = vadd.f32 %v2471_v24, %v4733_v1  ;;  %v3795_v34 = vpop.f32.mrb[10].mxu0 }
 0x5a3   : > { %2517 = vst [vmem:[%s280_s23 + $0x10] sm:$0xff] %v2510_v59  ;;  %v2511_v29 = vadd.f32 %v3795_v34, %v4740_v8  ;;  %v2474_v49 = vpop.f32.mrb[11].mxu0 }
 0x5a4   : > { %2515 = vst [vmem:[%s280_s23] sm:$0xff] %v2508_v12  ;;  %v2509_v58 = vadd.f32 %v2474_v49, %v4744_v19 }
 0x5a5   : > { %2518 = vst [vmem:[%s280_s23 + $0x18] sm:$0xff] %v2511_v29 }
 0x5a6   : > { %2516 = vst [vmem:[%s280_s23 + $0x8] sm:$0xff] %v2509_v58 }
 0x5a8   : > { %v3798_v5 = vpop.f32.mrb[44].mxu0 }
 0x5a9   : > { %v2507_v23 = vadd.f32 %v3798_v5, %v2410_v57  ;;  %v2487_v3 = vpop.f32.mrb[45].mxu0 }
 0x5aa   : > { %v2505_v2 = vadd.f32 %v2487_v3, %v2408_v22  ;;  %v3799_v14 = vpop.f32.mrb[46].mxu0 }
 0x5ab   : > { %v2514_v62 = vadd.f32 %v2507_v23, %v4755_v46  ;;  %v2490_v10 = vpop.f32.mrb[47].mxu0 }
 0x5ac   : > { %v2512_v1 = vadd.f32 %v2505_v2, %v4758_v55  ;;  %v2506_v50 = vadd.f32 %v2490_v10, %v2409_v4 }
 0x5ad   : > { %2521 = vst [vmem:[%s280_s23 + $0x30] sm:$0xff] %v2514_v62 }
 0x5ae   : > { %2519 = vst [vmem:[%s280_s23 + $0x20] sm:$0xff] %v2512_v1  ;;  %v2513_v8 = vadd.f32 %v2506_v50, %v4763_v36 }
 0x5b0   : > { %2520 = vst [vmem:[%s280_s23 + $0x28] sm:$0xff] %v2513_v8 }
 0x5b1 PF: > { %s17_s24 = sadd.s32 1, %s3887_s24  }
 0x5b2   : > { %p14_p4 = scmp.ge.s32.totalorder %s17_s24, 4  }
 0x5b4   :  { %16 = sbr.rel (!%p14_p4) target bundleno = 1 (0x1), region = 100 }

</bundles_post_ra>
